<compile_context>
chip_gen: v6e
topology: v6e:2x2x1
jax: 0.10.0
libtpu: 0.0.40
codegen_flags: <defaults>
</compile_context>

<pallas_src>
import re

import jax
import jax.numpy as jnp
from jax import lax
from jax.experimental import pallas as pl
from jax.experimental.pallas import tpu as pltpu

# ---- module hyper-parameters (from Attention.__init__) ----------------------
DIM      = 4                      # input channels `dim`
HEADS    = 4
DIM_HEAD = 32
HIDDEN   = HEADS * DIM_HEAD       # 128
SCALE    = DIM_HEAD ** (-0.5)

# ---- small problem sizes for the demo ---------------------------------------
B, H, W = 2, 16, 16
N = H * W                         # 256 spatial positions


def _tpu_generation() -> int:
    """Best-effort TPU generation number (5, 6, 7, ...); 0 if unknown."""
    try:
        kind = jax.devices()[0].device_kind
    except Exception:
        return 0
    m = re.search(r"(\d+)", kind)
    return int(m.group(1)) if m else 0


def make_attention_kernel(n_local_batches, n, exp_dtype, qkv_conv_dtype):
    """Builds the kernel for a block holding `n_local_batches` batches of n lanes.

    Refs:
      x_ref    : (C, L)          L = n_local_batches * n, spatial-on-lanes
      wqkv_ref : (C, 3*HIDDEN)   to_qkv weight, lane-dense, SCALE folded into Q cols
      wout_ref : (C, HIDDEN)     to_out weight
      bout_ref : (C, 1)          to_out bias
      o_ref    : (C, L)          output
      hcat_ref : (HIDDEN, L)     bf16 VMEM scratch holding concatenated head outputs
    """
    mxu_dtype = jnp.bfloat16

    def kernel(x_ref, wqkv_ref, wout_ref, bout_ref, o_ref, hcat_ref):
        # QKV 1x1 conv as a single matmul over all L lanes, contracting channels:
        #   qkv[o, l] = sum_c wqkv[c, o] * x[c, l]            -> (3*HIDDEN, L)
        x = x_ref[...].astype(qkv_conv_dtype)
        wqkv = wqkv_ref[...].astype(qkv_conv_dtype)
        qkv = lax.dot_general(wqkv, x, (((0,), (0,)), ((), ())),
                              preferred_element_type=jnp.float32)
        # Hoisted: one contiguous f32->bf16 pack instead of 12 per-slice casts.
        qkv_m = qkv.astype(mxu_dtype)

        for b in range(n_local_batches):
            col = slice(b * n, (b + 1) * n)          # static, lane-tile aligned (n % 128 == 0)
            for h in range(HEADS):
                q = qkv_m[h * DIM_HEAD:(h + 1) * DIM_HEAD, col]                            # (DH, n)
                k = qkv_m[HIDDEN + h * DIM_HEAD:HIDDEN + (h + 1) * DIM_HEAD, col]
                v = qkv_m[2 * HIDDEN + h * DIM_HEAD:2 * HIDDEN + (h + 1) * DIM_HEAD, col]

                # sim_t[j, i] = sum_d k[d, j] * q[d, i]; softmax runs over j (axis 0).
                sim_t = lax.dot_general(k, q, (((0,), (0,)), ((), ())),
                                        preferred_element_type=jnp.float32)                # (n, n)
                sim_t = sim_t - jnp.max(sim_t, axis=0, keepdims=True)

                # exp in exp_dtype (bf16 on v6e/v7x, f32 on v5e); row-sum and
                # reciprocal stay f32 per review correctness note.
                p = jnp.exp(sim_t.astype(exp_dtype))
                row_sum = jnp.sum(p.astype(jnp.float32), axis=0, keepdims=True)            # (1, n) f32
                inv_l = pl.reciprocal(row_sum, approx=True)

                # out_t[d, i] = sum_j v[d, j] * p[j, i]  (standard MXU orientation)
                out_t = jnp.dot(v, p.astype(mxu_dtype),
                                preferred_element_type=jnp.float32)                        # (DH, n)

                # Deferred softmax normalization, written straight into the
                # persistent bf16 scratch (h*32 rows: 8-sublane aligned slice).
                hcat_ref[h * DIM_HEAD:(h + 1) * DIM_HEAD, col] = \
                    (out_t * inv_l).astype(mxu_dtype)

        # Output 1x1 conv: ONE K=HIDDEN matmul into a lane-dense (C, L) result, + bias.
        y = jnp.dot(wout_ref[...].astype(mxu_dtype), hcat_ref[...],
                    preferred_element_type=jnp.float32)                                    # (C, L)
        o_ref[...] = (y + bout_ref[...]).astype(o_ref.dtype)

    return kernel


def attention_pallas(x_nchw, w_qkv, w_out, b_out):
    """x_nchw: (B, C, H, W) float32 -> (B, C, H, W) float32."""
    b, c, h, w = x_nchw.shape
    n = h * w

    gen = _tpu_generation()
    use_bf16_math = gen >= 6     # v6e/v7x: bf16 EUP exp + bf16 operands for the K=4 QKV conv
    multi_core = gen >= 7        # v7x: 2 TensorCores per chip -> keep grid=(B,)

    exp_dtype = jnp.bfloat16 if use_bf16_math else jnp.float32
    qkv_conv_dtype = jnp.bfloat16 if use_bf16_math else jnp.float32

    # Lane-dense weights; fold the softmax scale into the Q rows at trace time.
    wqkv2d = w_qkv.reshape(3 * HIDDEN, c)                                     # (3*HID, C)
    row_scale = jnp.concatenate([jnp.full((HIDDEN,), SCALE, jnp.float32),
                                 jnp.ones((2 * HIDDEN,), jnp.float32)])
    wqkv_t = (wqkv2d * row_scale[:, None]).T                                  # (C, 3*HID)
    wout2d = w_out.reshape(c, HIDDEN)                                         # (C, HID)
    bout2d = b_out.reshape(c, 1)                                              # (C, 1)

    if multi_core:
        # v7x: one batch per grid step, batch axis shards across the two TensorCores.
        # Note: if xprof shows both batches landing on one TC, switch this axis to
        # pltpu.CORE_PARALLEL (plain "parallel" may not change core assignment).
        kernel = make_attention_kernel(1, n, exp_dtype, qkv_conv_dtype)
        x_flat = x_nchw.reshape(b, c, n)                                      # natural NCHW flatten
        out_flat = pl.pallas_call(
            kernel,
            out_shape=jax.ShapeDtypeStruct((b, c, n), x_nchw.dtype),
            grid_spec=pltpu.PrefetchScalarGridSpec(
                num_scalar_prefetch=0,
                grid=(b,),
                in_specs=[
                    pl.BlockSpec((None, c, n), lambda i: (i, 0, 0)),      # x        (per batch)
                    pl.BlockSpec((c, 3 * HIDDEN), lambda i: (0, 0)),      # W_qkv^T  (resident)
                    pl.BlockSpec((c, HIDDEN), lambda i: (0, 0)),          # W_out    (resident)
                    pl.BlockSpec((c, 1), lambda i: (0, 0)),               # b_out    (resident)
                ],
                out_specs=pl.BlockSpec((None, c, n), lambda i: (i, 0, 0)),
                scratch_shapes=[pltpu.VMEM((HIDDEN, n), jnp.bfloat16)],   # head-concat scratch
            ),
            compiler_params=pltpu.CompilerParams(
                dimension_semantics=("parallel",)),
        )(x_flat, wqkv_t, wout2d, bout2d)
        return out_flat.reshape(b, c, h, w)

    # Single-TC chips (v5e / v6e / unknown): collapse the batch grid into one step.
    # x presented as (C, B*N) -- tiny wrapper transpose; both 1x1 convs run once
    # over B*N lanes, attention loops over batches inside the kernel.
    kernel = make_attention_kernel(b, n, exp_dtype, qkv_conv_dtype)
    x_cbn = jnp.transpose(x_nchw.reshape(b, c, n), (1, 0, 2)).reshape(c, b * n)
    out_cbn = pl.pallas_call(
        kernel,
        out_shape=jax.ShapeDtypeStruct((c, b * n), x_nchw.dtype),
        grid_spec=pltpu.PrefetchScalarGridSpec(
            num_scalar_prefetch=0,
            grid=(1,),
            in_specs=[
                pl.BlockSpec((c, b * n), lambda i: (0, 0)),               # x (all batches)
                pl.BlockSpec((c, 3 * HIDDEN), lambda i: (0, 0)),          # W_qkv^T
                pl.BlockSpec((c, HIDDEN), lambda i: (0, 0)),              # W_out
                pl.BlockSpec((c, 1), lambda i: (0, 0)),                   # b_out
            ],
            out_specs=pl.BlockSpec((c, b * n), lambda i: (0, 0)),
            scratch_shapes=[pltpu.VMEM((HIDDEN, b * n), jnp.bfloat16)],   # head-concat scratch
        ),
        compiler_params=pltpu.CompilerParams(
            dimension_semantics=("arbitrary",)),
    )(x_cbn, wqkv_t, wout2d, bout2d)
    out = jnp.transpose(out_cbn.reshape(c, b, n), (1, 0, 2))
    return out.reshape(b, c, h, w)


def attention_reference(x_nchw, w_qkv, w_out, b_out):
    """Plain-JAX f32 reference mirroring the PyTorch forward exactly."""
    b, c, h, w = x_nchw.shape
    n = h * w
    x_flat = jnp.transpose(x_nchw.reshape(b, c, n), (0, 2, 1))        # (B, N, C)
    qkv = jnp.einsum('bnc,oc->bno', x_flat, w_qkv.reshape(3 * HIDDEN, c))
    q, k, v = jnp.split(qkv, 3, axis=-1)                              # each (B, N, HID)

    def split_heads(t):   # (B, N, HID) -> (B, heads, N, DH)
        return jnp.transpose(t.reshape(b, n, HEADS, DIM_HEAD), (0, 2, 1, 3))

    q, k, v = map(split_heads, (q, k, v))
    q = q * SCALE
    sim = jnp.einsum('bhid,bhjd->bhij', q, k)
    sim = sim - jnp.max(sim, axis=-1, keepdims=True)
    attn = jax.nn.softmax(sim, axis=-1)
    out = jnp.einsum('bhij,bhjd->bhid', attn, v)                      # (B, heads, N, DH)
    out = jnp.transpose(out, (0, 2, 1, 3)).reshape(b, n, HIDDEN)      # c = h*DH + d
    y = jnp.einsum('bnh,ch->bnc', out, w_out.reshape(c, HIDDEN)) + b_out[None, None, :]
    return jnp.transpose(y, (0, 2, 1)).reshape(b, c, h, w)


if __name__ == "__main__":
    key = jax.random.PRNGKey(0)
    k_x, k_qkv, k_out, k_b = jax.random.split(key, 4)

    # Deterministic synthetic parameters (Conv2d weight shapes from __init__).
    x = jax.random.normal(k_x, (B, DIM, H, W), dtype=jnp.float32)
    w_qkv = jax.random.normal(k_qkv, (3 * HIDDEN, DIM, 1, 1), dtype=jnp.float32) * 0.1
    w_out = jax.random.normal(k_out, (DIM, HIDDEN, 1, 1), dtype=jnp.float32) * 0.1
    b_out = jax.random.normal(k_b, (DIM,), dtype=jnp.float32) * 0.1

    y = attention_pallas(x, w_qkv, w_out, b_out)
    jax.block_until_ready(y)

    y_ref = attention_reference(x, w_qkv, w_out, b_out)
    assert y.shape == (B, DIM, H, W)
    # bf16 MXU operands (+ bf16 exp on v6e/v7x) + approx EUP reciprocal
    # -> compare at bf16-level tolerance.
    assert jnp.allclose(y, y_ref, rtol=2e-2, atol=2e-2), "mismatch vs reference"

    print("KERNEL_OK")
</pallas_src>

<mosaic_0001>
module attributes {stable_mosaic.version = 11 : i64} {
  func.func @kernel(%arg0: i32, %arg1: memref<4x512xf32, #tpu.memory_space<vmem>>, %arg2: memref<4x384xf32, #tpu.memory_space<vmem>>, %arg3: memref<4x128xf32, #tpu.memory_space<vmem>>, %arg4: memref<4x1xf32, #tpu.memory_space<vmem>>, %arg5: memref<4x512xf32, #tpu.memory_space<vmem>>, %arg6: memref<128x512xbf16, #tpu.memory_space<vmem>>) attributes {dimension_semantics = [#tpu.dimension_semantics<arbitrary>], iteration_bounds = array<i64: 1>, scalar_prefetch = 0 : i64, scratch_operands = 1 : i64, tpu.core_type = #tpu.core_type<tc>, window_params = [{pipeline_mode = #tpu.pipeline_mode<synchronous>, transform_indices = @transform_0, window_bounds = array<i64: 4, 512>}, {pipeline_mode = #tpu.pipeline_mode<synchronous>, transform_indices = @transform_1, window_bounds = array<i64: 4, 384>}, {pipeline_mode = #tpu.pipeline_mode<synchronous>, transform_indices = @transform_2, window_bounds = array<i64: 4, 128>}, {pipeline_mode = #tpu.pipeline_mode<synchronous>, transform_indices = @transform_3, window_bounds = array<i64: 4, 1>}, {pipeline_mode = #tpu.pipeline_mode<synchronous>, transform_indices = @transform_4, window_bounds = array<i64: 4, 512>}]} {
    %c0 = arith.constant 0 : index
    %c0_0 = arith.constant 0 : index
    %0 = vector.load %arg1[%c0, %c0_0] : memref<4x512xf32, #tpu.memory_space<vmem>>, vector<4x512xf32>
    %c0_1 = arith.constant 0 : index
    %c0_2 = arith.constant 0 : index
    %1 = vector.load %arg2[%c0_1, %c0_2] : memref<4x384xf32, #tpu.memory_space<vmem>>, vector<4x384xf32>
    %cst = arith.constant dense<0.000000e+00> : vector<384x512xf32>
    %2 = tpu.matmul %1, %0, %cst {dimension_numbers = #tpu.dot_dimension_numbers<[0], [0], [1], [1], [0, 1, 1, 1], [], []>} : vector<4x384xf32>, vector<4x512xf32>, vector<384x512xf32> -> vector<384x512xf32>
    %3 = arith.truncf %2 : vector<384x512xf32> to vector<384x512xbf16>
    %4 = vector.extract_strided_slice %3 {offsets = [0, 0], sizes = [32, 256], strides = [1, 1]} : vector<384x512xbf16> to vector<32x256xbf16>
    %5 = vector.extract_strided_slice %3 {offsets = [128, 0], sizes = [32, 256], strides = [1, 1]} : vector<384x512xbf16> to vector<32x256xbf16>
    %6 = vector.extract_strided_slice %3 {offsets = [256, 0], sizes = [32, 256], strides = [1, 1]} : vector<384x512xbf16> to vector<32x256xbf16>
    %cst_3 = arith.constant dense<0.000000e+00> : vector<256x256xf32>
    %7 = tpu.matmul %5, %4, %cst_3 {dimension_numbers = #tpu.dot_dimension_numbers<[0], [0], [1], [1], [0, 1, 1, 1], [], []>} : vector<32x256xbf16>, vector<32x256xbf16>, vector<256x256xf32> -> vector<256x256xf32>
    %cst_4 = arith.constant dense<0xFF800000> : vector<256xf32>
    %8 = vector.multi_reduction <maximumf>, %7, %cst_4 [0] : vector<256x256xf32> to vector<256xf32>
    %9 = vector.shape_cast %8 : vector<256xf32> to vector<1x256xf32>
    %10 = vector.broadcast %9 : vector<1x256xf32> to vector<256x256xf32>
    %11 = arith.subf %7, %10 : vector<256x256xf32>
    %12 = math.exp %11 : vector<256x256xf32>
    %cst_5 = arith.constant dense<0.000000e+00> : vector<256xf32>
    %13 = vector.multi_reduction <add>, %12, %cst_5 [0] : vector<256x256xf32> to vector<256xf32>
    %14 = vector.shape_cast %13 : vector<256xf32> to vector<1x256xf32>
    %15 = tpu.reciprocal %14 {approx = true} : vector<1x256xf32> -> vector<1x256xf32>
    %16 = arith.truncf %12 : vector<256x256xf32> to vector<256x256xbf16>
    %cst_6 = arith.constant dense<0.000000e+00> : vector<32x256xf32>
    %17 = tpu.matmul %6, %16, %cst_6 {dimension_numbers = #tpu.dot_dimension_numbers<[1], [0], [0], [1], [0, 0, 1, 1], [], []>} : vector<32x256xbf16>, vector<256x256xbf16>, vector<32x256xf32> -> vector<32x256xf32>
    %18 = vector.broadcast %15 : vector<1x256xf32> to vector<32x256xf32>
    %19 = arith.mulf %17, %18 : vector<32x256xf32>
    %20 = arith.truncf %19 : vector<32x256xf32> to vector<32x256xbf16>
    %c0_7 = arith.constant 0 : index
    %c0_8 = arith.constant 0 : index
    %21 = vector.load %arg6[%c0_7, %c0_8] : memref<128x512xbf16, #tpu.memory_space<vmem>>, vector<32x256xbf16>
    tpu.vector_store %arg6[%c0_7, %c0_8], %20 {strides = array<i32>} : memref<128x512xbf16, #tpu.memory_space<vmem>>, vector<32x256xbf16>,
    %22 = vector.extract_strided_slice %3 {offsets = [32, 0], sizes = [32, 256], strides = [1, 1]} : vector<384x512xbf16> to vector<32x256xbf16>
    %23 = vector.extract_strided_slice %3 {offsets = [160, 0], sizes = [32, 256], strides = [1, 1]} : vector<384x512xbf16> to vector<32x256xbf16>
    %24 = vector.extract_strided_slice %3 {offsets = [288, 0], sizes = [32, 256], strides = [1, 1]} : vector<384x512xbf16> to vector<32x256xbf16>
    %cst_9 = arith.constant dense<0.000000e+00> : vector<256x256xf32>
    %25 = tpu.matmul %23, %22, %cst_9 {dimension_numbers = #tpu.dot_dimension_numbers<[0], [0], [1], [1], [0, 1, 1, 1], [], []>} : vector<32x256xbf16>, vector<32x256xbf16>, vector<256x256xf32> -> vector<256x256xf32>
    %cst_10 = arith.constant dense<0xFF800000> : vector<256xf32>
    %26 = vector.multi_reduction <maximumf>, %25, %cst_10 [0] : vector<256x256xf32> to vector<256xf32>
    %27 = vector.shape_cast %26 : vector<256xf32> to vector<1x256xf32>
    %28 = vector.broadcast %27 : vector<1x256xf32> to vector<256x256xf32>
    %29 = arith.subf %25, %28 : vector<256x256xf32>
    %30 = math.exp %29 : vector<256x256xf32>
    %cst_11 = arith.constant dense<0.000000e+00> : vector<256xf32>
    %31 = vector.multi_reduction <add>, %30, %cst_11 [0] : vector<256x256xf32> to vector<256xf32>
    %32 = vector.shape_cast %31 : vector<256xf32> to vector<1x256xf32>
    %33 = tpu.reciprocal %32 {approx = true} : vector<1x256xf32> -> vector<1x256xf32>
    %34 = arith.truncf %30 : vector<256x256xf32> to vector<256x256xbf16>
    %cst_12 = arith.constant dense<0.000000e+00> : vector<32x256xf32>
    %35 = tpu.matmul %24, %34, %cst_12 {dimension_numbers = #tpu.dot_dimension_numbers<[1], [0], [0], [1], [0, 0, 1, 1], [], []>} : vector<32x256xbf16>, vector<256x256xbf16>, vector<32x256xf32> -> vector<32x256xf32>
    %36 = vector.broadcast %33 : vector<1x256xf32> to vector<32x256xf32>
    %37 = arith.mulf %35, %36 : vector<32x256xf32>
    %38 = arith.truncf %37 : vector<32x256xf32> to vector<32x256xbf16>
    %c32 = arith.constant 32 : index
    %c0_13 = arith.constant 0 : index
    %39 = vector.load %arg6[%c32, %c0_13] : memref<128x512xbf16, #tpu.memory_space<vmem>>, vector<32x256xbf16>
    tpu.vector_store %arg6[%c32, %c0_13], %38 {strides = array<i32>} : memref<128x512xbf16, #tpu.memory_space<vmem>>, vector<32x256xbf16>,
    %40 = vector.extract_strided_slice %3 {offsets = [64, 0], sizes = [32, 256], strides = [1, 1]} : vector<384x512xbf16> to vector<32x256xbf16>
    %41 = vector.extract_strided_slice %3 {offsets = [192, 0], sizes = [32, 256], strides = [1, 1]} : vector<384x512xbf16> to vector<32x256xbf16>
    %42 = vector.extract_strided_slice %3 {offsets = [320, 0], sizes = [32, 256], strides = [1, 1]} : vector<384x512xbf16> to vector<32x256xbf16>
    %cst_14 = arith.constant dense<0.000000e+00> : vector<256x256xf32>
    %43 = tpu.matmul %41, %40, %cst_14 {dimension_numbers = #tpu.dot_dimension_numbers<[0], [0], [1], [1], [0, 1, 1, 1], [], []>} : vector<32x256xbf16>, vector<32x256xbf16>, vector<256x256xf32> -> vector<256x256xf32>
    %cst_15 = arith.constant dense<0xFF800000> : vector<256xf32>
    %44 = vector.multi_reduction <maximumf>, %43, %cst_15 [0] : vector<256x256xf32> to vector<256xf32>
    %45 = vector.shape_cast %44 : vector<256xf32> to vector<1x256xf32>
    %46 = vector.broadcast %45 : vector<1x256xf32> to vector<256x256xf32>
    %47 = arith.subf %43, %46 : vector<256x256xf32>
    %48 = math.exp %47 : vector<256x256xf32>
    %cst_16 = arith.constant dense<0.000000e+00> : vector<256xf32>
    %49 = vector.multi_reduction <add>, %48, %cst_16 [0] : vector<256x256xf32> to vector<256xf32>
    %50 = vector.shape_cast %49 : vector<256xf32> to vector<1x256xf32>
    %51 = tpu.reciprocal %50 {approx = true} : vector<1x256xf32> -> vector<1x256xf32>
    %52 = arith.truncf %48 : vector<256x256xf32> to vector<256x256xbf16>
    %cst_17 = arith.constant dense<0.000000e+00> : vector<32x256xf32>
    %53 = tpu.matmul %42, %52, %cst_17 {dimension_numbers = #tpu.dot_dimension_numbers<[1], [0], [0], [1], [0, 0, 1, 1], [], []>} : vector<32x256xbf16>, vector<256x256xbf16>, vector<32x256xf32> -> vector<32x256xf32>
    %54 = vector.broadcast %51 : vector<1x256xf32> to vector<32x256xf32>
    %55 = arith.mulf %53, %54 : vector<32x256xf32>
    %56 = arith.truncf %55 : vector<32x256xf32> to vector<32x256xbf16>
    %c64 = arith.constant 64 : index
    %c0_18 = arith.constant 0 : index
    %57 = vector.load %arg6[%c64, %c0_18] : memref<128x512xbf16, #tpu.memory_space<vmem>>, vector<32x256xbf16>
    tpu.vector_store %arg6[%c64, %c0_18], %56 {strides = array<i32>} : memref<128x512xbf16, #tpu.memory_space<vmem>>, vector<32x256xbf16>,
    %58 = vector.extract_strided_slice %3 {offsets = [96, 0], sizes = [32, 256], strides = [1, 1]} : vector<384x512xbf16> to vector<32x256xbf16>
    %59 = vector.extract_strided_slice %3 {offsets = [224, 0], sizes = [32, 256], strides = [1, 1]} : vector<384x512xbf16> to vector<32x256xbf16>
    %60 = vector.extract_strided_slice %3 {offsets = [352, 0], sizes = [32, 256], strides = [1, 1]} : vector<384x512xbf16> to vector<32x256xbf16>
    %cst_19 = arith.constant dense<0.000000e+00> : vector<256x256xf32>
    %61 = tpu.matmul %59, %58, %cst_19 {dimension_numbers = #tpu.dot_dimension_numbers<[0], [0], [1], [1], [0, 1, 1, 1], [], []>} : vector<32x256xbf16>, vector<32x256xbf16>, vector<256x256xf32> -> vector<256x256xf32>
    %cst_20 = arith.constant dense<0xFF800000> : vector<256xf32>
    %62 = vector.multi_reduction <maximumf>, %61, %cst_20 [0] : vector<256x256xf32> to vector<256xf32>
    %63 = vector.shape_cast %62 : vector<256xf32> to vector<1x256xf32>
    %64 = vector.broadcast %63 : vector<1x256xf32> to vector<256x256xf32>
    %65 = arith.subf %61, %64 : vector<256x256xf32>
    %66 = math.exp %65 : vector<256x256xf32>
    %cst_21 = arith.constant dense<0.000000e+00> : vector<256xf32>
    %67 = vector.multi_reduction <add>, %66, %cst_21 [0] : vector<256x256xf32> to vector<256xf32>
    %68 = vector.shape_cast %67 : vector<256xf32> to vector<1x256xf32>
    %69 = tpu.reciprocal %68 {approx = true} : vector<1x256xf32> -> vector<1x256xf32>
    %70 = arith.truncf %66 : vector<256x256xf32> to vector<256x256xbf16>
    %cst_22 = arith.constant dense<0.000000e+00> : vector<32x256xf32>
    %71 = tpu.matmul %60, %70, %cst_22 {dimension_numbers = #tpu.dot_dimension_numbers<[1], [0], [0], [1], [0, 0, 1, 1], [], []>} : vector<32x256xbf16>, vector<256x256xbf16>, vector<32x256xf32> -> vector<32x256xf32>
    %72 = vector.broadcast %69 : vector<1x256xf32> to vector<32x256xf32>
    %73 = arith.mulf %71, %72 : vector<32x256xf32>
    %74 = arith.truncf %73 : vector<32x256xf32> to vector<32x256xbf16>
    %c96 = arith.constant 96 : index
    %c0_23 = arith.constant 0 : index
    %75 = vector.load %arg6[%c96, %c0_23] : memref<128x512xbf16, #tpu.memory_space<vmem>>, vector<32x256xbf16>
    tpu.vector_store %arg6[%c96, %c0_23], %74 {strides = array<i32>} : memref<128x512xbf16, #tpu.memory_space<vmem>>, vector<32x256xbf16>,
    %76 = vector.extract_strided_slice %3 {offsets = [0, 256], sizes = [32, 256], strides = [1, 1]} : vector<384x512xbf16> to vector<32x256xbf16>
    %77 = vector.extract_strided_slice %3 {offsets = [128, 256], sizes = [32, 256], strides = [1, 1]} : vector<384x512xbf16> to vector<32x256xbf16>
    %78 = vector.extract_strided_slice %3 {offsets = [256, 256], sizes = [32, 256], strides = [1, 1]} : vector<384x512xbf16> to vector<32x256xbf16>
    %cst_24 = arith.constant dense<0.000000e+00> : vector<256x256xf32>
    %79 = tpu.matmul %77, %76, %cst_24 {dimension_numbers = #tpu.dot_dimension_numbers<[0], [0], [1], [1], [0, 1, 1, 1], [], []>} : vector<32x256xbf16>, vector<32x256xbf16>, vector<256x256xf32> -> vector<256x256xf32>
    %cst_25 = arith.constant dense<0xFF800000> : vector<256xf32>
    %80 = vector.multi_reduction <maximumf>, %79, %cst_25 [0] : vector<256x256xf32> to vector<256xf32>
    %81 = vector.shape_cast %80 : vector<256xf32> to vector<1x256xf32>
    %82 = vector.broadcast %81 : vector<1x256xf32> to vector<256x256xf32>
    %83 = arith.subf %79, %82 : vector<256x256xf32>
    %84 = math.exp %83 : vector<256x256xf32>
    %cst_26 = arith.constant dense<0.000000e+00> : vector<256xf32>
    %85 = vector.multi_reduction <add>, %84, %cst_26 [0] : vector<256x256xf32> to vector<256xf32>
    %86 = vector.shape_cast %85 : vector<256xf32> to vector<1x256xf32>
    %87 = tpu.reciprocal %86 {approx = true} : vector<1x256xf32> -> vector<1x256xf32>
    %88 = arith.truncf %84 : vector<256x256xf32> to vector<256x256xbf16>
    %cst_27 = arith.constant dense<0.000000e+00> : vector<32x256xf32>
    %89 = tpu.matmul %78, %88, %cst_27 {dimension_numbers = #tpu.dot_dimension_numbers<[1], [0], [0], [1], [0, 0, 1, 1], [], []>} : vector<32x256xbf16>, vector<256x256xbf16>, vector<32x256xf32> -> vector<32x256xf32>
    %90 = vector.broadcast %87 : vector<1x256xf32> to vector<32x256xf32>
    %91 = arith.mulf %89, %90 : vector<32x256xf32>
    %92 = arith.truncf %91 : vector<32x256xf32> to vector<32x256xbf16>
    %c0_28 = arith.constant 0 : index
    %c256 = arith.constant 256 : index
    %93 = vector.load %arg6[%c0_28, %c256] : memref<128x512xbf16, #tpu.memory_space<vmem>>, vector<32x256xbf16>
    tpu.vector_store %arg6[%c0_28, %c256], %92 {strides = array<i32>} : memref<128x512xbf16, #tpu.memory_space<vmem>>, vector<32x256xbf16>,
    %94 = vector.extract_strided_slice %3 {offsets = [32, 256], sizes = [32, 256], strides = [1, 1]} : vector<384x512xbf16> to vector<32x256xbf16>
    %95 = vector.extract_strided_slice %3 {offsets = [160, 256], sizes = [32, 256], strides = [1, 1]} : vector<384x512xbf16> to vector<32x256xbf16>
    %96 = vector.extract_strided_slice %3 {offsets = [288, 256], sizes = [32, 256], strides = [1, 1]} : vector<384x512xbf16> to vector<32x256xbf16>
    %cst_29 = arith.constant dense<0.000000e+00> : vector<256x256xf32>
    %97 = tpu.matmul %95, %94, %cst_29 {dimension_numbers = #tpu.dot_dimension_numbers<[0], [0], [1], [1], [0, 1, 1, 1], [], []>} : vector<32x256xbf16>, vector<32x256xbf16>, vector<256x256xf32> -> vector<256x256xf32>
    %cst_30 = arith.constant dense<0xFF800000> : vector<256xf32>
    %98 = vector.multi_reduction <maximumf>, %97, %cst_30 [0] : vector<256x256xf32> to vector<256xf32>
    %99 = vector.shape_cast %98 : vector<256xf32> to vector<1x256xf32>
    %100 = vector.broadcast %99 : vector<1x256xf32> to vector<256x256xf32>
    %101 = arith.subf %97, %100 : vector<256x256xf32>
    %102 = math.exp %101 : vector<256x256xf32>
    %cst_31 = arith.constant dense<0.000000e+00> : vector<256xf32>
    %103 = vector.multi_reduction <add>, %102, %cst_31 [0] : vector<256x256xf32> to vector<256xf32>
    %104 = vector.shape_cast %103 : vector<256xf32> to vector<1x256xf32>
    %105 = tpu.reciprocal %104 {approx = true} : vector<1x256xf32> -> vector<1x256xf32>
    %106 = arith.truncf %102 : vector<256x256xf32> to vector<256x256xbf16>
    %cst_32 = arith.constant dense<0.000000e+00> : vector<32x256xf32>
    %107 = tpu.matmul %96, %106, %cst_32 {dimension_numbers = #tpu.dot_dimension_numbers<[1], [0], [0], [1], [0, 0, 1, 1], [], []>} : vector<32x256xbf16>, vector<256x256xbf16>, vector<32x256xf32> -> vector<32x256xf32>
    %108 = vector.broadcast %105 : vector<1x256xf32> to vector<32x256xf32>
    %109 = arith.mulf %107, %108 : vector<32x256xf32>
    %110 = arith.truncf %109 : vector<32x256xf32> to vector<32x256xbf16>
    %c32_33 = arith.constant 32 : index
    %c256_34 = arith.constant 256 : index
    %111 = vector.load %arg6[%c32_33, %c256_34] : memref<128x512xbf16, #tpu.memory_space<vmem>>, vector<32x256xbf16>
    tpu.vector_store %arg6[%c32_33, %c256_34], %110 {strides = array<i32>} : memref<128x512xbf16, #tpu.memory_space<vmem>>, vector<32x256xbf16>,
    %112 = vector.extract_strided_slice %3 {offsets = [64, 256], sizes = [32, 256], strides = [1, 1]} : vector<384x512xbf16> to vector<32x256xbf16>
    %113 = vector.extract_strided_slice %3 {offsets = [192, 256], sizes = [32, 256], strides = [1, 1]} : vector<384x512xbf16> to vector<32x256xbf16>
    %114 = vector.extract_strided_slice %3 {offsets = [320, 256], sizes = [32, 256], strides = [1, 1]} : vector<384x512xbf16> to vector<32x256xbf16>
    %cst_35 = arith.constant dense<0.000000e+00> : vector<256x256xf32>
    %115 = tpu.matmul %113, %112, %cst_35 {dimension_numbers = #tpu.dot_dimension_numbers<[0], [0], [1], [1], [0, 1, 1, 1], [], []>} : vector<32x256xbf16>, vector<32x256xbf16>, vector<256x256xf32> -> vector<256x256xf32>
    %cst_36 = arith.constant dense<0xFF800000> : vector<256xf32>
    %116 = vector.multi_reduction <maximumf>, %115, %cst_36 [0] : vector<256x256xf32> to vector<256xf32>
    %117 = vector.shape_cast %116 : vector<256xf32> to vector<1x256xf32>
    %118 = vector.broadcast %117 : vector<1x256xf32> to vector<256x256xf32>
    %119 = arith.subf %115, %118 : vector<256x256xf32>
    %120 = math.exp %119 : vector<256x256xf32>
    %cst_37 = arith.constant dense<0.000000e+00> : vector<256xf32>
    %121 = vector.multi_reduction <add>, %120, %cst_37 [0] : vector<256x256xf32> to vector<256xf32>
    %122 = vector.shape_cast %121 : vector<256xf32> to vector<1x256xf32>
    %123 = tpu.reciprocal %122 {approx = true} : vector<1x256xf32> -> vector<1x256xf32>
    %124 = arith.truncf %120 : vector<256x256xf32> to vector<256x256xbf16>
    %cst_38 = arith.constant dense<0.000000e+00> : vector<32x256xf32>
    %125 = tpu.matmul %114, %124, %cst_38 {dimension_numbers = #tpu.dot_dimension_numbers<[1], [0], [0], [1], [0, 0, 1, 1], [], []>} : vector<32x256xbf16>, vector<256x256xbf16>, vector<32x256xf32> -> vector<32x256xf32>
    %126 = vector.broadcast %123 : vector<1x256xf32> to vector<32x256xf32>
    %127 = arith.mulf %125, %126 : vector<32x256xf32>
    %128 = arith.truncf %127 : vector<32x256xf32> to vector<32x256xbf16>
    %c64_39 = arith.constant 64 : index
    %c256_40 = arith.constant 256 : index
    %129 = vector.load %arg6[%c64_39, %c256_40] : memref<128x512xbf16, #tpu.memory_space<vmem>>, vector<32x256xbf16>
    tpu.vector_store %arg6[%c64_39, %c256_40], %128 {strides = array<i32>} : memref<128x512xbf16, #tpu.memory_space<vmem>>, vector<32x256xbf16>,
    %130 = vector.extract_strided_slice %3 {offsets = [96, 256], sizes = [32, 256], strides = [1, 1]} : vector<384x512xbf16> to vector<32x256xbf16>
    %131 = vector.extract_strided_slice %3 {offsets = [224, 256], sizes = [32, 256], strides = [1, 1]} : vector<384x512xbf16> to vector<32x256xbf16>
    %132 = vector.extract_strided_slice %3 {offsets = [352, 256], sizes = [32, 256], strides = [1, 1]} : vector<384x512xbf16> to vector<32x256xbf16>
    %cst_41 = arith.constant dense<0.000000e+00> : vector<256x256xf32>
    %133 = tpu.matmul %131, %130, %cst_41 {dimension_numbers = #tpu.dot_dimension_numbers<[0], [0], [1], [1], [0, 1, 1, 1], [], []>} : vector<32x256xbf16>, vector<32x256xbf16>, vector<256x256xf32> -> vector<256x256xf32>
    %cst_42 = arith.constant dense<0xFF800000> : vector<256xf32>
    %134 = vector.multi_reduction <maximumf>, %133, %cst_42 [0] : vector<256x256xf32> to vector<256xf32>
    %135 = vector.shape_cast %134 : vector<256xf32> to vector<1x256xf32>
    %136 = vector.broadcast %135 : vector<1x256xf32> to vector<256x256xf32>
    %137 = arith.subf %133, %136 : vector<256x256xf32>
    %138 = math.exp %137 : vector<256x256xf32>
    %cst_43 = arith.constant dense<0.000000e+00> : vector<256xf32>
    %139 = vector.multi_reduction <add>, %138, %cst_43 [0] : vector<256x256xf32> to vector<256xf32>
    %140 = vector.shape_cast %139 : vector<256xf32> to vector<1x256xf32>
    %141 = tpu.reciprocal %140 {approx = true} : vector<1x256xf32> -> vector<1x256xf32>
    %142 = arith.truncf %138 : vector<256x256xf32> to vector<256x256xbf16>
    %cst_44 = arith.constant dense<0.000000e+00> : vector<32x256xf32>
    %143 = tpu.matmul %132, %142, %cst_44 {dimension_numbers = #tpu.dot_dimension_numbers<[1], [0], [0], [1], [0, 0, 1, 1], [], []>} : vector<32x256xbf16>, vector<256x256xbf16>, vector<32x256xf32> -> vector<32x256xf32>
    %144 = vector.broadcast %141 : vector<1x256xf32> to vector<32x256xf32>
    %145 = arith.mulf %143, %144 : vector<32x256xf32>
    %146 = arith.truncf %145 : vector<32x256xf32> to vector<32x256xbf16>
    %c96_45 = arith.constant 96 : index
    %c256_46 = arith.constant 256 : index
    %147 = vector.load %arg6[%c96_45, %c256_46] : memref<128x512xbf16, #tpu.memory_space<vmem>>, vector<32x256xbf16>
    tpu.vector_store %arg6[%c96_45, %c256_46], %146 {strides = array<i32>} : memref<128x512xbf16, #tpu.memory_space<vmem>>, vector<32x256xbf16>,
    %c0_47 = arith.constant 0 : index
    %c0_48 = arith.constant 0 : index
    %148 = vector.load %arg3[%c0_47, %c0_48] : memref<4x128xf32, #tpu.memory_space<vmem>>, vector<4x128xf32>
    %149 = arith.truncf %148 : vector<4x128xf32> to vector<4x128xbf16>
    %c0_49 = arith.constant 0 : index
    %c0_50 = arith.constant 0 : index
    %150 = vector.load %arg6[%c0_49, %c0_50] : memref<128x512xbf16, #tpu.memory_space<vmem>>, vector<128x512xbf16>
    %cst_51 = arith.constant dense<0.000000e+00> : vector<4x512xf32>
    %151 = tpu.matmul %149, %150, %cst_51 {dimension_numbers = #tpu.dot_dimension_numbers<[1], [0], [0], [1], [0, 0, 1, 1], [], []>} : vector<4x128xbf16>, vector<128x512xbf16>, vector<4x512xf32> -> vector<4x512xf32>
    %c0_52 = arith.constant 0 : index
    %c0_53 = arith.constant 0 : index
    %152 = vector.load %arg4[%c0_52, %c0_53] : memref<4x1xf32, #tpu.memory_space<vmem>>, vector<4x1xf32>
    %153 = vector.broadcast %152 : vector<4x1xf32> to vector<4x512xf32>
    %154 = arith.addf %151, %153 : vector<4x512xf32>
    %c0_54 = arith.constant 0 : index
    %c0_55 = arith.constant 0 : index
    %155 = vector.load %arg5[%c0_54, %c0_55] : memref<4x512xf32, #tpu.memory_space<vmem>>, vector<4x512xf32>
    tpu.vector_store %arg5[%c0_54, %c0_55], %154 {strides = array<i32>} : memref<4x512xf32, #tpu.memory_space<vmem>>, vector<4x512xf32>,
    return
  }
  func.func @transform_0(%arg0: i32) -> (i32, i32) {
    %c0_i32 = arith.constant 0 : i32
    %c0_i32_0 = arith.constant 0 : i32
    %c0_i32_1 = arith.constant 0 : i32
    return %c0_i32, %c0_i32_0 : i32, i32
  }
  func.func @transform_1(%arg0: i32) -> (i32, i32) {
    %c0_i32 = arith.constant 0 : i32
    %c0_i32_0 = arith.constant 0 : i32
    %c0_i32_1 = arith.constant 0 : i32
    return %c0_i32, %c0_i32_0 : i32, i32
  }
  func.func @transform_2(%arg0: i32) -> (i32, i32) {
    %c0_i32 = arith.constant 0 : i32
    %c0_i32_0 = arith.constant 0 : i32
    %c0_i32_1 = arith.constant 0 : i32
    return %c0_i32, %c0_i32_0 : i32, i32
  }
  func.func @transform_3(%arg0: i32) -> (i32, i32) {
    %c0_i32 = arith.constant 0 : i32
    %c0_i32_0 = arith.constant 0 : i32
    %c0_i32_1 = arith.constant 0 : i32
    return %c0_i32, %c0_i32_0 : i32, i32
  }
  func.func @transform_4(%arg0: i32) -> (i32, i32) {
    %c0_i32 = arith.constant 0 : i32
    %c0_i32_0 = arith.constant 0 : i32
    %c0_i32_1 = arith.constant 0 : i32
    return %c0_i32, %c0_i32_0 : i32, i32
  }
}

</mosaic_0001>

<bundles_post_ra>
// kernel: tpu_custom_call.1
= control target key start
LH: loop header
LB: loop body
LE: loop exit
PB: predicated region body
PF: predicated region fallthrough
CT: control target
= control target key end

     0   :  { %9 = vsyncpa [#allocation4], 0  ;;  %s14543_s0 = inlined_call_operand.hbm [shape: f32[4,512], index: 0, kind: input, shape index: {}]   ;;  %s14544_s1 = inlined_call_operand.hbm [shape: f32[4,384], index: 1, kind: input, shape index: {}]   ;;  %s14545_s2 = inlined_call_operand.vmem [shape: f32[4,128], index: 2, kind: input, shape index: {}]   ;;  %s14546_s3 = inlined_call_operand.vmem [shape: f32[4,1], index: 3, kind: input, shape index: {}]   ;;  %s14547_s4 = inlined_call_operand.hbm [shape: f32[4,512], index: 4, kind: output, shape index: {}]  }
   0x1   :  { %10 = vsyncpa [#allocation7], 0 }
   0x2   :  { %11 = vsyncpa [#allocation5], 0  ;;  %s8793_s15 = smov [#allocation3]   ;;  %s8794_s17 = smov [#allocation6]  }
   0x3   :  { %s18_s16 = sshll.u32 %s8793_s15, 4  ;;  %s28_s18 = sshll.u32 %s8794_s17, 4  ;;  %s19_s16 = int_to_ptr.vmem [resolvable:$true] %s18_s16  ;;  %s29_s18 = int_to_ptr.vmem [resolvable:$true] %s28_s18 }
   0x4   :  { %s8735_s19 = scalar_lea.vmem %s19_s16, 256  ;;  %p8740_p1 = scmp.lt.s32.totalorder %s19_s16, %s19_s16 }
   0x5   :  { %p8736_p0 = scmp.ne.s32.totalorder %s19_s16, %s8735_s19  ;;  %p8741_p2 = scmp.lt.s32.totalorder %s8735_s19, %s8735_s19 }
   0x7   :  { %p8742_p3 = por %p8741_p2, %p8740_p1 }
   0x9   :  { %p8743_p4 = pnand %p8742_p3, %p8736_p0 }
   0xb   :  { %8746 = shalt.err (!%p8743_p4)
}
   0xc   :  { %21 = dma.hbm_to_vmem [thread:$0]  %s14543_s0, 256, %s19_s16, [#allocation4]  }
   0xd   :  { %s8755_s22 = scalar_lea.vmem %s29_s18, 192  ;;  %p8760_p6 = scmp.lt.s32.totalorder %s29_s18, %s29_s18 }
   0xe   :  { %p8756_p5 = scmp.ne.s32.totalorder %s29_s18, %s8755_s22  ;;  %p8761_p7 = scmp.lt.s32.totalorder %s8755_s22, %s8755_s22 }
  0x10   :  { %p8762_p8 = por %p8761_p7, %p8760_p6 }
  0x12   :  { %p8763_p9 = pnand %p8762_p8, %p8756_p5 }
  0x14   :  { %8766 = shalt.err (!%p8763_p9)
}
  0x15   :  { %31 = dma.hbm_to_vmem [thread:$0]  %s14544_s1, 192, %s29_s18, [#allocation7]  }
  0x16   :  { %8787 = dma.done.wait [#allocation4], 256  }
  0x17   :  { %8788 = vsyncadd [#allocation4], 4294967040 }
  0x18   :  { %8789 = dma.done.wait [#allocation7], 192  }
  0x19   :  { %8790 = vsyncadd [#allocation7], 4294967104  ;;  %v8795_v0 = vmov 0.0   ;;  %v46_v1 = vld [vmem:[#allocation6 + $0x8] sm:$0xf]  ;;  %v45_v2 = vld [vmem:[#allocation6] sm:$0xff] }
  0x1a   :  { %368 = vmatprep.mubr.f32.mxu0 %v8795_v0  ;;  %644 = vmatprep.mubr.f32.mxu1 %v8795_v0  ;;  %v43_v3 = vld [vmem:[#allocation3] sm:$0xff]  ;;  %vm295_vm0 = vcmask 1043456   ;;  %v8835_v5 = vld [vmem:[#allocation3 + $0x8] sm:$0xff]  ;;  %v48_v6 = vcombine.high %v45_v2, %v45_v2  ;;  %vm150_vm1 = vcmask 31744   ;;  %vm1138_vm2 = vcmask 261120  }
  0x1b   :  { %114 = vxpose.xlu1.b32.start.end [1/1] (short) %v46_v1, 128  ;;  %50 = vxpose.xlu0.b32.start.end [1/1] (short) %v45_v2, 128  ;;  %v148_v4 = vcombine.high %v43_v3, %v43_v3  ;;  %v149_v7 = vcombine.high %v8835_v5, %v8835_v5 }
  0x1d   :  { %7303 = vmatprep.subr.msk.mxu0 %vm295_vm0, %v148_v4  ;;  %7659 = vmatprep.subr.msk.mxu1 %vm295_vm0, %v148_v4 }
  0x1e   :  { %7304 = vmatpush1.msk.msra.mxu0 %vm295_vm0, %v43_v3  ;;  %7660 = vmatpush1.msk.msra.mxu1 %vm295_vm0, %v43_v3 }
  0x1f   :  { %7353 = vmatprep.subr.msk.mxu1 %vm295_vm0, %v149_v7 }
  0x58   :  { %82 = vxpose.xlu0.b32.start.end [1/1] (short) %v48_v6, 128 }
  0x97   :  { %v8840_v8 = vpop.trf.xlu1  ;;  %v8842_v9 = vpop.trf.xlu0 }
  0x98   :  { %7305 = vmatmul.mubr.msk.f32.vlgmr.msra.gmra.mxu0 %vm150_vm1, %v8842_v9 }
  0x99   :  { %374 = vmatprep.mubr.f32.mxu0 %v8795_v0 }
  0x9b   :  { %v8847_v10 = vpop.trf.xlu1  ;;  %v8849_v11 = vpop.trf.xlu0 }
  0x9c   :  { %7306 = vmatmul.mubr.msk.f32.gmra.mxu0 %vm150_vm1, %v8849_v11 }
  0x9d   :  { %380 = vmatprep.mubr.f32.mxu0 %v8795_v0 }
  0x9f   :  { %v8854_v12 = vpop.trf.xlu1  ;;  %v8856_v13 = vpop.trf.xlu0 }
  0xa0   :  { %7307 = vmatmul.mubr.msk.f32.gmra.mxu0 %vm150_vm1, %v8856_v13 }
  0xa1   :  { %386 = vmatprep.mubr.f32.mxu0 %v8795_v0 }
  0xa3   :  { %v8861_v14 = vpop.trf.xlu1  ;;  %v8863_v15 = vpop.trf.xlu0 }
  0xa4   :  { %7308 = vmatmul.mubr.msk.f32.gmra.mxu0 %vm150_vm1, %v8863_v15 }
  0xa5   :  { %392 = vmatprep.mubr.f32.mxu0 %v8795_v0 }
  0xa7   :  { %v8868_v16 = vpop.trf.xlu1  ;;  %v8870_v17 = vpop.trf.xlu0 }
  0xa8   :  { %7309 = vmatmul.mubr.msk.f32.gmra.mxu0 %vm150_vm1, %v8870_v17 }
  0xa9   :  { %398 = vmatprep.mubr.f32.mxu0 %v8795_v0 }
  0xab   :  { %v8875_v18 = vpop.trf.xlu1  ;;  %v8877_v19 = vpop.trf.xlu0 }
  0xac   :  { %7310 = vmatmul.mubr.msk.f32.gmra.mxu0 %vm150_vm1, %v8877_v19 }
  0xad   :  { %404 = vmatprep.mubr.f32.mxu0 %v8795_v0 }
  0xaf   :  { %v8882_v20 = vpop.trf.xlu1  ;;  %v8884_v21 = vpop.trf.xlu0 }
  0xb0   :  { %7311 = vmatmul.mubr.msk.f32.gmra.mxu0 %vm150_vm1, %v8884_v21 }
  0xb1   :  { %410 = vmatprep.mubr.f32.mxu0 %v8795_v0 }
  0xb3   :  { %v8889_v22 = vpop.trf.xlu1  ;;  %v8891_v23 = vpop.trf.xlu0 }
  0xb4   :  { %7312 = vmatmul.mubr.msk.f32.gmra.mxu0 %vm150_vm1, %v8891_v23 }
  0xb5   :  { %416 = vmatprep.mubr.f32.mxu0 %v8795_v0 }
  0xb7   :  { %v8896_v24 = vpop.trf.xlu1  ;;  %v8898_v25 = vpop.trf.xlu0 }
  0xb8   :  { %7313 = vmatmul.mubr.msk.f32.gmra.mxu0 %vm150_vm1, %v8898_v25 }
  0xb9   :  { %422 = vmatprep.mubr.f32.mxu0 %v8795_v0 }
  0xbb   :  { %v8903_v26 = vpop.trf.xlu1  ;;  %v8905_v27 = vpop.trf.xlu0 }
  0xbc   :  { %7314 = vmatmul.mubr.msk.f32.gmra.mxu0 %vm150_vm1, %v8905_v27 }
  0xbd   :  { %428 = vmatprep.mubr.f32.mxu0 %v8795_v0 }
  0xbf   :  { %v8910_v28 = vpop.trf.xlu1  ;;  %v8912_v29 = vpop.trf.xlu0 }
  0xc0   :  { %7315 = vmatmul.mubr.msk.f32.gmra.mxu0 %vm150_vm1, %v8912_v29 }
  0xc1   :  { %434 = vmatprep.mubr.f32.mxu0 %v8795_v0 }
  0xc3   :  { %v8917_v30 = vpop.trf.xlu1  ;;  %v8919_v31 = vpop.trf.xlu0 }
  0xc4   :  { %7316 = vmatmul.mubr.msk.f32.gmra.mxu0 %vm150_vm1, %v8919_v31 }
  0xc5   :  { %440 = vmatprep.mubr.f32.mxu0 %v8795_v0 }
  0xc7   :  { %v8924_v32 = vpop.trf.xlu1  ;;  %v8926_v33 = vpop.trf.xlu0 }
  0xc8   :  { %7317 = vmatmul.mubr.msk.f32.gmra.mxu0 %vm150_vm1, %v8926_v33 }
  0xc9   :  { %446 = vmatprep.mubr.f32.mxu0 %v8795_v0 }
  0xcb   :  { %v8931_v34 = vpop.trf.xlu1  ;;  %v8933_v35 = vpop.trf.xlu0 }
  0xcc   :  { %7318 = vmatmul.mubr.msk.f32.gmra.mxu0 %vm150_vm1, %v8933_v35 }
  0xcd   :  { %452 = vmatprep.mubr.f32.mxu0 %v8795_v0 }
  0xcf   :  { %v8938_v36 = vpop.trf.xlu1  ;;  %v8940_v37 = vpop.trf.xlu0 }
  0xd0   :  { %7319 = vmatmul.mubr.msk.f32.gmra.mxu0 %vm150_vm1, %v8940_v37  ;;  %7351 = vmatmul.mubr.msk.f32.vlgmr.msra.gmra.mxu1 %vm150_vm1, %v8938_v36 }
  0xd1   :  { %458 = vmatprep.mubr.f32.mxu0 %v8795_v0  ;;  %650 = vmatprep.mubr.f32.mxu1 %v8795_v0 }
  0xd2   :  { %7354 = vmatpush1.msk.msra.mxu1 %vm295_vm0, %v8835_v5 }
  0xd3   :  { %v8950_v38 = vpop.trf.xlu1  ;;  %v8952_v39 = vpop.trf.xlu0 }
  0xd4   :  { %7320 = vmatmul.mubr.msk.f32.gmra.mxu0 %vm150_vm1, %v8952_v39  ;;  %7352 = vmatmul.mubr.msk.f32.gmra.mxu1 %vm150_vm1, %v8950_v38 }
  0xd5   :  { %464 = vmatprep.mubr.f32.mxu0 %v8795_v0  ;;  %721 = vmatprep.mubr.f32.mxu1 %v8795_v0 }
  0xd7   :  { %v8960_v40 = vpop.trf.xlu0 }
  0xd8   :  { %7321 = vmatmul.mubr.msk.f32.gmra.mxu0 %vm150_vm1, %v8960_v40  ;;  %7355 = vmatmul.mubr.msk.f32.vlgmr.msra.gmra.mxu1 %vm150_vm1, %v8842_v9 }
  0xd9   :  { %470 = vmatprep.mubr.f32.mxu0 %v8795_v0  ;;  %727 = vmatprep.mubr.f32.mxu1 %v8795_v0 }
  0xdb   :  { %v8968_v41 = vpop.trf.xlu0 }
  0xdc   :  { %7322 = vmatmul.mubr.msk.f32.gmra.mxu0 %vm150_vm1, %v8968_v41  ;;  %7356 = vmatmul.mubr.msk.f32.gmra.mxu1 %vm150_vm1, %v8849_v11 }
  0xdd   :  { %476 = vmatprep.mubr.f32.mxu0 %v8795_v0  ;;  %733 = vmatprep.mubr.f32.mxu1 %v8795_v0 }
  0xdf   :  { %v8976_v42 = vpop.trf.xlu0 }
  0xe0   :  { %7323 = vmatmul.mubr.msk.f32.gmra.mxu0 %vm150_vm1, %v8976_v42  ;;  %7357 = vmatmul.mubr.msk.f32.gmra.mxu1 %vm150_vm1, %v8856_v13 }
  0xe1   :  { %482 = vmatprep.mubr.f32.mxu0 %v8795_v0  ;;  %739 = vmatprep.mubr.f32.mxu1 %v8795_v0 }
  0xe3   :  { %v8984_v43 = vpop.trf.xlu0 }
  0xe4   :  { %7324 = vmatmul.mubr.msk.f32.gmra.mxu0 %vm150_vm1, %v8984_v43  ;;  %7358 = vmatmul.mubr.msk.f32.gmra.mxu1 %vm150_vm1, %v8863_v15 }
  0xe5   :  { %488 = vmatprep.mubr.f32.mxu0 %v8795_v0  ;;  %745 = vmatprep.mubr.f32.mxu1 %v8795_v0 }
  0xe7   :  { %v8992_v44 = vpop.trf.xlu0 }
  0xe8   :  { %7325 = vmatmul.mubr.msk.f32.gmra.mxu0 %vm150_vm1, %v8992_v44  ;;  %7359 = vmatmul.mubr.msk.f32.gmra.mxu1 %vm150_vm1, %v8870_v17 }
  0xe9   :  { %494 = vmatprep.mubr.f32.mxu0 %v8795_v0  ;;  %751 = vmatprep.mubr.f32.mxu1 %v8795_v0 }
  0xeb   :  { %v9000_v45 = vpop.trf.xlu0 }
  0xec   :  { %7326 = vmatmul.mubr.msk.f32.gmra.mxu0 %vm150_vm1, %v9000_v45  ;;  %7360 = vmatmul.mubr.msk.f32.gmra.mxu1 %vm150_vm1, %v8877_v19 }
  0xed   :  { %500 = vmatprep.mubr.f32.mxu0 %v8795_v0  ;;  %757 = vmatprep.mubr.f32.mxu1 %v8795_v0 }
  0xef   :  { %v9008_v46 = vpop.trf.xlu0 }
  0xf0   :  { %7327 = vmatmul.mubr.msk.f32.gmra.mxu0 %vm150_vm1, %v9008_v46  ;;  %7361 = vmatmul.mubr.msk.f32.gmra.mxu1 %vm150_vm1, %v8884_v21 }
  0xf1   :  { %506 = vmatprep.mubr.f32.mxu0 %v8795_v0  ;;  %763 = vmatprep.mubr.f32.mxu1 %v8795_v0 }
  0xf3   :  { %v9016_v47 = vpop.trf.xlu0 }
  0xf4   :  { %7328 = vmatmul.mubr.msk.f32.gmra.mxu0 %vm150_vm1, %v9016_v47  ;;  %7362 = vmatmul.mubr.msk.f32.gmra.mxu1 %vm150_vm1, %v8891_v23  ;;  %v14548_v23 = vmov 0  }
  0xf5   :  { %512 = vmatprep.mubr.f32.mxu0 %v8795_v0  ;;  %769 = vmatprep.mubr.f32.mxu1 %v8795_v0 }
  0xf7   :  { %v9024_v48 = vpop.trf.xlu0 }
  0xf8   :  { %7329 = vmatmul.mubr.msk.f32.gmra.mxu0 %vm150_vm1, %v9024_v48  ;;  %7363 = vmatmul.mubr.msk.f32.gmra.mxu1 %vm150_vm1, %v8898_v25 }
  0xf9   :  { %518 = vmatprep.mubr.f32.mxu0 %v8795_v0  ;;  %775 = vmatprep.mubr.f32.mxu1 %v8795_v0 }
  0xfb   :  { %v9032_v49 = vpop.trf.xlu0 }
  0xfc   :  { %7330 = vmatmul.mubr.msk.f32.gmra.mxu0 %vm150_vm1, %v9032_v49  ;;  %7364 = vmatmul.mubr.msk.f32.gmra.mxu1 %vm150_vm1, %v8905_v27 }
  0xfd   :  { %524 = vmatprep.mubr.f32.mxu0 %v8795_v0  ;;  %781 = vmatprep.mubr.f32.mxu1 %v8795_v0 }
  0xff   :  { %v9040_v50 = vpop.trf.xlu0 }
 0x100   :  { %7331 = vmatmul.mubr.msk.f32.gmra.mxu0 %vm150_vm1, %v9040_v50  ;;  %7365 = vmatmul.mubr.msk.f32.gmra.mxu1 %vm150_vm1, %v8912_v29 }
 0x101   :  { %530 = vmatprep.mubr.f32.mxu0 %v8795_v0  ;;  %787 = vmatprep.mubr.f32.mxu1 %v8795_v0 }
 0x103   :  { %v9048_v51 = vpop.trf.xlu0 }
 0x104   :  { %7332 = vmatmul.mubr.msk.f32.gmra.mxu0 %vm150_vm1, %v9048_v51  ;;  %7366 = vmatmul.mubr.msk.f32.gmra.mxu1 %vm150_vm1, %v8919_v31 }
 0x105   :  { %793 = vmatprep.mubr.f32.mxu1 %v8795_v0  ;;  %536 = vmatprep.mubr.f32.mxu0 %v8795_v0 }
 0x107   :  { %v9056_v52 = vpop.trf.xlu0 }
 0x108   :  { %7367 = vmatmul.mubr.msk.f32.gmra.mxu1 %vm150_vm1, %v8926_v33  ;;  %7333 = vmatmul.mubr.msk.f32.gmra.mxu0 %vm150_vm1, %v9056_v52 }
 0x109   :  { %799 = vmatprep.mubr.f32.mxu1 %v8795_v0  ;;  %542 = vmatprep.mubr.f32.mxu0 %v8795_v0 }
 0x10b   :  { %v9064_v53 = vpop.trf.xlu0 }
 0x10c   :  { %7368 = vmatmul.mubr.msk.f32.gmra.mxu1 %vm150_vm1, %v8933_v35  ;;  %7334 = vmatmul.mubr.msk.f32.gmra.mxu0 %vm150_vm1, %v9064_v53 }
 0x10d   :  { %805 = vmatprep.mubr.f32.mxu1 %v8795_v0  ;;  %548 = vmatprep.mubr.f32.mxu0 %v8795_v0 }
 0x10f   :  { %v9072_v54 = vpop.trf.xlu0 }
 0x110   :  { %7369 = vmatmul.mubr.msk.f32.gmra.mxu1 %vm150_vm1, %v8940_v37  ;;  %7335 = vmatmul.mubr.msk.f32.gmra.mxu0 %vm150_vm1, %v9072_v54 }
 0x111   :  { %811 = vmatprep.mubr.f32.mxu1 %v8795_v0  ;;  %554 = vmatprep.mubr.f32.mxu0 %v8795_v0 }
 0x113   :  { %v113_v55 = vpop.trf.xlu0 }
 0x114   :  { %7370 = vmatmul.mubr.msk.f32.gmra.mxu1 %vm150_vm1, %v8952_v39  ;;  %7336 = vmatmul.mubr.msk.f32.gmra.mxu0 %vm150_vm1, %v113_v55 }
 0x115   :  { %817 = vmatprep.mubr.f32.mxu1 %v8795_v0  ;;  %560 = vmatprep.mubr.f32.mxu0 %v8795_v0 }
 0x118   :  { %7371 = vmatmul.mubr.msk.f32.gmra.mxu1 %vm150_vm1, %v8960_v40  ;;  %7337 = vmatmul.mubr.msk.f32.gmra.mxu0 %vm150_vm1, %v8840_v8 }
 0x119   :  { %823 = vmatprep.mubr.f32.mxu1 %v8795_v0  ;;  %566 = vmatprep.mubr.f32.mxu0 %v8795_v0 }
 0x11c   :  { %7372 = vmatmul.mubr.msk.f32.gmra.mxu1 %vm150_vm1, %v8968_v41  ;;  %7338 = vmatmul.mubr.msk.f32.gmra.mxu0 %vm150_vm1, %v8847_v10 }
 0x11d   :  { %829 = vmatprep.mubr.f32.mxu1 %v8795_v0  ;;  %572 = vmatprep.mubr.f32.mxu0 %v8795_v0 }
 0x120   :  { %7373 = vmatmul.mubr.msk.f32.gmra.mxu1 %vm150_vm1, %v8976_v42  ;;  %7339 = vmatmul.mubr.msk.f32.gmra.mxu0 %vm150_vm1, %v8854_v12 }
 0x121   :  { %835 = vmatprep.mubr.f32.mxu1 %v8795_v0  ;;  %578 = vmatprep.mubr.f32.mxu0 %v8795_v0 }
 0x124   :  { %7374 = vmatmul.mubr.msk.f32.gmra.mxu1 %vm150_vm1, %v8984_v43  ;;  %7340 = vmatmul.mubr.msk.f32.gmra.mxu0 %vm150_vm1, %v8861_v14 }
 0x125   :  { %841 = vmatprep.mubr.f32.mxu1 %v8795_v0  ;;  %584 = vmatprep.mubr.f32.mxu0 %v8795_v0 }
 0x128   :  { %7375 = vmatmul.mubr.msk.f32.gmra.mxu1 %vm150_vm1, %v8992_v44  ;;  %7341 = vmatmul.mubr.msk.f32.gmra.mxu0 %vm150_vm1, %v8868_v16 }
 0x129   :  { %847 = vmatprep.mubr.f32.mxu1 %v8795_v0  ;;  %590 = vmatprep.mubr.f32.mxu0 %v8795_v0 }
 0x12c   :  { %7376 = vmatmul.mubr.msk.f32.gmra.mxu1 %vm150_vm1, %v9000_v45  ;;  %7342 = vmatmul.mubr.msk.f32.gmra.mxu0 %vm150_vm1, %v8875_v18 }
 0x12d   :  { %853 = vmatprep.mubr.f32.mxu1 %v8795_v0  ;;  %596 = vmatprep.mubr.f32.mxu0 %v8795_v0 }
 0x130   :  { %7377 = vmatmul.mubr.msk.f32.gmra.mxu1 %vm150_vm1, %v9008_v46  ;;  %7343 = vmatmul.mubr.msk.f32.gmra.mxu0 %vm150_vm1, %v8882_v20 }
 0x131   :  { %859 = vmatprep.mubr.f32.mxu1 %v8795_v0  ;;  %602 = vmatprep.mubr.f32.mxu0 %v8795_v0 }
 0x134   :  { %7378 = vmatmul.mubr.msk.f32.gmra.mxu1 %vm150_vm1, %v9016_v47  ;;  %7344 = vmatmul.mubr.msk.f32.gmra.mxu0 %vm150_vm1, %v8889_v22 }
 0x135   :  { %865 = vmatprep.mubr.f32.mxu1 %v8795_v0  ;;  %608 = vmatprep.mubr.f32.mxu0 %v8795_v0 }
 0x138   :  { %7379 = vmatmul.mubr.msk.f32.gmra.mxu1 %vm150_vm1, %v9024_v48  ;;  %7345 = vmatmul.mubr.msk.f32.gmra.mxu0 %vm150_vm1, %v8896_v24 }
 0x139   :  { %871 = vmatprep.mubr.f32.mxu1 %v8795_v0  ;;  %614 = vmatprep.mubr.f32.mxu0 %v8795_v0 }
 0x13c   :  { %7380 = vmatmul.mubr.msk.f32.gmra.mxu1 %vm150_vm1, %v9032_v49  ;;  %7346 = vmatmul.mubr.msk.f32.gmra.mxu0 %vm150_vm1, %v8903_v26 }
 0x13d   :  { %877 = vmatprep.mubr.f32.mxu1 %v8795_v0  ;;  %620 = vmatprep.mubr.f32.mxu0 %v8795_v0 }
 0x140   :  { %7381 = vmatmul.mubr.msk.f32.gmra.mxu1 %vm150_vm1, %v9040_v50  ;;  %7347 = vmatmul.mubr.msk.f32.gmra.mxu0 %vm150_vm1, %v8910_v28 }
 0x141   :  { %883 = vmatprep.mubr.f32.mxu1 %v8795_v0  ;;  %626 = vmatprep.mubr.f32.mxu0 %v8795_v0 }
 0x144   :  { %7382 = vmatmul.mubr.msk.f32.gmra.mxu1 %vm150_vm1, %v9048_v51  ;;  %7348 = vmatmul.mubr.msk.f32.gmra.mxu0 %vm150_vm1, %v8917_v30 }
 0x145   :  { %889 = vmatprep.mubr.f32.mxu1 %v8795_v0  ;;  %632 = vmatprep.mubr.f32.mxu0 %v8795_v0 }
 0x148   :  { %7383 = vmatmul.mubr.msk.f32.gmra.mxu1 %vm150_vm1, %v9056_v52  ;;  %7349 = vmatmul.mubr.msk.f32.gmra.mxu0 %vm150_vm1, %v8924_v32 }
 0x149   :  { %895 = vmatprep.mubr.f32.mxu1 %v8795_v0  ;;  %638 = vmatprep.mubr.f32.mxu0 %v8795_v0 }
 0x14c   :  { %7384 = vmatmul.mubr.msk.f32.gmra.mxu1 %vm150_vm1, %v9064_v53  ;;  %7350 = vmatmul.mubr.msk.f32.gmra.mxu0 %vm150_vm1, %v8931_v34 }
 0x14d   :  { %901 = vmatprep.mubr.f32.mxu1 %v8795_v0  ;;  %1219 = vmatprep.mubr.bf16.mxu0 %v14548_v23 }
 0x150   :  { %7385 = vmatmul.mubr.msk.f32.gmra.mxu1 %vm150_vm1, %v9072_v54 }
 0x151   :  { %907 = vmatprep.mubr.f32.mxu1 %v8795_v0 }
 0x154   :  { %7386 = vmatmul.mubr.msk.f32.gmra.mxu1 %vm150_vm1, %v113_v55 }
 0x155   :  { %913 = vmatprep.mubr.f32.mxu1 %v8795_v0 }
 0x158   :  { %v370_v56 = vpop.f32.mrf.mxu0  ;;  %7387 = vmatmul.mubr.msk.f32.gmra.mxu1 %vm150_vm1, %v8840_v8 }
 0x159   :  { %919 = vmatprep.mubr.f32.mxu1 %v8795_v0 }
 0x15a   :  { %v372_v57 = vpop.f32.mrf.mxu0 }
 0x15c   :  { %v376_v58 = vpop.f32.mrf.mxu0  ;;  %7388 = vmatmul.mubr.msk.f32.gmra.mxu1 %vm150_vm1, %v8847_v10 }
 0x15d   :  { %925 = vmatprep.mubr.f32.mxu1 %v8795_v0  ;;  %v1010_v6 = vpack.c.bf16 %v376_v58, %v370_v56 }
 0x15e   :  { %v378_v59 = vpop.f32.mrf.mxu0 }
 0x15f   :  { %v1011_v4 = vpack.c.bf16 %v378_v59, %v372_v57 }
 0x160   :  { %v382_v60 = vpop.f32.mrf.mxu0  ;;  %7389 = vmatmul.mubr.msk.f32.gmra.mxu1 %vm150_vm1, %v8854_v12 }
 0x161   :  { %931 = vmatprep.mubr.f32.mxu1 %v8795_v0 }
 0x162   :  { %v384_v61 = vpop.f32.mrf.mxu0 }
 0x164   :  { %v388_v62 = vpop.f32.mrf.mxu0  ;;  %7390 = vmatmul.mubr.msk.f32.gmra.mxu1 %vm150_vm1, %v8861_v14 }
 0x165   :  { %937 = vmatprep.mubr.f32.mxu1 %v8795_v0  ;;  %v1014_v2 = vpack.c.bf16 %v388_v62, %v382_v60 }
 0x166   :  { %v390_v63 = vpop.f32.mrf.mxu0 }
 0x167   :  { %v1015_v1 = vpack.c.bf16 %v390_v63, %v384_v61 }
 0x168   :  { %v9185_v3 = vpop.f32.mrf.mxu0  ;;  %7391 = vmatmul.mubr.msk.f32.gmra.mxu1 %vm150_vm1, %v8868_v16 }
 0x169   :  { %14850 = vst [vmem:[#allocation12_spill] sm:$0xff] %v9185_v3  ;;  %1199 = vmatprep.subr.bf16.mxu0 %v1015_v1  ;;  %943 = vmatprep.mubr.f32.mxu1 %v8795_v0 }
 0x16a   :  { %v9190_v5 = vpop.f32.mrf.mxu0  ;;  %1200 = vmatpush1.bf16.msra.mxu0 %v1014_v2 }
 0x16b   :  { %14851 = vst [vmem:[#allocation13_spill] sm:$0xff] %v9190_v5  ;;  %1201 = vmatprep.subr.bf16.mxu0 %v1011_v4 }
 0x16c   :  { %v9192_v7 = vpop.f32.mrf.mxu0  ;;  %7392 = vmatmul.mubr.msk.f32.gmra.mxu1 %vm150_vm1, %v8875_v18 }
 0x16d   :  { %14852 = vst [vmem:[#allocation14_spill] sm:$0xff] %v9192_v7  ;;  %949 = vmatprep.mubr.f32.mxu1 %v8795_v0 }
 0x16e   :  { %v9199_v9 = vpop.f32.mrf.mxu0  ;;  %1202 = vmatpush1.bf16.msra.mxu0 %v1010_v6 }
 0x16f   :  { %14853 = vst [vmem:[#allocation15_spill] sm:$0xff] %v9199_v9 }
 0x170   :  { %v9201_v10 = vpop.f32.mrf.mxu0  ;;  %7393 = vmatmul.mubr.msk.f32.gmra.mxu1 %vm150_vm1, %v8882_v20 }
 0x171   :  { %14854 = vst [vmem:[#allocation16_spill] sm:$0xff] %v9201_v10  ;;  %955 = vmatprep.mubr.f32.mxu1 %v8795_v0 }
 0x172   :  { %v9206_v11 = vpop.f32.mrf.mxu0 }
 0x173   :  { %14855 = vst [vmem:[#allocation17_spill] sm:$0xff] %v9206_v11 }
 0x174   :  { %v9208_v12 = vpop.f32.mrf.mxu0  ;;  %7394 = vmatmul.mubr.msk.f32.gmra.mxu1 %vm150_vm1, %v8889_v22 }
 0x175   :  { %14856 = vst [vmem:[#allocation18_spill] sm:$0xff] %v9208_v12  ;;  %961 = vmatprep.mubr.f32.mxu1 %v8795_v0 }
 0x176   :  { %v9215_v14 = vpop.f32.mrf.mxu0 }
 0x177   :  { %14857 = vst [vmem:[#allocation19_spill] sm:$0xff] %v9215_v14 }
 0x178   :  { %v9217_v15 = vpop.f32.mrf.mxu0  ;;  %7395 = vmatmul.mubr.msk.f32.gmra.mxu1 %vm150_vm1, %v8896_v24 }
 0x179   :  { %14858 = vst [vmem:[#allocation20_spill] sm:$0xff] %v9217_v15  ;;  %967 = vmatprep.mubr.f32.mxu1 %v8795_v0 }
 0x17a   :  { %v9222_v16 = vpop.f32.mrf.mxu0 }
 0x17b   :  { %14859 = vst [vmem:[#allocation21_spill] sm:$0xff] %v9222_v16 }
 0x17c   :  { %v9224_v17 = vpop.f32.mrf.mxu0  ;;  %7396 = vmatmul.mubr.msk.f32.gmra.mxu1 %vm150_vm1, %v8903_v26 }
 0x17d   :  { %14860 = vst [vmem:[#allocation22_spill] sm:$0xff] %v9224_v17  ;;  %973 = vmatprep.mubr.f32.mxu1 %v8795_v0 }
 0x17e   :  { %v9231_v19 = vpop.f32.mrf.mxu0 }
 0x17f   :  { %14861 = vst [vmem:[#allocation23_spill] sm:$0xff] %v9231_v19 }
 0x180   :  { %v9233_v20 = vpop.f32.mrf.mxu0  ;;  %7397 = vmatmul.mubr.msk.f32.gmra.mxu1 %vm150_vm1, %v8910_v28 }
 0x181   :  { %14862 = vst [vmem:[#allocation24_spill] sm:$0xff] %v9233_v20  ;;  %979 = vmatprep.mubr.f32.mxu1 %v8795_v0 }
 0x182   :  { %v9238_v21 = vpop.f32.mrf.mxu0 }
 0x183   :  { %14863 = vst [vmem:[#allocation25_spill] sm:$0xff] %v9238_v21 }
 0x184   :  { %v9240_v22 = vpop.f32.mrf.mxu0  ;;  %7398 = vmatmul.mubr.msk.f32.gmra.mxu1 %vm150_vm1, %v8917_v30 }
 0x185   :  { %14864 = vst [vmem:[#allocation26_spill] sm:$0xff] %v9240_v22  ;;  %985 = vmatprep.mubr.f32.mxu1 %v8795_v0 }
 0x186   :  { %v9248_v25 = vpop.f32.mrf.mxu0 }
 0x187   :  { %14865 = vst [vmem:[#allocation27_spill] sm:$0xff] %v9248_v25 }
 0x188   :  { %v9250_v26 = vpop.f32.mrf.mxu0  ;;  %7399 = vmatmul.mubr.msk.f32.gmra.mxu1 %vm150_vm1, %v8924_v32 }
 0x189   :  { %14866 = vst [vmem:[#allocation28_spill] sm:$0xff] %v9250_v26  ;;  %991 = vmatprep.mubr.f32.mxu1 %v8795_v0 }
 0x18a   :  { %v9255_v27 = vpop.f32.mrf.mxu0 }
 0x18b   :  { %14867 = vst [vmem:[#allocation29_spill] sm:$0xff] %v9255_v27 }
 0x18c   :  { %v9257_v28 = vpop.f32.mrf.mxu0  ;;  %7400 = vmatmul.mubr.msk.f32.gmra.mxu1 %vm150_vm1, %v8931_v34 }
 0x18d   :  { %14868 = vst [vmem:[#allocation30_spill] sm:$0xff] %v9257_v28  ;;  %997 = vmatprep.mubr.f32.mxu1 %v8795_v0 }
 0x18e   :  { %v9264_v30 = vpop.f32.mrf.mxu0 }
 0x18f   :  { %14869 = vst [vmem:[#allocation31_spill] sm:$0xff] %v9264_v30 }
 0x190   :  { %v9266_v31 = vpop.f32.mrf.mxu0  ;;  %v9268_v33 = vpop.f32.mrf.mxu1  ;;  %7401 = vmatmul.mubr.msk.f32.gmra.mxu1 %vm150_vm1, %v8938_v36 }
 0x191   :  { %14870 = vst [vmem:[#allocation32_spill] sm:$0xff] %v9266_v31  ;;  %14871 = vst [vmem:[#allocation33_spill] sm:$0xff] %v9268_v33  ;;  %1003 = vmatprep.mubr.f32.mxu1 %v8795_v0 }
 0x192   :  { %v9273_v32 = vpop.f32.mrf.mxu0  ;;  %v9275_v35 = vpop.f32.mrf.mxu1 }
 0x193   :  { %14872 = vst [vmem:[#allocation34_spill] sm:$0xff] %v9273_v32  ;;  %14873 = vst [vmem:[#allocation35_spill] sm:$0xff] %v9275_v35 }
 0x194   :  { %v9277_v34 = vpop.f32.mrf.mxu0  ;;  %v9279_v37 = vpop.f32.mrf.mxu1  ;;  %7402 = vmatmul.mubr.msk.f32.gmra.mxu1 %vm150_vm1, %v8950_v38 }
 0x195   :  { %14874 = vst [vmem:[#allocation36_spill] sm:$0xff] %v9277_v34  ;;  %14875 = vst [vmem:[#allocation37_spill] sm:$0xff] %v9279_v37 }
 0x196   :  { %v9287_v36 = vpop.f32.mrf.mxu0  ;;  %v9289_v0 = vpop.f32.mrf.mxu1 }
 0x197   :  { %14876 = vst [vmem:[#allocation38_spill] sm:$0xff] %v9287_v36  ;;  %14877 = vst [vmem:[#allocation39_spill] sm:$0xff] %v9289_v0 }
 0x198   :  { %v466_v41 = vpop.f32.mrf.mxu0  ;;  %v9291_v42 = vpop.f32.mrf.mxu1 }
 0x199   :  { %14878 = vst [vmem:[#allocation40_spill] sm:$0xff] %v9291_v42 }
 0x19a   :  { %v468_v43 = vpop.f32.mrf.mxu0  ;;  %v9293_v44 = vpop.f32.mrf.mxu1 }
 0x19b   :  { %14879 = vst [vmem:[#allocation41_spill] sm:$0xff] %v9293_v44 }
 0x19c   :  { %v472_v45 = vpop.f32.mrf.mxu0  ;;  %v9295_v46 = vpop.f32.mrf.mxu1 }
 0x19d   :  { %14880 = vst [vmem:[#allocation42_spill] sm:$0xff] %v9295_v46  ;;  %v1042_v38 = vpack.c.bf16 %v472_v45, %v466_v41 }
 0x19e   :  { %v474_v48 = vpop.f32.mrf.mxu0  ;;  %v9299_v49 = vpop.f32.mrf.mxu1 }
 0x19f   :  { %14881 = vst [vmem:[#allocation43_spill] sm:$0xff] %v9299_v49  ;;  %1106 = vxpose.xlu1.c.b16.start [1/2] (short) %v1042_v38, 128  ;;  %v1043_v50 = vpack.c.bf16 %v474_v48, %v468_v43 }
 0x1a0   :  { %v478_v51 = vpop.f32.mrf.mxu0  ;;  %v9301_v52 = vpop.f32.mrf.mxu1 }
 0x1a1   :  { %14882 = vst [vmem:[#allocation44_spill] sm:$0xff] %v9301_v52  ;;  %1122 = vxpose.xlu0.c.b16.start [1/2] (short) %v1043_v50, 128 }
 0x1a2   :  { %v480_v53 = vpop.f32.mrf.mxu0  ;;  %v9303_v54 = vpop.f32.mrf.mxu1 }
 0x1a3   :  { %14883 = vst [vmem:[#allocation45_spill] sm:$0xff] %v9303_v54 }
 0x1a4   :  { %v484_v55 = vpop.f32.mrf.mxu0  ;;  %v9305_v56 = vpop.f32.mrf.mxu1 }
 0x1a5   :  { %14884 = vst [vmem:[#allocation46_spill] sm:$0xff] %v9305_v56  ;;  %v1046_v57 = vpack.c.bf16 %v484_v55, %v478_v51 }
 0x1a6   :  { %v486_v59 = vpop.f32.mrf.mxu0  ;;  %v9309_v60 = vpop.f32.mrf.mxu1 }
 0x1a7   :  { %14885 = vst [vmem:[#allocation47_spill] sm:$0xff] %v9309_v60  ;;  %v1047_v61 = vpack.c.bf16 %v486_v59, %v480_v53  ;;  %1107 = vxpose.xlu1.c.b16.end [2/2] (short) %v1046_v57, 128 }
 0x1a8   :  { %v490_v62 = vpop.f32.mrf.mxu0  ;;  %v9311_v63 = vpop.f32.mrf.mxu1 }
 0x1a9   :  { %14886 = vst [vmem:[#allocation48_spill] sm:$0xff] %v9311_v63  ;;  %1123 = vxpose.xlu0.c.b16.end [2/2] (short) %v1047_v61, 128 }
 0x1aa   :  { %v9313_v1 = vpop.f32.mrf.mxu0  ;;  %v9315_v2 = vpop.f32.mrf.mxu1 }
 0x1ab   :  { %14887 = vst [vmem:[#allocation49_spill] sm:$0xff] %v9315_v2 }
 0x1ac   :  { %v496_v4 = vpop.f32.mrf.mxu0  ;;  %v9317_v6 = vpop.f32.mrf.mxu1 }
 0x1ad   :  { %14888 = vst [vmem:[#allocation50_spill] sm:$0xff] %v9317_v6  ;;  %v1050_v29 = vpack.c.bf16 %v496_v4, %v490_v62 }
 0x1ae   :  { %v498_v43 = vpop.f32.mrf.mxu0  ;;  %v9321_v45 = vpop.f32.mrf.mxu1 }
 0x1af   :  { %14889 = vst [vmem:[#allocation51_spill] sm:$0xff] %v9321_v45 }
 0x1b0   :  { %v502_v38 = vpop.f32.mrf.mxu0  ;;  %v9323_v48 = vpop.f32.mrf.mxu1 }
 0x1b1   :  { %14890 = vst [vmem:[#allocation52_spill] sm:$0xff] %v9323_v48 }
 0x1b2   :  { %v504_v50 = vpop.f32.mrf.mxu0  ;;  %v9325_v51 = vpop.f32.mrf.mxu1 }
 0x1b3   :  { %14891 = vst [vmem:[#allocation53_spill] sm:$0xff] %v9325_v51 }
 0x1b4   :  { %v508_v53 = vpop.f32.mrf.mxu0  ;;  %v9327_v55 = vpop.f32.mrf.mxu1 }
 0x1b5   :  { %14892 = vst [vmem:[#allocation54_spill] sm:$0xff] %v9327_v55  ;;  %v1054_v23 = vpack.c.bf16 %v508_v53, %v502_v38 }
 0x1b6   :  { %v510_v59 = vpop.f32.mrf.mxu0  ;;  %v9331_v61 = vpop.f32.mrf.mxu1 }
 0x1b7   :  { %14893 = vst [vmem:[#allocation55_spill] sm:$0xff] %v9331_v61 }
 0x1b8   :  { %v9333_v40 = vpop.f32.mrf.mxu0  ;;  %v9335_v41 = vpop.f32.mrf.mxu1 }
 0x1b9   :  { %14894 = vst [vmem:[#allocation56_spill] sm:$0xff] %v9335_v41 }
 0x1ba   :  { %v516_v47 = vpop.f32.mrf.mxu0  ;;  %v9337_v58 = vpop.f32.mrf.mxu1 }
 0x1bb   :  { %14895 = vst [vmem:[#allocation57_spill] sm:$0xff] %v9337_v58 }
 0x1bc   :  { %v9339_v39 = vpop.f32.mrf.mxu0  ;;  %v9341_v18 = vpop.f32.mrf.mxu1 }
 0x1bd   :  { %14896 = vst [vmem:[#allocation58_spill] sm:$0xff] %v9341_v18 }
 0x1be   :  { %v522_v8 = vpop.f32.mrf.mxu0  ;;  %v9345_v57 = vpop.f32.mrf.mxu1 }
 0x1bf   :  { %14897 = vst [vmem:[#allocation59_spill] sm:$0xff] %v9345_v57  ;;  %v1059_v13 = vpack.c.bf16 %v522_v8, %v516_v47 }
 0x1c0   :  { %v9347_v63 = vpop.f32.mrf.mxu1  ;;  %1843 = vxpose.xlu1.c.b16.start [1/2] (short) %v1050_v29, 128  ;;  %v526_v6 = vpop.f32.mrf.mxu0 }
 0x1c1   :  { %14898 = vst [vmem:[#allocation60_spill] sm:$0xff] %v9347_v63 }
 0x1c2   :  { %v528_v48 = vpop.f32.mrf.mxu0  ;;  %v9349_v55 = vpop.f32.mrf.mxu1  ;;  %2595 = vxpose.xlu0.c.b16.start [1/2] (short) %v1059_v13, 128 }
 0x1c3   :  { %14899 = vst [vmem:[#allocation61_spill] sm:$0xff] %v9349_v55 }
 0x1c4   :  { %v9351_v62 = vpop.f32.mrf.mxu1  ;;  %1844 = vxpose.xlu1.c.b16.end [2/2] (short) %v1054_v23, 128  ;;  %v532_v4 = vpop.f32.mrf.mxu0  ;;  %v1051_v23 = vpack.c.bf16 %v498_v43, %v9313_v1 }
 0x1c5   :  { %14900 = vst [vmem:[#allocation62_spill] sm:$0xff] %v9351_v62 }
 0x1c6   :  { %v534_v41 = vpop.f32.mrf.mxu0  ;;  %v9355_v18 = vpop.f32.mrf.mxu1 }
 0x1c7   :  { %14901 = vst [vmem:[#allocation63_spill] sm:$0xff] %v9355_v18  ;;  %v1063_v8 = vpack.c.bf16 %v534_v41, %v528_v48 }
 0x1c8   :  { %v9357_v47 = vpop.f32.mrf.mxu1  ;;  %v9359_v38 = vpop.f32.mrf.mxu0 }
 0x1c9   :  { %14902 = vst [vmem:[#allocation64_spill] sm:$0xff] %v9357_v47  ;;  %2596 = vxpose.xlu0.c.b16.end [2/2] (short) %v1063_v8, 128 }
 0x1ca   :  { %v9361_v29 = vpop.f32.mrf.mxu1  ;;  %v540_v53 = vpop.f32.mrf.mxu0 }
 0x1cb   :  { %14903 = vst [vmem:[#allocation65_spill] sm:$0xff] %v9361_v29 }
 0x1cc   :  { %v9363_v13 = vpop.f32.mrf.mxu1  ;;  %v9365_v57 = vpop.f32.mrf.mxu0 }
 0x1cd   :  { %14904 = vst [vmem:[#allocation66_spill] sm:$0xff] %v9363_v13  ;;  %v1066_v28 = vpack.c.bf16 %v9365_v57, %v9359_v38 }
 0x1ce   :  { %v9369_v24 = vpop.f32.mrf.mxu1  ;;  %v546_v63 = vpop.f32.mrf.mxu0 }
 0x1cf   :  { %14905 = vst [vmem:[#allocation67_spill] sm:$0xff] %v9369_v24  ;;  %v1067_v45 = vpack.c.bf16 %v546_v63, %v540_v53 }
 0x1d0   :  { %v9371_v62 = vpop.f32.mrf.mxu1  ;;  %v9375_v48 = vpop.f32.mrf.mxu0 }
 0x1d1   :  { %14906 = vst [vmem:[#allocation68_spill] sm:$0xff] %v9371_v62 }
 0x1d2   :  { %v9373_v41 = vpop.f32.mrf.mxu1  ;;  %v552_v18 = vpop.f32.mrf.mxu0 }
 0x1d3   :  { %14907 = vst [vmem:[#allocation69_spill] sm:$0xff] %v9373_v41  ;;  %v1055_v41 = vpack.c.bf16 %v510_v59, %v504_v50 }
 0x1d4   :  { %v9377_v8 = vpop.f32.mrf.mxu1  ;;  %v9386_v13 = vpop.f32.mrf.mxu0 }
 0x1d5   :  { %14908 = vst [vmem:[#allocation70_spill] sm:$0xff] %v9377_v8  ;;  %v1070_v36 = vpack.c.bf16 %v9386_v13, %v9375_v48 }
 0x1d6   :  { %v9381_v58 = vpop.f32.mrf.mxu1  ;;  %v558_v61 = vpop.f32.mrf.mxu0 }
 0x1d7   :  { %14909 = vst [vmem:[#allocation71_spill] sm:$0xff] %v9381_v58  ;;  %v1071_v62 = vpack.c.bf16 %v558_v61, %v552_v18  ;;  %v1058_v18 = vpack.c.bf16 %v9339_v39, %v9333_v40 }
 0x1d8   :  { %v9383_v55 = vpop.f32.mrf.mxu1  ;;  %v9420_v46 = vpop.f32.mrf.mxu0 }
 0x1d9   :  { %14910 = vst [vmem:[#allocation72_spill] sm:$0xff] %v9420_v46 }
 0x1da   :  { %v821_v47 = vpop.f32.mrf.mxu1  ;;  %v564_v39 = vpop.f32.mrf.mxu0 }
 0x1dc   :  { %v9388_v24 = vpop.f32.mrf.mxu1  ;;  %v9426_v49 = vpop.f32.mrf.mxu0 }
 0x1dd   :  { %1859 = vxpose.xlu1.c.b16.start [1/2] (short) %v1051_v23, 128  ;;  %14911 = vst [vmem:[#allocation73_spill] sm:$0xff] %v9426_v49 }
 0x1de   :  { %v827_v2 = vpop.f32.mrf.mxu1 }
 0x1df   :  { %v1045_v37 = vpack.c.bf16 %v827_v2, %v821_v47 }
 0x1e0   :  { %v9390_v51 = vpop.f32.mrf.mxu1 }
 0x1e1   :  { %1860 = vxpose.xlu1.c.b16.end [2/2] (short) %v1055_v41, 128 }
 0x1e2   :  { %v833_v29 = vpop.f32.mrf.mxu1  ;;  %3331 = vxpose.xlu0.c.b16.start [1/2] (short) %v1067_v45, 128 }
 0x1e4   :  { %v9392_v8 = vpop.f32.mrf.mxu1 }
 0x1e6   :  { %v839_v58 = vpop.f32.mrf.mxu1  ;;  %3332 = vxpose.xlu0.c.b16.end [2/2] (short) %v1071_v62, 128  ;;  %v1062_v62 = vpack.c.bf16 %v532_v4, %v526_v6  ;;  %v570_v4 = vpop.f32.mrf.mxu0 }
 0x1e7   :  { %v1049_v40 = vpack.c.bf16 %v839_v58, %v833_v29  ;;  %v14913_v58 = vmov 0  }
 0x1e8   :  { %v9394_v1 = vpop.f32.mrf.mxu1 }
 0x1ea   :  { %v9396_v43 = vpop.f32.mrf.mxu1 }
 0x1ec   :  { %v9398_v33 = vpop.f32.mrf.mxu1 }
 0x1ee   :  { %v9400_v50 = vpop.f32.mrf.mxu1 }
 0x1ef   :  { %v1053_v38 = vpack.c.bf16 %v9400_v50, %v9396_v43 }
 0x1f0   :  { %v9402_v63 = vpop.f32.mrf.mxu1 }
 0x1f2   :  { %v9404_v59 = vpop.f32.mrf.mxu1 }
 0x1f4   :  { %v9406_v53 = vpop.f32.mrf.mxu1 }
 0x1f6   :  { %v9410_v45 = vpop.f32.mrf.mxu1 }
 0x1f8   :  { %v9412_v61 = vpop.f32.mrf.mxu1 }
 0x1fa   :  { %2579 = vxpose.xlu1.c.b16.start [1/2] (short) %v1058_v18, 128  ;;  %v9414_v23 = vpop.f32.mrf.mxu1  ;;  %v1075_v18 = vpack.c.bf16 %v570_v4, %v564_v39 }
 0x1fc   :  { %v9416_v41 = vpop.f32.mrf.mxu1  ;;  %1786 = vmatprep.mubr.bf16.mxu1 %v1075_v18 }
 0x1fe   :  { %2580 = vxpose.xlu1.c.b16.end [2/2] (short) %v1062_v62, 128  ;;  %v9418_v42 = vpop.f32.mrf.mxu1  ;;  %v9435_v62 = vpop.f32.mrf.mxu0 }
 0x1ff   :  { %4067 = vxpose.xlu0.c.b16.start [1/2] (short) %v1045_v37, 128  ;;  %14912 = vst [vmem:[#allocation74_spill] sm:$0xff] %v9435_v62 }
 0x200   :  { %v9422_v52 = vpop.f32.mrf.mxu1 }
 0x202   :  { %v9424_v56 = vpop.f32.mrf.mxu1 }
 0x203   :  { %4068 = vxpose.xlu0.c.b16.end [2/2] (short) %v1049_v40, 128  ;;  %v9440_v40 = vpop.f32.mrf.mxu0 }
 0x204   :  { %v9430_v2 = vpop.f32.mrf.mxu1  ;;  %14914 = vst [vmem:[#allocation75_spill] sm:$0xff] %v9440_v40 }
 0x205   :  { %v1114_v47 = vpop.trf.xlu1  ;;  %v9444_v0 = vpop.f32.mrf.mxu0 }
 0x206   :  { %7403 = vmatmul.mubr.msk.bf16.vlgmr.msra.gmra.mxu0 %vm1138_vm2, %v1114_v47  ;;  %v9433_v37 = vpop.f32.mrf.mxu1  ;;  %14915 = vst [vmem:[#allocation76_spill] sm:$0xff] %v9444_v0 }
 0x207   :  { %1229 = vmatprep.mubr.bf16.mxu0 %v14913_v58  ;;  %v9450_v4 = vpop.f32.mrf.mxu0 }
 0x208   :  { %v9438_v29 = vpop.f32.mrf.mxu1  ;;  %14916 = vst [vmem:[#allocation77_spill] sm:$0xff] %v9450_v4 }
 0x209   :  { %v1115_v6 = vpop.trf.xlu1  ;;  %v9456_v18 = vpop.f32.mrf.mxu0 }
 0x20a   :  { %v9442_v44 = vpop.f32.mrf.mxu1  ;;  %14917 = vst [vmem:[#allocation78_spill] sm:$0xff] %v9456_v18 }
 0x20b   :  { %v9460_v54 = vpop.f32.mrf.mxu0 }
 0x20c   :  { %v9446_v35 = vpop.f32.mrf.mxu1 }
 0x20d   :  { %v1116_v39 = vpop.trf.xlu1  ;;  %v9466_v31 = vpop.f32.mrf.mxu0 }
 0x20e   :  { %7404 = vmatmul.mubr.msk.bf16.gmra.mxu0 %vm1138_vm2, %v1115_v6  ;;  %v9453_v47 = vpop.f32.mrf.mxu1  ;;  %14918 = vst [vmem:[#allocation79_spill] sm:$0xff] %v9466_v31 }
 0x20f   :  { %1239 = vmatprep.mubr.bf16.mxu0 %v14913_v58  ;;  %v9472_v30 = vpop.f32.mrf.mxu0 }
 0x210   :  { %v9458_v60 = vpop.f32.mrf.mxu1 }
 0x211   :  { %v9480_v57 = vpop.f32.mrf.mxu0 }
 0x212   :  { %v9462_v26 = vpop.f32.mrf.mxu1  ;;  %14919 = vst [vmem:[#allocation80_spill] sm:$0xff] %v9480_v57 }
 0x213   :  { %v9486_v6 = vpop.f32.mrf.mxu0 }
 0x214   :  { %v9468_v34 = vpop.f32.mrf.mxu1  ;;  %14921 = vst [vmem:[#allocation82_spill] sm:$0xff] %v9486_v6 }
 0x215   :  { %v9490_v17 = vpop.f32.mrf.mxu0 }
 0x216   :  { %7405 = vmatmul.mubr.msk.bf16.gmra.mxu0 %vm1138_vm2, %v1116_v39  ;;  %v9475_v27 = vpop.f32.mrf.mxu1  ;;  %v1117_v39 = vpop.trf.xlu1  ;;  %14923 = vst [vmem:[#allocation84_spill] sm:$0xff] %v9490_v17 }
 0x217   :  { %3315 = vxpose.xlu1.c.b16.start [1/2] (short) %v1066_v28, 128  ;;  %1249 = vmatprep.mubr.bf16.mxu0 %v14913_v58  ;;  %v1057_v28 = vpack.c.bf16 %v9410_v45, %v9404_v59  ;;  %v9500_v50 = vpop.f32.mrf.mxu0 }
 0x218   :  { %v9484_v32 = vpop.f32.mrf.mxu1  ;;  %14925 = vst [vmem:[#allocation86_spill] sm:$0xff] %v9500_v50 }
 0x219   :  { %14920 = vst [vmem:[#allocation81_spill] sm:$0xff] %v9484_v32 }
 0x21a   :  { %v9488_v15 = vpop.f32.mrf.mxu1  ;;  %v1118_v48 = vpop.trf.xlu1 }
 0x21b   :  { %14922 = vst [vmem:[#allocation83_spill] sm:$0xff] %v9488_v15  ;;  %3316 = vxpose.xlu1.c.b16.end [2/2] (short) %v1070_v36, 128 }
 0x21c   :  { %4803 = vxpose.xlu0.c.b16.start [1/2] (short) %v1053_v38, 128  ;;  %v9494_v13 = vpop.f32.mrf.mxu1  ;;  %v9506_v38 = vpop.f32.mrf.mxu0 }
 0x21d   :  { %14924 = vst [vmem:[#allocation85_spill] sm:$0xff] %v9494_v13  ;;  %14927 = vst [vmem:[#allocation88_spill] sm:$0xff] %v9506_v38 }
 0x21e   :  { %7406 = vmatmul.mubr.msk.bf16.gmra.mxu0 %vm1138_vm2, %v1117_v39  ;;  %v9503_v36 = vpop.f32.mrf.mxu1  ;;  %v9510_v45 = vpop.f32.mrf.mxu0 }
 0x21f   :  { %14926 = vst [vmem:[#allocation87_spill] sm:$0xff] %v9503_v36  ;;  %1259 = vmatprep.mubr.bf16.mxu0 %v14913_v58  ;;  %14929 = vst [vmem:[#allocation90_spill] sm:$0xff] %v9510_v45  ;;  %v1119_v17 = vpop.trf.xlu1 }
 0x220   :  { %4804 = vxpose.xlu0.c.b16.end [2/2] (short) %v1057_v28, 128  ;;  %v9508_v59 = vpop.f32.mrf.mxu1  ;;  %v9514_v57 = vpop.f32.mrf.mxu0 }
 0x221   :  { %14928 = vst [vmem:[#allocation89_spill] sm:$0xff] %v9508_v59  ;;  %14931 = vst [vmem:[#allocation92_spill] sm:$0xff] %v9514_v57 }
 0x222   :  { %v9512_v15 = vpop.f32.mrf.mxu1  ;;  %v9522_v13 = vpop.f32.mrf.mxu0 }
 0x223   :  { %14930 = vst [vmem:[#allocation91_spill] sm:$0xff] %v9512_v15  ;;  %14933 = vst [vmem:[#allocation94_spill] sm:$0xff] %v9522_v13  ;;  %v1120_v59 = vpop.trf.xlu1 }
 0x224   :  { %v9516_v43 = vpop.f32.mrf.mxu1  ;;  %v9528_v15 = vpop.f32.mrf.mxu0 }
 0x225   :  { %14932 = vst [vmem:[#allocation93_spill] sm:$0xff] %v9516_v43  ;;  %14935 = vst [vmem:[#allocation96_spill] sm:$0xff] %v9528_v15 }
 0x226   :  { %7407 = vmatmul.mubr.msk.bf16.gmra.mxu0 %vm1138_vm2, %v1118_v48  ;;  %v9525_v28 = vpop.f32.mrf.mxu1  ;;  %v9532_v20 = vpop.f32.mrf.mxu0  ;;  %v1044_v48 = vpack.c.bf16 %v9388_v24, %v9383_v55  ;;  %v1048_v24 = vpack.c.bf16 %v9392_v8, %v9390_v51 }
 0x227   :  { %14934 = vst [vmem:[#allocation95_spill] sm:$0xff] %v9525_v28  ;;  %1269 = vmatprep.mubr.bf16.mxu0 %v14913_v58  ;;  %14937 = vst [vmem:[#allocation98_spill] sm:$0xff] %v9532_v20  ;;  %v1121_v20 = vpop.trf.xlu1  ;;  %v1130_v8 = vpop.trf.xlu0 }
 0x228   :  { %v9530_v36 = vpop.f32.mrf.mxu1  ;;  %v9536_v39 = vpop.f32.mrf.mxu0 }
 0x229   :  { %14936 = vst [vmem:[#allocation97_spill] sm:$0xff] %v9530_v36  ;;  %14939 = vst [vmem:[#allocation100_spill] sm:$0xff] %v9536_v39  ;;  %v1065_v36 = vpack.c.bf16 %v9433_v37, %v9424_v56 }
 0x22a   :  { %v9534_v22 = vpop.f32.mrf.mxu1  ;;  %v9544_v28 = vpop.f32.mrf.mxu0 }
 0x22b   :  { %14938 = vst [vmem:[#allocation99_spill] sm:$0xff] %v9534_v22  ;;  %14941 = vst [vmem:[#allocation102_spill] sm:$0xff] %v9544_v28  ;;  %v1131_v37 = vpop.trf.xlu0 }
 0x22c   :  { %v9538_v32 = vpop.f32.mrf.mxu1  ;;  %v9550_v22 = vpop.f32.mrf.mxu0 }
 0x22d   :  { %14940 = vst [vmem:[#allocation101_spill] sm:$0xff] %v9538_v32  ;;  %14943 = vst [vmem:[#allocation104_spill] sm:$0xff] %v9550_v22  ;;  %v9566_v32 = vpop.trf.xlu1 }
 0x22e   :  { %7408 = vmatmul.mubr.msk.bf16.gmra.mxu0 %vm1138_vm2, %v1119_v17  ;;  %v9547_v38 = vpop.f32.mrf.mxu1  ;;  %v9554_v18 = vpop.f32.mrf.mxu0  ;;  %14949 = vst [vmem:[#allocation110_spill] sm:$0xff] %v9566_v32 }
 0x22f   :  { %14942 = vst [vmem:[#allocation103_spill] sm:$0xff] %v9547_v38  ;;  %1279 = vmatprep.mubr.bf16.mxu0 %v14913_v58  ;;  %14945 = vst [vmem:[#allocation106_spill] sm:$0xff] %v9554_v18  ;;  %v1061_v38 = vpack.c.bf16 %v9418_v42, %v9414_v23 }
 0x230   :  { %v9552_v57 = vpop.f32.mrf.mxu1  ;;  %v9560_v43 = vpop.f32.mrf.mxu0 }
 0x231   :  { %14944 = vst [vmem:[#allocation105_spill] sm:$0xff] %v9552_v57  ;;  %14947 = vst [vmem:[#allocation108_spill] sm:$0xff] %v9560_v43  ;;  %v9584_v23 = vpop.trf.xlu1 }
 0x232   :  { %v9558_v15 = vpop.f32.mrf.mxu1  ;;  %14953 = vst [vmem:[#allocation114_spill] sm:$0xff] %v9584_v23 }
 0x233   :  { %14946 = vst [vmem:[#allocation107_spill] sm:$0xff] %v9558_v15  ;;  %v1052_v15 = vpack.c.bf16 %v9398_v33, %v9394_v1  ;;  %v1069_v33 = vpack.c.bf16 %v9453_v47, %v9442_v44  ;;  %v1064_v47 = vpack.c.bf16 %v9430_v2, %v9422_v52  ;;  %v1068_v2 = vpack.c.bf16 %v9446_v35, %v9438_v29 }
 0x234   :  { %4051 = vxpose.xlu1.c.b16.start [1/2] (short) %v1044_v48, 128  ;;  %v9562_v17 = vpop.f32.mrf.mxu1 }
 0x235   :  { %14948 = vst [vmem:[#allocation109_spill] sm:$0xff] %v9562_v17  ;;  %v9596_v56 = vpop.trf.xlu1 }
 0x236   :  { %7409 = vmatmul.mubr.msk.bf16.gmra.mxu0 %vm1138_vm2, %v1120_v59  ;;  %v9575_v55 = vpop.f32.mrf.mxu1  ;;  %14957 = vst [vmem:[#allocation118_spill] sm:$0xff] %v9596_v56 }
 0x237   :  { %14950 = vst [vmem:[#allocation111_spill] sm:$0xff] %v9575_v55  ;;  %1289 = vmatprep.mubr.bf16.mxu0 %v14913_v58 }
 0x238   :  { %4052 = vxpose.xlu1.c.b16.end [2/2] (short) %v1048_v24, 128  ;;  %v9578_v48 = vpop.f32.mrf.mxu1 }
 0x239   :  { %14951 = vst [vmem:[#allocation112_spill] sm:$0xff] %v9578_v48  ;;  %5539 = vxpose.xlu0.c.b16.start [1/2] (short) %v1061_v38, 128  ;;  %v9608_v48 = vpop.trf.xlu1 }
 0x23a   :  { %v9582_v42 = vpop.f32.mrf.mxu1  ;;  %14961 = vst [vmem:[#allocation122_spill] sm:$0xff] %v9608_v48 }
 0x23b   :  { %14952 = vst [vmem:[#allocation113_spill] sm:$0xff] %v9582_v42 }
 0x23c   :  { %v9586_v39 = vpop.f32.mrf.mxu1 }
 0x23d   :  { %14954 = vst [vmem:[#allocation115_spill] sm:$0xff] %v9586_v39  ;;  %5540 = vxpose.xlu0.c.b16.end [2/2] (short) %v1065_v36, 128  ;;  %v9618_v36 = vpop.trf.xlu1 }
 0x23e   :  { %7410 = vmatmul.mubr.msk.bf16.gmra.mxu0 %vm1138_vm2, %v1121_v20  ;;  %v9591_v59 = vpop.f32.mrf.mxu1  ;;  %v1132_v20 = vpop.trf.xlu0  ;;  %14965 = vst [vmem:[#allocation126_spill] sm:$0xff] %v9618_v36 }
 0x23f   :  { %14955 = vst [vmem:[#allocation116_spill] sm:$0xff] %v9591_v59  ;;  %1299 = vmatprep.mubr.bf16.mxu0 %v14913_v58 }
 0x240   :  { %v9594_v38 = vpop.f32.mrf.mxu1 }
 0x241   :  { %14956 = vst [vmem:[#allocation117_spill] sm:$0xff] %v9594_v38 }
 0x242   :  { %v9598_v24 = vpop.f32.mrf.mxu1  ;;  %v1133_v17 = vpop.trf.xlu0 }
 0x243   :  { %14958 = vst [vmem:[#allocation119_spill] sm:$0xff] %v9598_v24 }
 0x244   :  { %v9600_v57 = vpop.f32.mrf.mxu1 }
 0x245   :  { %14959 = vst [vmem:[#allocation120_spill] sm:$0xff] %v9600_v57 }
 0x246   :  { %7411 = vmatmul.mubr.msk.bf16.gmra.mxu0 %vm1138_vm2, %v1130_v8  ;;  %v9605_v51 = vpop.f32.mrf.mxu1  ;;  %v1134_v38 = vpop.trf.xlu0 }
 0x247   :  { %14960 = vst [vmem:[#allocation121_spill] sm:$0xff] %v9605_v51  ;;  %1309 = vmatprep.mubr.bf16.mxu0 %v14913_v58  ;;  %v9634_v8 = vpop.trf.xlu1 }
 0x248   :  { %v9610_v39 = vpop.f32.mrf.mxu1  ;;  %14969 = vst [vmem:[#allocation130_spill] sm:$0xff] %v9634_v8 }
 0x249   :  { %14962 = vst [vmem:[#allocation123_spill] sm:$0xff] %v9610_v39 }
 0x24a   :  { %v9612_v55 = vpop.f32.mrf.mxu1  ;;  %v1135_v59 = vpop.trf.xlu0 }
 0x24b   :  { %14963 = vst [vmem:[#allocation124_spill] sm:$0xff] %v9612_v55  ;;  %v1056_v55 = vpack.c.bf16 %v9406_v53, %v9402_v63  ;;  %v9644_v44 = vpop.trf.xlu1 }
 0x24c   :  { %v9614_v24 = vpop.f32.mrf.mxu1  ;;  %14971 = vst [vmem:[#allocation132_spill] sm:$0xff] %v9644_v44 }
 0x24d   :  { %14964 = vst [vmem:[#allocation125_spill] sm:$0xff] %v9614_v24 }
 0x24e   :  { %7412 = vmatmul.mubr.msk.bf16.gmra.mxu0 %vm1138_vm2, %v1131_v37  ;;  %v9623_v57 = vpop.f32.mrf.mxu1  ;;  %v1136_v24 = vpop.trf.xlu0 }
 0x24f   :  { %14966 = vst [vmem:[#allocation127_spill] sm:$0xff] %v9623_v57  ;;  %1319 = vmatprep.mubr.bf16.mxu0 %v14913_v58  ;;  %v9648_v63 = vpop.trf.xlu1 }
 0x250   :  { %v9626_v51 = vpop.f32.mrf.mxu1  ;;  %14972 = vst [vmem:[#allocation133_spill] sm:$0xff] %v9648_v63 }
 0x251   :  { %14967 = vst [vmem:[#allocation128_spill] sm:$0xff] %v9626_v51  ;;  %4787 = vxpose.xlu1.c.b16.start [1/2] (short) %v1052_v15, 128  ;;  %v1073_v15 = vpack.c.bf16 %v9475_v27, %v9462_v26  ;;  %v1060_v26 = vpack.c.bf16 %v9416_v41, %v9412_v61  ;;  %v1083_v41 = vpack.c.bf16 %v9472_v30, %v9460_v54  ;;  %v9683_v30 = vpop.f32.mrf.mxu0 }
 0x252   :  { %v9632_v1 = vpop.f32.mrf.mxu1  ;;  %v1137_v61 = vpop.trf.xlu0  ;;  %14980 = vst [vmem:[#allocation141_spill] sm:$0xff] %v9683_v30 }
 0x253   :  { %14968 = vst [vmem:[#allocation129_spill] sm:$0xff] %v9632_v1  ;;  %v9651_v53 = vpop.trf.xlu1 }
 0x254   :  { %v9636_v37 = vpop.f32.mrf.mxu1  ;;  %14973 = vst [vmem:[#allocation134_spill] sm:$0xff] %v9651_v53 }
 0x255   :  { %14970 = vst [vmem:[#allocation131_spill] sm:$0xff] %v9636_v37  ;;  %4788 = vxpose.xlu1.c.b16.end [2/2] (short) %v1056_v55, 128 }
 0x256   :  { %7413 = vmatmul.mubr.msk.bf16.gmra.mxu0 %vm1138_vm2, %v1132_v20  ;;  %6275 = vxpose.xlu0.c.b16.start [1/2] (short) %v1069_v33, 128 }
 0x257   :  { %1329 = vmatprep.mubr.bf16.mxu0 %v14913_v58  ;;  %v9657_v27 = vpop.trf.xlu1 }
 0x258   :  { %14974 = vst [vmem:[#allocation135_spill] sm:$0xff] %v9657_v27 }
 0x25a   :  { %6276 = vxpose.xlu0.c.b16.end [2/2] (short) %v1073_v15, 128 }
 0x25e   :  { %7414 = vmatmul.mubr.msk.bf16.gmra.mxu0 %vm1138_vm2, %v1133_v17  ;;  %v9663_v17 = vpop.trf.xlu1 }
 0x25f   :  { %1339 = vmatprep.mubr.bf16.mxu0 %v14913_v58  ;;  %14975 = vst [vmem:[#allocation136_spill] sm:$0xff] %v9663_v17 }
 0x262   :  { %v9667_v55 = vpop.trf.xlu1 }
 0x263   :  { %7667 = vset.pattern.permute.xlu0 %v14913_v58  ;;  %14976 = vst [vmem:[#allocation137_spill] sm:$0xff] %v9667_v55 }
 0x266   :  { %7415 = vmatmul.mubr.msk.bf16.gmra.mxu0 %vm1138_vm2, %v1134_v38  ;;  %v9671_v38 = vpop.trf.xlu1 }
 0x267   :  { %1349 = vmatprep.mubr.bf16.mxu0 %v14913_v58  ;;  %14977 = vst [vmem:[#allocation138_spill] sm:$0xff] %v9671_v38 }
 0x26a   :  { %v9674_v52 = vpop.trf.xlu1 }
 0x26b   :  { %14978 = vst [vmem:[#allocation139_spill] sm:$0xff] %v9674_v52 }
 0x26e   :  { %7416 = vmatmul.mubr.msk.bf16.gmra.mxu0 %vm1138_vm2, %v1135_v59  ;;  %5523 = vxpose.xlu1.c.b16.start [1/2] (short) %v1060_v26, 128  ;;  %v9678_v59 = vpop.trf.xlu1 }
 0x26f   :  { %1359 = vmatprep.mubr.bf16.mxu0 %v14913_v58  ;;  %14979 = vst [vmem:[#allocation140_spill] sm:$0xff] %v9678_v59 }
 0x272   :  { %5524 = vxpose.xlu1.c.b16.end [2/2] (short) %v1064_v47, 128 }
 0x276   :  { %7417 = vmatmul.mubr.msk.bf16.gmra.mxu0 %vm1138_vm2, %v1136_v24  ;;  %v1072_v24 = vpack.c.bf16 %v9468_v34, %v9458_v60 }
 0x277   :  { %1369 = vmatprep.mubr.bf16.mxu0 %v14913_v58 }
 0x27e   :  { %7418 = vmatmul.mubr.msk.bf16.gmra.mxu0 %vm1138_vm2, %v1137_v61 }
 0x27f   :  { %2522 = vmatprep.mubr.bf16.mxu0 %v1083_v41 }
 0x28b   :  { %6259 = vxpose.xlu1.c.b16.start [1/2] (short) %v1068_v2, 128 }
 0x28f   :  { %6260 = vxpose.xlu1.c.b16.end [2/2] (short) %v1072_v24, 128 }
 0x293   :  { %7666 = vset.pattern.permute.xlu1 %v14913_v58 }
 0x2c6   :  { %v9685_v54 = vpop.f32.mrf.mxu0 }
 0x2c8   :  { %v9687_v20 = vpop.f32.mrf.mxu0 }
 0x2ca   :  { %v9689_v33 = vpop.f32.mrf.mxu0 }
 0x2cc   :  { %v9691_v15 = vpop.f32.mrf.mxu0 }
 0x2ce   :  { %v9693_v35 = vpop.f32.mrf.mxu0 }
 0x2cf   :  { %v1380_v58 = vmax.f32 %v9685_v54, %v9693_v35 }
 0x2d0   :  { %v9695_v29 = vpop.f32.mrf.mxu0 }
 0x2d2   :  { %v9697_v26 = vpop.f32.mrf.mxu0 }
 0x2d3   :  { %v1381_v62 = vmax.f32 %v9689_v33, %v9697_v26 }
 0x2d4   :  { %v9699_v34 = vpop.f32.mrf.mxu0 }
 0x2d5   :  { %14981 = vst [vmem:[#allocation142_spill] sm:$0xff] %v9699_v34 }
 0x2d6   :  { %v9701_v60 = vpop.f32.mrf.mxu0 }
 0x2d7   :  { %v1382_v3 = vmax.f32 %v1380_v58, %v9701_v60 }
 0x2d8   :  { %v9703_v47 = vpop.f32.mrf.mxu0 }
 0x2da   :  { %v9705_v61 = vpop.f32.mrf.mxu0 }
 0x2db   :  { %v1383_v7 = vmax.f32 %v1381_v62, %v9705_v61 }
 0x2dc   :  { %v9707_v41 = vpop.f32.mrf.mxu0 }
 0x2dd   :  { %14982 = vst [vmem:[#allocation143_spill] sm:$0xff] %v9707_v41 }
 0x2de   :  { %v9709_v2 = vpop.f32.mrf.mxu0 }
 0x2df   :  { %v1384_v12 = vmax.f32 %v1382_v3, %v9709_v2 }
 0x2e0   :  { %v9711_v24 = vpop.f32.mrf.mxu0 }
 0x2e2   :  { %v9713_v39 = vpop.f32.mrf.mxu0 }
 0x2e3   :  { %v1385_v46 = vmax.f32 %v1383_v7, %v9713_v39 }
 0x2e4   :  { %v9715_v51 = vpop.f32.mrf.mxu0 }
 0x2e5   :  { %14983 = vst [vmem:[#allocation144_spill] sm:$0xff] %v9715_v51 }
 0x2e6   :  { %v9717_v37 = vpop.f32.mrf.mxu0 }
 0x2e7   :  { %14984 = vst [vmem:[#allocation145_spill] sm:$0xff] %v9717_v37  ;;  %v1386_v9 = vmax.f32 %v1384_v12, %v9717_v37 }
 0x2e8   :  { %v9719_v1 = vpop.f32.mrf.mxu0 }
 0x2e9   :  { %14985 = vst [vmem:[#allocation146_spill] sm:$0xff] %v9719_v1 }
 0x2ea   :  { %v9721_v57 = vpop.f32.mrf.mxu0 }
 0x2eb   :  { %v1387_v5 = vmax.f32 %v1385_v46, %v9721_v57 }
 0x2ec   :  { %v9723_v42 = vpop.f32.mrf.mxu0 }
 0x2ed   :  { %14986 = vst [vmem:[#allocation147_spill] sm:$0xff] %v9723_v42 }
 0x2ee   :  { %v9725_v22 = vpop.f32.mrf.mxu0 }
 0x2ef   :  { %14987 = vst [vmem:[#allocation148_spill] sm:$0xff] %v9725_v22  ;;  %v1388_v40 = vmax.f32 %v1386_v9, %v9725_v22 }
 0x2f0   :  { %v9727_v43 = vpop.f32.mrf.mxu0 }
 0x2f2   :  { %v9729_v28 = vpop.f32.mrf.mxu0 }
 0x2f3   :  { %v1389_v58 = vmax.f32 %v1387_v5, %v9729_v28 }
 0x2f4   :  { %v9731_v30 = vpop.f32.mrf.mxu0 }
 0x2f6   :  { %v9733_v18 = vpop.f32.mrf.mxu0 }
 0x2f7   :  { %14988 = vst [vmem:[#allocation149_spill] sm:$0xff] %v9733_v18  ;;  %v1390_v62 = vmax.f32 %v1388_v40, %v9733_v18 }
 0x2f8   :  { %v9735_v31 = vpop.f32.mrf.mxu0 }
 0x2fa   :  { %v9737_v19 = vpop.f32.mrf.mxu0 }
 0x2fb   :  { %v1391_v3 = vmax.f32 %v1389_v58, %v9737_v19  ;;  %v1418_v58 = vmax.f32 %v9691_v15, %v9699_v34 }
 0x2fc   :  { %v9739_v16 = vpop.f32.mrf.mxu0 }
 0x2fe   :  { %v9741_v50 = vpop.f32.mrf.mxu0 }
 0x2ff   :  { %v1392_v7 = vmax.f32 %v1390_v62, %v9741_v50 }
 0x300   :  { %v9743_v6 = vpop.f32.mrf.mxu0 }
 0x302   :  { %v9745_v25 = vpop.f32.mrf.mxu0 }
 0x303   :  { %14989 = vst [vmem:[#allocation150_spill] sm:$0xff] %v9745_v25  ;;  %v1393_v12 = vmax.f32 %v1391_v3, %v9745_v25 }
 0x304   :  { %v9747_v21 = vpop.f32.mrf.mxu0 }
 0x306   :  { %v9749_v13 = vpop.f32.mrf.mxu0 }
 0x307   :  { %v1394_v46 = vmax.f32 %v1392_v7, %v9749_v13  ;;  %v1417_v7 = vmax.f32 %v9687_v20, %v9695_v29 }
 0x308   :  { %v9751_v45 = vpop.f32.mrf.mxu0 }
 0x30a   :  { %v9753_v59 = vpop.f32.mrf.mxu0 }
 0x30b   :  { %v1395_v9 = vmax.f32 %v1393_v12, %v9753_v59  ;;  %v1420_v12 = vmax.f32 %v1418_v58, %v9707_v41 }
 0x30c   :  { %v9755_v52 = vpop.f32.mrf.mxu0 }
 0x30d   :  { %v1422_v34 = vmax.f32 %v1420_v12, %v9715_v51 }
 0x30e   :  { %v9757_v38 = vpop.f32.mrf.mxu0 }
 0x30f   :  { %14990 = vst [vmem:[#allocation151_spill] sm:$0xff] %v9757_v38  ;;  %v1396_v5 = vmax.f32 %v1394_v46, %v9757_v38  ;;  %v1419_v38 = vmax.f32 %v1417_v7, %v9703_v47  ;;  %v1424_v58 = vmax.f32 %v1422_v34, %v9723_v42 }
 0x310   :  { %v9759_v55 = vpop.f32.mrf.mxu0 }
 0x311   :  { %v1426_v12 = vmax.f32 %v1424_v58, %v9731_v30 }
 0x312   :  { %v9761_v17 = vpop.f32.mrf.mxu0 }
 0x313   :  { %14991 = vst [vmem:[#allocation152_spill] sm:$0xff] %v9761_v17  ;;  %v1397_v40 = vmax.f32 %v1395_v9, %v9761_v17  ;;  %v1428_v34 = vmax.f32 %v1426_v12, %v9739_v16 }
 0x314   :  { %v9763_v27 = vpop.f32.mrf.mxu0 }
 0x316   :  { %v9765_v53 = vpop.f32.mrf.mxu0 }
 0x317   :  { %14992 = vst [vmem:[#allocation153_spill] sm:$0xff] %v9765_v53  ;;  %v1398_v62 = vmax.f32 %v1396_v5, %v9765_v53  ;;  %v1421_v53 = vmax.f32 %v1419_v38, %v9711_v24 }
 0x318   :  { %v9767_v63 = vpop.f32.mrf.mxu0 }
 0x319   :  { %v1423_v7 = vmax.f32 %v1421_v53, %v9719_v1  ;;  %v1430_v53 = vmax.f32 %v1428_v34, %v9747_v21 }
 0x31a   :  { %v9769_v44 = vpop.f32.mrf.mxu0 }
 0x31b   :  { %14993 = vst [vmem:[#allocation154_spill] sm:$0xff] %v9769_v44  ;;  %v1399_v3 = vmax.f32 %v1397_v40, %v9769_v44  ;;  %v1425_v38 = vmax.f32 %v1423_v7, %v9727_v43 }
 0x31c   :  { %v9771_v8 = vpop.f32.mrf.mxu0 }
 0x31d   :  { %v1427_v42 = vmax.f32 %v1425_v38, %v9735_v31 }
 0x31e   :  { %v9773_v36 = vpop.f32.mrf.mxu0 }
 0x31f   :  { %v1400_v46 = vmax.f32 %v1398_v62, %v9773_v36  ;;  %v1429_v58 = vmax.f32 %v1427_v42, %v9743_v6 }
 0x320   :  { %v9775_v48 = vpop.f32.mrf.mxu0 }
 0x322   :  { %v9777_v56 = vpop.f32.mrf.mxu0 }
 0x323   :  { %v1401_v9 = vmax.f32 %v1399_v3, %v9777_v56 }
 0x324   :  { %v9779_v23 = vpop.f32.mrf.mxu0 }
 0x326   :  { %v9781_v32 = vpop.f32.mrf.mxu0 }
 0x327   :  { %v1402_v5 = vmax.f32 %v1400_v46, %v9781_v32 }
 0x328   :  { %v9787_v0 = vpop.f32.mrf.mxu0 }
 0x32a   :  { %v9791_v10 = vpop.f32.mrf.mxu0 }
 0x32b   :  { %v1403_v40 = vmax.f32 %v1401_v9, %v9791_v10 }
 0x32c   :  { %v9795_v49 = vpop.f32.mrf.mxu0 }
 0x32e   :  { %v9799_v4 = vpop.f32.mrf.mxu0 }
 0x32f   :  { %v1404_v62 = vmax.f32 %v1402_v5, %v9799_v4 }
 0x330   :  { %v9803_v14 = vpop.f32.mrf.mxu0 }
 0x332   :  { %v9807_v11 = vpop.f32.mrf.mxu0 }
 0x333   :  { %v1405_v3 = vmax.f32 %v1403_v40, %v9807_v11 }
 0x334   :  { %v9811_v37 = vpop.f32.mrf.mxu0 }
 0x336   :  { %v9815_v22 = vpop.f32.mrf.mxu0 }
 0x337   :  { %14994 = vst [vmem:[#allocation155_spill] sm:$0xff] %v9815_v22  ;;  %v1406_v46 = vmax.f32 %v1404_v62, %v9815_v22  ;;  %v1432_v62 = vmax.f32 %v1430_v53, %v9755_v52 }
 0x338   :  { %v9819_v18 = vpop.f32.mrf.mxu0 }
 0x339   :  { %v1434_v7 = vmax.f32 %v1432_v62, %v9763_v27 }
 0x33a   :  { %v9825_v25 = vpop.f32.mrf.mxu0 }
 0x33b   :  { %14995 = vst [vmem:[#allocation156_spill] sm:$0xff] %v9825_v25  ;;  %v1407_v9 = vmax.f32 %v1405_v3, %v9825_v25  ;;  %v1431_v25 = vmax.f32 %v1429_v58, %v9751_v45 }
 0x33c   :  { %v9832_v17 = vpop.f32.mrf.mxu0 }
 0x33d   :  { %v1433_v12 = vmax.f32 %v1431_v25, %v9759_v55 }
 0x33e   :  { %v9838_v44 = vpop.f32.mrf.mxu0 }
 0x33f   :  { %v1408_v5 = vmax.f32 %v1406_v46, %v9838_v44  ;;  %v1436_v46 = vmax.f32 %v1434_v7, %v9771_v8  ;;  %v1435_v38 = vmax.f32 %v1433_v12, %v9767_v63 }
 0x340   :  { %v9844_v41 = vpop.f32.mrf.mxu0 }
 0x341   :  { %v1438_v34 = vmax.f32 %v1436_v46, %v9779_v23  ;;  %v1437_v42 = vmax.f32 %v1435_v38, %v9775_v48 }
 0x342   :  { %v9850_v51 = vpop.f32.mrf.mxu0 }
 0x343   :  { %v1409_v40 = vmax.f32 %v1407_v9, %v9850_v51  ;;  %v1439_v58 = vmax.f32 %v1437_v42, %v9787_v0 }
 0x345   :  { %v1410_v1 = vmax.f32 %v1408_v5, %v1409_v40  ;;  %v1440_v40 = vmax.f32 %v1438_v34, %v9795_v49  ;;  %v1441_v25 = vmax.f32 %v1439_v58, %v9803_v14 }
 0x347   :  { %v1411_v3 = vrot.slane %v1410_v1, 4  ;;  %v1442_v62 = vmax.f32 %v1440_v40, %v9811_v37  ;;  %v1443_v12 = vmax.f32 %v1441_v25, %v9819_v18 }
 0x349   :  { %v1412_v22 = vmax.f32 %v1410_v1, %v1411_v3  ;;  %v9870_v1 = vpop.f32.mrf.mxu0  ;;  %v1444_v3 = vmax.f32 %v1442_v62, %v9832_v17  ;;  %v1445_v46 = vmax.f32 %v1443_v12, %v9844_v41 }
 0x34b   :  { %v1413_v9 = vrot.slane %v1412_v22, 2 }
 0x34d   :  { %v1414_v5 = vmax.f32 %v1412_v22, %v1413_v9  ;;  %v1446_v22 = vmax.f32 %v1444_v3, %v9870_v1 }
 0x34f   :  { %v1415_v53 = vrot.slane %v1414_v5, 1  ;;  %v1447_v42 = vmax.f32 %v1445_v46, %v1446_v22 }
 0x351   :  { %v9874_v7 = vmax.f32 %v1414_v5, %v1415_v53  ;;  %v1448_v25 = vrot.slane %v1447_v42, 4 }
 0x353   :  { %v1454_v9 = vsub.f32 %v9685_v54, %v9874_v7  ;;  %v1456_v38 = vsub.f32 %v9689_v33, %v9874_v7  ;;  %v1458_v34 = vsub.f32 %v9693_v35, %v9874_v7  ;;  %v1460_v5 = vsub.f32 %v9697_v26, %v9874_v7 }
 0x354   :  { %v1462_v58 = vsub.f32 %v9701_v60, %v9874_v7  ;;  %v1464_v54 = vsub.f32 %v9705_v61, %v9874_v7  ;;  %v1466_v35 = vsub.f32 %v9709_v2, %v9874_v7  ;;  %v1449_v12 = vmax.f32 %v1447_v42, %v1448_v25  ;;  %v14996_v60 = vld [vmem:[#allocation145_spill] sm:$0xff] }
 0x355   :  { %v1518_v40 = vmul.f32 1.442695, %v1454_v9  ;;  %v1522_v53 = vmul.f32 1.442695, %v1456_v38  ;;  %v1526_v62 = vmul.f32 1.442695, %v1458_v34  ;;  %v1468_v26 = vsub.f32 %v9713_v39, %v9874_v7 }
 0x356   :  { %v1530_v33 = vmul.f32 1.442695, %v1460_v5  ;;  %v1534_v3 = vmul.f32 1.442695, %v1462_v58  ;;  %v1538_v22 = vmul.f32 1.442695, %v1464_v54  ;;  %v1470_v46 = vsub.f32 %v14996_v60, %v9874_v7 }
 0x357   :  { %7671 = vpow2.f32 %v1518_v40  ;;  %v1542_v9 = vmul.f32 1.442695, %v1466_v35  ;;  %v1472_v61 = vsub.f32 %v9721_v57, %v9874_v7  ;;  %v1450_v38 = vrot.slane %v1449_v12, 2  ;;  %v14997_v34 = vld [vmem:[#allocation148_spill] sm:$0xff]  ;;  %v14998_v39 = vld [vmem:[#allocation149_spill] sm:$0xff] }
 0x358   :  { %7673 = vpow2.f32 %v1522_v53  ;;  %v1474_v2 = vsub.f32 %v14997_v34, %v9874_v7  ;;  %v1546_v5 = vmul.f32 1.442695, %v1468_v26  ;;  %v1476_v42 = vsub.f32 %v9729_v28, %v9874_v7 }
 0x359   :  { %7675 = vpow2.f32 %v1526_v62  ;;  %v1478_v40 = vsub.f32 %v14998_v39, %v9874_v7  ;;  %v1550_v53 = vmul.f32 1.442695, %v1470_v46  ;;  %v1480_v58 = vsub.f32 %v9737_v19, %v9874_v7 }
 0x35a   :  { %7677 = vpow2.f32 %v1530_v33  ;;  %v1554_v62 = vmul.f32 1.442695, %v1472_v61  ;;  %v1451_v25 = vmax.f32 %v1449_v12, %v1450_v38  ;;  %v1482_v54 = vsub.f32 %v9741_v50, %v9874_v7 }
 0x35b   :  { %7679 = vpow2.f32 %v1534_v3  ;;  %v1558_v33 = vmul.f32 1.442695, %v1474_v2  ;;  %v1498_v28 = vsub.f32 %v9773_v36, %v9874_v7  ;;  %v1562_v3 = vmul.f32 1.442695, %v1476_v42 }
 0x35c   :  { %7681 = vpow2.f32 %v1538_v22  ;;  %v1500_v26 = vsub.f32 %v9777_v56, %v9874_v7  ;;  %v1566_v19 = vmul.f32 1.442695, %v1478_v40  ;;  %v1502_v50 = vsub.f32 %v9781_v32, %v9874_v7 }
 0x35d   :  { %7683 = vpow2.f32 %v1542_v9  ;;  %v1570_v60 = vmul.f32 1.442695, %v1480_v58  ;;  %v1452_v46 = vrot.slane %v1451_v25, 1  ;;  %v1504_v36 = vsub.f32 %v9791_v10, %v9874_v7  ;;  %v15000_v10 = vld [vmem:[#allocation150_spill] sm:$0xff] }
 0x35e   :  { %7685 = vpow2.f32 %v1546_v5  ;;  %v1574_v9 = vmul.f32 1.442695, %v1482_v54  ;;  %v1506_v38 = vsub.f32 %v9799_v4, %v9874_v7  ;;  %v1606_v34 = vmul.f32 1.442695, %v1498_v28  ;;  %v15001_v28 = vld [vmem:[#allocation151_spill] sm:$0xff] }
 0x35f   :  { %7687 = vpow2.f32 %v1550_v53  ;;  %v1508_v32 = vsub.f32 %v9807_v11, %v9874_v7  ;;  %v1610_v2 = vmul.f32 1.442695, %v1500_v26  ;;  %v1484_v39 = vsub.f32 %v15000_v10, %v9874_v7 }
 0x360   :  { %7689 = vpow2.f32 %v1554_v62  ;;  %v1614_v40 = vmul.f32 1.442695, %v1502_v50  ;;  %v9937_v53 = vmax.f32 %v1451_v25, %v1452_v46  ;;  %v1486_v4 = vsub.f32 %v9749_v13, %v9874_v7 }
 0x361   :  { %7691 = vpow2.f32 %v1558_v33  ;;  %v1618_v58 = vmul.f32 1.442695, %v1504_v36  ;;  %v1488_v54 = vsub.f32 %v9753_v59, %v9874_v7  ;;  %v1622_v33 = vmul.f32 1.442695, %v1506_v38  ;;  %v15002_v36 = vld [vmem:[#allocation152_spill] sm:$0xff] }
 0x362   :  { %7693 = vpow2.f32 %v1562_v3  ;;  %v1490_v3 = vsub.f32 %v15001_v28, %v9874_v7  ;;  %v1626_v25 = vmul.f32 1.442695, %v1508_v32  ;;  %v1578_v13 = vmul.f32 1.442695, %v1484_v39 }
 0x363   :  { %7695 = vpow2.f32 %v1566_v19  ;;  %v1582_v50 = vmul.f32 1.442695, %v1486_v4 }
 0x364   :  { %v9907_v57 = vpop.eup %7671  ;;  %7697 = vpow2.f32 %v1570_v60  ;;  %v1457_v60 = vsub.f32 %v9691_v15, %v9937_v53  ;;  %v1590_v38 = vmul.f32 1.442695, %v1490_v3 }
 0x365   :  { %v9911_v35 = vpop.eup %7673  ;;  %7699 = vpow2.f32 %v1574_v9  ;;  %v1492_v9 = vsub.f32 %v15002_v36, %v9874_v7 }
 0x366   :  { %14999 = vst [vmem:[#allocation145_spill] sm:$0xff] %v9911_v35  ;;  %v1646_v12 = vadd.f32 %v9911_v35, %v9907_v57  ;;  %v9919_v22 = vpop.eup %7675  ;;  %7701 = vpow2.f32 %v1606_v34 }
 0x367   :  { %v9926_v61 = vpop.eup %7677  ;;  %7703 = vpow2.f32 %v1610_v2  ;;  %v15003_v2 = vld [vmem:[#allocation153_spill] sm:$0xff] }
 0x368   :  { %v1647_v56 = vadd.f32 %v9919_v22, %v1646_v12  ;;  %v9933_v42 = vpop.eup %7679  ;;  %7705 = vpow2.f32 %v1614_v40  ;;  %v1455_v12 = vsub.f32 %v9687_v20, %v9937_v53  ;;  %v1459_v20 = vsub.f32 %v9695_v29, %v9937_v53  ;;  %v15004_v40 = vld [vmem:[#allocation142_spill] sm:$0xff] }
 0x369   :  { %v9942_v62 = vpop.eup %7681  ;;  %7707 = vpow2.f32 %v1618_v58  ;;  %v1461_v4 = vsub.f32 %v15004_v40, %v9937_v53  ;;  %v1524_v58 = vmul.f32 1.442695, %v1457_v60  ;;  %v15005_v29 = vld [vmem:[#allocation154_spill] sm:$0xff] }
 0x36a   :  { %v1648_v5 = vadd.f32 %v9926_v61, %v1647_v56  ;;  %v9949_v19 = vpop.eup %7683  ;;  %v1586_v56 = vmul.f32 1.442695, %v1488_v54  ;;  %7709 = vpow2.f32 %v1622_v33  ;;  %v1520_v15 = vmul.f32 1.442695, %v1455_v12 }
 0x36b   :  { %v9956_v46 = vpop.eup %7685  ;;  %7711 = vpow2.f32 %v1626_v25  ;;  %v1496_v54 = vsub.f32 %v15005_v29, %v9874_v7  ;;  %v1594_v33 = vmul.f32 1.442695, %v1492_v9  ;;  %v1463_v25 = vsub.f32 %v9703_v47, %v9937_v53 }
 0x36c   :  { %v1649_v11 = vadd.f32 %v9933_v42, %v1648_v5  ;;  %v9963_v32 = vpop.eup %7687  ;;  %v1494_v5 = vsub.f32 %v15003_v2, %v9874_v7  ;;  %7713 = vpow2.f32 %v1578_v13  ;;  %v1467_v9 = vsub.f32 %v9711_v24, %v9937_v53 }
 0x36d   :  { %v9967_v10 = vpop.eup %7689  ;;  %7715 = vpow2.f32 %v1582_v50  ;;  %v15006_v50 = vld [vmem:[#allocation143_spill] sm:$0xff]  ;;  %v1602_v47 = vmul.f32 1.442695, %v1496_v54  ;;  %v1536_v40 = vmul.f32 1.442695, %v1463_v25  ;;  %v1479_v24 = vsub.f32 %v9735_v31, %v9937_v53 }
 0x36e   :  { %v1650_v26 = vadd.f32 %v9942_v62, %v1649_v11  ;;  %v9972_v11 = vpop.eup %7691  ;;  %7717 = vpow2.f32 %v1586_v56  ;;  %v1598_v12 = vmul.f32 1.442695, %v1494_v5  ;;  %v1532_v56 = vmul.f32 1.442695, %v1461_v4 }
 0x36f   :  { %v9976_v28 = vpop.eup %7693  ;;  %7719 = vpow2.f32 %v1590_v38  ;;  %v1481_v4 = vsub.f32 %v9739_v16, %v9937_v53  ;;  %v1485_v31 = vsub.f32 %v9747_v21, %v9937_v53 }
 0x370   :  { %v1651_v59 = vadd.f32 %v9949_v19, %v1650_v26  ;;  %v1528_v26 = vmul.f32 1.442695, %v1459_v20  ;;  %v9981_v13 = vpop.eup %7695  ;;  %7721 = vpow2.f32 %v1520_v15  ;;  %v15009_v15 = vld [vmem:[#allocation146_spill] sm:$0xff] }
 0x371   :  { %v9985_v60 = vpop.eup %7697  ;;  %7723 = vpow2.f32 %v1524_v58 }
 0x372   :  { %v1652_v34 = vadd.f32 %v9956_v46, %v1651_v59  ;;  %v1465_v59 = vsub.f32 %v15006_v50, %v9937_v53  ;;  %v9990_v38 = vpop.eup %7699  ;;  %7725 = vpow2.f32 %v1594_v33 }
 0x373   :  { %v9994_v2 = vpop.eup %7701  ;;  %7727 = vpow2.f32 %v1528_v26 }
 0x374   :  { %v1653_v39 = vadd.f32 %v9963_v32, %v1652_v34  ;;  %v15007_v34 = vld [vmem:[#allocation144_spill] sm:$0xff]  ;;  %15008 = vst [vmem:[#allocation148_spill] sm:$0xff] %v9994_v2  ;;  %v9999_v29 = vpop.eup %7703  ;;  %7729 = vpow2.f32 %v1598_v12  ;;  %v1540_v58 = vmul.f32 1.442695, %v1465_v59  ;;  %v1483_v12 = vsub.f32 %v9743_v6, %v9937_v53 }
 0x375   :  { %v1469_v20 = vsub.f32 %v15007_v34, %v9937_v53  ;;  %v10005_v54 = vpop.eup %7705  ;;  %7731 = vpow2.f32 %v1532_v56  ;;  %v1568_v6 = vmul.f32 1.442695, %v1479_v24 }
 0x376   :  { %v1654_v3 = vadd.f32 %v9967_v10, %v1653_v39  ;;  %v1471_v39 = vsub.f32 %v15009_v15, %v9937_v53  ;;  %v10010_v25 = vpop.eup %7707  ;;  %7733 = vpow2.f32 %v1602_v47  ;;  %v15010_v47 = vld [vmem:[#allocation147_spill] sm:$0xff] }
 0x377   :  { %v1548_v16 = vmul.f32 1.442695, %v1469_v20  ;;  %v10016_v50 = vpop.eup %7709  ;;  %7735 = vpow2.f32 %v1536_v40  ;;  %v1473_v34 = vsub.f32 %v15010_v47, %v9937_v53  ;;  %v1572_v20 = vmul.f32 1.442695, %v1481_v4 }
 0x378   :  { %v1655_v36 = vadd.f32 %v9972_v11, %v1654_v3  ;;  %v1544_v3 = vmul.f32 1.442695, %v1467_v9  ;;  %v10021_v56 = vpop.eup %7711  ;;  %7737 = vpow2.f32 %v1540_v58  ;;  %v1475_v40 = vsub.f32 %v9727_v43, %v9937_v53 }
 0x379   :  { %v1477_v58 = vsub.f32 %v9731_v30, %v9937_v53  ;;  %v1556_v9 = vmul.f32 1.442695, %v1473_v34 }
 0x37a   :  { %v1656_v5 = vadd.f32 %v9976_v28, %v1655_v36  ;;  %v1552_v36 = vmul.f32 1.442695, %v1471_v39  ;;  %7739 = vpow2.f32 %v1544_v3  ;;  %v1580_v3 = vmul.f32 1.442695, %v1485_v31 }
 0x37b   :  { %7741 = vpow2.f32 %v1548_v16  ;;  %v1564_v31 = vmul.f32 1.442695, %v1477_v58  ;;  %v1514_v58 = vsub.f32 %v9838_v44, %v9874_v7 }
 0x37c   :  { %v1657_v33 = vadd.f32 %v9981_v13, %v1656_v5  ;;  %v10025_v5 = vpop.eup %7713  ;;  %7743 = vpow2.f32 %v1552_v36 }
 0x37d   :  { %v10030_v39 = vpop.eup %7715  ;;  %7745 = vpow2.f32 %v1568_v6 }
 0x37e   :  { %v1658_v59 = vadd.f32 %v9985_v60, %v1657_v33  ;;  %15011 = vst [vmem:[#allocation149_spill] sm:$0xff] %v10030_v39  ;;  %v1576_v33 = vmul.f32 1.442695, %v1483_v12  ;;  %v10034_v26 = vpop.eup %7717  ;;  %7747 = vpow2.f32 %v1572_v20  ;;  %v15014_v12 = vld [vmem:[#allocation155_spill] sm:$0xff]  ;;  %v15017_v20 = vld [vmem:[#allocation156_spill] sm:$0xff] }
 0x37f   :  { %15012 = vst [vmem:[#allocation150_spill] sm:$0xff] %v10034_v26  ;;  %v10039_v4 = vpop.eup %7719  ;;  %v1510_v16 = vsub.f32 %v15014_v12, %v9874_v7 }
 0x380   :  { %v1659_v21 = vadd.f32 %v9990_v38, %v1658_v59  ;;  %15013 = vst [vmem:[#allocation151_spill] sm:$0xff] %v10039_v4  ;;  %v10041_v59 = vpop.eup %7721  ;;  %7749 = vpow2.f32 %v1576_v33 }
 0x381   :  { %v10044_v43 = vpop.eup %7723  ;;  %7751 = vpow2.f32 %v1580_v3 }
 0x382   :  { %v1660_v24 = vadd.f32 %v10025_v5, %v1659_v21  ;;  %v1560_v21 = vmul.f32 1.442695, %v1475_v40  ;;  %v10048_v15 = vpop.eup %7725  ;;  %v1683_v36 = vadd.f32 %v10044_v43, %v10041_v59  ;;  %7753 = vpow2.f32 %v1556_v9 }
 0x383   :  { %15015 = vst [vmem:[#allocation152_spill] sm:$0xff] %v10048_v15  ;;  %v10053_v6 = vpop.eup %7727  ;;  %v1516_v9 = vsub.f32 %v9850_v51, %v9874_v7  ;;  %v1489_v51 = vsub.f32 %v9755_v52, %v9937_v53 }
 0x384   :  { %v1661_v47 = vadd.f32 %v10030_v39, %v1660_v24  ;;  %v10055_v34 = vpop.eup %7729  ;;  %v1512_v24 = vsub.f32 %v15017_v20, %v9874_v7  ;;  %v1684_v40 = vadd.f32 %v10053_v6, %v1683_v36  ;;  %7755 = vpow2.f32 %v1560_v21 }
 0x385   :  { %15016 = vst [vmem:[#allocation153_spill] sm:$0xff] %v10055_v34  ;;  %v10061_v33 = vpop.eup %7731  ;;  %7757 = vpow2.f32 %v1564_v31 }
 0x386   :  { %v1662_v30 = vadd.f32 %v10034_v26, %v1661_v47  ;;  %v10065_v3 = vpop.eup %7733  ;;  %v1630_v47 = vmul.f32 1.442695, %v1510_v16  ;;  %v1685_v39 = vadd.f32 %v10061_v33, %v1684_v40  ;;  %v1634_v36 = vmul.f32 1.442695, %v1512_v24 }
 0x387   :  { %15018 = vst [vmem:[#allocation142_spill] sm:$0xff] %v10065_v3  ;;  %v10069_v20 = vpop.eup %7735  ;;  %v1638_v16 = vmul.f32 1.442695, %v1514_v58 }
 0x388   :  { %v1663_v12 = vadd.f32 %v10039_v4, %v1662_v30  ;;  %v10071_v30 = vpop.eup %7737  ;;  %v1686_v44 = vadd.f32 %v10069_v20, %v1685_v39  ;;  %7759 = vpow2.f32 %v1630_v47 }
 0x389   :  { %v10077_v21 = vpop.eup %7739  ;;  %7761 = vpow2.f32 %v1634_v36  ;;  %v1588_v36 = vmul.f32 1.442695, %v1489_v51 }
 0x38a   :  { %v1664_v26 = vadd.f32 %v10048_v15, %v1663_v12  ;;  %v10079_v35 = vpop.eup %7741  ;;  %v1487_v12 = vsub.f32 %v9751_v45, %v9937_v53  ;;  %v1687_v40 = vadd.f32 %v10071_v30, %v1686_v44  ;;  %7763 = vpow2.f32 %v1638_v16 }
 0x38b   :  { %v10085_v15 = vpop.eup %7743 }
 0x38c   :  { %v1665_v4 = vadd.f32 %v10055_v34, %v1664_v26  ;;  %v7746_v7 = vpop.eup %7745  ;;  %v1642_v26 = vmul.f32 1.442695, %v1516_v9  ;;  %v1688_v24 = vadd.f32 %v10077_v21, %v1687_v40  ;;  %v1584_v44 = vmul.f32 1.442695, %v1487_v12 }
 0x38d   :  { %v7748_v58 = vpop.eup %7747  ;;  %v1493_v9 = vsub.f32 %v9763_v27, %v9937_v53  ;;  %v1495_v12 = vsub.f32 %v9767_v63, %v9937_v53  ;;  %v1501_v63 = vsub.f32 %v9779_v23, %v9937_v53 }
 0x38e   :  { %v1666_v31 = vadd.f32 %v10065_v3, %v1665_v4  ;;  %v1491_v4 = vsub.f32 %v9759_v55, %v9937_v53  ;;  %v10093_v47 = vpop.eup %7749  ;;  %v1689_v3 = vadd.f32 %v10079_v35, %v1688_v24  ;;  %7765 = vpow2.f32 %v1642_v26 }
 0x38f   :  { %v10097_v52 = vpop.eup %7751  ;;  %v1736_v24 = vpack.c.bf16 %v10025_v5, %v9990_v38  ;;  %7767 = vpow2.f32 %v1584_v44  ;;  %v1735_v26 = vpack.c.bf16 %v7748_v58, %v7746_v7  ;;  %v1596_v5 = vmul.f32 1.442695, %v1493_v9 }
 0x390   :  { %v1667_v39 = vadd.f32 %v9994_v2, %v1666_v31  ;;  %v1690_v40 = vadd.f32 %v10085_v15, %v1689_v3  ;;  %v1737_v55 = vpack.c.bf16 %v10097_v52, %v10093_v47  ;;  %v7754_v16 = vpop.eup %7753  ;;  %v1497_v3 = vsub.f32 %v9771_v8, %v9937_v53 }
 0x391   :  { %v7756_v34 = vpop.eup %7755  ;;  %v1499_v2 = vsub.f32 %v9775_v48, %v9937_v53  ;;  %7769 = vpow2.f32 %v1588_v36  ;;  %v1515_v44 = vsub.f32 %v9844_v41, %v9937_v53  ;;  %v1600_v8 = vmul.f32 1.442695, %v1495_v12 }
 0x392   :  { %v1668_v45 = vadd.f32 %v9999_v29, %v1667_v39  ;;  %v1592_v39 = vmul.f32 1.442695, %v1491_v4  ;;  %v1691_v51 = vadd.f32 %v7754_v16, %v1690_v40  ;;  %1754 = vmatprep.subr.bf16.mxu1 %v1737_v55  ;;  %v1734_v48 = vpack.c.bf16 %v9985_v60, %v9981_v13 }
 0x393   :  { %1755 = vmatpush1.bf16.msra.mxu1 %v1736_v24  ;;  %v1503_v9 = vsub.f32 %v9787_v0, %v9937_v53  ;;  %v1505_v41 = vsub.f32 %v9795_v49, %v9937_v53  ;;  %v1604_v36 = vmul.f32 1.442695, %v1497_v3  ;;  %v1608_v60 = vmul.f32 1.442695, %v1499_v2 }
 0x394   :  { %v1669_v31 = vadd.f32 %v10005_v54, %v1668_v45  ;;  %v7758_v45 = vpop.eup %7757  ;;  %v1692_v4 = vadd.f32 %v7756_v34, %v1691_v51  ;;  %1756 = vmatprep.subr.bf16.mxu1 %v1735_v26  ;;  %7771 = vpow2.f32 %v1592_v39  ;;  %v1513_v39 = vsub.f32 %v9832_v17, %v9937_v53 }
 0x395   :  { %v1733_v55 = vpack.c.bf16 %v7758_v45, %v7756_v34  ;;  %v10124_v24 = vpop.eup %7759  ;;  %7773 = vpow2.f32 %v1596_v5  ;;  %v1640_v0 = vmul.f32 1.442695, %v1515_v44  ;;  %v1732_v49 = vpack.c.bf16 %v9976_v28, %v9972_v11 }
 0x396   :  { %v1670_v27 = vadd.f32 %v10010_v25, %v1669_v31  ;;  %v1517_v31 = vsub.f32 %v9870_v1, %v9937_v53  ;;  %v1693_v23 = vadd.f32 %v7758_v45, %v1692_v4  ;;  %v1511_v1 = vsub.f32 %v9819_v18, %v9937_v53  ;;  %v10133_v34 = vpop.eup %7761 }
 0x397   :  { %1757 = vmatpush1.bf16.msra.mxu1 %v1734_v48  ;;  %7775 = vpow2.f32 %v1600_v8  ;;  %v1731_v26 = vpack.c.bf16 %v7754_v16, %v10085_v15  ;;  %v10141_v45 = vpop.eup %7763  ;;  %v1507_v2 = vsub.f32 %v9803_v14, %v9937_v53  ;;  %v1612_v17 = vmul.f32 1.442695, %v1501_v63 }
 0x398   :  { %v1671_v38 = vadd.f32 %v10016_v50, %v1670_v27  ;;  %v1694_v12 = vadd.f32 %v7746_v7, %v1693_v23  ;;  %1758 = vmatprep.subr.bf16.mxu1 %v1733_v55  ;;  %v1644_v27 = vmul.f32 1.442695, %v1517_v31  ;;  %v1509_v7 = vsub.f32 %v9811_v37, %v9937_v53 }
 0x399   :  { %7777 = vpow2.f32 %v1604_v36  ;;  %v1616_v11 = vmul.f32 1.442695, %v1503_v9  ;;  %v1632_v15 = vmul.f32 1.442695, %v1511_v1  ;;  %v1636_v16 = vmul.f32 1.442695, %v1513_v39 }
 0x39a   :  { %v1672_v40 = vadd.f32 %v10021_v56, %v1671_v38  ;;  %v1695_v51 = vadd.f32 %v7748_v58, %v1694_v12  ;;  %7779 = vpow2.f32 %v1608_v60  ;;  %v1730_v14 = vpack.c.bf16 %v9967_v10, %v9963_v32 }
 0x39b   :  { %1759 = vmatpush1.bf16.msra.mxu1 %v1732_v49  ;;  %v10149_v58 = vpop.eup %7765  ;;  %7781 = vpow2.f32 %v1640_v0  ;;  %v1729_v63 = vpack.c.bf16 %v10079_v35, %v10077_v21  ;;  %v1624_v32 = vmul.f32 1.442695, %v1507_v2  ;;  %v1728_v10 = vpack.c.bf16 %v9956_v46, %v9949_v19 }
 0x39c   :  { %v1673_v13 = vadd.f32 %v10124_v24, %v1672_v40  ;;  %v1696_v28 = vadd.f32 %v10093_v47, %v1695_v51  ;;  %1760 = vmatprep.subr.bf16.mxu1 %v1731_v26  ;;  %7783 = vpow2.f32 %v1644_v27  ;;  %v10159_v38 = vpop.eup %7767  ;;  %v1620_v47 = vmul.f32 1.442695, %v1505_v41 }
 0x39d   :  { %7785 = vpow2.f32 %v1612_v17  ;;  %v1727_v21 = vpack.c.bf16 %v10071_v30, %v10069_v20  ;;  %v1726_v48 = vpack.c.bf16 %v9942_v62, %v9933_v42  ;;  %v1725_v46 = vpack.c.bf16 %v10061_v33, %v10053_v6  ;;  %v15019_v33 = vld [vmem:[#allocation145_spill] sm:$0xff] }
 0x39e   :  { %v1674_v18 = vadd.f32 %v10133_v34, %v1673_v13  ;;  %v1697_v53 = vadd.f32 %v10097_v52, %v1696_v28  ;;  %7787 = vpow2.f32 %v1616_v11  ;;  %v10162_v4 = vpop.eup %7769  ;;  %v1628_v52 = vmul.f32 1.442695, %v1509_v7 }
 0x39f   :  { %1761 = vmatpush1.bf16.msra.mxu1 %v1730_v14  ;;  %7789 = vpow2.f32 %v1632_v15  ;;  %v1724_v55 = vpack.c.bf16 %v9926_v61, %v9919_v22  ;;  %v1723_v1 = vpack.c.bf16 %v10044_v43, %v10041_v59  ;;  %v1722_v13 = vpack.c.bf16 %v15019_v33, %v9907_v57  ;;  %v15024_v14 = vld [vmem:[#allocation153_spill] sm:$0xff]  ;;  %v15051_v33 = vld [vmem:[#allocation118_spill] sm:$0xff] }
 0x3a0   :  { %v1675_v3 = vadd.f32 %v10141_v45, %v1674_v18  ;;  %v1698_v5 = vadd.f32 %v10159_v38, %v1697_v53  ;;  %1762 = vmatprep.subr.bf16.mxu1 %v1729_v63  ;;  %7791 = vpow2.f32 %v1636_v16  ;;  %v1752_v59 = vpack.c.bf16 %v10149_v58, %v10141_v45  ;;  %v15025_v53 = vld [vmem:[#allocation142_spill] sm:$0xff]  ;;  %v15026_v63 = vld [vmem:[#allocation151_spill] sm:$0xff] }
 0x3a1   :  { %v10169_v44 = vpop.eup %7771  ;;  %7793 = vpow2.f32 %v1620_v47  ;;  %v1750_v57 = vpack.c.bf16 %v10133_v34, %v10124_v24  ;;  %v15020_v45 = vpack.c.bf16 %v10021_v56, %v10016_v50  ;;  %v15021_v15 = vpack.c.bf16 %v10010_v25, %v10005_v54  ;;  %v15022_v34 = vld [vmem:[#allocation148_spill] sm:$0xff]  ;;  %v15028_v25 = vld [vmem:[#allocation149_spill] sm:$0xff] }
 0x3a2   :  { %v10154_v37 = vadd.f32 %v10149_v58, %v1675_v3  ;;  %v1699_v35 = vadd.f32 %v10162_v4, %v1698_v5  ;;  %v7774_v8 = vpop.eup %7773  ;;  %7795 = vpow2.f32 %v1624_v32  ;;  %v15023_v16 = vpack.c.bf16 %v9999_v29, %v15022_v34  ;;  %v15027_v47 = vld [vmem:[#allocation152_spill] sm:$0xff]  ;;  %v15029_v32 = vld [vmem:[#allocation150_spill] sm:$0xff] }
 0x3a3   :  { %1763 = vmatpush1.bf16.msra.mxu1 %v1728_v10  ;;  %7797 = vpow2.f32 %v1628_v52  ;;  %v1742_v50 = vpack.c.bf16 %v15025_v53, %v15024_v14  ;;  %v1741_v56 = vpack.c.bf16 %v7774_v8, %v10169_v44  ;;  %v1740_v5 = vpack.c.bf16 %v15027_v47, %v15026_v63  ;;  %v15030_v10 = vld [vmem:[#allocation17_spill] sm:$0xff]  ;;  %v15031_v52 = vld [vmem:[#allocation19_spill] sm:$0xff] }
 0x3a4   :  { %v1700_v31 = vadd.f32 %v10169_v44, %v1699_v35  ;;  %1764 = vmatprep.subr.bf16.mxu1 %v1727_v21  ;;  %v7776_v40 = vpop.eup %7775  ;;  %v1739_v54 = vpack.c.bf16 %v10162_v4, %v10159_v38  ;;  %v1738_v29 = vpack.c.bf16 %v15029_v32, %v15028_v25  ;;  %v1023_v35 = vpack.c.bf16 %v15031_v52, %v15030_v10  ;;  %v15032_v21 = vld [vmem:[#allocation75_spill] sm:$0xff]  ;;  %v15033_v44 = vld [vmem:[#allocation77_spill] sm:$0xff]  ;;  %v15039_v38 = vld [vmem:[#allocation18_spill] sm:$0xff] }
 0x3a5   :  { %v15040_v4 = vld [vmem:[#allocation16_spill] sm:$0xff] }
 0x3a6   :  { %v1701_v19 = vadd.f32 %v7774_v8, %v1700_v31  ;;  %v7778_v20 = vpop.eup %7777  ;;  %v1079_v31 = vpack.c.bf16 %v15033_v44, %v15032_v21  ;;  %v15034_v8 = vld [vmem:[#allocation13_spill] sm:$0xff] }
 0x3a7   :  { %1765 = vmatpush1.bf16.msra.mxu1 %v1726_v48  ;;  %v7780_v23 = vpop.eup %7779  ;;  %v1743_v24 = vpack.c.bf16 %v7778_v20, %v7776_v40  ;;  %v15035_v48 = vld [vmem:[#allocation15_spill] sm:$0xff] }
 0x3a8   :  { %v1702_v30 = vadd.f32 %v7776_v40, %v1701_v19  ;;  %1766 = vmatprep.subr.bf16.mxu1 %v1725_v46  ;;  %v7782_v9 = vpop.eup %7781  ;;  %v1019_v19 = vpack.c.bf16 %v15035_v48, %v15034_v8  ;;  %v15036_v46 = vld [vmem:[#allocation73_spill] sm:$0xff]  ;;  %v15037_v40 = vld [vmem:[#allocation72_spill] sm:$0xff] }
 0x3a9   :  { %v7784_v42 = vpop.eup %7783 }
 0x3aa   :  { %v1703_v41 = vadd.f32 %v7778_v20, %v1702_v30  ;;  %v7786_v62 = vpop.eup %7785  ;;  %v1753_v39 = vpack.c.bf16 %v7784_v42, %v7782_v9  ;;  %v15038_v20 = vpack.c.bf16 %v15036_v46, %v15037_v40  ;;  %v15041_v30 = vpack.c.bf16 %v15039_v38, %v15040_v4 }
 0x3ab   :  { %1767 = vmatpush1.bf16.msra.mxu1 %v1724_v55  ;;  %v7788_v6 = vpop.eup %7787  ;;  %v1745_v58 = vpack.c.bf16 %v7786_v62, %v7780_v23  ;;  %v15043_v55 = vld [vmem:[#allocation12_spill] sm:$0xff] }
 0x3ac   :  { %v1704_v36 = vadd.f32 %v7780_v23, %v1703_v41  ;;  %1768 = vmatprep.subr.bf16.mxu1 %v1723_v1  ;;  %v7790_v60 = vpop.eup %7789  ;;  %v15042_v23 = vld [vmem:[#allocation14_spill] sm:$0xff]  ;;  %v15045_v41 = vld [vmem:[#allocation76_spill] sm:$0xff] }
 0x3ad   :  { %v7792_v0 = vpop.eup %7791  ;;  %v15046_v1 = vld [vmem:[#allocation74_spill] sm:$0xff] }
 0x3ae   :  { %v1705_v12 = vadd.f32 %v7786_v62, %v1704_v36  ;;  %v7794_v61 = vpop.eup %7793  ;;  %v1751_v49 = vpack.c.bf16 %v7792_v0, %v7790_v60  ;;  %v15048_v62 = vmov 0   ;;  %v15049_v36 = vld [vmem:[#allocation110_spill] sm:$0xff] }
 0x3af   :  { %1769 = vmatpush1.bf16.msra.mxu1 %v1722_v13  ;;  %v7796_v43 = vpop.eup %7795  ;;  %v1747_v3 = vpack.c.bf16 %v7794_v61, %v7788_v6  ;;  %v15052_v13 = vld [vmem:[#allocation122_spill] sm:$0xff] }
 0x3b0   :  { %v1706_v22 = vadd.f32 %v7788_v6, %v1705_v12  ;;  %1770 = vmatprep.subr.bf16.mxu1 %v1753_v39  ;;  %v7798_v18 = vpop.eup %7797  ;;  %v15050_v6 = vld [vmem:[#allocation114_spill] sm:$0xff]  ;;  %v15055_v39 = vld [vmem:[#allocation132_spill] sm:$0xff] }
 0x3b1   :  { %v1749_v2 = vpack.c.bf16 %v7798_v18, %v7796_v43  ;;  %v15054_v12 = vld [vmem:[#allocation130_spill] sm:$0xff] }
 0x3b2   :  { %v1707_v27 = vadd.f32 %v7794_v61, %v1706_v22  ;;  %v15057_v22 = vld [vmem:[#allocation134_spill] sm:$0xff]  ;;  %v15058_v61 = vld [vmem:[#allocation135_spill] sm:$0xff] }
 0x3b3   :  { %1771 = vmatpush2.bf16.msra.mxu1 %v1752_v59  ;;  %v15059_v59 = vld [vmem:[#allocation136_spill] sm:$0xff] }
 0x3b4   :  { %v1708_v51 = vadd.f32 %v7796_v43, %v1707_v27  ;;  %1772 = vmatprep.subr.bf16.mxu1 %v1751_v49  ;;  %v15060_v43 = vld [vmem:[#allocation137_spill] sm:$0xff]  ;;  %v15061_v27 = vld [vmem:[#allocation138_spill] sm:$0xff]  ;;  %v15062_v49 = vld [vmem:[#allocation139_spill] sm:$0xff] }
 0x3b6   :  { %v1709_v26 = vadd.f32 %v7798_v18, %v1708_v51  ;;  %v15063_v18 = vld [vmem:[#allocation140_spill] sm:$0xff]  ;;  %v1874_v51 = vpop.trf.xlu1 }
 0x3b7   :  { %1773 = vmatpush2.bf16.msra.mxu1 %v1750_v57  ;;  %v15064_v57 = vld [vmem:[#allocation90_spill] sm:$0xff] }
 0x3b8   :  { %v1710_v7 = vadd.f32 %v7790_v60, %v1709_v26  ;;  %1774 = vmatprep.subr.bf16.mxu1 %v1749_v2  ;;  %v15053_v60 = vld [vmem:[#allocation126_spill] sm:$0xff] }
 0x3b9   :  { %v15065_v26 = vld [vmem:[#allocation94_spill] sm:$0xff] }
 0x3ba   :  { %v1711_v17 = vadd.f32 %v7792_v0, %v1710_v7  ;;  %v15056_v0 = vld [vmem:[#allocation133_spill] sm:$0xff]  ;;  %v1091_v2 = vpack.c.bf16 %v15065_v26, %v15064_v57  ;;  %v1677_v7 = vrot.slane %v10154_v37, 4 }
 0x3bb   :  { %1775 = vmatpush2.bf16.msra.mxu1 %v15020_v45 }
 0x3bc   :  { %v1712_v11 = vadd.f32 %v7782_v9, %v1711_v17  ;;  %1776 = vmatprep.subr.bf16.mxu1 %v1747_v3  ;;  %v15044_v9 = vpack.c.bf16 %v15042_v23, %v15043_v55  ;;  %v1678_v3 = vadd.f32 %v1677_v7, %v10154_v37 }
 0x3be   :  { %v10189_v28 = vadd.f32 %v7784_v42, %v1712_v11  ;;  %v15047_v42 = vpack.c.bf16 %v15045_v41, %v15046_v1  ;;  %v1679_v11 = vrot.slane %v1678_v3, 2 }
 0x3bf   :  { %1777 = vmatpush2.bf16.msra.mxu1 %v15021_v15 }
 0x3c0   :  { %1778 = vmatprep.subr.bf16.mxu1 %v1745_v58  ;;  %v1714_v17 = vrot.slane %v10189_v28, 4  ;;  %v1680_v15 = vadd.f32 %v1679_v11, %v1678_v3 }
 0x3c2   :  { %v1715_v45 = vadd.f32 %v1714_v17, %v10189_v28  ;;  %v1681_v34 = vrot.slane %v1680_v15, 1 }
 0x3c3   :  { %1779 = vmatpush2.bf16.msra.mxu1 %v15023_v16 }
 0x3c4   :  { %1780 = vmatprep.subr.bf16.mxu1 %v1743_v24  ;;  %v1716_v58 = vrot.slane %v1715_v45, 2  ;;  %v1682_v14 = vadd.f32 %v1681_v34, %v1680_v15 }
 0x3c6   :  { %v1717_v24 = vadd.f32 %v1716_v58, %v1715_v45  ;;  %7799 = vrcp.f32 %v1682_v14 }
 0x3c7   :  { %1781 = vmatpush2.bf16.msra.mxu1 %v1742_v50  ;;  %v10277_v50 = vpop.f32.mrf.mxu1 }
 0x3c8   :  { %1782 = vmatprep.subr.bf16.mxu1 %v1741_v56  ;;  %v1718_v16 = vrot.slane %v1717_v24, 1  ;;  %15066 = vst [vmem:[#allocation154_spill] sm:$0xff] %v10277_v50 }
 0x3ca   :  { %v1719_v53 = vadd.f32 %v1718_v16, %v1717_v24 }
 0x3cb   :  { %1783 = vmatpush2.bf16.msra.mxu1 %v1740_v5 }
 0x3cc   :  { %1784 = vmatprep.subr.bf16.mxu1 %v1739_v54  ;;  %7801 = vrcp.f32 %v1719_v53 }
 0x3cf   :  { %1785 = vmatpush2.bf16.msra.mxu1 %v1738_v29 }
 0x3d0   :  { %1935 = vmatprep.subr.bf16.mxu1 %v1023_v35 }
 0x3d2   :  { %1787 = vmatmul.mubr.bf16.vlgmr.msra.gmra.mxu1 %v15038_v20 }
 0x3d3   :  { %1796 = vmatprep.mubr.bf16.mxu1 %v1079_v31  ;;  %1936 = vmatpush1.bf16.msra.mxu1 %v15041_v30  ;;  %v7800_v56 = vpop.eup %7799 }
 0x3d4   :  { %1937 = vmatprep.subr.bf16.mxu1 %v1019_v19 }
 0x3d7   :  { %1938 = vmatpush1.bf16.msra.mxu1 %v15044_v9 }
 0x3d9   :  { %v7802_v5 = vpop.eup %7801 }
 0x3da   :  { %1797 = vmatmul.mubr.bf16.gmra.mxu1 %v15047_v42 }
 0x3db   :  { %1955 = vmatprep.mubr.bf16.mxu1 %v15048_v62 }
 0x3e2   :  { %7423 = vmatmul.mubr.msk.bf16.vlgmr.msra.gmra.mxu1 %vm1138_vm2, %v15049_v36 }
 0x3e3   :  { %1965 = vmatprep.mubr.bf16.mxu1 %v15048_v62 }
 0x3ea   :  { %7424 = vmatmul.mubr.msk.bf16.gmra.mxu1 %vm1138_vm2, %v15050_v6 }
 0x3eb   :  { %1975 = vmatprep.mubr.bf16.mxu1 %v15048_v62 }
 0x3f2   :  { %7425 = vmatmul.mubr.msk.bf16.gmra.mxu1 %vm1138_vm2, %v15051_v33 }
 0x3f3   :  { %1985 = vmatprep.mubr.bf16.mxu1 %v15048_v62 }
 0x3fa   :  { %7426 = vmatmul.mubr.msk.bf16.gmra.mxu1 %vm1138_vm2, %v15052_v13 }
 0x3fb   :  { %1995 = vmatprep.mubr.bf16.mxu1 %v15048_v62 }
 0x402   :  { %7427 = vmatmul.mubr.msk.bf16.gmra.mxu1 %vm1138_vm2, %v15053_v60 }
 0x403   :  { %2005 = vmatprep.mubr.bf16.mxu1 %v15048_v62 }
 0x40a   :  { %7428 = vmatmul.mubr.msk.bf16.gmra.mxu1 %vm1138_vm2, %v15054_v12 }
 0x40b   :  { %2015 = vmatprep.mubr.bf16.mxu1 %v15048_v62 }
 0x412   :  { %7429 = vmatmul.mubr.msk.bf16.gmra.mxu1 %vm1138_vm2, %v15055_v39 }
 0x413   :  { %2025 = vmatprep.mubr.bf16.mxu1 %v15048_v62 }
 0x41a   :  { %7430 = vmatmul.mubr.msk.bf16.gmra.mxu1 %vm1138_vm2, %v15056_v0 }
 0x41b   :  { %2035 = vmatprep.mubr.bf16.mxu1 %v15048_v62 }
 0x422   :  { %7431 = vmatmul.mubr.msk.bf16.gmra.mxu1 %vm1138_vm2, %v15057_v22 }
 0x423   :  { %2045 = vmatprep.mubr.bf16.mxu1 %v15048_v62 }
 0x42a   :  { %7432 = vmatmul.mubr.msk.bf16.gmra.mxu1 %vm1138_vm2, %v15058_v61 }
 0x42b   :  { %2055 = vmatprep.mubr.bf16.mxu1 %v15048_v62 }
 0x432   :  { %7433 = vmatmul.mubr.msk.bf16.gmra.mxu1 %vm1138_vm2, %v15059_v59 }
 0x433   :  { %2065 = vmatprep.mubr.bf16.mxu1 %v15048_v62 }
 0x43a   :  { %7434 = vmatmul.mubr.msk.bf16.gmra.mxu1 %vm1138_vm2, %v15060_v43 }
 0x43b   :  { %2075 = vmatprep.mubr.bf16.mxu1 %v15048_v62 }
 0x442   :  { %7435 = vmatmul.mubr.msk.bf16.gmra.mxu1 %vm1138_vm2, %v15061_v27 }
 0x443   :  { %2085 = vmatprep.mubr.bf16.mxu1 %v15048_v62 }
 0x44a   :  { %7436 = vmatmul.mubr.msk.bf16.gmra.mxu1 %vm1138_vm2, %v15062_v49 }
 0x44b   :  { %2095 = vmatprep.mubr.bf16.mxu1 %v15048_v62 }
 0x452   :  { %7437 = vmatmul.mubr.msk.bf16.gmra.mxu1 %vm1138_vm2, %v15063_v18 }
 0x453   :  { %2105 = vmatprep.mubr.bf16.mxu1 %v15048_v62 }
 0x45a   :  { %7438 = vmatmul.mubr.msk.bf16.gmra.mxu1 %vm1138_vm2, %v1874_v51 }
 0x45b   :  { %3258 = vmatprep.mubr.bf16.mxu1 %v1091_v2 }
 0x492   :  { %v1788_v63 = vpop.f32.mrf.mxu1 }
 0x493   :  { %v10279_v47 = vmul.f32 %v7800_v56, %v1788_v63 }
 0x494   :  { %v1790_v37 = vpop.f32.mrf.mxu1 }
 0x495   :  { %15067 = vst [vmem:[#allocation143_spill] sm:$0xff] %v10279_v47  ;;  %v10281_v54 = vmul.f32 %v7802_v5, %v1790_v37 }
 0x496   :  { %v1792_v28 = vpop.f32.mrf.mxu1 }
 0x497   :  { %15068 = vst [vmem:[#allocation144_spill] sm:$0xff] %v10281_v54  ;;  %v10283_v25 = vmul.f32 %v7800_v56, %v1792_v28 }
 0x498   :  { %v1794_v32 = vpop.f32.mrf.mxu1 }
 0x499   :  { %15069 = vst [vmem:[#allocation146_spill] sm:$0xff] %v10283_v25  ;;  %v10287_v10 = vmul.f32 %v7802_v5, %v1794_v32 }
 0x49a   :  { %v1798_v52 = vpop.f32.mrf.mxu1 }
 0x49b   :  { %15070 = vst [vmem:[#allocation147_spill] sm:$0xff] %v10287_v10  ;;  %v10291_v21 = vmul.f32 %v7800_v56, %v1798_v52 }
 0x49c   :  { %v1800_v44 = vpop.f32.mrf.mxu1 }
 0x49d   :  { %15071 = vst [vmem:[#allocation155_spill] sm:$0xff] %v10291_v21  ;;  %v10293_v31 = vmul.f32 %v7802_v5, %v1800_v44 }
 0x49e   :  { %v1802_v8 = vpop.f32.mrf.mxu1 }
 0x49f   :  { %15072 = vst [vmem:[#allocation156_spill] sm:$0xff] %v10293_v31  ;;  %v10295_v48 = vmul.f32 %v7800_v56, %v1802_v8 }
 0x4a0   :  { %v1804_v19 = vpop.f32.mrf.mxu1 }
 0x4a1   :  { %15073 = vst [vmem:[#allocation145_spill] sm:$0xff] %v10295_v48  ;;  %v10299_v40 = vmul.f32 %v7802_v5, %v1804_v19 }
 0x4a2   :  { %v10301_v20 = vpop.f32.mrf.mxu1 }
 0x4a3   :  { %15074 = vst [vmem:[#allocation148_spill] sm:$0xff] %v10299_v40 }
 0x4a4   :  { %v10305_v4 = vpop.f32.mrf.mxu1 }
 0x4a6   :  { %v10307_v30 = vpop.f32.mrf.mxu1 }
 0x4a8   :  { %v10309_v23 = vpop.f32.mrf.mxu1 }
 0x4aa   :  { %v10311_v55 = vpop.f32.mrf.mxu1 }
 0x4ab   :  { %v2116_v19 = vmax.f32 %v10301_v20, %v10311_v55 }
 0x4ac   :  { %v10313_v9 = vpop.f32.mrf.mxu1 }
 0x4ae   :  { %v10315_v41 = vpop.f32.mrf.mxu1 }
 0x4af   :  { %v2117_v29 = vmax.f32 %v10307_v30, %v10315_v41 }
 0x4b0   :  { %v10317_v1 = vpop.f32.mrf.mxu1 }
 0x4b1   :  { %15075 = vst [vmem:[#allocation153_spill] sm:$0xff] %v10317_v1 }
 0x4b2   :  { %v10319_v42 = vpop.f32.mrf.mxu1 }
 0x4b3   :  { %v2118_v46 = vmax.f32 %v2116_v19, %v10319_v42 }
 0x4b4   :  { %v10321_v36 = vpop.f32.mrf.mxu1 }
 0x4b6   :  { %v10323_v6 = vpop.f32.mrf.mxu1 }
 0x4b7   :  { %v2119_v38 = vmax.f32 %v2117_v29, %v10323_v6 }
 0x4b8   :  { %v10325_v33 = vpop.f32.mrf.mxu1 }
 0x4b9   :  { %15076 = vst [vmem:[#allocation142_spill] sm:$0xff] %v10325_v33 }
 0x4ba   :  { %v10327_v13 = vpop.f32.mrf.mxu1 }
 0x4bb   :  { %v2120_v47 = vmax.f32 %v2118_v46, %v10327_v13 }
 0x4bc   :  { %v10329_v60 = vpop.f32.mrf.mxu1 }
 0x4be   :  { %v10331_v12 = vpop.f32.mrf.mxu1 }
 0x4bf   :  { %v2121_v25 = vmax.f32 %v2119_v38, %v10331_v12 }
 0x4c0   :  { %v10333_v39 = vpop.f32.mrf.mxu1 }
 0x4c1   :  { %15077 = vst [vmem:[#allocation151_spill] sm:$0xff] %v10333_v39 }
 0x4c2   :  { %v10335_v0 = vpop.f32.mrf.mxu1 }
 0x4c3   :  { %15078 = vst [vmem:[#allocation152_spill] sm:$0xff] %v10335_v0  ;;  %v2122_v10 = vmax.f32 %v2120_v47, %v10335_v0 }
 0x4c4   :  { %v10337_v22 = vpop.f32.mrf.mxu1 }
 0x4c5   :  { %15079 = vst [vmem:[#allocation149_spill] sm:$0xff] %v10337_v22 }
 0x4c6   :  { %v10339_v61 = vpop.f32.mrf.mxu1 }
 0x4c7   :  { %v2123_v21 = vmax.f32 %v2121_v25, %v10339_v61 }
 0x4c8   :  { %v10341_v59 = vpop.f32.mrf.mxu1 }
 0x4c9   :  { %15080 = vst [vmem:[#allocation150_spill] sm:$0xff] %v10341_v59 }
 0x4ca   :  { %v10343_v43 = vpop.f32.mrf.mxu1 }
 0x4cb   :  { %15081 = vst [vmem:[#allocation17_spill] sm:$0xff] %v10343_v43  ;;  %v2124_v31 = vmax.f32 %v2122_v10, %v10343_v43 }
 0x4cc   :  { %v10345_v27 = vpop.f32.mrf.mxu1 }
 0x4ce   :  { %v10347_v49 = vpop.f32.mrf.mxu1 }
 0x4cf   :  { %v2125_v19 = vmax.f32 %v2123_v21, %v10347_v49 }
 0x4d0   :  { %v10349_v18 = vpop.f32.mrf.mxu1 }
 0x4d2   :  { %v10351_v51 = vpop.f32.mrf.mxu1 }
 0x4d3   :  { %15082 = vst [vmem:[#allocation19_spill] sm:$0xff] %v10351_v51  ;;  %v2126_v29 = vmax.f32 %v2124_v31, %v10351_v51 }
 0x4d4   :  { %v10353_v57 = vpop.f32.mrf.mxu1 }
 0x4d6   :  { %v10355_v26 = vpop.f32.mrf.mxu1 }
 0x4d7   :  { %v2127_v46 = vmax.f32 %v2125_v19, %v10355_v26  ;;  %v2154_v19 = vmax.f32 %v10309_v23, %v10317_v1 }
 0x4d8   :  { %v10357_v2 = vpop.f32.mrf.mxu1 }
 0x4da   :  { %v10359_v7 = vpop.f32.mrf.mxu1 }
 0x4db   :  { %v2128_v38 = vmax.f32 %v2126_v29, %v10359_v7 }
 0x4dc   :  { %v10361_v17 = vpop.f32.mrf.mxu1 }
 0x4de   :  { %v10363_v3 = vpop.f32.mrf.mxu1 }
 0x4df   :  { %15083 = vst [vmem:[#allocation75_spill] sm:$0xff] %v10363_v3  ;;  %v2129_v47 = vmax.f32 %v2127_v46, %v10363_v3 }
 0x4e0   :  { %v10365_v45 = vpop.f32.mrf.mxu1 }
 0x4e2   :  { %v10367_v11 = vpop.f32.mrf.mxu1 }
 0x4e3   :  { %v2130_v25 = vmax.f32 %v2128_v38, %v10367_v11  ;;  %v2153_v38 = vmax.f32 %v10305_v4, %v10313_v9 }
 0x4e4   :  { %v10369_v58 = vpop.f32.mrf.mxu1 }
 0x4e6   :  { %v10371_v15 = vpop.f32.mrf.mxu1 }
 0x4e7   :  { %v2131_v10 = vmax.f32 %v2129_v47, %v10371_v15  ;;  %v2156_v47 = vmax.f32 %v2154_v19, %v10325_v33 }
 0x4e8   :  { %v10373_v24 = vpop.f32.mrf.mxu1 }
 0x4e9   :  { %v2158_v1 = vmax.f32 %v2156_v47, %v10333_v39 }
 0x4ea   :  { %v10375_v34 = vpop.f32.mrf.mxu1 }
 0x4eb   :  { %15084 = vst [vmem:[#allocation77_spill] sm:$0xff] %v10375_v34  ;;  %v2132_v21 = vmax.f32 %v2130_v25, %v10375_v34  ;;  %v2155_v34 = vmax.f32 %v2153_v38, %v10321_v36  ;;  %v2160_v19 = vmax.f32 %v2158_v1, %v10341_v59 }
 0x4ec   :  { %v10377_v16 = vpop.f32.mrf.mxu1 }
 0x4ed   :  { %v2162_v47 = vmax.f32 %v2160_v19, %v10349_v18 }
 0x4ee   :  { %v10379_v14 = vpop.f32.mrf.mxu1 }
 0x4ef   :  { %15085 = vst [vmem:[#allocation13_spill] sm:$0xff] %v10379_v14  ;;  %v2133_v31 = vmax.f32 %v2131_v10, %v10379_v14  ;;  %v2164_v1 = vmax.f32 %v2162_v47, %v10357_v2 }
 0x4f0   :  { %v10381_v53 = vpop.f32.mrf.mxu1 }
 0x4f2   :  { %v10383_v56 = vpop.f32.mrf.mxu1 }
 0x4f3   :  { %15086 = vst [vmem:[#allocation15_spill] sm:$0xff] %v10383_v56  ;;  %v2134_v29 = vmax.f32 %v2132_v21, %v10383_v56  ;;  %v2157_v56 = vmax.f32 %v2155_v34, %v10329_v60 }
 0x4f4   :  { %v10385_v63 = vpop.f32.mrf.mxu1 }
 0x4f5   :  { %v2159_v38 = vmax.f32 %v2157_v56, %v10337_v22  ;;  %v2166_v56 = vmax.f32 %v2164_v1, %v10365_v45 }
 0x4f6   :  { %v10387_v5 = vpop.f32.mrf.mxu1 }
 0x4f7   :  { %15087 = vst [vmem:[#allocation73_spill] sm:$0xff] %v10387_v5  ;;  %v2135_v46 = vmax.f32 %v2133_v31, %v10387_v5  ;;  %v2161_v34 = vmax.f32 %v2159_v38, %v10345_v27 }
 0x4f8   :  { %v10389_v37 = vpop.f32.mrf.mxu1 }
 0x4f9   :  { %v2163_v59 = vmax.f32 %v2161_v34, %v10353_v57 }
 0x4fa   :  { %v10391_v28 = vpop.f32.mrf.mxu1 }
 0x4fb   :  { %v2136_v25 = vmax.f32 %v2134_v29, %v10391_v28  ;;  %v2165_v19 = vmax.f32 %v2163_v59, %v10361_v17 }
 0x4fc   :  { %v10393_v32 = vpop.f32.mrf.mxu1 }
 0x4fe   :  { %v10395_v52 = vpop.f32.mrf.mxu1 }
 0x4ff   :  { %v2137_v10 = vmax.f32 %v2135_v46, %v10395_v52 }
 0x500   :  { %v10397_v44 = vpop.f32.mrf.mxu1 }
 0x502   :  { %v10399_v8 = vpop.f32.mrf.mxu1 }
 0x503   :  { %v2138_v21 = vmax.f32 %v2136_v25, %v10399_v8 }
 0x504   :  { %v10405_v35 = vpop.f32.mrf.mxu1 }
 0x506   :  { %v10409_v50 = vpop.f32.mrf.mxu1 }
 0x507   :  { %v2139_v31 = vmax.f32 %v2137_v10, %v10409_v50 }
 0x508   :  { %v10413_v54 = vpop.f32.mrf.mxu1 }
 0x50a   :  { %v10417_v48 = vpop.f32.mrf.mxu1 }
 0x50b   :  { %v2140_v29 = vmax.f32 %v2138_v21, %v10417_v48 }
 0x50c   :  { %v10421_v40 = vpop.f32.mrf.mxu1 }
 0x50e   :  { %v10425_v62 = vpop.f32.mrf.mxu1 }
 0x50f   :  { %v2141_v46 = vmax.f32 %v2139_v31, %v10425_v62 }
 0x510   :  { %v10429_v0 = vpop.f32.mrf.mxu1 }
 0x512   :  { %v10433_v43 = vpop.f32.mrf.mxu1 }
 0x513   :  { %15088 = vst [vmem:[#allocation72_spill] sm:$0xff] %v10433_v43  ;;  %v2142_v25 = vmax.f32 %v2140_v29, %v10433_v43  ;;  %v2168_v29 = vmax.f32 %v2166_v56, %v10373_v24 }
 0x514   :  { %v10437_v51 = vpop.f32.mrf.mxu1 }
 0x515   :  { %v2170_v38 = vmax.f32 %v2168_v29, %v10381_v53 }
 0x516   :  { %v10443_v3 = vpop.f32.mrf.mxu1 }
 0x517   :  { %15089 = vst [vmem:[#allocation18_spill] sm:$0xff] %v10443_v3  ;;  %v2143_v10 = vmax.f32 %v2141_v46, %v10443_v3  ;;  %v2167_v3 = vmax.f32 %v2165_v19, %v10369_v58 }
 0x518   :  { %v10450_v14 = vpop.f32.mrf.mxu1 }
 0x519   :  { %v2169_v47 = vmax.f32 %v2167_v3, %v10377_v16 }
 0x51a   :  { %v10456_v5 = vpop.f32.mrf.mxu1 }
 0x51b   :  { %v2144_v21 = vmax.f32 %v2142_v25, %v10456_v5  ;;  %v2172_v25 = vmax.f32 %v2170_v38, %v10389_v37  ;;  %v2171_v34 = vmax.f32 %v2169_v47, %v10385_v63 }
 0x51c   :  { %v10462_v33 = vpop.f32.mrf.mxu1 }
 0x51d   :  { %v2174_v1 = vmax.f32 %v2172_v25, %v10397_v44  ;;  %v2173_v59 = vmax.f32 %v2171_v34, %v10393_v32 }
 0x51e   :  { %v10468_v39 = vpop.f32.mrf.mxu1 }
 0x51f   :  { %v2145_v31 = vmax.f32 %v2143_v10, %v10468_v39  ;;  %v2175_v19 = vmax.f32 %v2173_v59, %v10405_v35 }
 0x521   :  { %v2146_v22 = vmax.f32 %v2144_v21, %v2145_v31  ;;  %v2176_v31 = vmax.f32 %v2174_v1, %v10413_v54  ;;  %v2177_v3 = vmax.f32 %v2175_v19, %v10421_v40 }
 0x523   :  { %v2147_v46 = vrot.slane %v2146_v22, 4  ;;  %v2178_v29 = vmax.f32 %v2176_v31, %v10429_v0  ;;  %v2179_v47 = vmax.f32 %v2177_v3, %v10437_v51 }
 0x525   :  { %v2148_v43 = vmax.f32 %v2146_v22, %v2147_v46  ;;  %v10488_v22 = vpop.f32.mrf.mxu1  ;;  %v2180_v46 = vmax.f32 %v2178_v29, %v10450_v14  ;;  %v2181_v25 = vmax.f32 %v2179_v47, %v10462_v33 }
 0x527   :  { %v2149_v10 = vrot.slane %v2148_v43, 2 }
 0x529   :  { %v2150_v21 = vmax.f32 %v2148_v43, %v2149_v10  ;;  %v2182_v43 = vmax.f32 %v2180_v46, %v10488_v22 }
 0x52b   :  { %v2151_v56 = vrot.slane %v2150_v21, 1  ;;  %v2183_v59 = vmax.f32 %v2181_v25, %v2182_v43 }
 0x52d   :  { %v10492_v38 = vmax.f32 %v2150_v21, %v2151_v56  ;;  %v2184_v3 = vrot.slane %v2183_v59, 4 }
 0x52f   :  { %v2190_v10 = vsub.f32 %v10301_v20, %v10492_v38  ;;  %v2192_v34 = vsub.f32 %v10307_v30, %v10492_v38  ;;  %v2194_v1 = vsub.f32 %v10311_v55, %v10492_v38  ;;  %v2196_v21 = vsub.f32 %v10315_v41, %v10492_v38 }
 0x530   :  { %v2198_v19 = vsub.f32 %v10319_v42, %v10492_v38  ;;  %v2200_v20 = vsub.f32 %v10323_v6, %v10492_v38  ;;  %v2202_v55 = vsub.f32 %v10327_v13, %v10492_v38  ;;  %v2185_v47 = vmax.f32 %v2183_v59, %v2184_v3  ;;  %v15090_v42 = vld [vmem:[#allocation152_spill] sm:$0xff] }
 0x531   :  { %v2254_v31 = vmul.f32 1.442695, %v2190_v10  ;;  %v2258_v56 = vmul.f32 1.442695, %v2192_v34  ;;  %v2262_v29 = vmul.f32 1.442695, %v2194_v1  ;;  %v2204_v41 = vsub.f32 %v10331_v12, %v10492_v38 }
 0x532   :  { %v2266_v30 = vmul.f32 1.442695, %v2196_v21  ;;  %v2270_v46 = vmul.f32 1.442695, %v2198_v19  ;;  %v2274_v43 = vmul.f32 1.442695, %v2200_v20  ;;  %v2206_v25 = vsub.f32 %v15090_v42, %v10492_v38 }
 0x533   :  { %7803 = vpow2.f32 %v2254_v31  ;;  %v2278_v10 = vmul.f32 1.442695, %v2202_v55  ;;  %v2208_v6 = vsub.f32 %v10339_v61, %v10492_v38  ;;  %v2186_v34 = vrot.slane %v2185_v47, 2  ;;  %v15091_v1 = vld [vmem:[#allocation17_spill] sm:$0xff]  ;;  %v15092_v12 = vld [vmem:[#allocation19_spill] sm:$0xff] }
 0x534   :  { %7805 = vpow2.f32 %v2258_v56  ;;  %v2210_v13 = vsub.f32 %v15091_v1, %v10492_v38  ;;  %v2282_v21 = vmul.f32 1.442695, %v2204_v41  ;;  %v2212_v59 = vsub.f32 %v10347_v49, %v10492_v38 }
 0x535   :  { %7807 = vpow2.f32 %v2262_v29  ;;  %v2214_v31 = vsub.f32 %v15092_v12, %v10492_v38  ;;  %v2286_v56 = vmul.f32 1.442695, %v2206_v25  ;;  %v2216_v19 = vsub.f32 %v10355_v26, %v10492_v38 }
 0x536   :  { %7809 = vpow2.f32 %v2266_v30  ;;  %v2290_v29 = vmul.f32 1.442695, %v2208_v6  ;;  %v2187_v3 = vmax.f32 %v2185_v47, %v2186_v34  ;;  %v2218_v20 = vsub.f32 %v10359_v7, %v10492_v38 }
 0x537   :  { %7811 = vpow2.f32 %v2270_v46  ;;  %v2294_v30 = vmul.f32 1.442695, %v2210_v13  ;;  %v2234_v49 = vsub.f32 %v10391_v28, %v10492_v38  ;;  %v2298_v46 = vmul.f32 1.442695, %v2212_v59 }
 0x538   :  { %7813 = vpow2.f32 %v2274_v43  ;;  %v2236_v41 = vsub.f32 %v10395_v52, %v10492_v38  ;;  %v2302_v26 = vmul.f32 1.442695, %v2214_v31  ;;  %v2238_v7 = vsub.f32 %v10399_v8, %v10492_v38 }
 0x539   :  { %7815 = vpow2.f32 %v2278_v10  ;;  %v2306_v42 = vmul.f32 1.442695, %v2216_v19  ;;  %v2188_v25 = vrot.slane %v2187_v3, 1  ;;  %v2240_v28 = vsub.f32 %v10409_v50, %v10492_v38  ;;  %v15094_v50 = vld [vmem:[#allocation75_spill] sm:$0xff] }
 0x53a   :  { %7817 = vpow2.f32 %v2282_v21  ;;  %v2310_v10 = vmul.f32 1.442695, %v2218_v20  ;;  %v2242_v34 = vsub.f32 %v10417_v48, %v10492_v38  ;;  %v2342_v1 = vmul.f32 1.442695, %v2234_v49  ;;  %v15095_v49 = vld [vmem:[#allocation77_spill] sm:$0xff] }
 0x53b   :  { %7819 = vpow2.f32 %v2286_v56  ;;  %v2244_v8 = vsub.f32 %v10425_v62, %v10492_v38  ;;  %v2346_v13 = vmul.f32 1.442695, %v2236_v41  ;;  %v2220_v12 = vsub.f32 %v15094_v50, %v10492_v38 }
 0x53c   :  { %7821 = vpow2.f32 %v2290_v29  ;;  %v2350_v31 = vmul.f32 1.442695, %v2238_v7  ;;  %v10555_v56 = vmax.f32 %v2187_v3, %v2188_v25  ;;  %v2222_v48 = vsub.f32 %v10367_v11, %v10492_v38 }
 0x53d   :  { %7823 = vpow2.f32 %v2294_v30  ;;  %v2354_v19 = vmul.f32 1.442695, %v2240_v28  ;;  %v2224_v20 = vsub.f32 %v10371_v15, %v10492_v38  ;;  %v2358_v30 = vmul.f32 1.442695, %v2242_v34  ;;  %v15096_v28 = vld [vmem:[#allocation13_spill] sm:$0xff] }
 0x53e   :  { %7825 = vpow2.f32 %v2298_v46  ;;  %v2226_v46 = vsub.f32 %v15095_v49, %v10492_v38  ;;  %v2362_v3 = vmul.f32 1.442695, %v2244_v8  ;;  %v2314_v11 = vmul.f32 1.442695, %v2220_v12 }
 0x53f   :  { %7827 = vpow2.f32 %v2302_v26  ;;  %v2318_v7 = vmul.f32 1.442695, %v2222_v48 }
 0x540   :  { %v10525_v61 = vpop.eup %7803  ;;  %7829 = vpow2.f32 %v2306_v42  ;;  %v2193_v42 = vsub.f32 %v10309_v23, %v10555_v56  ;;  %v2326_v34 = vmul.f32 1.442695, %v2226_v46 }
 0x541   :  { %v10529_v55 = vpop.eup %7805  ;;  %7831 = vpow2.f32 %v2310_v10  ;;  %v2228_v10 = vsub.f32 %v15096_v28, %v10492_v38 }
 0x542   :  { %15093 = vst [vmem:[#allocation16_spill] sm:$0xff] %v10529_v55  ;;  %v2382_v47 = vadd.f32 %v10529_v55, %v10525_v61  ;;  %v10537_v43 = vpop.eup %7807  ;;  %7833 = vpow2.f32 %v2342_v1 }
 0x543   :  { %v10544_v6 = vpop.eup %7809  ;;  %7835 = vpow2.f32 %v2346_v13  ;;  %v15097_v13 = vld [vmem:[#allocation15_spill] sm:$0xff] }
 0x544   :  { %v2383_v52 = vadd.f32 %v10537_v43, %v2382_v47  ;;  %v10551_v59 = vpop.eup %7811  ;;  %7837 = vpow2.f32 %v2350_v31  ;;  %v2191_v47 = vsub.f32 %v10305_v4, %v10555_v56  ;;  %v2195_v4 = vsub.f32 %v10313_v9, %v10555_v56  ;;  %v15098_v31 = vld [vmem:[#allocation153_spill] sm:$0xff] }
 0x545   :  { %v10560_v29 = vpop.eup %7813  ;;  %7839 = vpow2.f32 %v2354_v19  ;;  %v2197_v48 = vsub.f32 %v15098_v31, %v10555_v56  ;;  %v2260_v19 = vmul.f32 1.442695, %v2193_v42  ;;  %v15099_v9 = vld [vmem:[#allocation73_spill] sm:$0xff] }
 0x546   :  { %v2384_v21 = vadd.f32 %v10544_v6, %v2383_v52  ;;  %v10567_v26 = vpop.eup %7815  ;;  %v2322_v52 = vmul.f32 1.442695, %v2224_v20  ;;  %7841 = vpow2.f32 %v2358_v30  ;;  %v2256_v23 = vmul.f32 1.442695, %v2191_v47 }
 0x547   :  { %v10574_v25 = vpop.eup %7817  ;;  %7843 = vpow2.f32 %v2362_v3  ;;  %v2232_v20 = vsub.f32 %v15099_v9, %v10492_v38  ;;  %v2330_v30 = vmul.f32 1.442695, %v2228_v10  ;;  %v2199_v3 = vsub.f32 %v10321_v36, %v10555_v56 }
 0x548   :  { %v2385_v62 = vadd.f32 %v10551_v59, %v2384_v21  ;;  %v10581_v8 = vpop.eup %7819  ;;  %v2230_v21 = vsub.f32 %v15097_v13, %v10492_v38  ;;  %7845 = vpow2.f32 %v2314_v11  ;;  %v2203_v10 = vsub.f32 %v10329_v60, %v10555_v56 }
 0x549   :  { %v10585_v50 = vpop.eup %7821  ;;  %7847 = vpow2.f32 %v2318_v7  ;;  %v15100_v7 = vld [vmem:[#allocation142_spill] sm:$0xff]  ;;  %v2338_v36 = vmul.f32 1.442695, %v2232_v20  ;;  %v2272_v31 = vmul.f32 1.442695, %v2199_v3  ;;  %v2215_v60 = vsub.f32 %v10353_v57, %v10555_v56 }
 0x54a   :  { %v2386_v41 = vadd.f32 %v10560_v29, %v2385_v62  ;;  %v10590_v62 = vpop.eup %7823  ;;  %7849 = vpow2.f32 %v2322_v52  ;;  %v2334_v47 = vmul.f32 1.442695, %v2230_v21  ;;  %v2268_v52 = vmul.f32 1.442695, %v2197_v48 }
 0x54b   :  { %v10594_v49 = vpop.eup %7825  ;;  %7851 = vpow2.f32 %v2326_v34  ;;  %v2217_v48 = vsub.f32 %v10357_v2, %v10555_v56  ;;  %v2221_v57 = vsub.f32 %v10365_v45, %v10555_v56 }
 0x54c   :  { %v2387_v15 = vadd.f32 %v10567_v26, %v2386_v41  ;;  %v2264_v41 = vmul.f32 1.442695, %v2195_v4  ;;  %v10599_v11 = vpop.eup %7827  ;;  %7853 = vpow2.f32 %v2256_v23  ;;  %v15103_v23 = vld [vmem:[#allocation149_spill] sm:$0xff] }
 0x54d   :  { %v10603_v42 = vpop.eup %7829  ;;  %7855 = vpow2.f32 %v2260_v19 }
 0x54e   :  { %v2388_v1 = vadd.f32 %v10574_v25, %v2387_v15  ;;  %v2201_v15 = vsub.f32 %v15100_v7, %v10555_v56  ;;  %v10608_v34 = vpop.eup %7831  ;;  %7857 = vpow2.f32 %v2330_v30 }
 0x54f   :  { %v10612_v13 = vpop.eup %7833  ;;  %7859 = vpow2.f32 %v2264_v41 }
 0x550   :  { %v2389_v12 = vadd.f32 %v10581_v8, %v2388_v1  ;;  %v15101_v1 = vld [vmem:[#allocation151_spill] sm:$0xff]  ;;  %15102 = vst [vmem:[#allocation14_spill] sm:$0xff] %v10612_v13  ;;  %v10617_v9 = vpop.eup %7835  ;;  %7861 = vpow2.f32 %v2334_v47  ;;  %v2276_v19 = vmul.f32 1.442695, %v2201_v15  ;;  %v2219_v47 = vsub.f32 %v10361_v17, %v10555_v56 }
 0x551   :  { %v2205_v4 = vsub.f32 %v15101_v1, %v10555_v56  ;;  %v10623_v20 = vpop.eup %7837  ;;  %7863 = vpow2.f32 %v2268_v52  ;;  %v2304_v17 = vmul.f32 1.442695, %v2215_v60 }
 0x552   :  { %v2390_v46 = vadd.f32 %v10585_v50, %v2389_v12  ;;  %v2207_v12 = vsub.f32 %v15103_v23, %v10555_v56  ;;  %v10628_v3 = vpop.eup %7839  ;;  %7865 = vpow2.f32 %v2338_v36  ;;  %v15104_v36 = vld [vmem:[#allocation150_spill] sm:$0xff] }
 0x553   :  { %v2284_v2 = vmul.f32 1.442695, %v2205_v4  ;;  %v10634_v7 = vpop.eup %7841  ;;  %7867 = vpow2.f32 %v2272_v31  ;;  %v2209_v1 = vsub.f32 %v15104_v36, %v10555_v56  ;;  %v2308_v4 = vmul.f32 1.442695, %v2217_v48 }
 0x554   :  { %v2391_v28 = vadd.f32 %v10590_v62, %v2390_v46  ;;  %v2280_v46 = vmul.f32 1.442695, %v2203_v10  ;;  %v10639_v52 = vpop.eup %7843  ;;  %7869 = vpow2.f32 %v2276_v19  ;;  %v2211_v31 = vsub.f32 %v10345_v27, %v10555_v56 }
 0x555   :  { %v2213_v19 = vsub.f32 %v10349_v18, %v10555_v56  ;;  %v2292_v10 = vmul.f32 1.442695, %v2209_v1 }
 0x556   :  { %v2392_v21 = vadd.f32 %v10594_v49, %v2391_v28  ;;  %v2288_v28 = vmul.f32 1.442695, %v2207_v12  ;;  %7871 = vpow2.f32 %v2280_v46  ;;  %v2316_v46 = vmul.f32 1.442695, %v2221_v57 }
 0x557   :  { %7873 = vpow2.f32 %v2284_v2  ;;  %v2300_v57 = vmul.f32 1.442695, %v2213_v19  ;;  %v2250_v19 = vsub.f32 %v10456_v5, %v10492_v38 }
 0x558   :  { %v2393_v30 = vadd.f32 %v10599_v11, %v2392_v21  ;;  %v10643_v21 = vpop.eup %7845  ;;  %7875 = vpow2.f32 %v2288_v28 }
 0x559   :  { %v10648_v12 = vpop.eup %7847  ;;  %7877 = vpow2.f32 %v2304_v17 }
 0x55a   :  { %v2394_v15 = vadd.f32 %v10603_v42, %v2393_v30  ;;  %15105 = vst [vmem:[#allocation12_spill] sm:$0xff] %v10648_v12  ;;  %v2312_v30 = vmul.f32 1.442695, %v2219_v47  ;;  %v10652_v41 = vpop.eup %7849  ;;  %7879 = vpow2.f32 %v2308_v4  ;;  %v15108_v47 = vld [vmem:[#allocation72_spill] sm:$0xff]  ;;  %v15111_v4 = vld [vmem:[#allocation18_spill] sm:$0xff] }
 0x55b   :  { %15106 = vst [vmem:[#allocation76_spill] sm:$0xff] %v10652_v41  ;;  %v10657_v48 = vpop.eup %7851  ;;  %v2246_v2 = vsub.f32 %v15108_v47, %v10492_v38 }
 0x55c   :  { %v2395_v45 = vadd.f32 %v10608_v34, %v2394_v15  ;;  %15107 = vst [vmem:[#allocation74_spill] sm:$0xff] %v10657_v48  ;;  %v10659_v15 = vpop.eup %7853  ;;  %7881 = vpow2.f32 %v2312_v30 }
 0x55d   :  { %v10662_v27 = vpop.eup %7855  ;;  %7883 = vpow2.f32 %v2316_v46 }
 0x55e   :  { %v2396_v60 = vadd.f32 %v10643_v21, %v2395_v45  ;;  %v2296_v45 = vmul.f32 1.442695, %v2211_v31  ;;  %v10666_v23 = vpop.eup %7857  ;;  %v2419_v28 = vadd.f32 %v10662_v27, %v10659_v15  ;;  %7885 = vpow2.f32 %v2292_v10 }
 0x55f   :  { %15109 = vst [vmem:[#allocation110_spill] sm:$0xff] %v10666_v23  ;;  %v10671_v17 = vpop.eup %7859  ;;  %v2252_v10 = vsub.f32 %v10468_v39, %v10492_v38  ;;  %v2225_v39 = vsub.f32 %v10373_v24, %v10555_v56 }
 0x560   :  { %v2397_v36 = vadd.f32 %v10648_v12, %v2396_v60  ;;  %v10673_v1 = vpop.eup %7861  ;;  %v2248_v60 = vsub.f32 %v15111_v4, %v10492_v38  ;;  %v2420_v31 = vadd.f32 %v10671_v17, %v2419_v28  ;;  %7887 = vpow2.f32 %v2296_v45 }
 0x561   :  { %15110 = vst [vmem:[#allocation114_spill] sm:$0xff] %v10673_v1  ;;  %v10679_v30 = vpop.eup %7863  ;;  %7889 = vpow2.f32 %v2300_v57 }
 0x562   :  { %v2398_v18 = vadd.f32 %v10652_v41, %v2397_v36  ;;  %v10683_v46 = vpop.eup %7865  ;;  %v2366_v36 = vmul.f32 1.442695, %v2246_v2  ;;  %v2421_v12 = vadd.f32 %v10679_v30, %v2420_v31  ;;  %v2370_v28 = vmul.f32 1.442695, %v2248_v60 }
 0x563   :  { %15112 = vst [vmem:[#allocation118_spill] sm:$0xff] %v10683_v46  ;;  %v10687_v4 = vpop.eup %7867  ;;  %v2374_v2 = vmul.f32 1.442695, %v2250_v19 }
 0x564   :  { %v2399_v47 = vadd.f32 %v10657_v48, %v2398_v18  ;;  %v10689_v18 = vpop.eup %7869  ;;  %v2422_v5 = vadd.f32 %v10687_v4, %v2421_v12  ;;  %7891 = vpow2.f32 %v2366_v36 }
 0x565   :  { %v10695_v45 = vpop.eup %7871  ;;  %7893 = vpow2.f32 %v2370_v28  ;;  %v2324_v28 = vmul.f32 1.442695, %v2225_v39 }
 0x566   :  { %v2400_v41 = vadd.f32 %v10666_v23, %v2399_v47  ;;  %v10697_v55 = vpop.eup %7873  ;;  %v2223_v47 = vsub.f32 %v10369_v58, %v10555_v56  ;;  %v2423_v31 = vadd.f32 %v10689_v18, %v2422_v5  ;;  %7895 = vpow2.f32 %v2374_v2 }
 0x567   :  { %v10703_v23 = vpop.eup %7875 }
 0x568   :  { %v2401_v48 = vadd.f32 %v10673_v1, %v2400_v41  ;;  %v7878_v38 = vpop.eup %7877  ;;  %v2378_v41 = vmul.f32 1.442695, %v2252_v10  ;;  %v2424_v60 = vadd.f32 %v10695_v45, %v2423_v31  ;;  %v2320_v5 = vmul.f32 1.442695, %v2223_v47 }
 0x569   :  { %v7880_v19 = vpop.eup %7879  ;;  %v2229_v10 = vsub.f32 %v10381_v53, %v10555_v56  ;;  %v2231_v47 = vsub.f32 %v10385_v63, %v10555_v56  ;;  %v2237_v63 = vsub.f32 %v10397_v44, %v10555_v56 }
 0x56a   :  { %v2402_v57 = vadd.f32 %v10683_v46, %v2401_v48  ;;  %v2227_v48 = vsub.f32 %v10377_v16, %v10555_v56  ;;  %v10711_v36 = vpop.eup %7881  ;;  %v2425_v46 = vadd.f32 %v10697_v55, %v2424_v60  ;;  %7897 = vpow2.f32 %v2378_v41 }
 0x56b   :  { %v10715_v24 = vpop.eup %7883  ;;  %v2472_v60 = vpack.c.bf16 %v10643_v21, %v10608_v34  ;;  %7899 = vpow2.f32 %v2320_v5  ;;  %v2471_v41 = vpack.c.bf16 %v7880_v19, %v7878_v38  ;;  %v2332_v21 = vmul.f32 1.442695, %v2229_v10 }
 0x56c   :  { %v2403_v12 = vadd.f32 %v10612_v13, %v2402_v57  ;;  %v2426_v31 = vadd.f32 %v10703_v23, %v2425_v46  ;;  %v2473_v16 = vpack.c.bf16 %v10715_v24, %v10711_v36  ;;  %v7886_v2 = vpop.eup %7885  ;;  %v2233_v46 = vsub.f32 %v10389_v37, %v10555_v56 }
 0x56d   :  { %v7888_v1 = vpop.eup %7887  ;;  %v2235_v13 = vsub.f32 %v10393_v32, %v10555_v56  ;;  %7901 = vpow2.f32 %v2324_v28  ;;  %v2251_v5 = vsub.f32 %v10462_v33, %v10555_v56  ;;  %v2336_v37 = vmul.f32 1.442695, %v2231_v47 }
 0x56e   :  { %v2404_v58 = vadd.f32 %v10617_v9, %v2403_v12  ;;  %v2328_v12 = vmul.f32 1.442695, %v2227_v48  ;;  %v2427_v39 = vadd.f32 %v7886_v2, %v2426_v31  ;;  %2490 = vmatprep.subr.bf16.mxu0 %v2473_v16  ;;  %v2470_v32 = vpack.c.bf16 %v10603_v42, %v10599_v11 }
 0x56f   :  { %2491 = vmatpush1.bf16.msra.mxu0 %v2472_v60  ;;  %v2239_v10 = vsub.f32 %v10405_v35, %v10555_v56  ;;  %v2241_v33 = vsub.f32 %v10413_v54, %v10555_v56  ;;  %v2340_v28 = vmul.f32 1.442695, %v2233_v46  ;;  %v2344_v42 = vmul.f32 1.442695, %v2235_v13 }
 0x570   :  { %v2405_v57 = vadd.f32 %v10623_v20, %v2404_v58  ;;  %v7890_v58 = vpop.eup %7889  ;;  %v2428_v48 = vadd.f32 %v7888_v1, %v2427_v39  ;;  %2492 = vmatprep.subr.bf16.mxu0 %v2471_v41  ;;  %7903 = vpow2.f32 %v2328_v12  ;;  %v2249_v12 = vsub.f32 %v10450_v14, %v10555_v56 }
 0x571   :  { %v2469_v16 = vpack.c.bf16 %v7890_v58, %v7888_v1  ;;  %v10742_v60 = vpop.eup %7891  ;;  %7905 = vpow2.f32 %v2332_v21  ;;  %v2376_v35 = vmul.f32 1.442695, %v2251_v5  ;;  %v2468_v54 = vpack.c.bf16 %v10594_v49, %v10590_v62 }
 0x572   :  { %v2406_v53 = vadd.f32 %v10628_v3, %v2405_v57  ;;  %v2253_v57 = vsub.f32 %v10488_v22, %v10555_v56  ;;  %v2429_v44 = vadd.f32 %v7890_v58, %v2428_v48  ;;  %v2247_v22 = vsub.f32 %v10437_v51, %v10555_v56  ;;  %v10751_v1 = vpop.eup %7893 }
 0x573   :  { %2493 = vmatpush1.bf16.msra.mxu0 %v2470_v32  ;;  %7907 = vpow2.f32 %v2336_v37  ;;  %v2467_v41 = vpack.c.bf16 %v7886_v2, %v10703_v23  ;;  %v10759_v58 = vpop.eup %7895  ;;  %v2243_v13 = vsub.f32 %v10421_v40, %v10555_v56  ;;  %v2348_v14 = vmul.f32 1.442695, %v2237_v63 }
 0x574   :  { %v2407_v34 = vadd.f32 %v10634_v7, %v2406_v53  ;;  %v2430_v47 = vadd.f32 %v7878_v38, %v2429_v44  ;;  %2494 = vmatprep.subr.bf16.mxu0 %v2469_v16  ;;  %v2380_v53 = vmul.f32 1.442695, %v2253_v57  ;;  %v2245_v38 = vsub.f32 %v10429_v0, %v10555_v56 }
 0x575   :  { %7909 = vpow2.f32 %v2340_v28  ;;  %v2352_v62 = vmul.f32 1.442695, %v2239_v10  ;;  %v2368_v23 = vmul.f32 1.442695, %v2247_v22  ;;  %v2372_v2 = vmul.f32 1.442695, %v2249_v12 }
 0x576   :  { %v2408_v31 = vadd.f32 %v10639_v52, %v2407_v34  ;;  %v2431_v39 = vadd.f32 %v7880_v19, %v2430_v47  ;;  %7911 = vpow2.f32 %v2344_v42  ;;  %v2466_v40 = vpack.c.bf16 %v10585_v50, %v10581_v8 }
 0x577   :  { %2495 = vmatpush1.bf16.msra.mxu0 %v2468_v54  ;;  %v10767_v19 = vpop.eup %7897  ;;  %7913 = vpow2.f32 %v2376_v35  ;;  %v2465_v63 = vpack.c.bf16 %v10697_v55, %v10695_v45  ;;  %v2360_v8 = vmul.f32 1.442695, %v2243_v13  ;;  %v2464_v50 = vpack.c.bf16 %v10574_v25, %v10567_v26 }
 0x578   :  { %v2409_v11 = vadd.f32 %v10742_v60, %v2408_v31  ;;  %v2432_v49 = vadd.f32 %v10711_v36, %v2431_v39  ;;  %2496 = vmatprep.subr.bf16.mxu0 %v2467_v41  ;;  %7915 = vpow2.f32 %v2380_v53  ;;  %v10777_v34 = vpop.eup %7899  ;;  %v2356_v36 = vmul.f32 1.442695, %v2241_v33 }
 0x579   :  { %7917 = vpow2.f32 %v2348_v14  ;;  %v2463_v45 = vpack.c.bf16 %v10689_v18, %v10687_v4  ;;  %v2462_v32 = vpack.c.bf16 %v10560_v29, %v10551_v59  ;;  %v2461_v25 = vpack.c.bf16 %v10679_v30, %v10671_v17  ;;  %v15113_v30 = vld [vmem:[#allocation16_spill] sm:$0xff] }
 0x57a   :  { %v2410_v51 = vadd.f32 %v10751_v1, %v2409_v11  ;;  %v2433_v56 = vadd.f32 %v10715_v24, %v2432_v49  ;;  %7919 = vpow2.f32 %v2352_v62  ;;  %v10780_v48 = vpop.eup %7901  ;;  %v2364_v24 = vmul.f32 1.442695, %v2245_v38 }
 0x57b   :  { %2497 = vmatpush1.bf16.msra.mxu0 %v2466_v40  ;;  %7921 = vpow2.f32 %v2368_v23  ;;  %v2460_v16 = vpack.c.bf16 %v10544_v6, %v10537_v43  ;;  %v2459_v22 = vpack.c.bf16 %v10662_v27, %v10659_v15  ;;  %v2458_v11 = vpack.c.bf16 %v15113_v30, %v10525_v61  ;;  %v15118_v40 = vld [vmem:[#allocation114_spill] sm:$0xff] }
 0x57c   :  { %v2411_v46 = vadd.f32 %v10759_v58, %v2410_v51  ;;  %v2434_v21 = vadd.f32 %v10777_v34, %v2433_v56  ;;  %2498 = vmatprep.subr.bf16.mxu0 %v2465_v63  ;;  %7923 = vpow2.f32 %v2372_v2  ;;  %v2488_v15 = vpack.c.bf16 %v10767_v19, %v10759_v58  ;;  %v15119_v56 = vld [vmem:[#allocation118_spill] sm:$0xff] }
 0x57d   :  { %v10787_v5 = vpop.eup %7903  ;;  %7925 = vpow2.f32 %v2356_v36  ;;  %v2486_v61 = vpack.c.bf16 %v10751_v1, %v10742_v60  ;;  %v15114_v58 = vpack.c.bf16 %v10639_v52, %v10634_v7  ;;  %v15115_v23 = vpack.c.bf16 %v10628_v3, %v10623_v20  ;;  %v15116_v1 = vld [vmem:[#allocation14_spill] sm:$0xff]  ;;  %v15122_v3 = vld [vmem:[#allocation12_spill] sm:$0xff] }
 0x57e   :  { %v10772_v0 = vadd.f32 %v10767_v19, %v2411_v46  ;;  %v2435_v55 = vadd.f32 %v10780_v48, %v2434_v21  ;;  %v7906_v37 = vpop.eup %7905  ;;  %7927 = vpow2.f32 %v2360_v8  ;;  %v15117_v2 = vpack.c.bf16 %v10617_v9, %v15116_v1  ;;  %v15120_v63 = vld [vmem:[#allocation74_spill] sm:$0xff]  ;;  %v15123_v8 = vld [vmem:[#allocation76_spill] sm:$0xff] }
 0x57f   :  { %2499 = vmatpush1.bf16.msra.mxu0 %v2464_v50  ;;  %7929 = vpow2.f32 %v2364_v24  ;;  %v2478_v7 = vpack.c.bf16 %v15119_v56, %v15118_v40  ;;  %v2477_v52 = vpack.c.bf16 %v7906_v37, %v10787_v5  ;;  %v15121_v36 = vld [vmem:[#allocation110_spill] sm:$0xff]  ;;  %v2475_v20 = vpack.c.bf16 %v10780_v48, %v10777_v34  ;;  %v15124_v50 = vld [vmem:[#allocation25_spill] sm:$0xff]  ;;  %v15125_v24 = vld [vmem:[#allocation27_spill] sm:$0xff] }
 0x580   :  { %v2436_v57 = vadd.f32 %v10787_v5, %v2435_v55  ;;  %2500 = vmatprep.subr.bf16.mxu0 %v2463_v45  ;;  %v7908_v31 = vpop.eup %7907  ;;  %v2476_v21 = vpack.c.bf16 %v15121_v36, %v15120_v63  ;;  %v2474_v9 = vpack.c.bf16 %v15123_v8, %v15122_v3  ;;  %v1031_v55 = vpack.c.bf16 %v15125_v24, %v15124_v50  ;;  %v15126_v45 = vld [vmem:[#allocation82_spill] sm:$0xff]  ;;  %v15134_v48 = vld [vmem:[#allocation24_spill] sm:$0xff] }
 0x581   :  { %v15127_v5 = vld [vmem:[#allocation86_spill] sm:$0xff] }
 0x582   :  { %v2437_v26 = vadd.f32 %v7906_v37, %v2436_v57  ;;  %v7910_v4 = vpop.eup %7909  ;;  %v1087_v57 = vpack.c.bf16 %v15127_v5, %v15126_v45  ;;  %v15128_v37 = vld [vmem:[#allocation21_spill] sm:$0xff]  ;;  %v15133_v34 = vld [vmem:[#allocation26_spill] sm:$0xff] }
 0x583   :  { %2501 = vmatpush1.bf16.msra.mxu0 %v2462_v32  ;;  %v7912_v44 = vpop.eup %7911  ;;  %v2479_v60 = vpack.c.bf16 %v7910_v4, %v7908_v31  ;;  %v15129_v32 = vld [vmem:[#allocation23_spill] sm:$0xff] }
 0x584   :  { %v2438_v18 = vadd.f32 %v7908_v31, %v2437_v26  ;;  %2502 = vmatprep.subr.bf16.mxu0 %v2461_v25  ;;  %v7914_v10 = vpop.eup %7913  ;;  %v1027_v26 = vpack.c.bf16 %v15129_v32, %v15128_v37  ;;  %v15130_v25 = vld [vmem:[#allocation79_spill] sm:$0xff]  ;;  %v15131_v31 = vld [vmem:[#allocation78_spill] sm:$0xff] }
 0x585   :  { %v7916_v59 = vpop.eup %7915 }
 0x586   :  { %v2439_v33 = vadd.f32 %v7910_v4, %v2438_v18  ;;  %v7918_v29 = vpop.eup %7917  ;;  %v2489_v12 = vpack.c.bf16 %v7916_v59, %v7914_v10  ;;  %v15132_v4 = vpack.c.bf16 %v15130_v25, %v15131_v31  ;;  %v15135_v18 = vpack.c.bf16 %v15133_v34, %v15134_v48 }
 0x587   :  { %2503 = vmatpush1.bf16.msra.mxu0 %v2460_v16  ;;  %v7920_v17 = vpop.eup %7919  ;;  %v2481_v19 = vpack.c.bf16 %v7918_v29, %v7912_v44  ;;  %v15137_v16 = vld [vmem:[#allocation20_spill] sm:$0xff] }
 0x588   :  { %v2440_v28 = vadd.f32 %v7912_v44, %v2439_v33  ;;  %2504 = vmatprep.subr.bf16.mxu0 %v2459_v22  ;;  %v7922_v42 = vpop.eup %7921  ;;  %v15136_v44 = vld [vmem:[#allocation22_spill] sm:$0xff]  ;;  %v15139_v33 = vld [vmem:[#allocation84_spill] sm:$0xff] }
 0x589   :  { %v7924_v35 = vpop.eup %7923  ;;  %v15140_v22 = vld [vmem:[#allocation80_spill] sm:$0xff] }
 0x58a   :  { %v2441_v47 = vadd.f32 %v7918_v29, %v2440_v28  ;;  %v7926_v6 = vpop.eup %7925  ;;  %v2487_v54 = vpack.c.bf16 %v7924_v35, %v7922_v42  ;;  %v15142_v29 = vmov 0   ;;  %v2587_v28 = vpop.trf.xlu1 }
 0x58b   :  { %2505 = vmatpush1.bf16.msra.mxu0 %v2458_v11  ;;  %v7928_v27 = vpop.eup %7927  ;;  %v2483_v46 = vpack.c.bf16 %v7926_v6, %v7920_v17 }
 0x58c   :  { %v2442_v43 = vadd.f32 %v7920_v17, %v2441_v47  ;;  %2506 = vmatprep.subr.bf16.mxu0 %v2489_v12  ;;  %v7930_v51 = vpop.eup %7929 }
 0x58d   :  { %v2485_v13 = vpack.c.bf16 %v7930_v51, %v7928_v27 }
 0x58e   :  { %v2443_v53 = vadd.f32 %v7926_v6, %v2442_v43  ;;  %v2588_v17 = vpop.trf.xlu1  ;;  %v2603_v43 = vpop.trf.xlu0 }
 0x58f   :  { %2507 = vmatpush2.bf16.msra.mxu0 %v2488_v15 }
 0x590   :  { %v2444_v39 = vadd.f32 %v7928_v27, %v2443_v53  ;;  %2508 = vmatprep.subr.bf16.mxu0 %v2487_v54 }
 0x592   :  { %v2445_v41 = vadd.f32 %v7930_v51, %v2444_v39  ;;  %v2589_v30 = vpop.trf.xlu1  ;;  %v2604_v6 = vpop.trf.xlu0 }
 0x593   :  { %2509 = vmatpush2.bf16.msra.mxu0 %v2486_v61  ;;  %v15143_v61 = vld [vmem:[#allocation106_spill] sm:$0xff] }
 0x594   :  { %v2446_v38 = vadd.f32 %v7922_v42, %v2445_v41  ;;  %2510 = vmatprep.subr.bf16.mxu0 %v2485_v13  ;;  %v15144_v41 = vld [vmem:[#allocation141_spill] sm:$0xff] }
 0x595   :  { %v1099_v13 = vpack.c.bf16 %v15144_v41, %v15143_v61 }
 0x596   :  { %v2447_v14 = vadd.f32 %v7924_v35, %v2446_v38  ;;  %v2590_v11 = vpop.trf.xlu1  ;;  %v2605_v15 = vpop.trf.xlu0  ;;  %v2413_v38 = vrot.slane %v10772_v0, 4 }
 0x597   :  { %2511 = vmatpush2.bf16.msra.mxu0 %v15114_v58 }
 0x598   :  { %v2448_v62 = vadd.f32 %v7914_v10, %v2447_v14  ;;  %2512 = vmatprep.subr.bf16.mxu0 %v2483_v46  ;;  %v15138_v10 = vpack.c.bf16 %v15136_v44, %v15137_v16  ;;  %v2414_v46 = vadd.f32 %v2413_v38, %v10772_v0 }
 0x59a   :  { %v10807_v49 = vadd.f32 %v7916_v59, %v2448_v62  ;;  %v15141_v59 = vpack.c.bf16 %v15139_v33, %v15140_v22  ;;  %v2591_v42 = vpop.trf.xlu1  ;;  %v2606_v27 = vpop.trf.xlu0  ;;  %v2415_v62 = vrot.slane %v2414_v46, 2 }
 0x59b   :  { %2513 = vmatpush2.bf16.msra.mxu0 %v15115_v23 }
 0x59c   :  { %2514 = vmatprep.subr.bf16.mxu0 %v2481_v19  ;;  %v2450_v14 = vrot.slane %v10807_v49, 4  ;;  %v2416_v23 = vadd.f32 %v2415_v62, %v2414_v46 }
 0x59e   :  { %v2592_v47 = vpop.trf.xlu1  ;;  %v2607_v53 = vpop.trf.xlu0  ;;  %v2451_v58 = vadd.f32 %v2450_v14, %v10807_v49  ;;  %v2417_v1 = vrot.slane %v2416_v23, 1 }
 0x59f   :  { %2515 = vmatpush2.bf16.msra.mxu0 %v15117_v2 }
 0x5a0   :  { %2516 = vmatprep.subr.bf16.mxu0 %v2479_v60  ;;  %v2452_v19 = vrot.slane %v2451_v58, 2  ;;  %v2418_v40 = vadd.f32 %v2417_v1, %v2416_v23 }
 0x5a2   :  { %v2593_v12 = vpop.trf.xlu1  ;;  %v2608_v54 = vpop.trf.xlu0  ;;  %v2453_v60 = vadd.f32 %v2452_v19, %v2451_v58  ;;  %7931 = vrcp.f32 %v2418_v40 }
 0x5a3   :  { %2517 = vmatpush2.bf16.msra.mxu0 %v2478_v7 }
 0x5a4   :  { %2518 = vmatprep.subr.bf16.mxu0 %v2477_v52  ;;  %v2454_v2 = vrot.slane %v2453_v60, 1 }
 0x5a6   :  { %v2594_v35 = vpop.trf.xlu1  ;;  %v2609_v51 = vpop.trf.xlu0  ;;  %v2455_v56 = vadd.f32 %v2454_v2, %v2453_v60 }
 0x5a7   :  { %2519 = vmatpush2.bf16.msra.mxu0 %v2476_v21 }
 0x5a8   :  { %2520 = vmatprep.subr.bf16.mxu0 %v2475_v20  ;;  %7933 = vrcp.f32 %v2455_v56 }
 0x5aa   :  { %v2610_v39 = vpop.trf.xlu0 }
 0x5ab   :  { %2521 = vmatpush2.bf16.msra.mxu0 %v2474_v9 }
 0x5ac   :  { %2671 = vmatprep.subr.bf16.mxu0 %v1031_v55 }
 0x5ae   :  { %2523 = vmatmul.mubr.bf16.vlgmr.msra.gmra.mxu0 %v15132_v4 }
 0x5af   :  { %2532 = vmatprep.mubr.bf16.mxu0 %v1087_v57  ;;  %2672 = vmatpush1.bf16.msra.mxu0 %v15135_v18  ;;  %v7932_v7 = vpop.eup %7931 }
 0x5b0   :  { %2673 = vmatprep.subr.bf16.mxu0 %v1027_v26 }
 0x5b3   :  { %2674 = vmatpush1.bf16.msra.mxu0 %v15138_v10 }
 0x5b5   :  { %v7934_v36 = vpop.eup %7933 }
 0x5b6   :  { %2533 = vmatmul.mubr.bf16.gmra.mxu0 %v15141_v59 }
 0x5b7   :  { %2691 = vmatprep.mubr.bf16.mxu0 %v15142_v29 }
 0x5be   :  { %7443 = vmatmul.mubr.msk.bf16.vlgmr.msra.gmra.mxu0 %vm1138_vm2, %v2587_v28 }
 0x5bf   :  { %2701 = vmatprep.mubr.bf16.mxu0 %v15142_v29 }
 0x5c6   :  { %7444 = vmatmul.mubr.msk.bf16.gmra.mxu0 %vm1138_vm2, %v2588_v17 }
 0x5c7   :  { %2711 = vmatprep.mubr.bf16.mxu0 %v15142_v29 }
 0x5ce   :  { %7445 = vmatmul.mubr.msk.bf16.gmra.mxu0 %vm1138_vm2, %v2589_v30 }
 0x5cf   :  { %2721 = vmatprep.mubr.bf16.mxu0 %v15142_v29 }
 0x5d6   :  { %7446 = vmatmul.mubr.msk.bf16.gmra.mxu0 %vm1138_vm2, %v2590_v11 }
 0x5d7   :  { %2731 = vmatprep.mubr.bf16.mxu0 %v15142_v29 }
 0x5de   :  { %7447 = vmatmul.mubr.msk.bf16.gmra.mxu0 %vm1138_vm2, %v2591_v42 }
 0x5df   :  { %2741 = vmatprep.mubr.bf16.mxu0 %v15142_v29 }
 0x5e6   :  { %7448 = vmatmul.mubr.msk.bf16.gmra.mxu0 %vm1138_vm2, %v2592_v47 }
 0x5e7   :  { %2751 = vmatprep.mubr.bf16.mxu0 %v15142_v29 }
 0x5ee   :  { %7449 = vmatmul.mubr.msk.bf16.gmra.mxu0 %vm1138_vm2, %v2593_v12 }
 0x5ef   :  { %2761 = vmatprep.mubr.bf16.mxu0 %v15142_v29 }
 0x5f6   :  { %7450 = vmatmul.mubr.msk.bf16.gmra.mxu0 %vm1138_vm2, %v2594_v35 }
 0x5f7   :  { %2771 = vmatprep.mubr.bf16.mxu0 %v15142_v29 }
 0x5fe   :  { %7451 = vmatmul.mubr.msk.bf16.gmra.mxu0 %vm1138_vm2, %v2603_v43 }
 0x5ff   :  { %2781 = vmatprep.mubr.bf16.mxu0 %v15142_v29 }
 0x606   :  { %7452 = vmatmul.mubr.msk.bf16.gmra.mxu0 %vm1138_vm2, %v2604_v6 }
 0x607   :  { %2791 = vmatprep.mubr.bf16.mxu0 %v15142_v29 }
 0x60e   :  { %7453 = vmatmul.mubr.msk.bf16.gmra.mxu0 %vm1138_vm2, %v2605_v15 }
 0x60f   :  { %2801 = vmatprep.mubr.bf16.mxu0 %v15142_v29 }
 0x616   :  { %7454 = vmatmul.mubr.msk.bf16.gmra.mxu0 %vm1138_vm2, %v2606_v27 }
 0x617   :  { %2811 = vmatprep.mubr.bf16.mxu0 %v15142_v29 }
 0x61e   :  { %7455 = vmatmul.mubr.msk.bf16.gmra.mxu0 %vm1138_vm2, %v2607_v53 }
 0x61f   :  { %2821 = vmatprep.mubr.bf16.mxu0 %v15142_v29 }
 0x626   :  { %7456 = vmatmul.mubr.msk.bf16.gmra.mxu0 %vm1138_vm2, %v2608_v54 }
 0x627   :  { %2831 = vmatprep.mubr.bf16.mxu0 %v15142_v29 }
 0x62e   :  { %7457 = vmatmul.mubr.msk.bf16.gmra.mxu0 %vm1138_vm2, %v2609_v51 }
 0x62f   :  { %2841 = vmatprep.mubr.bf16.mxu0 %v15142_v29 }
 0x636   :  { %7458 = vmatmul.mubr.msk.bf16.gmra.mxu0 %vm1138_vm2, %v2610_v39 }
 0x637   :  { %3994 = vmatprep.mubr.bf16.mxu0 %v1099_v13 }
 0x66e   :  { %v2524_v52 = vpop.f32.mrf.mxu0 }
 0x66f   :  { %v10880_v63 = vmul.f32 %v7932_v7, %v2524_v52 }
 0x670   :  { %v2526_v21 = vpop.f32.mrf.mxu0 }
 0x671   :  { %15145 = vst [vmem:[#allocation122_spill] sm:$0xff] %v10880_v63  ;;  %v10882_v20 = vmul.f32 %v7934_v36, %v2526_v21 }
 0x672   :  { %v2528_v0 = vpop.f32.mrf.mxu0 }
 0x673   :  { %15146 = vst [vmem:[#allocation126_spill] sm:$0xff] %v10882_v20  ;;  %v10884_v49 = vmul.f32 %v7932_v7, %v2528_v0 }
 0x674   :  { %v2530_v3 = vpop.f32.mrf.mxu0 }
 0x675   :  { %15147 = vst [vmem:[#allocation130_spill] sm:$0xff] %v10884_v49  ;;  %v10888_v9 = vmul.f32 %v7934_v36, %v2530_v3 }
 0x676   :  { %v2534_v50 = vpop.f32.mrf.mxu0 }
 0x677   :  { %15148 = vst [vmem:[#allocation132_spill] sm:$0xff] %v10888_v9  ;;  %v10892_v55 = vmul.f32 %v7932_v7, %v2534_v50 }
 0x678   :  { %v2536_v45 = vpop.f32.mrf.mxu0 }
 0x679   :  { %15149 = vst [vmem:[#allocation133_spill] sm:$0xff] %v10892_v55  ;;  %v10894_v5 = vmul.f32 %v7934_v36, %v2536_v45 }
 0x67a   :  { %v2538_v57 = vpop.f32.mrf.mxu0 }
 0x67b   :  { %15150 = vst [vmem:[#allocation134_spill] sm:$0xff] %v10894_v5  ;;  %v10896_v37 = vmul.f32 %v7932_v7, %v2538_v57 }
 0x67c   :  { %v2540_v32 = vpop.f32.mrf.mxu0 }
 0x67d   :  { %15151 = vst [vmem:[#allocation135_spill] sm:$0xff] %v10896_v37  ;;  %v10900_v25 = vmul.f32 %v7934_v36, %v2540_v32 }
 0x67e   :  { %v10902_v31 = vpop.f32.mrf.mxu0 }
 0x67f   :  { %15152 = vst [vmem:[#allocation136_spill] sm:$0xff] %v10900_v25 }
 0x680   :  { %v10906_v34 = vpop.f32.mrf.mxu0 }
 0x682   :  { %v10908_v48 = vpop.f32.mrf.mxu0 }
 0x684   :  { %v10910_v18 = vpop.f32.mrf.mxu0 }
 0x686   :  { %v10912_v44 = vpop.f32.mrf.mxu0 }
 0x687   :  { %v2852_v57 = vmax.f32 %v10902_v31, %v10912_v44 }
 0x688   :  { %v10914_v16 = vpop.f32.mrf.mxu0 }
 0x68a   :  { %v10916_v10 = vpop.f32.mrf.mxu0 }
 0x68b   :  { %v2853_v32 = vmax.f32 %v10908_v48, %v10916_v10 }
 0x68c   :  { %v10918_v33 = vpop.f32.mrf.mxu0 }
 0x68d   :  { %15153 = vst [vmem:[#allocation137_spill] sm:$0xff] %v10918_v33 }
 0x68e   :  { %v10920_v22 = vpop.f32.mrf.mxu0 }
 0x68f   :  { %v2854_v24 = vmax.f32 %v2852_v57, %v10920_v22 }
 0x690   :  { %v10922_v59 = vpop.f32.mrf.mxu0 }
 0x692   :  { %v10924_v28 = vpop.f32.mrf.mxu0 }
 0x693   :  { %v2855_v26 = vmax.f32 %v2853_v32, %v10924_v28 }
 0x694   :  { %v10926_v17 = vpop.f32.mrf.mxu0 }
 0x695   :  { %15154 = vst [vmem:[#allocation138_spill] sm:$0xff] %v10926_v17 }
 0x696   :  { %v10928_v30 = vpop.f32.mrf.mxu0 }
 0x697   :  { %v2856_v63 = vmax.f32 %v2854_v24, %v10928_v30 }
 0x698   :  { %v10930_v11 = vpop.f32.mrf.mxu0 }
 0x69a   :  { %v10932_v42 = vpop.f32.mrf.mxu0 }
 0x69b   :  { %v2857_v49 = vmax.f32 %v2855_v26, %v10932_v42 }
 0x69c   :  { %v10934_v47 = vpop.f32.mrf.mxu0 }
 0x69d   :  { %15155 = vst [vmem:[#allocation139_spill] sm:$0xff] %v10934_v47 }
 0x69e   :  { %v10936_v12 = vpop.f32.mrf.mxu0 }
 0x69f   :  { %15156 = vst [vmem:[#allocation140_spill] sm:$0xff] %v10936_v12  ;;  %v2858_v9 = vmax.f32 %v2856_v63, %v10936_v12 }
 0x6a0   :  { %v10938_v35 = vpop.f32.mrf.mxu0 }
 0x6a1   :  { %15157 = vst [vmem:[#allocation90_spill] sm:$0xff] %v10938_v35 }
 0x6a2   :  { %v10940_v43 = vpop.f32.mrf.mxu0 }
 0x6a3   :  { %v2859_v55 = vmax.f32 %v2857_v49, %v10940_v43 }
 0x6a4   :  { %v10942_v6 = vpop.f32.mrf.mxu0 }
 0x6a5   :  { %15158 = vst [vmem:[#allocation94_spill] sm:$0xff] %v10942_v6 }
 0x6a6   :  { %v10944_v15 = vpop.f32.mrf.mxu0 }
 0x6a7   :  { %15159 = vst [vmem:[#allocation152_spill] sm:$0xff] %v10944_v15  ;;  %v2860_v5 = vmax.f32 %v2858_v9, %v10944_v15 }
 0x6a8   :  { %v10946_v27 = vpop.f32.mrf.mxu0 }
 0x6aa   :  { %v10948_v53 = vpop.f32.mrf.mxu0 }
 0x6ab   :  { %v2861_v57 = vmax.f32 %v2859_v55, %v10948_v53 }
 0x6ac   :  { %v10950_v54 = vpop.f32.mrf.mxu0 }
 0x6ae   :  { %v10952_v51 = vpop.f32.mrf.mxu0 }
 0x6af   :  { %15160 = vst [vmem:[#allocation17_spill] sm:$0xff] %v10952_v51  ;;  %v2862_v32 = vmax.f32 %v2860_v5, %v10952_v51 }
 0x6b0   :  { %v10954_v39 = vpop.f32.mrf.mxu0 }
 0x6b2   :  { %v10956_v61 = vpop.f32.mrf.mxu0 }
 0x6b3   :  { %v2863_v24 = vmax.f32 %v2861_v57, %v10956_v61  ;;  %v2890_v57 = vmax.f32 %v10910_v18, %v10918_v33 }
 0x6b4   :  { %v10958_v41 = vpop.f32.mrf.mxu0 }
 0x6b6   :  { %v10960_v13 = vpop.f32.mrf.mxu0 }
 0x6b7   :  { %v2864_v26 = vmax.f32 %v2862_v32, %v10960_v13 }
 0x6b8   :  { %v10962_v38 = vpop.f32.mrf.mxu0 }
 0x6ba   :  { %v10964_v14 = vpop.f32.mrf.mxu0 }
 0x6bb   :  { %15161 = vst [vmem:[#allocation19_spill] sm:$0xff] %v10964_v14  ;;  %v2865_v63 = vmax.f32 %v2863_v24, %v10964_v14 }
 0x6bc   :  { %v10966_v46 = vpop.f32.mrf.mxu0 }
 0x6be   :  { %v10968_v58 = vpop.f32.mrf.mxu0 }
 0x6bf   :  { %v2866_v49 = vmax.f32 %v2864_v26, %v10968_v58  ;;  %v2889_v26 = vmax.f32 %v10906_v34, %v10914_v16 }
 0x6c0   :  { %v10970_v62 = vpop.f32.mrf.mxu0 }
 0x6c2   :  { %v10972_v19 = vpop.f32.mrf.mxu0 }
 0x6c3   :  { %v2867_v9 = vmax.f32 %v2865_v63, %v10972_v19  ;;  %v2892_v63 = vmax.f32 %v2890_v57, %v10926_v17 }
 0x6c4   :  { %v10974_v23 = vpop.f32.mrf.mxu0 }
 0x6c5   :  { %v2894_v33 = vmax.f32 %v2892_v63, %v10934_v47 }
 0x6c6   :  { %v10976_v60 = vpop.f32.mrf.mxu0 }
 0x6c7   :  { %15162 = vst [vmem:[#allocation75_spill] sm:$0xff] %v10976_v60  ;;  %v2868_v55 = vmax.f32 %v2866_v49, %v10976_v60  ;;  %v2891_v60 = vmax.f32 %v2889_v26, %v10922_v59  ;;  %v2896_v57 = vmax.f32 %v2894_v33, %v10942_v6 }
 0x6c8   :  { %v10978_v1 = vpop.f32.mrf.mxu0 }
 0x6c9   :  { %v2898_v63 = vmax.f32 %v2896_v57, %v10950_v54 }
 0x6ca   :  { %v10980_v2 = vpop.f32.mrf.mxu0 }
 0x6cb   :  { %15163 = vst [vmem:[#allocation77_spill] sm:$0xff] %v10980_v2  ;;  %v2869_v5 = vmax.f32 %v2867_v9, %v10980_v2  ;;  %v2900_v33 = vmax.f32 %v2898_v63, %v10958_v41 }
 0x6cc   :  { %v10982_v40 = vpop.f32.mrf.mxu0 }
 0x6ce   :  { %v10984_v56 = vpop.f32.mrf.mxu0 }
 0x6cf   :  { %15164 = vst [vmem:[#allocation13_spill] sm:$0xff] %v10984_v56  ;;  %v2870_v32 = vmax.f32 %v2868_v55, %v10984_v56  ;;  %v2893_v56 = vmax.f32 %v2891_v60, %v10930_v11 }
 0x6d0   :  { %v10986_v7 = vpop.f32.mrf.mxu0 }
 0x6d1   :  { %v2895_v26 = vmax.f32 %v2893_v56, %v10938_v35  ;;  %v2902_v56 = vmax.f32 %v2900_v33, %v10966_v46 }
 0x6d2   :  { %v10988_v52 = vpop.f32.mrf.mxu0 }
 0x6d3   :  { %15165 = vst [vmem:[#allocation15_spill] sm:$0xff] %v10988_v52  ;;  %v2871_v24 = vmax.f32 %v2869_v5, %v10988_v52  ;;  %v2897_v60 = vmax.f32 %v2895_v26, %v10946_v27 }
 0x6d4   :  { %v10990_v36 = vpop.f32.mrf.mxu0 }
 0x6d5   :  { %v2899_v6 = vmax.f32 %v2897_v60, %v10954_v39 }
 0x6d6   :  { %v10992_v21 = vpop.f32.mrf.mxu0 }
 0x6d7   :  { %v2872_v49 = vmax.f32 %v2870_v32, %v10992_v21  ;;  %v2901_v57 = vmax.f32 %v2899_v6, %v10962_v38 }
 0x6d8   :  { %v10994_v0 = vpop.f32.mrf.mxu0 }
 0x6da   :  { %v10996_v3 = vpop.f32.mrf.mxu0 }
 0x6db   :  { %v2873_v9 = vmax.f32 %v2871_v24, %v10996_v3 }
 0x6dc   :  { %v10998_v50 = vpop.f32.mrf.mxu0 }
 0x6de   :  { %v11000_v45 = vpop.f32.mrf.mxu0 }
 0x6df   :  { %v2874_v55 = vmax.f32 %v2872_v49, %v11000_v45 }
 0x6e0   :  { %v11006_v8 = vpop.f32.mrf.mxu0 }
 0x6e2   :  { %v11010_v4 = vpop.f32.mrf.mxu0 }
 0x6e3   :  { %v2875_v5 = vmax.f32 %v2873_v9, %v11010_v4 }
 0x6e4   :  { %v11014_v20 = vpop.f32.mrf.mxu0 }
 0x6e6   :  { %v11018_v37 = vpop.f32.mrf.mxu0 }
 0x6e7   :  { %v2876_v32 = vmax.f32 %v2874_v55, %v11018_v37 }
 0x6e8   :  { %v11022_v25 = vpop.f32.mrf.mxu0 }
 0x6ea   :  { %v11026_v29 = vpop.f32.mrf.mxu0 }
 0x6eb   :  { %v2877_v24 = vmax.f32 %v2875_v5, %v11026_v29 }
 0x6ec   :  { %v11030_v12 = vpop.f32.mrf.mxu0 }
 0x6ee   :  { %v11034_v15 = vpop.f32.mrf.mxu0 }
 0x6ef   :  { %15166 = vst [vmem:[#allocation153_spill] sm:$0xff] %v11034_v15  ;;  %v2878_v49 = vmax.f32 %v2876_v32, %v11034_v15  ;;  %v2904_v32 = vmax.f32 %v2902_v56, %v10974_v23 }
 0x6f0   :  { %v11038_v51 = vpop.f32.mrf.mxu0 }
 0x6f1   :  { %v2906_v26 = vmax.f32 %v2904_v32, %v10982_v40 }
 0x6f2   :  { %v11044_v14 = vpop.f32.mrf.mxu0 }
 0x6f3   :  { %15167 = vst [vmem:[#allocation73_spill] sm:$0xff] %v11044_v14  ;;  %v2879_v9 = vmax.f32 %v2877_v24, %v11044_v14  ;;  %v2903_v14 = vmax.f32 %v2901_v57, %v10970_v62 }
 0x6f4   :  { %v11051_v2 = vpop.f32.mrf.mxu0 }
 0x6f5   :  { %v2905_v63 = vmax.f32 %v2903_v14, %v10978_v1 }
 0x6f6   :  { %v11057_v52 = vpop.f32.mrf.mxu0 }
 0x6f7   :  { %v2880_v55 = vmax.f32 %v2878_v49, %v11057_v52  ;;  %v2908_v49 = vmax.f32 %v2906_v26, %v10990_v36  ;;  %v2907_v60 = vmax.f32 %v2905_v63, %v10986_v7 }
 0x6f8   :  { %v11063_v17 = vpop.f32.mrf.mxu0 }
 0x6f9   :  { %v2910_v33 = vmax.f32 %v2908_v49, %v10998_v50  ;;  %v2909_v6 = vmax.f32 %v2907_v60, %v10994_v0 }
 0x6fa   :  { %v11069_v47 = vpop.f32.mrf.mxu0 }
 0x6fb   :  { %v2881_v5 = vmax.f32 %v2879_v9, %v11069_v47  ;;  %v2911_v57 = vmax.f32 %v2909_v6, %v11006_v8 }
 0x6fd   :  { %v2882_v35 = vmax.f32 %v2880_v55, %v2881_v5  ;;  %v2912_v5 = vmax.f32 %v2910_v33, %v11014_v20  ;;  %v2913_v14 = vmax.f32 %v2911_v57, %v11022_v25 }
 0x6ff   :  { %v2883_v24 = vrot.slane %v2882_v35, 4  ;;  %v2914_v32 = vmax.f32 %v2912_v5, %v11030_v12  ;;  %v2915_v63 = vmax.f32 %v2913_v14, %v11038_v51 }
 0x701   :  { %v2884_v15 = vmax.f32 %v2882_v35, %v2883_v24  ;;  %v11089_v35 = vpop.f32.mrf.mxu0  ;;  %v2916_v24 = vmax.f32 %v2914_v32, %v11051_v2  ;;  %v2917_v49 = vmax.f32 %v2915_v63, %v11063_v17 }
 0x703   :  { %v2885_v9 = vrot.slane %v2884_v15, 2 }
 0x705   :  { %v2886_v55 = vmax.f32 %v2884_v15, %v2885_v9  ;;  %v2918_v15 = vmax.f32 %v2916_v24, %v11089_v35 }
 0x707   :  { %v2887_v56 = vrot.slane %v2886_v55, 1  ;;  %v2919_v6 = vmax.f32 %v2917_v49, %v2918_v15 }
 0x709   :  { %v11093_v26 = vmax.f32 %v2886_v55, %v2887_v56  ;;  %v2920_v14 = vrot.slane %v2919_v6, 4 }
 0x70b   :  { %v2926_v9 = vsub.f32 %v10902_v31, %v11093_v26  ;;  %v2928_v60 = vsub.f32 %v10908_v48, %v11093_v26  ;;  %v2930_v33 = vsub.f32 %v10912_v44, %v11093_v26  ;;  %v2932_v55 = vsub.f32 %v10916_v10, %v11093_v26 }
 0x70c   :  { %v2934_v57 = vsub.f32 %v10920_v22, %v11093_v26  ;;  %v2936_v31 = vsub.f32 %v10924_v28, %v11093_v26  ;;  %v2938_v44 = vsub.f32 %v10928_v30, %v11093_v26  ;;  %v2921_v63 = vmax.f32 %v2919_v6, %v2920_v14  ;;  %v15168_v22 = vld [vmem:[#allocation140_spill] sm:$0xff] }
 0x70d   :  { %v2990_v5 = vmul.f32 1.442695, %v2926_v9  ;;  %v2994_v56 = vmul.f32 1.442695, %v2928_v60  ;;  %v2998_v32 = vmul.f32 1.442695, %v2930_v33  ;;  %v2940_v10 = vsub.f32 %v10932_v42, %v11093_v26 }
 0x70e   :  { %v3002_v48 = vmul.f32 1.442695, %v2932_v55  ;;  %v3006_v24 = vmul.f32 1.442695, %v2934_v57  ;;  %v3010_v15 = vmul.f32 1.442695, %v2936_v31  ;;  %v2942_v49 = vsub.f32 %v15168_v22, %v11093_v26 }
 0x70f   :  { %7935 = vpow2.f32 %v2990_v5  ;;  %v3014_v9 = vmul.f32 1.442695, %v2938_v44  ;;  %v2944_v28 = vsub.f32 %v10940_v43, %v11093_v26  ;;  %v2922_v60 = vrot.slane %v2921_v63, 2  ;;  %v15169_v33 = vld [vmem:[#allocation152_spill] sm:$0xff]  ;;  %v15170_v42 = vld [vmem:[#allocation17_spill] sm:$0xff] }
 0x710   :  { %7937 = vpow2.f32 %v2994_v56  ;;  %v2946_v30 = vsub.f32 %v15169_v33, %v11093_v26  ;;  %v3018_v55 = vmul.f32 1.442695, %v2940_v10  ;;  %v2948_v6 = vsub.f32 %v10948_v53, %v11093_v26 }
 0x711   :  { %7939 = vpow2.f32 %v2998_v32  ;;  %v2950_v5 = vsub.f32 %v15170_v42, %v11093_v26  ;;  %v3022_v56 = vmul.f32 1.442695, %v2942_v49  ;;  %v2952_v57 = vsub.f32 %v10956_v61, %v11093_v26 }
 0x712   :  { %7941 = vpow2.f32 %v3002_v48  ;;  %v3026_v32 = vmul.f32 1.442695, %v2944_v28  ;;  %v2923_v14 = vmax.f32 %v2921_v63, %v2922_v60  ;;  %v2954_v31 = vsub.f32 %v10960_v13, %v11093_v26 }
 0x713   :  { %7943 = vpow2.f32 %v3006_v24  ;;  %v3030_v48 = vmul.f32 1.442695, %v2946_v30  ;;  %v2970_v53 = vsub.f32 %v10992_v21, %v11093_v26  ;;  %v3034_v24 = vmul.f32 1.442695, %v2948_v6 }
 0x714   :  { %7945 = vpow2.f32 %v3010_v15  ;;  %v2972_v10 = vsub.f32 %v10996_v3, %v11093_v26  ;;  %v3038_v61 = vmul.f32 1.442695, %v2950_v5  ;;  %v2974_v13 = vsub.f32 %v11000_v45, %v11093_v26 }
 0x715   :  { %7947 = vpow2.f32 %v3014_v9  ;;  %v3042_v22 = vmul.f32 1.442695, %v2952_v57  ;;  %v2924_v49 = vrot.slane %v2923_v14, 1  ;;  %v2976_v21 = vsub.f32 %v11010_v4, %v11093_v26  ;;  %v15172_v4 = vld [vmem:[#allocation19_spill] sm:$0xff] }
 0x716   :  { %7949 = vpow2.f32 %v3018_v55  ;;  %v3046_v9 = vmul.f32 1.442695, %v2954_v31  ;;  %v2978_v60 = vsub.f32 %v11018_v37, %v11093_v26  ;;  %v3078_v33 = vmul.f32 1.442695, %v2970_v53  ;;  %v15173_v53 = vld [vmem:[#allocation75_spill] sm:$0xff] }
 0x717   :  { %7951 = vpow2.f32 %v3022_v56  ;;  %v2980_v45 = vsub.f32 %v11026_v29, %v11093_v26  ;;  %v3082_v30 = vmul.f32 1.442695, %v2972_v10  ;;  %v2956_v42 = vsub.f32 %v15172_v4, %v11093_v26 }
 0x718   :  { %7953 = vpow2.f32 %v3026_v32  ;;  %v3086_v5 = vmul.f32 1.442695, %v2974_v13  ;;  %v11156_v56 = vmax.f32 %v2923_v14, %v2924_v49  ;;  %v2958_v37 = vsub.f32 %v10968_v58, %v11093_v26 }
 0x719   :  { %7955 = vpow2.f32 %v3030_v48  ;;  %v3090_v57 = vmul.f32 1.442695, %v2976_v21  ;;  %v2960_v31 = vsub.f32 %v10972_v19, %v11093_v26  ;;  %v3094_v48 = vmul.f32 1.442695, %v2978_v60  ;;  %v15174_v21 = vld [vmem:[#allocation77_spill] sm:$0xff] }
 0x71a   :  { %7957 = vpow2.f32 %v3034_v24  ;;  %v2962_v24 = vsub.f32 %v15173_v53, %v11093_v26  ;;  %v3098_v14 = vmul.f32 1.442695, %v2980_v45  ;;  %v3050_v58 = vmul.f32 1.442695, %v2956_v42 }
 0x71b   :  { %7959 = vpow2.f32 %v3038_v61  ;;  %v3054_v13 = vmul.f32 1.442695, %v2958_v37 }
 0x71c   :  { %v11126_v43 = vpop.eup %7935  ;;  %7961 = vpow2.f32 %v3042_v22  ;;  %v2929_v22 = vsub.f32 %v10910_v18, %v11156_v56  ;;  %v3062_v60 = vmul.f32 1.442695, %v2962_v24 }
 0x71d   :  { %v11130_v44 = vpop.eup %7937  ;;  %7963 = vpow2.f32 %v3046_v9  ;;  %v2964_v9 = vsub.f32 %v15174_v21, %v11093_v26 }
 0x71e   :  { %15171 = vst [vmem:[#allocation142_spill] sm:$0xff] %v11130_v44  ;;  %v3118_v63 = vadd.f32 %v11130_v44, %v11126_v43  ;;  %v11138_v15 = vpop.eup %7939  ;;  %7965 = vpow2.f32 %v3078_v33 }
 0x71f   :  { %v11145_v28 = vpop.eup %7941  ;;  %7967 = vpow2.f32 %v3082_v30  ;;  %v15175_v30 = vld [vmem:[#allocation13_spill] sm:$0xff] }
 0x720   :  { %v3119_v3 = vadd.f32 %v11138_v15, %v3118_v63  ;;  %v11152_v6 = vpop.eup %7943  ;;  %7969 = vpow2.f32 %v3086_v5  ;;  %v2927_v63 = vsub.f32 %v10906_v34, %v11156_v56  ;;  %v2931_v34 = vsub.f32 %v10914_v16, %v11156_v56  ;;  %v15176_v5 = vld [vmem:[#allocation137_spill] sm:$0xff]  ;;  %v15177_v16 = vld [vmem:[#allocation15_spill] sm:$0xff] }
 0x721   :  { %v11161_v32 = vpop.eup %7945  ;;  %7971 = vpow2.f32 %v3090_v57  ;;  %v2933_v37 = vsub.f32 %v15176_v5, %v11156_v56  ;;  %v2996_v57 = vmul.f32 1.442695, %v2929_v22 }
 0x722   :  { %v3120_v55 = vadd.f32 %v11145_v28, %v3119_v3  ;;  %v11168_v61 = vpop.eup %7947  ;;  %v3058_v3 = vmul.f32 1.442695, %v2960_v31  ;;  %7973 = vpow2.f32 %v3094_v48  ;;  %v2992_v18 = vmul.f32 1.442695, %v2927_v63 }
 0x723   :  { %v11175_v49 = vpop.eup %7949  ;;  %7975 = vpow2.f32 %v3098_v14  ;;  %v2968_v31 = vsub.f32 %v15177_v16, %v11093_v26  ;;  %v3066_v48 = vmul.f32 1.442695, %v2964_v9  ;;  %v2935_v14 = vsub.f32 %v10922_v59, %v11156_v56 }
 0x724   :  { %v3121_v29 = vadd.f32 %v11152_v6, %v3120_v55  ;;  %v11182_v45 = vpop.eup %7951  ;;  %v2966_v55 = vsub.f32 %v15175_v30, %v11093_v26  ;;  %7977 = vpow2.f32 %v3050_v58  ;;  %v2939_v9 = vsub.f32 %v10930_v11, %v11156_v56 }
 0x725   :  { %v11186_v4 = vpop.eup %7953  ;;  %7979 = vpow2.f32 %v3054_v13  ;;  %v15178_v13 = vld [vmem:[#allocation138_spill] sm:$0xff]  ;;  %v3074_v59 = vmul.f32 1.442695, %v2968_v31  ;;  %v3008_v5 = vmul.f32 1.442695, %v2935_v14  ;;  %v2951_v11 = vsub.f32 %v10954_v39, %v11156_v56 }
 0x726   :  { %v3122_v10 = vadd.f32 %v11161_v32, %v3121_v29  ;;  %v11191_v29 = vpop.eup %7955  ;;  %7981 = vpow2.f32 %v3058_v3  ;;  %v3070_v63 = vmul.f32 1.442695, %v2966_v55  ;;  %v3004_v3 = vmul.f32 1.442695, %v2933_v37 }
 0x727   :  { %v11195_v53 = vpop.eup %7957  ;;  %7983 = vpow2.f32 %v3062_v60  ;;  %v2953_v37 = vsub.f32 %v10958_v41, %v11156_v56  ;;  %v2957_v39 = vsub.f32 %v10966_v46, %v11156_v56 }
 0x728   :  { %v3123_v19 = vadd.f32 %v11168_v61, %v3122_v10  ;;  %v3000_v10 = vmul.f32 1.442695, %v2931_v34  ;;  %v11200_v58 = vpop.eup %7959  ;;  %7985 = vpow2.f32 %v2992_v18  ;;  %v15181_v18 = vld [vmem:[#allocation90_spill] sm:$0xff] }
 0x729   :  { %v11204_v22 = vpop.eup %7961  ;;  %7987 = vpow2.f32 %v2996_v57 }
 0x72a   :  { %v3124_v33 = vadd.f32 %v11175_v49, %v3123_v19  ;;  %v2937_v19 = vsub.f32 %v15178_v13, %v11156_v56  ;;  %v11209_v60 = vpop.eup %7963  ;;  %7989 = vpow2.f32 %v3066_v48 }
 0x72b   :  { %v11213_v30 = vpop.eup %7965  ;;  %7991 = vpow2.f32 %v3000_v10 }
 0x72c   :  { %v3125_v42 = vadd.f32 %v11182_v45, %v3124_v33  ;;  %v15179_v33 = vld [vmem:[#allocation139_spill] sm:$0xff]  ;;  %15180 = vst [vmem:[#allocation151_spill] sm:$0xff] %v11213_v30  ;;  %v11218_v16 = vpop.eup %7967  ;;  %7993 = vpow2.f32 %v3070_v63  ;;  %v3012_v57 = vmul.f32 1.442695, %v2937_v19  ;;  %v2955_v63 = vsub.f32 %v10962_v38, %v11156_v56 }
 0x72d   :  { %v2941_v34 = vsub.f32 %v15179_v33, %v11156_v56  ;;  %v11224_v31 = vpop.eup %7969  ;;  %7995 = vpow2.f32 %v3004_v3  ;;  %v3040_v38 = vmul.f32 1.442695, %v2951_v11 }
 0x72e   :  { %v3126_v24 = vadd.f32 %v11186_v4, %v3125_v42  ;;  %v2943_v42 = vsub.f32 %v15181_v18, %v11156_v56  ;;  %v11229_v14 = vpop.eup %7971  ;;  %7997 = vpow2.f32 %v3074_v59  ;;  %v15182_v59 = vld [vmem:[#allocation94_spill] sm:$0xff] }
 0x72f   :  { %v3020_v41 = vmul.f32 1.442695, %v2941_v34  ;;  %v11235_v13 = vpop.eup %7973  ;;  %7999 = vpow2.f32 %v3008_v5  ;;  %v2945_v33 = vsub.f32 %v15182_v59, %v11156_v56  ;;  %v3044_v34 = vmul.f32 1.442695, %v2953_v37 }
 0x730   :  { %v3127_v21 = vadd.f32 %v11191_v29, %v3126_v24  ;;  %v3016_v24 = vmul.f32 1.442695, %v2939_v9  ;;  %v11240_v3 = vpop.eup %7975  ;;  %8001 = vpow2.f32 %v3012_v57  ;;  %v2947_v5 = vsub.f32 %v10946_v27, %v11156_v56 }
 0x731   :  { %v2949_v57 = vsub.f32 %v10950_v54, %v11156_v56  ;;  %v3028_v9 = vmul.f32 1.442695, %v2945_v33 }
 0x732   :  { %v3128_v55 = vadd.f32 %v11195_v53, %v3127_v21  ;;  %v3024_v21 = vmul.f32 1.442695, %v2943_v42  ;;  %8003 = vpow2.f32 %v3016_v24  ;;  %v3052_v24 = vmul.f32 1.442695, %v2957_v39 }
 0x733   :  { %8005 = vpow2.f32 %v3020_v41  ;;  %v3036_v39 = vmul.f32 1.442695, %v2949_v57  ;;  %v2986_v57 = vsub.f32 %v11057_v52, %v11093_v26 }
 0x734   :  { %v3129_v48 = vadd.f32 %v11200_v58, %v3128_v55  ;;  %v11244_v55 = vpop.eup %7977  ;;  %8007 = vpow2.f32 %v3024_v21 }
 0x735   :  { %v11249_v42 = vpop.eup %7979  ;;  %8009 = vpow2.f32 %v3040_v38 }
 0x736   :  { %v3130_v19 = vadd.f32 %v11204_v22, %v3129_v48  ;;  %15183 = vst [vmem:[#allocation149_spill] sm:$0xff] %v11249_v42  ;;  %v3048_v48 = vmul.f32 1.442695, %v2955_v63  ;;  %v11253_v10 = vpop.eup %7981  ;;  %8011 = vpow2.f32 %v3044_v34  ;;  %v15186_v63 = vld [vmem:[#allocation153_spill] sm:$0xff] }
 0x737   :  { %15184 = vst [vmem:[#allocation150_spill] sm:$0xff] %v11253_v10  ;;  %v11258_v37 = vpop.eup %7983  ;;  %v2982_v41 = vsub.f32 %v15186_v63, %v11093_v26  ;;  %v15189_v34 = vld [vmem:[#allocation73_spill] sm:$0xff] }
 0x738   :  { %v3131_v46 = vadd.f32 %v11209_v60, %v3130_v19  ;;  %15185 = vst [vmem:[#allocation72_spill] sm:$0xff] %v11258_v37  ;;  %v11260_v19 = vpop.eup %7985  ;;  %8013 = vpow2.f32 %v3048_v48 }
 0x739   :  { %v11263_v27 = vpop.eup %7987  ;;  %8015 = vpow2.f32 %v3052_v24 }
 0x73a   :  { %v3132_v11 = vadd.f32 %v11244_v55, %v3131_v46  ;;  %v3032_v46 = vmul.f32 1.442695, %v2947_v5  ;;  %v11267_v18 = vpop.eup %7989  ;;  %v3155_v21 = vadd.f32 %v11263_v27, %v11260_v19  ;;  %8017 = vpow2.f32 %v3028_v9 }
 0x73b   :  { %15187 = vst [vmem:[#allocation18_spill] sm:$0xff] %v11267_v18  ;;  %v11272_v38 = vpop.eup %7991  ;;  %v2988_v9 = vsub.f32 %v11069_v47, %v11093_v26  ;;  %v2961_v47 = vsub.f32 %v10974_v23, %v11156_v56 }
 0x73c   :  { %v3133_v59 = vadd.f32 %v11249_v42, %v3132_v11  ;;  %v11274_v33 = vpop.eup %7993  ;;  %v2984_v11 = vsub.f32 %v15189_v34, %v11093_v26  ;;  %v3156_v5 = vadd.f32 %v11272_v38, %v3155_v21  ;;  %8019 = vpow2.f32 %v3032_v46 }
 0x73d   :  { %15188 = vst [vmem:[#allocation16_spill] sm:$0xff] %v11274_v33  ;;  %v11280_v48 = vpop.eup %7995  ;;  %8021 = vpow2.f32 %v3036_v39 }
 0x73e   :  { %v3134_v54 = vadd.f32 %v11253_v10, %v3133_v59  ;;  %v11284_v24 = vpop.eup %7997  ;;  %v3102_v59 = vmul.f32 1.442695, %v2982_v41  ;;  %v3157_v42 = vadd.f32 %v11280_v48, %v3156_v5  ;;  %v3106_v21 = vmul.f32 1.442695, %v2984_v11 }
 0x73f   :  { %15190 = vst [vmem:[#allocation14_spill] sm:$0xff] %v11284_v24  ;;  %v11288_v34 = vpop.eup %7999  ;;  %v3110_v41 = vmul.f32 1.442695, %v2986_v57 }
 0x740   :  { %v3135_v63 = vadd.f32 %v11258_v37, %v3134_v54  ;;  %v11290_v54 = vpop.eup %8001  ;;  %v3158_v52 = vadd.f32 %v11288_v34, %v3157_v42  ;;  %8023 = vpow2.f32 %v3102_v59 }
 0x741   :  { %v11296_v46 = vpop.eup %8003  ;;  %8025 = vpow2.f32 %v3106_v21  ;;  %v3060_v21 = vmul.f32 1.442695, %v2961_v47 }
 0x742   :  { %v3136_v10 = vadd.f32 %v11267_v18, %v3135_v63  ;;  %v11298_v44 = vpop.eup %8005  ;;  %v2959_v63 = vsub.f32 %v10970_v62, %v11156_v56  ;;  %v3159_v5 = vadd.f32 %v11290_v54, %v3158_v52  ;;  %8027 = vpow2.f32 %v3110_v41 }
 0x743   :  { %v11304_v18 = vpop.eup %8007 }
 0x744   :  { %v3137_v37 = vadd.f32 %v11274_v33, %v3136_v10  ;;  %v8010_v26 = vpop.eup %8009  ;;  %v3114_v10 = vmul.f32 1.442695, %v2988_v9  ;;  %v3160_v11 = vadd.f32 %v11296_v46, %v3159_v5  ;;  %v3056_v52 = vmul.f32 1.442695, %v2959_v63 }
 0x745   :  { %v8012_v57 = vpop.eup %8011  ;;  %v2965_v9 = vsub.f32 %v10982_v40, %v11156_v56  ;;  %v2967_v63 = vsub.f32 %v10986_v7, %v11156_v56  ;;  %v2973_v7 = vsub.f32 %v10998_v50, %v11156_v56 }
 0x746   :  { %v3138_v39 = vadd.f32 %v11284_v24, %v3137_v37  ;;  %v2963_v37 = vsub.f32 %v10978_v1, %v11156_v56  ;;  %v11312_v59 = vpop.eup %8013  ;;  %v3161_v24 = vadd.f32 %v11298_v44, %v3160_v11  ;;  %8029 = vpow2.f32 %v3114_v10 }
 0x747   :  { %v11316_v23 = vpop.eup %8015  ;;  %v3208_v11 = vpack.c.bf16 %v11244_v55, %v11209_v60  ;;  %8031 = vpow2.f32 %v3056_v52  ;;  %v3207_v10 = vpack.c.bf16 %v8012_v57, %v8010_v26  ;;  %v3068_v55 = vmul.f32 1.442695, %v2965_v9 }
 0x748   :  { %v3139_v42 = vadd.f32 %v11213_v30, %v3138_v39  ;;  %v3162_v5 = vadd.f32 %v11304_v18, %v3161_v24  ;;  %v3209_v1 = vpack.c.bf16 %v11316_v23, %v11312_v59  ;;  %v8018_v41 = vpop.eup %8017  ;;  %v2969_v24 = vsub.f32 %v10990_v36, %v11156_v56 }
 0x749   :  { %v8020_v33 = vpop.eup %8019  ;;  %v2971_v30 = vsub.f32 %v10994_v0, %v11156_v56  ;;  %8033 = vpow2.f32 %v3060_v21  ;;  %v2987_v52 = vsub.f32 %v11063_v17, %v11156_v56  ;;  %v3072_v36 = vmul.f32 1.442695, %v2967_v63 }
 0x74a   :  { %v3140_v62 = vadd.f32 %v11218_v16, %v3139_v42  ;;  %v3064_v42 = vmul.f32 1.442695, %v2963_v37  ;;  %v3163_v47 = vadd.f32 %v8018_v41, %v3162_v5  ;;  %3226 = vmatprep.subr.bf16.mxu1 %v3209_v1  ;;  %v3206_v0 = vpack.c.bf16 %v11204_v22, %v11200_v58 }
 0x74b   :  { %3227 = vmatpush1.bf16.msra.mxu1 %v3208_v11  ;;  %v2975_v9 = vsub.f32 %v11006_v8, %v11156_v56  ;;  %v2977_v17 = vsub.f32 %v11014_v20, %v11156_v56  ;;  %v3076_v21 = vmul.f32 1.442695, %v2969_v24  ;;  %v3080_v22 = vmul.f32 1.442695, %v2971_v30 }
 0x74c   :  { %v3141_v39 = vadd.f32 %v11224_v31, %v3140_v62  ;;  %v8022_v62 = vpop.eup %8021  ;;  %v3164_v37 = vadd.f32 %v8020_v33, %v3163_v47  ;;  %3228 = vmatprep.subr.bf16.mxu1 %v3207_v10  ;;  %8035 = vpow2.f32 %v3064_v42  ;;  %v2985_v42 = vsub.f32 %v11051_v2, %v11156_v56 }
 0x74d   :  { %v3205_v1 = vpack.c.bf16 %v8022_v62, %v8020_v33  ;;  %v11343_v11 = vpop.eup %8023  ;;  %8037 = vpow2.f32 %v3068_v55  ;;  %v3112_v8 = vmul.f32 1.442695, %v2987_v52  ;;  %v3204_v20 = vpack.c.bf16 %v11195_v53, %v11191_v29 }
 0x74e   :  { %v3142_v40 = vadd.f32 %v11229_v14, %v3141_v39  ;;  %v2989_v39 = vsub.f32 %v11089_v35, %v11156_v56  ;;  %v3165_v50 = vadd.f32 %v8022_v62, %v3164_v37  ;;  %v2983_v35 = vsub.f32 %v11038_v51, %v11156_v56  ;;  %v11352_v33 = vpop.eup %8025 }
 0x74f   :  { %3229 = vmatpush1.bf16.msra.mxu1 %v3206_v0  ;;  %8039 = vpow2.f32 %v3072_v36  ;;  %v3203_v10 = vpack.c.bf16 %v8018_v41, %v11304_v18  ;;  %v11360_v62 = vpop.eup %8027  ;;  %v2979_v30 = vsub.f32 %v11022_v25, %v11156_v56  ;;  %v3084_v2 = vmul.f32 1.442695, %v2973_v7 }
 0x750   :  { %v3143_v60 = vadd.f32 %v11235_v13, %v3142_v40  ;;  %v3166_v63 = vadd.f32 %v8010_v26, %v3165_v50  ;;  %3230 = vmatprep.subr.bf16.mxu1 %v3205_v1  ;;  %v3116_v40 = vmul.f32 1.442695, %v2989_v39  ;;  %v2981_v26 = vsub.f32 %v11030_v12, %v11156_v56 }
 0x751   :  { %8041 = vpow2.f32 %v3076_v21  ;;  %v3088_v29 = vmul.f32 1.442695, %v2975_v9  ;;  %v3104_v18 = vmul.f32 1.442695, %v2983_v35  ;;  %v3108_v41 = vmul.f32 1.442695, %v2985_v42 }
 0x752   :  { %v3144_v5 = vadd.f32 %v11240_v3, %v3143_v60  ;;  %v3167_v47 = vadd.f32 %v8012_v57, %v3166_v63  ;;  %8043 = vpow2.f32 %v3080_v22  ;;  %v3202_v25 = vpack.c.bf16 %v11186_v4, %v11182_v45 }
 0x753   :  { %3231 = vmatpush1.bf16.msra.mxu1 %v3204_v20  ;;  %v11368_v57 = vpop.eup %8029  ;;  %8045 = vpow2.f32 %v3112_v8  ;;  %v3201_v7 = vpack.c.bf16 %v11298_v44, %v11296_v46  ;;  %v3096_v45 = vmul.f32 1.442695, %v2979_v30  ;;  %v3200_v4 = vpack.c.bf16 %v11175_v49, %v11168_v61 }
 0x754   :  { %v3145_v58 = vadd.f32 %v11343_v11, %v3144_v5  ;;  %v3168_v53 = vadd.f32 %v11312_v59, %v3167_v47  ;;  %3232 = vmatprep.subr.bf16.mxu1 %v3203_v10  ;;  %8047 = vpow2.f32 %v3116_v40  ;;  %v11378_v60 = vpop.eup %8031  ;;  %v3092_v59 = vmul.f32 1.442695, %v2977_v17 }
 0x755   :  { %8049 = vpow2.f32 %v3084_v2  ;;  %v3199_v46 = vpack.c.bf16 %v11290_v54, %v11288_v34  ;;  %v3198_v0 = vpack.c.bf16 %v11161_v32, %v11152_v6  ;;  %v3197_v49 = vpack.c.bf16 %v11280_v48, %v11272_v38  ;;  %v15191_v48 = vld [vmem:[#allocation142_spill] sm:$0xff] }
 0x756   :  { %v3146_v51 = vadd.f32 %v11352_v33, %v3145_v58  ;;  %v3169_v56 = vadd.f32 %v11316_v23, %v3168_v53  ;;  %8051 = vpow2.f32 %v3088_v29  ;;  %v11381_v37 = vpop.eup %8033  ;;  %v3100_v23 = vmul.f32 1.442695, %v2981_v26 }
 0x757   :  { %3233 = vmatpush1.bf16.msra.mxu1 %v3202_v25  ;;  %8053 = vpow2.f32 %v3104_v18  ;;  %v3196_v1 = vpack.c.bf16 %v11145_v28, %v11138_v15  ;;  %v3195_v35 = vpack.c.bf16 %v11263_v27, %v11260_v19  ;;  %v3194_v58 = vpack.c.bf16 %v15191_v48, %v11126_v43  ;;  %v15196_v25 = vld [vmem:[#allocation16_spill] sm:$0xff] }
 0x758   :  { %v3147_v24 = vadd.f32 %v11360_v62, %v3146_v51  ;;  %v3170_v55 = vadd.f32 %v11378_v60, %v3169_v56  ;;  %3234 = vmatprep.subr.bf16.mxu1 %v3201_v7  ;;  %8055 = vpow2.f32 %v3108_v41  ;;  %v3224_v19 = vpack.c.bf16 %v11368_v57, %v11360_v62  ;;  %v15197_v56 = vld [vmem:[#allocation14_spill] sm:$0xff]  ;;  %v15198_v7 = vld [vmem:[#allocation72_spill] sm:$0xff] }
 0x759   :  { %v11388_v52 = vpop.eup %8035  ;;  %8057 = vpow2.f32 %v3092_v59  ;;  %v3222_v43 = vpack.c.bf16 %v11352_v33, %v11343_v11  ;;  %v15192_v62 = vpack.c.bf16 %v11240_v3, %v11235_v13  ;;  %v15193_v18 = vpack.c.bf16 %v11229_v14, %v11224_v31  ;;  %v15194_v33 = vld [vmem:[#allocation151_spill] sm:$0xff]  ;;  %v15199_v59 = vld [vmem:[#allocation18_spill] sm:$0xff]  ;;  %v15200_v14 = vld [vmem:[#allocation149_spill] sm:$0xff] }
 0x75a   :  { %v11373_v12 = vadd.f32 %v11368_v57, %v3147_v24  ;;  %v3171_v44 = vadd.f32 %v11381_v37, %v3170_v55  ;;  %v8038_v36 = vpop.eup %8037  ;;  %8059 = vpow2.f32 %v3096_v45  ;;  %v15195_v41 = vpack.c.bf16 %v11218_v16, %v15194_v33  ;;  %v15201_v45 = vld [vmem:[#allocation150_spill] sm:$0xff] }
 0x75b   :  { %3235 = vmatpush1.bf16.msra.mxu1 %v3200_v4  ;;  %8061 = vpow2.f32 %v3100_v23  ;;  %v3214_v13 = vpack.c.bf16 %v15197_v56, %v15196_v25  ;;  %v3213_v3 = vpack.c.bf16 %v8038_v36, %v11388_v52  ;;  %v3212_v55 = vpack.c.bf16 %v15199_v59, %v15198_v7  ;;  %v15202_v4 = vld [vmem:[#allocation34_spill] sm:$0xff] }
 0x75c   :  { %v3172_v39 = vadd.f32 %v11388_v52, %v3171_v44  ;;  %3236 = vmatprep.subr.bf16.mxu1 %v3199_v46  ;;  %v8040_v5 = vpop.eup %8039  ;;  %v3211_v31 = vpack.c.bf16 %v11381_v37, %v11378_v60  ;;  %v3210_v16 = vpack.c.bf16 %v15201_v45, %v15200_v14  ;;  %v15203_v23 = vld [vmem:[#allocation38_spill] sm:$0xff]  ;;  %v15211_v60 = vld [vmem:[#allocation36_spill] sm:$0xff] }
 0x75d   :  { %v1039_v44 = vpack.c.bf16 %v15203_v23, %v15202_v4  ;;  %v15204_v46 = vld [vmem:[#allocation98_spill] sm:$0xff]  ;;  %v15212_v37 = vld [vmem:[#allocation32_spill] sm:$0xff] }
 0x75e   :  { %v3173_v61 = vadd.f32 %v8038_v36, %v3172_v39  ;;  %v8042_v34 = vpop.eup %8041  ;;  %v15205_v52 = vld [vmem:[#allocation102_spill] sm:$0xff]  ;;  %v15206_v36 = vld [vmem:[#allocation29_spill] sm:$0xff] }
 0x75f   :  { %3237 = vmatpush1.bf16.msra.mxu1 %v3198_v0  ;;  %v8044_v50 = vpop.eup %8043  ;;  %v3215_v11 = vpack.c.bf16 %v8042_v34, %v8040_v5  ;;  %v1095_v39 = vpack.c.bf16 %v15205_v52, %v15204_v46  ;;  %v15207_v0 = vld [vmem:[#allocation31_spill] sm:$0xff] }
 0x760   :  { %v3174_v54 = vadd.f32 %v8040_v5, %v3173_v61  ;;  %3238 = vmatprep.subr.bf16.mxu1 %v3197_v49  ;;  %v8046_v9 = vpop.eup %8045  ;;  %v1035_v61 = vpack.c.bf16 %v15207_v0, %v15206_v36  ;;  %v15208_v49 = vld [vmem:[#allocation92_spill] sm:$0xff] }
 0x761   :  { %v8048_v6 = vpop.eup %8047  ;;  %v15209_v5 = vld [vmem:[#allocation88_spill] sm:$0xff] }
 0x762   :  { %v3175_v17 = vadd.f32 %v8042_v34, %v3174_v54  ;;  %v8050_v32 = vpop.eup %8049  ;;  %v3225_v42 = vpack.c.bf16 %v8048_v6, %v8046_v9  ;;  %v15210_v34 = vpack.c.bf16 %v15208_v49, %v15209_v5  ;;  %v15213_v54 = vpack.c.bf16 %v15211_v60, %v15212_v37 }
 0x763   :  { %3239 = vmatpush1.bf16.msra.mxu1 %v3196_v1  ;;  %v8052_v38 = vpop.eup %8051  ;;  %v3217_v57 = vpack.c.bf16 %v8050_v32, %v8044_v50  ;;  %v15215_v1 = vld [vmem:[#allocation28_spill] sm:$0xff] }
 0x764   :  { %v3176_v21 = vadd.f32 %v8044_v50, %v3175_v17  ;;  %3240 = vmatprep.subr.bf16.mxu1 %v3195_v35  ;;  %v8054_v22 = vpop.eup %8053  ;;  %v15214_v50 = vld [vmem:[#allocation30_spill] sm:$0xff]  ;;  %v15217_v17 = vld [vmem:[#allocation100_spill] sm:$0xff] }
 0x765   :  { %v8056_v8 = vpop.eup %8055  ;;  %v15218_v35 = vld [vmem:[#allocation96_spill] sm:$0xff] }
 0x766   :  { %v3177_v63 = vadd.f32 %v8050_v32, %v3176_v21  ;;  %v8058_v28 = vpop.eup %8057  ;;  %v3223_v20 = vpack.c.bf16 %v8056_v8, %v8054_v22  ;;  %v15220_v32 = vmov 0   ;;  %v3323_v21 = vpop.trf.xlu1 }
 0x767   :  { %3241 = vmatpush1.bf16.msra.mxu1 %v3194_v58  ;;  %v8060_v27 = vpop.eup %8059  ;;  %v3219_v24 = vpack.c.bf16 %v8058_v28, %v8052_v38 }
 0x768   :  { %v3178_v15 = vadd.f32 %v8052_v38, %v3177_v63  ;;  %3242 = vmatprep.subr.bf16.mxu1 %v3225_v42  ;;  %v8062_v51 = vpop.eup %8061 }
 0x769   :  { %v3221_v30 = vpack.c.bf16 %v8062_v51, %v8060_v27 }
 0x76a   :  { %v3179_v40 = vadd.f32 %v8058_v28, %v3178_v15  ;;  %v3324_v38 = vpop.trf.xlu1  ;;  %v3339_v15 = vpop.trf.xlu0 }
 0x76b   :  { %3243 = vmatpush2.bf16.msra.mxu1 %v3224_v19 }
 0x76c   :  { %v3180_v47 = vadd.f32 %v8060_v27, %v3179_v40  ;;  %3244 = vmatprep.subr.bf16.mxu1 %v3223_v20 }
 0x76e   :  { %v3181_v10 = vadd.f32 %v8062_v51, %v3180_v47  ;;  %v3325_v48 = vpop.trf.xlu1  ;;  %v3340_v28 = vpop.trf.xlu0 }
 0x76f   :  { %3245 = vmatpush2.bf16.msra.mxu1 %v3222_v43  ;;  %v15221_v43 = vld [vmem:[#allocation83_spill] sm:$0xff] }
 0x770   :  { %v3182_v26 = vadd.f32 %v8054_v22, %v3181_v10  ;;  %3246 = vmatprep.subr.bf16.mxu1 %v3221_v30  ;;  %v15222_v10 = vld [vmem:[#allocation87_spill] sm:$0xff] }
 0x771   :  { %v1077_v30 = vpack.c.bf16 %v15222_v10, %v15221_v43 }
 0x772   :  { %v3183_v2 = vadd.f32 %v8056_v8, %v3182_v26  ;;  %v3326_v58 = vpop.trf.xlu1  ;;  %v3341_v19 = vpop.trf.xlu0  ;;  %v3149_v26 = vrot.slane %v11373_v12, 4 }
 0x773   :  { %3247 = vmatpush2.bf16.msra.mxu1 %v15192_v62 }
 0x774   :  { %v3184_v29 = vadd.f32 %v8046_v9, %v3183_v2  ;;  %3248 = vmatprep.subr.bf16.mxu1 %v3219_v24  ;;  %v15216_v9 = vpack.c.bf16 %v15214_v50, %v15215_v1  ;;  %v3150_v24 = vadd.f32 %v3149_v26, %v11373_v12 }
 0x776   :  { %v11408_v53 = vadd.f32 %v8048_v6, %v3184_v29  ;;  %v15219_v6 = vpack.c.bf16 %v15217_v17, %v15218_v35  ;;  %v3327_v22 = vpop.trf.xlu1  ;;  %v3342_v27 = vpop.trf.xlu0  ;;  %v3151_v29 = vrot.slane %v3150_v24, 2 }
 0x777   :  { %3249 = vmatpush2.bf16.msra.mxu1 %v15193_v18 }
 0x778   :  { %3250 = vmatprep.subr.bf16.mxu1 %v3217_v57  ;;  %v3186_v2 = vrot.slane %v11408_v53, 4  ;;  %v3152_v18 = vadd.f32 %v3151_v29, %v3150_v24 }
 0x77a   :  { %v3328_v63 = vpop.trf.xlu1  ;;  %v3343_v40 = vpop.trf.xlu0  ;;  %v3187_v62 = vadd.f32 %v3186_v2, %v11408_v53  ;;  %v3153_v33 = vrot.slane %v3152_v18, 1 }
 0x77b   :  { %3251 = vmatpush2.bf16.msra.mxu1 %v15195_v41 }
 0x77c   :  { %3252 = vmatprep.subr.bf16.mxu1 %v3215_v11  ;;  %v3188_v57 = vrot.slane %v3187_v62, 2  ;;  %v3154_v25 = vadd.f32 %v3153_v33, %v3152_v18 }
 0x77e   :  { %v3329_v42 = vpop.trf.xlu1  ;;  %v3344_v20 = vpop.trf.xlu0  ;;  %v3189_v11 = vadd.f32 %v3188_v57, %v3187_v62  ;;  %8063 = vrcp.f32 %v3154_v25 }
 0x77f   :  { %3253 = vmatpush2.bf16.msra.mxu1 %v3214_v13 }
 0x780   :  { %3254 = vmatprep.subr.bf16.mxu1 %v3213_v3  ;;  %v3190_v41 = vrot.slane %v3189_v11, 1 }
 0x782   :  { %v3330_v8 = vpop.trf.xlu1  ;;  %v3345_v51 = vpop.trf.xlu0  ;;  %v3191_v56 = vadd.f32 %v3190_v41, %v3189_v11 }
 0x783   :  { %3255 = vmatpush2.bf16.msra.mxu1 %v3212_v55 }
 0x784   :  { %3256 = vmatprep.subr.bf16.mxu1 %v3211_v31  ;;  %8065 = vrcp.f32 %v3191_v56 }
 0x786   :  { %v3346_v47 = vpop.trf.xlu0 }
 0x787   :  { %3257 = vmatpush2.bf16.msra.mxu1 %v3210_v16 }
 0x788   :  { %3407 = vmatprep.subr.bf16.mxu1 %v1039_v44 }
 0x78a   :  { %3259 = vmatmul.mubr.bf16.vlgmr.msra.gmra.mxu1 %v15210_v34 }
 0x78b   :  { %3268 = vmatprep.mubr.bf16.mxu1 %v1095_v39  ;;  %3408 = vmatpush1.bf16.msra.mxu1 %v15213_v54  ;;  %v8064_v13 = vpop.eup %8063 }
 0x78c   :  { %3409 = vmatprep.subr.bf16.mxu1 %v1035_v61 }
 0x78f   :  { %3410 = vmatpush1.bf16.msra.mxu1 %v15216_v9 }
 0x791   :  { %v8066_v59 = vpop.eup %8065 }
 0x792   :  { %3269 = vmatmul.mubr.bf16.gmra.mxu1 %v15219_v6 }
 0x793   :  { %3427 = vmatprep.mubr.bf16.mxu1 %v15220_v32 }
 0x79a   :  { %7463 = vmatmul.mubr.msk.bf16.vlgmr.msra.gmra.mxu1 %vm1138_vm2, %v3323_v21 }
 0x79b   :  { %3437 = vmatprep.mubr.bf16.mxu1 %v15220_v32 }
 0x7a2   :  { %7464 = vmatmul.mubr.msk.bf16.gmra.mxu1 %vm1138_vm2, %v3324_v38 }
 0x7a3   :  { %3447 = vmatprep.mubr.bf16.mxu1 %v15220_v32 }
 0x7aa   :  { %7465 = vmatmul.mubr.msk.bf16.gmra.mxu1 %vm1138_vm2, %v3325_v48 }
 0x7ab   :  { %3457 = vmatprep.mubr.bf16.mxu1 %v15220_v32 }
 0x7b2   :  { %7466 = vmatmul.mubr.msk.bf16.gmra.mxu1 %vm1138_vm2, %v3326_v58 }
 0x7b3   :  { %3467 = vmatprep.mubr.bf16.mxu1 %v15220_v32 }
 0x7ba   :  { %7467 = vmatmul.mubr.msk.bf16.gmra.mxu1 %vm1138_vm2, %v3327_v22 }
 0x7bb   :  { %3477 = vmatprep.mubr.bf16.mxu1 %v15220_v32 }
 0x7c2   :  { %7468 = vmatmul.mubr.msk.bf16.gmra.mxu1 %vm1138_vm2, %v3328_v63 }
 0x7c3   :  { %3487 = vmatprep.mubr.bf16.mxu1 %v15220_v32 }
 0x7ca   :  { %7469 = vmatmul.mubr.msk.bf16.gmra.mxu1 %vm1138_vm2, %v3329_v42 }
 0x7cb   :  { %3497 = vmatprep.mubr.bf16.mxu1 %v15220_v32 }
 0x7d2   :  { %7470 = vmatmul.mubr.msk.bf16.gmra.mxu1 %vm1138_vm2, %v3330_v8 }
 0x7d3   :  { %3507 = vmatprep.mubr.bf16.mxu1 %v15220_v32 }
 0x7da   :  { %7471 = vmatmul.mubr.msk.bf16.gmra.mxu1 %vm1138_vm2, %v3339_v15 }
 0x7db   :  { %3517 = vmatprep.mubr.bf16.mxu1 %v15220_v32 }
 0x7e2   :  { %7472 = vmatmul.mubr.msk.bf16.gmra.mxu1 %vm1138_vm2, %v3340_v28 }
 0x7e3   :  { %3527 = vmatprep.mubr.bf16.mxu1 %v15220_v32 }
 0x7ea   :  { %7473 = vmatmul.mubr.msk.bf16.gmra.mxu1 %vm1138_vm2, %v3341_v19 }
 0x7eb   :  { %3537 = vmatprep.mubr.bf16.mxu1 %v15220_v32 }
 0x7f2   :  { %7474 = vmatmul.mubr.msk.bf16.gmra.mxu1 %vm1138_vm2, %v3342_v27 }
 0x7f3   :  { %3547 = vmatprep.mubr.bf16.mxu1 %v15220_v32 }
 0x7fa   :  { %7475 = vmatmul.mubr.msk.bf16.gmra.mxu1 %vm1138_vm2, %v3343_v40 }
 0x7fb   :  { %3557 = vmatprep.mubr.bf16.mxu1 %v15220_v32 }
 0x802   :  { %7476 = vmatmul.mubr.msk.bf16.gmra.mxu1 %vm1138_vm2, %v3344_v20 }
 0x803   :  { %3567 = vmatprep.mubr.bf16.mxu1 %v15220_v32 }
 0x80a   :  { %7477 = vmatmul.mubr.msk.bf16.gmra.mxu1 %vm1138_vm2, %v3345_v51 }
 0x80b   :  { %3577 = vmatprep.mubr.bf16.mxu1 %v15220_v32 }
 0x812   :  { %7478 = vmatmul.mubr.msk.bf16.gmra.mxu1 %vm1138_vm2, %v3346_v47 }
 0x813   :  { %4730 = vmatprep.mubr.bf16.mxu1 %v1077_v30 }
 0x84a   :  { %v3260_v3 = vpop.f32.mrf.mxu1 }
 0x84b   :  { %v11481_v7 = vmul.f32 %v8064_v13, %v3260_v3 }
 0x84c   :  { %v3262_v55 = vpop.f32.mrf.mxu1 }
 0x84d   :  { %15223 = vst [vmem:[#allocation114_spill] sm:$0xff] %v11481_v7  ;;  %v11483_v31 = vmul.f32 %v8066_v59, %v3262_v55 }
 0x84e   :  { %v3264_v12 = vpop.f32.mrf.mxu1 }
 0x84f   :  { %15224 = vst [vmem:[#allocation118_spill] sm:$0xff] %v11483_v31  ;;  %v11485_v53 = vmul.f32 %v8064_v13, %v3264_v12 }
 0x850   :  { %v3266_v14 = vpop.f32.mrf.mxu1 }
 0x851   :  { %15225 = vst [vmem:[#allocation74_spill] sm:$0xff] %v11485_v53  ;;  %v11489_v16 = vmul.f32 %v8066_v59, %v3266_v14 }
 0x852   :  { %v3270_v4 = vpop.f32.mrf.mxu1 }
 0x853   :  { %15226 = vst [vmem:[#allocation110_spill] sm:$0xff] %v11489_v16  ;;  %v11493_v44 = vmul.f32 %v8064_v13, %v3270_v4 }
 0x854   :  { %v3272_v46 = vpop.f32.mrf.mxu1 }
 0x855   :  { %15227 = vst [vmem:[#allocation12_spill] sm:$0xff] %v11493_v44  ;;  %v11495_v52 = vmul.f32 %v8066_v59, %v3272_v46 }
 0x856   :  { %v3274_v39 = vpop.f32.mrf.mxu1 }
 0x857   :  { %15228 = vst [vmem:[#allocation76_spill] sm:$0xff] %v11495_v52  ;;  %v11497_v36 = vmul.f32 %v8064_v13, %v3274_v39 }
 0x858   :  { %v3276_v0 = vpop.f32.mrf.mxu1 }
 0x859   :  { %15229 = vst [vmem:[#allocation25_spill] sm:$0xff] %v11497_v36  ;;  %v11501_v49 = vmul.f32 %v8066_v59, %v3276_v0 }
 0x85a   :  { %v11503_v5 = vpop.f32.mrf.mxu1 }
 0x85b   :  { %15230 = vst [vmem:[#allocation27_spill] sm:$0xff] %v11501_v49 }
 0x85c   :  { %v11507_v60 = vpop.f32.mrf.mxu1 }
 0x85e   :  { %v11509_v37 = vpop.f32.mrf.mxu1 }
 0x860   :  { %v11511_v54 = vpop.f32.mrf.mxu1 }
 0x862   :  { %v11513_v50 = vpop.f32.mrf.mxu1 }
 0x863   :  { %v3588_v39 = vmax.f32 %v11503_v5, %v11513_v50 }
 0x864   :  { %v11515_v1 = vpop.f32.mrf.mxu1 }
 0x866   :  { %v11517_v9 = vpop.f32.mrf.mxu1 }
 0x867   :  { %v3589_v0 = vmax.f32 %v11509_v37, %v11517_v9 }
 0x868   :  { %v11519_v17 = vpop.f32.mrf.mxu1 }
 0x869   :  { %15231 = vst [vmem:[#allocation82_spill] sm:$0xff] %v11519_v17 }
 0x86a   :  { %v11521_v35 = vpop.f32.mrf.mxu1 }
 0x86b   :  { %v3590_v23 = vmax.f32 %v3588_v39, %v11521_v35 }
 0x86c   :  { %v11523_v6 = vpop.f32.mrf.mxu1 }
 0x86e   :  { %v11525_v21 = vpop.f32.mrf.mxu1 }
 0x86f   :  { %v3591_v61 = vmax.f32 %v3589_v0, %v11525_v21 }
 0x870   :  { %v11527_v38 = vpop.f32.mrf.mxu1 }
 0x871   :  { %15232 = vst [vmem:[#allocation86_spill] sm:$0xff] %v11527_v38 }
 0x872   :  { %v11529_v48 = vpop.f32.mrf.mxu1 }
 0x873   :  { %v3592_v7 = vmax.f32 %v3590_v23, %v11529_v48 }
 0x874   :  { %v11531_v58 = vpop.f32.mrf.mxu1 }
 0x876   :  { %v11533_v22 = vpop.f32.mrf.mxu1 }
 0x877   :  { %v3593_v53 = vmax.f32 %v3591_v61, %v11533_v22 }
 0x878   :  { %v11535_v63 = vpop.f32.mrf.mxu1 }
 0x879   :  { %15233 = vst [vmem:[#allocation21_spill] sm:$0xff] %v11535_v63 }
 0x87a   :  { %v11537_v42 = vpop.f32.mrf.mxu1 }
 0x87b   :  { %15234 = vst [vmem:[#allocation23_spill] sm:$0xff] %v11537_v42  ;;  %v3594_v16 = vmax.f32 %v3592_v7, %v11537_v42 }
 0x87c   :  { %v11539_v8 = vpop.f32.mrf.mxu1 }
 0x87d   :  { %15235 = vst [vmem:[#allocation79_spill] sm:$0xff] %v11539_v8 }
 0x87e   :  { %v11541_v15 = vpop.f32.mrf.mxu1 }
 0x87f   :  { %v3595_v44 = vmax.f32 %v3593_v53, %v11541_v15 }
 0x880   :  { %v11543_v28 = vpop.f32.mrf.mxu1 }
 0x881   :  { %15236 = vst [vmem:[#allocation78_spill] sm:$0xff] %v11543_v28 }
 0x882   :  { %v11545_v19 = vpop.f32.mrf.mxu1 }
 0x883   :  { %15237 = vst [vmem:[#allocation26_spill] sm:$0xff] %v11545_v19  ;;  %v3596_v52 = vmax.f32 %v3594_v16, %v11545_v19 }
 0x884   :  { %v11547_v27 = vpop.f32.mrf.mxu1 }
 0x886   :  { %v11549_v40 = vpop.f32.mrf.mxu1 }
 0x887   :  { %v3597_v39 = vmax.f32 %v3595_v44, %v11549_v40 }
 0x888   :  { %v11551_v20 = vpop.f32.mrf.mxu1 }
 0x88a   :  { %v11553_v51 = vpop.f32.mrf.mxu1 }
 0x88b   :  { %15238 = vst [vmem:[#allocation24_spill] sm:$0xff] %v11553_v51  ;;  %v3598_v0 = vmax.f32 %v3596_v52, %v11553_v51 }
 0x88c   :  { %v11555_v47 = vpop.f32.mrf.mxu1 }
 0x88e   :  { %v11557_v43 = vpop.f32.mrf.mxu1 }
 0x88f   :  { %v3599_v23 = vmax.f32 %v3597_v39, %v11557_v43  ;;  %v3626_v39 = vmax.f32 %v11511_v54, %v11519_v17 }
 0x890   :  { %v11559_v10 = vpop.f32.mrf.mxu1 }
 0x892   :  { %v11561_v30 = vpop.f32.mrf.mxu1 }
 0x893   :  { %v3600_v61 = vmax.f32 %v3598_v0, %v11561_v30 }
 0x894   :  { %v11563_v26 = vpop.f32.mrf.mxu1 }
 0x896   :  { %v11565_v2 = vpop.f32.mrf.mxu1 }
 0x897   :  { %15239 = vst [vmem:[#allocation22_spill] sm:$0xff] %v11565_v2  ;;  %v3601_v7 = vmax.f32 %v3599_v23, %v11565_v2 }
 0x898   :  { %v11567_v24 = vpop.f32.mrf.mxu1 }
 0x89a   :  { %v11569_v62 = vpop.f32.mrf.mxu1 }
 0x89b   :  { %v3602_v53 = vmax.f32 %v3600_v61, %v11569_v62  ;;  %v3625_v61 = vmax.f32 %v11507_v60, %v11515_v1 }
 0x89c   :  { %v11571_v29 = vpop.f32.mrf.mxu1 }
 0x89e   :  { %v11573_v57 = vpop.f32.mrf.mxu1 }
 0x89f   :  { %v3603_v16 = vmax.f32 %v3601_v7, %v11573_v57  ;;  %v3628_v7 = vmax.f32 %v3626_v39, %v11527_v38 }
 0x8a0   :  { %v11575_v18 = vpop.f32.mrf.mxu1 }
 0x8a1   :  { %v3630_v17 = vmax.f32 %v3628_v7, %v11535_v63 }
 0x8a2   :  { %v11577_v11 = vpop.f32.mrf.mxu1 }
 0x8a3   :  { %15240 = vst [vmem:[#allocation20_spill] sm:$0xff] %v11577_v11  ;;  %v3604_v44 = vmax.f32 %v3602_v53, %v11577_v11  ;;  %v3627_v11 = vmax.f32 %v3625_v61, %v11523_v6  ;;  %v3632_v39 = vmax.f32 %v3630_v17, %v11543_v28 }
 0x8a4   :  { %v11579_v33 = vpop.f32.mrf.mxu1 }
 0x8a5   :  { %v3634_v7 = vmax.f32 %v3632_v39, %v11551_v20 }
 0x8a6   :  { %v11581_v41 = vpop.f32.mrf.mxu1 }
 0x8a7   :  { %15241 = vst [vmem:[#allocation84_spill] sm:$0xff] %v11581_v41  ;;  %v3605_v52 = vmax.f32 %v3603_v16, %v11581_v41  ;;  %v3636_v17 = vmax.f32 %v3634_v7, %v11559_v10 }
 0x8a8   :  { %v11583_v25 = vpop.f32.mrf.mxu1 }
 0x8aa   :  { %v11585_v56 = vpop.f32.mrf.mxu1 }
 0x8ab   :  { %15242 = vst [vmem:[#allocation80_spill] sm:$0xff] %v11585_v56  ;;  %v3606_v0 = vmax.f32 %v3604_v44, %v11585_v56  ;;  %v3629_v56 = vmax.f32 %v3627_v11, %v11531_v58 }
 0x8ac   :  { %v11587_v13 = vpop.f32.mrf.mxu1 }
 0x8ad   :  { %v3631_v61 = vmax.f32 %v3629_v56, %v11539_v8  ;;  %v3638_v56 = vmax.f32 %v3636_v17, %v11567_v24 }
 0x8ae   :  { %v11589_v3 = vpop.f32.mrf.mxu1 }
 0x8af   :  { %15243 = vst [vmem:[#allocation106_spill] sm:$0xff] %v11589_v3  ;;  %v3607_v23 = vmax.f32 %v3605_v52, %v11589_v3  ;;  %v3633_v11 = vmax.f32 %v3631_v61, %v11547_v27 }
 0x8b0   :  { %v11591_v59 = vpop.f32.mrf.mxu1 }
 0x8b1   :  { %v3635_v28 = vmax.f32 %v3633_v11, %v11555_v47 }
 0x8b2   :  { %v11593_v55 = vpop.f32.mrf.mxu1 }
 0x8b3   :  { %v3608_v53 = vmax.f32 %v3606_v0, %v11593_v55  ;;  %v3637_v39 = vmax.f32 %v3635_v28, %v11563_v26 }
 0x8b4   :  { %v11595_v12 = vpop.f32.mrf.mxu1 }
 0x8b6   :  { %v11597_v14 = vpop.f32.mrf.mxu1 }
 0x8b7   :  { %v3609_v16 = vmax.f32 %v3607_v23, %v11597_v14 }
 0x8b8   :  { %v11599_v4 = vpop.f32.mrf.mxu1 }
 0x8ba   :  { %v11601_v46 = vpop.f32.mrf.mxu1 }
 0x8bb   :  { %v3610_v44 = vmax.f32 %v3608_v53, %v11601_v46 }
 0x8bc   :  { %v11607_v45 = vpop.f32.mrf.mxu1 }
 0x8be   :  { %v11611_v34 = vpop.f32.mrf.mxu1 }
 0x8bf   :  { %v3611_v52 = vmax.f32 %v3609_v16, %v11611_v34 }
 0x8c0   :  { %v11615_v31 = vpop.f32.mrf.mxu1 }
 0x8c2   :  { %v11619_v36 = vpop.f32.mrf.mxu1 }
 0x8c3   :  { %v3612_v0 = vmax.f32 %v3610_v44, %v11619_v36 }
 0x8c4   :  { %v11623_v49 = vpop.f32.mrf.mxu1 }
 0x8c6   :  { %v11627_v32 = vpop.f32.mrf.mxu1 }
 0x8c7   :  { %v3613_v23 = vmax.f32 %v3611_v52, %v11627_v32 }
 0x8c8   :  { %v11631_v42 = vpop.f32.mrf.mxu1 }
 0x8ca   :  { %v11635_v19 = vpop.f32.mrf.mxu1 }
 0x8cb   :  { %15244 = vst [vmem:[#allocation141_spill] sm:$0xff] %v11635_v19  ;;  %v3614_v53 = vmax.f32 %v3612_v0, %v11635_v19  ;;  %v3640_v0 = vmax.f32 %v3638_v56, %v11575_v18 }
 0x8cc   :  { %v11639_v51 = vpop.f32.mrf.mxu1 }
 0x8cd   :  { %v3642_v61 = vmax.f32 %v3640_v0, %v11583_v25 }
 0x8ce   :  { %v11645_v2 = vpop.f32.mrf.mxu1 }
 0x8cf   :  { %15245 = vst [vmem:[#allocation140_spill] sm:$0xff] %v11645_v2  ;;  %v3615_v16 = vmax.f32 %v3613_v23, %v11645_v2  ;;  %v3639_v2 = vmax.f32 %v3637_v39, %v11571_v29 }
 0x8d0   :  { %v11652_v41 = vpop.f32.mrf.mxu1 }
 0x8d1   :  { %v3641_v7 = vmax.f32 %v3639_v2, %v11579_v33 }
 0x8d2   :  { %v11658_v3 = vpop.f32.mrf.mxu1 }
 0x8d3   :  { %v3616_v44 = vmax.f32 %v3614_v53, %v11658_v3  ;;  %v3644_v53 = vmax.f32 %v3642_v61, %v11591_v59  ;;  %v3643_v11 = vmax.f32 %v3641_v7, %v11587_v13 }
 0x8d4   :  { %v11664_v38 = vpop.f32.mrf.mxu1 }
 0x8d5   :  { %v3646_v17 = vmax.f32 %v3644_v53, %v11599_v4  ;;  %v3645_v28 = vmax.f32 %v3643_v11, %v11595_v12 }
 0x8d6   :  { %v11670_v63 = vpop.f32.mrf.mxu1 }
 0x8d7   :  { %v3617_v52 = vmax.f32 %v3615_v16, %v11670_v63  ;;  %v3647_v39 = vmax.f32 %v3645_v28, %v11607_v45 }
 0x8d9   :  { %v3618_v8 = vmax.f32 %v3616_v44, %v3617_v52  ;;  %v3648_v52 = vmax.f32 %v3646_v17, %v11615_v31  ;;  %v3649_v2 = vmax.f32 %v3647_v39, %v11623_v49 }
 0x8db   :  { %v3619_v23 = vrot.slane %v3618_v8, 4  ;;  %v3650_v0 = vmax.f32 %v3648_v52, %v11631_v42  ;;  %v3651_v7 = vmax.f32 %v3649_v2, %v11639_v51 }
 0x8dd   :  { %v3620_v19 = vmax.f32 %v3618_v8, %v3619_v23  ;;  %v11690_v8 = vpop.f32.mrf.mxu1  ;;  %v3652_v23 = vmax.f32 %v3650_v0, %v11652_v41  ;;  %v3653_v53 = vmax.f32 %v3651_v7, %v11664_v38 }
 0x8df   :  { %v3621_v16 = vrot.slane %v3620_v19, 2 }
 0x8e1   :  { %v3622_v44 = vmax.f32 %v3620_v19, %v3621_v16  ;;  %v3654_v19 = vmax.f32 %v3652_v23, %v11690_v8 }
 0x8e3   :  { %v3623_v56 = vrot.slane %v3622_v44, 1  ;;  %v3655_v28 = vmax.f32 %v3653_v53, %v3654_v19 }
 0x8e5   :  { %v11694_v61 = vmax.f32 %v3622_v44, %v3623_v56  ;;  %v3656_v2 = vrot.slane %v3655_v28, 4 }
 0x8e7   :  { %v3662_v16 = vsub.f32 %v11503_v5, %v11694_v61  ;;  %v3664_v11 = vsub.f32 %v11509_v37, %v11694_v61  ;;  %v3666_v17 = vsub.f32 %v11513_v50, %v11694_v61  ;;  %v3668_v44 = vsub.f32 %v11517_v9, %v11694_v61 }
 0x8e8   :  { %v3670_v39 = vsub.f32 %v11521_v35, %v11694_v61  ;;  %v3672_v5 = vsub.f32 %v11525_v21, %v11694_v61  ;;  %v3674_v50 = vsub.f32 %v11529_v48, %v11694_v61  ;;  %v3657_v7 = vmax.f32 %v3655_v28, %v3656_v2  ;;  %v15246_v35 = vld [vmem:[#allocation23_spill] sm:$0xff] }
 0x8e9   :  { %v3726_v52 = vmul.f32 1.442695, %v3662_v16  ;;  %v3730_v56 = vmul.f32 1.442695, %v3664_v11  ;;  %v3734_v0 = vmul.f32 1.442695, %v3666_v17  ;;  %v3676_v9 = vsub.f32 %v11533_v22, %v11694_v61 }
 0x8ea   :  { %v3738_v37 = vmul.f32 1.442695, %v3668_v44  ;;  %v3742_v23 = vmul.f32 1.442695, %v3670_v39  ;;  %v3746_v19 = vmul.f32 1.442695, %v3672_v5  ;;  %v3678_v53 = vsub.f32 %v15246_v35, %v11694_v61 }
 0x8eb   :  { %8067 = vpow2.f32 %v3726_v52  ;;  %v3750_v16 = vmul.f32 1.442695, %v3674_v50  ;;  %v3680_v21 = vsub.f32 %v11541_v15, %v11694_v61  ;;  %v3658_v11 = vrot.slane %v3657_v7, 2  ;;  %v15247_v17 = vld [vmem:[#allocation26_spill] sm:$0xff]  ;;  %v15248_v22 = vld [vmem:[#allocation24_spill] sm:$0xff] }
 0x8ec   :  { %8069 = vpow2.f32 %v3730_v56  ;;  %v3682_v48 = vsub.f32 %v15247_v17, %v11694_v61  ;;  %v3754_v44 = vmul.f32 1.442695, %v3676_v9  ;;  %v3684_v28 = vsub.f32 %v11549_v40, %v11694_v61 }
 0x8ed   :  { %8071 = vpow2.f32 %v3734_v0  ;;  %v3686_v52 = vsub.f32 %v15248_v22, %v11694_v61  ;;  %v3758_v56 = vmul.f32 1.442695, %v3678_v53  ;;  %v3688_v39 = vsub.f32 %v11557_v43, %v11694_v61 }
 0x8ee   :  { %8073 = vpow2.f32 %v3738_v37  ;;  %v3762_v0 = vmul.f32 1.442695, %v3680_v21  ;;  %v3659_v2 = vmax.f32 %v3657_v7, %v3658_v11  ;;  %v3690_v5 = vsub.f32 %v11561_v30, %v11694_v61 }
 0x8ef   :  { %8075 = vpow2.f32 %v3742_v23  ;;  %v3766_v37 = vmul.f32 1.442695, %v3682_v48  ;;  %v3706_v40 = vsub.f32 %v11593_v55, %v11694_v61  ;;  %v3770_v23 = vmul.f32 1.442695, %v3684_v28 }
 0x8f0   :  { %8077 = vpow2.f32 %v3746_v19  ;;  %v3708_v9 = vsub.f32 %v11597_v14, %v11694_v61  ;;  %v3774_v43 = vmul.f32 1.442695, %v3686_v52  ;;  %v3710_v30 = vsub.f32 %v11601_v46, %v11694_v61 }
 0x8f1   :  { %8079 = vpow2.f32 %v3750_v16  ;;  %v3778_v35 = vmul.f32 1.442695, %v3688_v39  ;;  %v3660_v53 = vrot.slane %v3659_v2, 1  ;;  %v3712_v55 = vsub.f32 %v11611_v34, %v11694_v61  ;;  %v15250_v34 = vld [vmem:[#allocation22_spill] sm:$0xff] }
 0x8f2   :  { %8081 = vpow2.f32 %v3754_v44  ;;  %v3782_v16 = vmul.f32 1.442695, %v3690_v5  ;;  %v3714_v11 = vsub.f32 %v11619_v36, %v11694_v61  ;;  %v3814_v17 = vmul.f32 1.442695, %v3706_v40  ;;  %v15251_v40 = vld [vmem:[#allocation20_spill] sm:$0xff] }
 0x8f3   :  { %8083 = vpow2.f32 %v3758_v56  ;;  %v3716_v46 = vsub.f32 %v11627_v32, %v11694_v61  ;;  %v3818_v48 = vmul.f32 1.442695, %v3708_v9  ;;  %v3692_v22 = vsub.f32 %v15250_v34, %v11694_v61 }
 0x8f4   :  { %8085 = vpow2.f32 %v3762_v0  ;;  %v3822_v52 = vmul.f32 1.442695, %v3710_v30  ;;  %v11757_v56 = vmax.f32 %v3659_v2, %v3660_v53  ;;  %v3694_v36 = vsub.f32 %v11569_v62, %v11694_v61 }
 0x8f5   :  { %8087 = vpow2.f32 %v3766_v37  ;;  %v3826_v39 = vmul.f32 1.442695, %v3712_v55  ;;  %v3696_v5 = vsub.f32 %v11573_v57, %v11694_v61  ;;  %v3830_v37 = vmul.f32 1.442695, %v3714_v11  ;;  %v15252_v55 = vld [vmem:[#allocation84_spill] sm:$0xff] }
 0x8f6   :  { %8089 = vpow2.f32 %v3770_v23  ;;  %v3698_v23 = vsub.f32 %v15251_v40, %v11694_v61  ;;  %v3834_v2 = vmul.f32 1.442695, %v3716_v46  ;;  %v3786_v62 = vmul.f32 1.442695, %v3692_v22 }
 0x8f7   :  { %8091 = vpow2.f32 %v3774_v43  ;;  %v3790_v30 = vmul.f32 1.442695, %v3694_v36 }
 0x8f8   :  { %v11727_v15 = vpop.eup %8067  ;;  %8093 = vpow2.f32 %v3778_v35  ;;  %v3665_v35 = vsub.f32 %v11511_v54, %v11757_v56  ;;  %v3798_v11 = vmul.f32 1.442695, %v3698_v23 }
 0x8f9   :  { %v11731_v50 = vpop.eup %8069  ;;  %8095 = vpow2.f32 %v3782_v16  ;;  %v3700_v16 = vsub.f32 %v15252_v55, %v11694_v61 }
 0x8fa   :  { %15249 = vst [vmem:[#allocation152_spill] sm:$0xff] %v11731_v50  ;;  %v3854_v7 = vadd.f32 %v11731_v50, %v11727_v15  ;;  %v11739_v19 = vpop.eup %8071  ;;  %8097 = vpow2.f32 %v3814_v17 }
 0x8fb   :  { %v11746_v21 = vpop.eup %8073  ;;  %8099 = vpow2.f32 %v3818_v48  ;;  %v15253_v48 = vld [vmem:[#allocation80_spill] sm:$0xff] }
 0x8fc   :  { %v3855_v14 = vadd.f32 %v11739_v19, %v3854_v7  ;;  %v11753_v28 = vpop.eup %8075  ;;  %8101 = vpow2.f32 %v3822_v52  ;;  %v3663_v7 = vsub.f32 %v11507_v60, %v11757_v56  ;;  %v3667_v60 = vsub.f32 %v11515_v1, %v11757_v56  ;;  %v15254_v52 = vld [vmem:[#allocation82_spill] sm:$0xff] }
 0x8fd   :  { %v11762_v0 = vpop.eup %8077  ;;  %8103 = vpow2.f32 %v3826_v39  ;;  %v3669_v36 = vsub.f32 %v15254_v52, %v11757_v56  ;;  %v3732_v39 = vmul.f32 1.442695, %v3665_v35  ;;  %v15255_v1 = vld [vmem:[#allocation106_spill] sm:$0xff] }
 0x8fe   :  { %v3856_v44 = vadd.f32 %v11746_v21, %v3855_v14  ;;  %v11769_v43 = vpop.eup %8079  ;;  %v3794_v14 = vmul.f32 1.442695, %v3696_v5  ;;  %8105 = vpow2.f32 %v3830_v37  ;;  %v3728_v54 = vmul.f32 1.442695, %v3663_v7 }
 0x8ff   :  { %v11776_v53 = vpop.eup %8081  ;;  %8107 = vpow2.f32 %v3834_v2  ;;  %v3704_v5 = vsub.f32 %v15255_v1, %v11694_v61  ;;  %v3802_v37 = vmul.f32 1.442695, %v3700_v16  ;;  %v3671_v2 = vsub.f32 %v11523_v6, %v11757_v56 }
 0x900   :  { %v3857_v32 = vadd.f32 %v11753_v28, %v3856_v44  ;;  %v11783_v46 = vpop.eup %8083  ;;  %v3702_v44 = vsub.f32 %v15253_v48, %v11694_v61  ;;  %8109 = vpow2.f32 %v3786_v62  ;;  %v3675_v16 = vsub.f32 %v11531_v58, %v11757_v56 }
 0x901   :  { %v11787_v34 = vpop.eup %8085  ;;  %8111 = vpow2.f32 %v3790_v30  ;;  %v15256_v30 = vld [vmem:[#allocation86_spill] sm:$0xff]  ;;  %v3810_v6 = vmul.f32 1.442695, %v3704_v5  ;;  %v3744_v52 = vmul.f32 1.442695, %v3671_v2  ;;  %v3687_v58 = vsub.f32 %v11555_v47, %v11757_v56 }
 0x902   :  { %v3858_v9 = vadd.f32 %v11762_v0, %v3857_v32  ;;  %v11792_v32 = vpop.eup %8087  ;;  %8113 = vpow2.f32 %v3794_v14  ;;  %v3806_v7 = vmul.f32 1.442695, %v3702_v44  ;;  %v3740_v14 = vmul.f32 1.442695, %v3669_v36 }
 0x903   :  { %v11796_v40 = vpop.eup %8089  ;;  %8115 = vpow2.f32 %v3798_v11  ;;  %v3689_v36 = vsub.f32 %v11559_v10, %v11757_v56  ;;  %v3693_v47 = vsub.f32 %v11567_v24, %v11757_v56 }
 0x904   :  { %v3859_v57 = vadd.f32 %v11769_v43, %v3858_v9  ;;  %v3736_v9 = vmul.f32 1.442695, %v3667_v60  ;;  %v11801_v62 = vpop.eup %8091  ;;  %8117 = vpow2.f32 %v3728_v54  ;;  %v15259_v54 = vld [vmem:[#allocation79_spill] sm:$0xff] }
 0x905   :  { %v11805_v35 = vpop.eup %8093  ;;  %8119 = vpow2.f32 %v3732_v39 }
 0x906   :  { %v3860_v17 = vadd.f32 %v11776_v53, %v3859_v57  ;;  %v3673_v57 = vsub.f32 %v15256_v30, %v11757_v56  ;;  %v11810_v11 = vpop.eup %8095  ;;  %8121 = vpow2.f32 %v3802_v37 }
 0x907   :  { %v11814_v48 = vpop.eup %8097  ;;  %8123 = vpow2.f32 %v3736_v9 }
 0x908   :  { %v3861_v22 = vadd.f32 %v11783_v46, %v3860_v17  ;;  %v15257_v17 = vld [vmem:[#allocation21_spill] sm:$0xff]  ;;  %15258 = vst [vmem:[#allocation17_spill] sm:$0xff] %v11814_v48  ;;  %v11819_v1 = vpop.eup %8099  ;;  %8125 = vpow2.f32 %v3806_v7  ;;  %v3748_v39 = vmul.f32 1.442695, %v3673_v57  ;;  %v3691_v7 = vsub.f32 %v11563_v26, %v11757_v56 }
 0x909   :  { %v3677_v60 = vsub.f32 %v15257_v17, %v11757_v56  ;;  %v11825_v5 = vpop.eup %8101  ;;  %8127 = vpow2.f32 %v3740_v14  ;;  %v3776_v26 = vmul.f32 1.442695, %v3687_v58 }
 0x90a   :  { %v3862_v23 = vadd.f32 %v11787_v34, %v3861_v22  ;;  %v3679_v22 = vsub.f32 %v15259_v54, %v11757_v56  ;;  %v11830_v2 = vpop.eup %8103  ;;  %8129 = vpow2.f32 %v3810_v6  ;;  %v15260_v6 = vld [vmem:[#allocation78_spill] sm:$0xff] }
 0x90b   :  { %v3756_v10 = vmul.f32 1.442695, %v3677_v60  ;;  %v11836_v30 = vpop.eup %8105  ;;  %8131 = vpow2.f32 %v3744_v52  ;;  %v3681_v17 = vsub.f32 %v15260_v6, %v11757_v56  ;;  %v3780_v60 = vmul.f32 1.442695, %v3689_v36 }
 0x90c   :  { %v3863_v55 = vadd.f32 %v11792_v32, %v3862_v23  ;;  %v3752_v23 = vmul.f32 1.442695, %v3675_v16  ;;  %v11841_v14 = vpop.eup %8107  ;;  %8133 = vpow2.f32 %v3748_v39  ;;  %v3683_v52 = vsub.f32 %v11547_v27, %v11757_v56 }
 0x90d   :  { %v3685_v39 = vsub.f32 %v11551_v20, %v11757_v56  ;;  %v3764_v16 = vmul.f32 1.442695, %v3681_v17 }
 0x90e   :  { %v3864_v44 = vadd.f32 %v11796_v40, %v3863_v55  ;;  %v3760_v55 = vmul.f32 1.442695, %v3679_v22  ;;  %8135 = vpow2.f32 %v3752_v23  ;;  %v3788_v23 = vmul.f32 1.442695, %v3693_v47 }
 0x90f   :  { %8137 = vpow2.f32 %v3756_v10  ;;  %v3772_v47 = vmul.f32 1.442695, %v3685_v39  ;;  %v3722_v39 = vsub.f32 %v11658_v3, %v11694_v61 }
 0x910   :  { %v3865_v37 = vadd.f32 %v11801_v62, %v3864_v44  ;;  %v11845_v44 = vpop.eup %8109  ;;  %8139 = vpow2.f32 %v3760_v55 }
 0x911   :  { %v11850_v22 = vpop.eup %8111  ;;  %8141 = vpow2.f32 %v3776_v26 }
 0x912   :  { %v3866_v57 = vadd.f32 %v11805_v35, %v3865_v37  ;;  %15261 = vst [vmem:[#allocation19_spill] sm:$0xff] %v11850_v22  ;;  %v3784_v37 = vmul.f32 1.442695, %v3691_v7  ;;  %v11854_v9 = vpop.eup %8113  ;;  %8143 = vpow2.f32 %v3780_v60  ;;  %v15264_v7 = vld [vmem:[#allocation141_spill] sm:$0xff]  ;;  %v15267_v60 = vld [vmem:[#allocation140_spill] sm:$0xff] }
 0x913   :  { %15262 = vst [vmem:[#allocation75_spill] sm:$0xff] %v11854_v9  ;;  %v11859_v36 = vpop.eup %8115  ;;  %v3718_v10 = vsub.f32 %v15264_v7, %v11694_v61 }
 0x914   :  { %v3867_v24 = vadd.f32 %v11810_v11, %v3866_v57  ;;  %15263 = vst [vmem:[#allocation77_spill] sm:$0xff] %v11859_v36  ;;  %v11861_v57 = vpop.eup %8117  ;;  %8145 = vpow2.f32 %v3784_v37 }
 0x915   :  { %v11864_v27 = vpop.eup %8119  ;;  %8147 = vpow2.f32 %v3788_v23 }
 0x916   :  { %v3868_v58 = vadd.f32 %v11845_v44, %v3867_v24  ;;  %v3768_v24 = vmul.f32 1.442695, %v3683_v52  ;;  %v11868_v54 = vpop.eup %8121  ;;  %v3891_v55 = vadd.f32 %v11864_v27, %v11861_v57  ;;  %8149 = vpow2.f32 %v3764_v16 }
 0x917   :  { %15265 = vst [vmem:[#allocation13_spill] sm:$0xff] %v11868_v54  ;;  %v11873_v26 = vpop.eup %8123  ;;  %v3724_v16 = vsub.f32 %v11670_v63, %v11694_v61  ;;  %v3697_v63 = vsub.f32 %v11575_v18, %v11757_v56 }
 0x918   :  { %v3869_v6 = vadd.f32 %v11850_v22, %v3868_v58  ;;  %v11875_v17 = vpop.eup %8125  ;;  %v3720_v58 = vsub.f32 %v15267_v60, %v11694_v61  ;;  %v3892_v52 = vadd.f32 %v11873_v26, %v3891_v55  ;;  %8151 = vpow2.f32 %v3768_v24 }
 0x919   :  { %15266 = vst [vmem:[#allocation137_spill] sm:$0xff] %v11875_v17  ;;  %v11881_v37 = vpop.eup %8127  ;;  %8153 = vpow2.f32 %v3772_v47 }
 0x91a   :  { %v3870_v20 = vadd.f32 %v11854_v9, %v3869_v6  ;;  %v11885_v23 = vpop.eup %8129  ;;  %v3838_v6 = vmul.f32 1.442695, %v3718_v10  ;;  %v3893_v22 = vadd.f32 %v11881_v37, %v3892_v52  ;;  %v3842_v55 = vmul.f32 1.442695, %v3720_v58 }
 0x91b   :  { %15268 = vst [vmem:[#allocation15_spill] sm:$0xff] %v11885_v23  ;;  %v11889_v60 = vpop.eup %8131  ;;  %v3846_v10 = vmul.f32 1.442695, %v3722_v39 }
 0x91c   :  { %v3871_v7 = vadd.f32 %v11859_v36, %v3870_v20  ;;  %v11891_v20 = vpop.eup %8133  ;;  %v3894_v3 = vadd.f32 %v11889_v60, %v3893_v22  ;;  %8155 = vpow2.f32 %v3838_v6 }
 0x91d   :  { %v11897_v24 = vpop.eup %8135  ;;  %8157 = vpow2.f32 %v3842_v55  ;;  %v3796_v55 = vmul.f32 1.442695, %v3697_v63 }
 0x91e   :  { %v3872_v9 = vadd.f32 %v11868_v54, %v3871_v7  ;;  %v11899_v50 = vpop.eup %8137  ;;  %v3695_v7 = vsub.f32 %v11571_v29, %v11757_v56  ;;  %v3895_v52 = vadd.f32 %v11891_v20, %v3894_v3  ;;  %8159 = vpow2.f32 %v3846_v10 }
 0x91f   :  { %v11905_v54 = vpop.eup %8139 }
 0x920   :  { %v3873_v36 = vadd.f32 %v11875_v17, %v3872_v9  ;;  %v8142_v61 = vpop.eup %8141  ;;  %v3850_v9 = vmul.f32 1.442695, %v3724_v16  ;;  %v3896_v58 = vadd.f32 %v11897_v24, %v3895_v52  ;;  %v3792_v3 = vmul.f32 1.442695, %v3695_v7 }
 0x921   :  { %v8144_v39 = vpop.eup %8143  ;;  %v3701_v16 = vsub.f32 %v11583_v25, %v11757_v56  ;;  %v3703_v7 = vsub.f32 %v11587_v13, %v11757_v56  ;;  %v3709_v13 = vsub.f32 %v11599_v4, %v11757_v56 }
 0x922   :  { %v3874_v47 = vadd.f32 %v11885_v23, %v3873_v36  ;;  %v3699_v36 = vsub.f32 %v11579_v33, %v11757_v56  ;;  %v11913_v6 = vpop.eup %8145  ;;  %v3897_v23 = vadd.f32 %v11899_v50, %v3896_v58  ;;  %8161 = vpow2.f32 %v3850_v9 }
 0x923   :  { %v11917_v18 = vpop.eup %8147  ;;  %v3944_v58 = vpack.c.bf16 %v11845_v44, %v11810_v11  ;;  %8163 = vpow2.f32 %v3792_v3  ;;  %v3943_v9 = vpack.c.bf16 %v8144_v39, %v8142_v61  ;;  %v3804_v44 = vmul.f32 1.442695, %v3701_v16 }
 0x924   :  { %v3875_v22 = vadd.f32 %v11814_v48, %v3874_v47  ;;  %v3898_v52 = vadd.f32 %v11905_v54, %v3897_v23  ;;  %v3945_v33 = vpack.c.bf16 %v11917_v18, %v11913_v6  ;;  %v8150_v10 = vpop.eup %8149  ;;  %v3705_v23 = vsub.f32 %v11591_v59, %v11757_v56 }
 0x925   :  { %v8152_v17 = vpop.eup %8151  ;;  %v3707_v48 = vsub.f32 %v11595_v12, %v11757_v56  ;;  %8165 = vpow2.f32 %v3796_v55  ;;  %v3723_v3 = vsub.f32 %v11664_v38, %v11757_v56  ;;  %v3808_v59 = vmul.f32 1.442695, %v3703_v7 }
 0x926   :  { %v3876_v29 = vadd.f32 %v11819_v1, %v3875_v22  ;;  %v3800_v22 = vmul.f32 1.442695, %v3699_v36  ;;  %v3899_v63 = vadd.f32 %v8150_v10, %v3898_v52  ;;  %3962 = vmatprep.subr.bf16.mxu0 %v3945_v33  ;;  %v3942_v12 = vpack.c.bf16 %v11805_v35, %v11801_v62 }
 0x927   :  { %3963 = vmatpush1.bf16.msra.mxu0 %v3944_v58  ;;  %v3711_v16 = vsub.f32 %v11607_v45, %v11757_v56  ;;  %v3713_v38 = vsub.f32 %v11615_v31, %v11757_v56  ;;  %v3812_v55 = vmul.f32 1.442695, %v3705_v23  ;;  %v3816_v35 = vmul.f32 1.442695, %v3707_v48 }
 0x928   :  { %v3877_v47 = vadd.f32 %v11825_v5, %v3876_v29  ;;  %v8154_v29 = vpop.eup %8153  ;;  %v3900_v36 = vadd.f32 %v8152_v17, %v3899_v63  ;;  %3964 = vmatprep.subr.bf16.mxu0 %v3943_v9  ;;  %8167 = vpow2.f32 %v3800_v22  ;;  %v3721_v22 = vsub.f32 %v11652_v41, %v11757_v56 }
 0x929   :  { %v3941_v33 = vpack.c.bf16 %v8154_v29, %v8152_v17  ;;  %v11944_v58 = vpop.eup %8155  ;;  %8169 = vpow2.f32 %v3804_v44  ;;  %v3848_v45 = vmul.f32 1.442695, %v3723_v3  ;;  %v3940_v31 = vpack.c.bf16 %v11796_v40, %v11792_v32 }
 0x92a   :  { %v3878_v25 = vadd.f32 %v11830_v2, %v3877_v47  ;;  %v3725_v47 = vsub.f32 %v11690_v8, %v11757_v56  ;;  %v3901_v4 = vadd.f32 %v8154_v29, %v3900_v36  ;;  %v3719_v8 = vsub.f32 %v11639_v51, %v11757_v56  ;;  %v11953_v17 = vpop.eup %8157 }
 0x92b   :  { %3965 = vmatpush1.bf16.msra.mxu0 %v3942_v12  ;;  %8171 = vpow2.f32 %v3808_v59  ;;  %v3939_v9 = vpack.c.bf16 %v8150_v10, %v11905_v54  ;;  %v11961_v29 = vpop.eup %8159  ;;  %v3715_v48 = vsub.f32 %v11623_v49, %v11757_v56  ;;  %v3820_v41 = vmul.f32 1.442695, %v3709_v13 }
 0x92c   :  { %v3879_v11 = vadd.f32 %v11836_v30, %v3878_v25  ;;  %v3902_v7 = vadd.f32 %v8142_v61, %v3901_v4  ;;  %3966 = vmatprep.subr.bf16.mxu0 %v3941_v33  ;;  %v3852_v25 = vmul.f32 1.442695, %v3725_v47  ;;  %v3717_v61 = vsub.f32 %v11631_v42, %v11757_v56 }
 0x92d   :  { %8173 = vpow2.f32 %v3812_v55  ;;  %v3824_v32 = vmul.f32 1.442695, %v3711_v16  ;;  %v3840_v54 = vmul.f32 1.442695, %v3719_v8  ;;  %v3844_v10 = vmul.f32 1.442695, %v3721_v22 }
 0x92e   :  { %v3880_v52 = vadd.f32 %v11841_v14, %v3879_v11  ;;  %v3903_v63 = vadd.f32 %v8144_v39, %v3902_v7  ;;  %8175 = vpow2.f32 %v3816_v35  ;;  %v3938_v49 = vpack.c.bf16 %v11787_v34, %v11783_v46 }
 0x92f   :  { %3967 = vmatpush1.bf16.msra.mxu0 %v3940_v31  ;;  %v11969_v39 = vpop.eup %8161  ;;  %8177 = vpow2.f32 %v3848_v45  ;;  %v3937_v13 = vpack.c.bf16 %v11899_v50, %v11897_v24  ;;  %v3832_v46 = vmul.f32 1.442695, %v3715_v48  ;;  %v3936_v34 = vpack.c.bf16 %v11776_v53, %v11769_v43 }
 0x930   :  { %v3881_v62 = vadd.f32 %v11944_v58, %v3880_v52  ;;  %v3904_v40 = vadd.f32 %v11913_v6, %v3903_v63  ;;  %3968 = vmatprep.subr.bf16.mxu0 %v3939_v9  ;;  %8179 = vpow2.f32 %v3852_v25  ;;  %v11979_v11 = vpop.eup %8163  ;;  %v3828_v6 = vmul.f32 1.442695, %v3713_v38 }
 0x931   :  { %8181 = vpow2.f32 %v3820_v41  ;;  %v3935_v24 = vpack.c.bf16 %v11891_v20, %v11889_v60  ;;  %v3934_v12 = vpack.c.bf16 %v11762_v0, %v11753_v28  ;;  %v3933_v53 = vpack.c.bf16 %v11881_v37, %v11873_v26  ;;  %v15269_v37 = vld [vmem:[#allocation152_spill] sm:$0xff] }
 0x932   :  { %v3882_v51 = vadd.f32 %v11953_v17, %v3881_v62  ;;  %v3905_v56 = vadd.f32 %v11917_v18, %v3904_v40  ;;  %8183 = vpow2.f32 %v3824_v32  ;;  %v11982_v36 = vpop.eup %8165  ;;  %v3836_v18 = vmul.f32 1.442695, %v3717_v61 }
 0x933   :  { %3969 = vmatpush1.bf16.msra.mxu0 %v3938_v49  ;;  %8185 = vpow2.f32 %v3840_v54  ;;  %v3932_v33 = vpack.c.bf16 %v11746_v21, %v11739_v19  ;;  %v3931_v8 = vpack.c.bf16 %v11864_v27, %v11861_v57  ;;  %v3930_v62 = vpack.c.bf16 %v15269_v37, %v11727_v15  ;;  %v15274_v49 = vld [vmem:[#allocation137_spill] sm:$0xff] }
 0x934   :  { %v3883_v23 = vadd.f32 %v11961_v29, %v3882_v51  ;;  %v3906_v44 = vadd.f32 %v11979_v11, %v3905_v56  ;;  %3970 = vmatprep.subr.bf16.mxu0 %v3937_v13  ;;  %8187 = vpow2.f32 %v3844_v10  ;;  %v3960_v57 = vpack.c.bf16 %v11969_v39, %v11961_v29  ;;  %v15275_v56 = vld [vmem:[#allocation15_spill] sm:$0xff]  ;;  %v15276_v13 = vld [vmem:[#allocation77_spill] sm:$0xff] }
 0x935   :  { %v11989_v3 = vpop.eup %8167  ;;  %8189 = vpow2.f32 %v3828_v6  ;;  %v3958_v15 = vpack.c.bf16 %v11953_v17, %v11944_v58  ;;  %v15270_v29 = vpack.c.bf16 %v11841_v14, %v11836_v30  ;;  %v15271_v54 = vpack.c.bf16 %v11830_v2, %v11825_v5  ;;  %v15272_v17 = vld [vmem:[#allocation17_spill] sm:$0xff]  ;;  %v15278_v2 = vld [vmem:[#allocation19_spill] sm:$0xff] }
 0x936   :  { %v11974_v42 = vadd.f32 %v11969_v39, %v3883_v23  ;;  %v3907_v50 = vadd.f32 %v11982_v36, %v3906_v44  ;;  %v8170_v59 = vpop.eup %8169  ;;  %8191 = vpow2.f32 %v3832_v46  ;;  %v15273_v10 = vpack.c.bf16 %v11819_v1, %v15272_v17  ;;  %v15277_v6 = vld [vmem:[#allocation13_spill] sm:$0xff]  ;;  %v15279_v46 = vld [vmem:[#allocation75_spill] sm:$0xff] }
 0x937   :  { %3971 = vmatpush1.bf16.msra.mxu0 %v3936_v34  ;;  %8193 = vpow2.f32 %v3836_v18  ;;  %v3950_v30 = vpack.c.bf16 %v15275_v56, %v15274_v49  ;;  %v3949_v14 = vpack.c.bf16 %v8170_v59, %v11989_v3  ;;  %v3948_v44 = vpack.c.bf16 %v15277_v6, %v15276_v13  ;;  %v15280_v34 = vld [vmem:[#allocation45_spill] sm:$0xff]  ;;  %v15281_v18 = vld [vmem:[#allocation47_spill] sm:$0xff] }
 0x938   :  { %v3908_v47 = vadd.f32 %v11989_v3, %v3907_v50  ;;  %3972 = vmatprep.subr.bf16.mxu0 %v3935_v24  ;;  %v8172_v52 = vpop.eup %8171  ;;  %v3947_v5 = vpack.c.bf16 %v11982_v36, %v11979_v11  ;;  %v3946_v1 = vpack.c.bf16 %v15279_v46, %v15278_v2  ;;  %v1017_v50 = vpack.c.bf16 %v15281_v18, %v15280_v34  ;;  %v15282_v24 = vld [vmem:[#allocation35_spill] sm:$0xff]  ;;  %v15289_v11 = vld [vmem:[#allocation46_spill] sm:$0xff]  ;;  %v15290_v36 = vld [vmem:[#allocation44_spill] sm:$0xff] }
 0x939   :  { %v15283_v3 = vld [vmem:[#allocation39_spill] sm:$0xff] }
 0x93a   :  { %v3909_v43 = vadd.f32 %v8170_v59, %v3908_v47  ;;  %v8174_v60 = vpop.eup %8173  ;;  %v1103_v47 = vpack.c.bf16 %v15283_v3, %v15282_v24  ;;  %v15284_v59 = vld [vmem:[#allocation41_spill] sm:$0xff] }
 0x93b   :  { %3973 = vmatpush1.bf16.msra.mxu0 %v3934_v12  ;;  %v8176_v4 = vpop.eup %8175  ;;  %v3951_v58 = vpack.c.bf16 %v8174_v60, %v8172_v52  ;;  %v15285_v12 = vld [vmem:[#allocation43_spill] sm:$0xff] }
 0x93c   :  { %v3910_v20 = vadd.f32 %v8172_v52, %v3909_v43  ;;  %3974 = vmatprep.subr.bf16.mxu0 %v3933_v53  ;;  %v8178_v16 = vpop.eup %8177  ;;  %v1013_v43 = vpack.c.bf16 %v15285_v12, %v15284_v59  ;;  %v15286_v53 = vld [vmem:[#allocation108_spill] sm:$0xff] }
 0x93d   :  { %v8180_v28 = vpop.eup %8179  ;;  %v15287_v52 = vld [vmem:[#allocation104_spill] sm:$0xff] }
 0x93e   :  { %v3911_v38 = vadd.f32 %v8174_v60, %v3910_v20  ;;  %v8182_v0 = vpop.eup %8181  ;;  %v3961_v22 = vpack.c.bf16 %v8180_v28, %v8178_v16  ;;  %v15288_v60 = vpack.c.bf16 %v15286_v53, %v15287_v52  ;;  %v15291_v20 = vpack.c.bf16 %v15289_v11, %v15290_v36 }
 0x93f   :  { %3975 = vmatpush1.bf16.msra.mxu0 %v3932_v33  ;;  %v8184_v26 = vpop.eup %8183  ;;  %v3953_v39 = vpack.c.bf16 %v8182_v0, %v8176_v4  ;;  %v15293_v33 = vld [vmem:[#allocation40_spill] sm:$0xff] }
 0x940   :  { %v3912_v55 = vadd.f32 %v8176_v4, %v3911_v38  ;;  %3976 = vmatprep.subr.bf16.mxu0 %v3931_v8  ;;  %v8186_v35 = vpop.eup %8185  ;;  %v15292_v4 = vld [vmem:[#allocation42_spill] sm:$0xff]  ;;  %v15295_v38 = vld [vmem:[#allocation37_spill] sm:$0xff] }
 0x941   :  { %v8188_v45 = vpop.eup %8187  ;;  %v15296_v8 = vld [vmem:[#allocation33_spill] sm:$0xff] }
 0x942   :  { %v3913_v7 = vadd.f32 %v8182_v0, %v3912_v55  ;;  %v8190_v21 = vpop.eup %8189  ;;  %v3959_v31 = vpack.c.bf16 %v8188_v45, %v8186_v35  ;;  %v15298_v0 = vmov 0   ;;  %v4059_v55 = vpop.trf.xlu1 }
 0x943   :  { %3977 = vmatpush1.bf16.msra.mxu0 %v3930_v62  ;;  %v8192_v27 = vpop.eup %8191  ;;  %v3955_v23 = vpack.c.bf16 %v8190_v21, %v8184_v26 }
 0x944   :  { %v3914_v19 = vadd.f32 %v8184_v26, %v3913_v7  ;;  %3978 = vmatprep.subr.bf16.mxu0 %v3961_v22  ;;  %v8194_v51 = vpop.eup %8193 }
 0x945   :  { %v3957_v48 = vpack.c.bf16 %v8194_v51, %v8192_v27 }
 0x946   :  { %v3915_v25 = vadd.f32 %v8190_v21, %v3914_v19  ;;  %v4060_v26 = vpop.trf.xlu1  ;;  %v4075_v19 = vpop.trf.xlu0 }
 0x947   :  { %3979 = vmatpush2.bf16.msra.mxu0 %v3960_v57 }
 0x948   :  { %v3916_v63 = vadd.f32 %v8192_v27, %v3915_v25  ;;  %3980 = vmatprep.subr.bf16.mxu0 %v3959_v31 }
 0x94a   :  { %v3917_v9 = vadd.f32 %v8194_v51, %v3916_v63  ;;  %v4061_v37 = vpop.trf.xlu1  ;;  %v4076_v21 = vpop.trf.xlu0 }
 0x94b   :  { %3981 = vmatpush2.bf16.msra.mxu0 %v3958_v15  ;;  %v15299_v15 = vld [vmem:[#allocation99_spill] sm:$0xff] }
 0x94c   :  { %v3918_v61 = vadd.f32 %v8186_v35, %v3917_v9  ;;  %3982 = vmatprep.subr.bf16.mxu0 %v3957_v48  ;;  %v15300_v9 = vld [vmem:[#allocation103_spill] sm:$0xff] }
 0x94d   :  { %v1085_v48 = vpack.c.bf16 %v15300_v9, %v15299_v15 }
 0x94e   :  { %v3919_v41 = vadd.f32 %v8188_v45, %v3918_v61  ;;  %v4062_v62 = vpop.trf.xlu1  ;;  %v4077_v57 = vpop.trf.xlu0  ;;  %v3885_v61 = vrot.slane %v11974_v42, 4 }
 0x94f   :  { %3983 = vmatpush2.bf16.msra.mxu0 %v15270_v29 }
 0x950   :  { %v3920_v32 = vadd.f32 %v8178_v16, %v3919_v41  ;;  %3984 = vmatprep.subr.bf16.mxu0 %v3955_v23  ;;  %v15294_v16 = vpack.c.bf16 %v15292_v4, %v15293_v33  ;;  %v3886_v23 = vadd.f32 %v3885_v61, %v11974_v42 }
 0x952   :  { %v12009_v40 = vadd.f32 %v8180_v28, %v3920_v32  ;;  %v15297_v28 = vpack.c.bf16 %v15295_v38, %v15296_v8  ;;  %v4063_v35 = vpop.trf.xlu1  ;;  %v4078_v27 = vpop.trf.xlu0  ;;  %v3887_v32 = vrot.slane %v3886_v23, 2 }
 0x953   :  { %3985 = vmatpush2.bf16.msra.mxu0 %v15271_v54 }
 0x954   :  { %3986 = vmatprep.subr.bf16.mxu0 %v3953_v39  ;;  %v3922_v41 = vrot.slane %v12009_v40, 4  ;;  %v3888_v54 = vadd.f32 %v3887_v32, %v3886_v23 }
 0x956   :  { %v4064_v7 = vpop.trf.xlu1  ;;  %v4079_v25 = vpop.trf.xlu0  ;;  %v3923_v29 = vadd.f32 %v3922_v41, %v12009_v40  ;;  %v3889_v17 = vrot.slane %v3888_v54, 1 }
 0x957   :  { %3987 = vmatpush2.bf16.msra.mxu0 %v15273_v10 }
 0x958   :  { %3988 = vmatprep.subr.bf16.mxu0 %v3951_v58  ;;  %v3924_v39 = vrot.slane %v3923_v29, 2  ;;  %v3890_v49 = vadd.f32 %v3889_v17, %v3888_v54 }
 0x95a   :  { %v4065_v22 = vpop.trf.xlu1  ;;  %v4080_v31 = vpop.trf.xlu0  ;;  %v3925_v58 = vadd.f32 %v3924_v39, %v3923_v29  ;;  %8195 = vrcp.f32 %v3890_v49 }
 0x95b   :  { %3989 = vmatpush2.bf16.msra.mxu0 %v3950_v30 }
 0x95c   :  { %3990 = vmatprep.subr.bf16.mxu0 %v3949_v14  ;;  %v3926_v10 = vrot.slane %v3925_v58, 1 }
 0x95e   :  { %v4066_v45 = vpop.trf.xlu1  ;;  %v4081_v51 = vpop.trf.xlu0  ;;  %v3927_v56 = vadd.f32 %v3926_v10, %v3925_v58 }
 0x95f   :  { %3991 = vmatpush2.bf16.msra.mxu0 %v3948_v44 }
 0x960   :  { %3992 = vmatprep.subr.bf16.mxu0 %v3947_v5  ;;  %8197 = vrcp.f32 %v3927_v56 }
 0x962   :  { %v4082_v63 = vpop.trf.xlu0 }
 0x963   :  { %3993 = vmatpush2.bf16.msra.mxu0 %v3946_v1 }
 0x964   :  { %4143 = vmatprep.subr.bf16.mxu0 %v1017_v50 }
 0x966   :  { %3995 = vmatmul.mubr.bf16.vlgmr.msra.gmra.mxu0 %v15288_v60 }
 0x967   :  { %4004 = vmatprep.mubr.bf16.mxu0 %v1103_v47  ;;  %4144 = vmatpush1.bf16.msra.mxu0 %v15291_v20  ;;  %v8196_v30 = vpop.eup %8195 }
 0x968   :  { %4145 = vmatprep.subr.bf16.mxu0 %v1013_v43 }
 0x96b   :  { %4146 = vmatpush1.bf16.msra.mxu0 %v15294_v16 }
 0x96d   :  { %v8198_v6 = vpop.eup %8197 }
 0x96e   :  { %4005 = vmatmul.mubr.bf16.gmra.mxu0 %v15297_v28 }
 0x96f   :  { %4163 = vmatprep.mubr.bf16.mxu0 %v15298_v0 }
 0x976   :  { %7483 = vmatmul.mubr.msk.bf16.vlgmr.msra.gmra.mxu0 %vm1138_vm2, %v4059_v55 }
 0x977   :  { %4173 = vmatprep.mubr.bf16.mxu0 %v15298_v0 }
 0x97e   :  { %7484 = vmatmul.mubr.msk.bf16.gmra.mxu0 %vm1138_vm2, %v4060_v26 }
 0x97f   :  { %4183 = vmatprep.mubr.bf16.mxu0 %v15298_v0 }
 0x986   :  { %7485 = vmatmul.mubr.msk.bf16.gmra.mxu0 %vm1138_vm2, %v4061_v37 }
 0x987   :  { %4193 = vmatprep.mubr.bf16.mxu0 %v15298_v0 }
 0x98e   :  { %7486 = vmatmul.mubr.msk.bf16.gmra.mxu0 %vm1138_vm2, %v4062_v62 }
 0x98f   :  { %4203 = vmatprep.mubr.bf16.mxu0 %v15298_v0 }
 0x996   :  { %7487 = vmatmul.mubr.msk.bf16.gmra.mxu0 %vm1138_vm2, %v4063_v35 }
 0x997   :  { %4213 = vmatprep.mubr.bf16.mxu0 %v15298_v0 }
 0x99e   :  { %7488 = vmatmul.mubr.msk.bf16.gmra.mxu0 %vm1138_vm2, %v4064_v7 }
 0x99f   :  { %4223 = vmatprep.mubr.bf16.mxu0 %v15298_v0 }
 0x9a6   :  { %7489 = vmatmul.mubr.msk.bf16.gmra.mxu0 %vm1138_vm2, %v4065_v22 }
 0x9a7   :  { %4233 = vmatprep.mubr.bf16.mxu0 %v15298_v0 }
 0x9ae   :  { %7490 = vmatmul.mubr.msk.bf16.gmra.mxu0 %vm1138_vm2, %v4066_v45 }
 0x9af   :  { %4243 = vmatprep.mubr.bf16.mxu0 %v15298_v0 }
 0x9b6   :  { %7491 = vmatmul.mubr.msk.bf16.gmra.mxu0 %vm1138_vm2, %v4075_v19 }
 0x9b7   :  { %4253 = vmatprep.mubr.bf16.mxu0 %v15298_v0 }
 0x9be   :  { %7492 = vmatmul.mubr.msk.bf16.gmra.mxu0 %vm1138_vm2, %v4076_v21 }
 0x9bf   :  { %4263 = vmatprep.mubr.bf16.mxu0 %v15298_v0 }
 0x9c6   :  { %7493 = vmatmul.mubr.msk.bf16.gmra.mxu0 %vm1138_vm2, %v4077_v57 }
 0x9c7   :  { %4273 = vmatprep.mubr.bf16.mxu0 %v15298_v0 }
 0x9ce   :  { %7494 = vmatmul.mubr.msk.bf16.gmra.mxu0 %vm1138_vm2, %v4078_v27 }
 0x9cf   :  { %4283 = vmatprep.mubr.bf16.mxu0 %v15298_v0 }
 0x9d6   :  { %7495 = vmatmul.mubr.msk.bf16.gmra.mxu0 %vm1138_vm2, %v4079_v25 }
 0x9d7   :  { %4293 = vmatprep.mubr.bf16.mxu0 %v15298_v0 }
 0x9de   :  { %7496 = vmatmul.mubr.msk.bf16.gmra.mxu0 %vm1138_vm2, %v4080_v31 }
 0x9df   :  { %4303 = vmatprep.mubr.bf16.mxu0 %v15298_v0 }
 0x9e6   :  { %7497 = vmatmul.mubr.msk.bf16.gmra.mxu0 %vm1138_vm2, %v4081_v51 }
 0x9e7   :  { %4313 = vmatprep.mubr.bf16.mxu0 %v15298_v0 }
 0x9ee   :  { %7498 = vmatmul.mubr.msk.bf16.gmra.mxu0 %vm1138_vm2, %v4082_v63 }
 0x9ef   :  { %5466 = vmatprep.mubr.bf16.mxu0 %v1085_v48 }
 0xa26   :  { %v3996_v14 = vpop.f32.mrf.mxu0 }
 0xa27   :  { %v12082_v13 = vmul.f32 %v8196_v30, %v3996_v14 }
 0xa28   :  { %v3998_v44 = vpop.f32.mrf.mxu0 }
 0xa29   :  { %15301 = vst [vmem:[#allocation138_spill] sm:$0xff] %v12082_v13  ;;  %v12084_v5 = vmul.f32 %v8198_v6, %v3998_v44 }
 0xa2a   :  { %v4000_v42 = vpop.f32.mrf.mxu0 }
 0xa2b   :  { %15302 = vst [vmem:[#allocation139_spill] sm:$0xff] %v12084_v5  ;;  %v12086_v40 = vmul.f32 %v8196_v30, %v4000_v42 }
 0xa2c   :  { %v4002_v2 = vpop.f32.mrf.mxu0 }
 0xa2d   :  { %15303 = vst [vmem:[#allocation90_spill] sm:$0xff] %v12086_v40  ;;  %v12090_v1 = vmul.f32 %v8198_v6, %v4002_v2 }
 0xa2e   :  { %v4006_v34 = vpop.f32.mrf.mxu0 }
 0xa2f   :  { %15304 = vst [vmem:[#allocation94_spill] sm:$0xff] %v12090_v1  ;;  %v12094_v50 = vmul.f32 %v8196_v30, %v4006_v34 }
 0xa30   :  { %v4008_v24 = vpop.f32.mrf.mxu0 }
 0xa31   :  { %15305 = vst [vmem:[#allocation153_spill] sm:$0xff] %v12094_v50  ;;  %v12096_v3 = vmul.f32 %v8198_v6, %v4008_v24 }
 0xa32   :  { %v4010_v47 = vpop.f32.mrf.mxu0 }
 0xa33   :  { %15306 = vst [vmem:[#allocation73_spill] sm:$0xff] %v12096_v3  ;;  %v12098_v59 = vmul.f32 %v8196_v30, %v4010_v47 }
 0xa34   :  { %v4012_v12 = vpop.f32.mrf.mxu0 }
 0xa35   :  { %15307 = vst [vmem:[#allocation142_spill] sm:$0xff] %v12098_v59  ;;  %v12102_v53 = vmul.f32 %v8198_v6, %v4012_v12 }
 0xa36   :  { %v12104_v52 = vpop.f32.mrf.mxu0 }
 0xa37   :  { %15308 = vst [vmem:[#allocation151_spill] sm:$0xff] %v12102_v53 }
 0xa38   :  { %v12108_v11 = vpop.f32.mrf.mxu0 }
 0xa3a   :  { %v12110_v36 = vpop.f32.mrf.mxu0 }
 0xa3c   :  { %v12112_v20 = vpop.f32.mrf.mxu0 }
 0xa3e   :  { %v12114_v4 = vpop.f32.mrf.mxu0 }
 0xa3f   :  { %v4324_v47 = vmax.f32 %v12104_v52, %v12114_v4 }
 0xa40   :  { %v12116_v33 = vpop.f32.mrf.mxu0 }
 0xa42   :  { %v12118_v16 = vpop.f32.mrf.mxu0 }
 0xa43   :  { %v4325_v12 = vmax.f32 %v12110_v36, %v12118_v16 }
 0xa44   :  { %v12120_v38 = vpop.f32.mrf.mxu0 }
 0xa45   :  { %15309 = vst [vmem:[#allocation16_spill] sm:$0xff] %v12120_v38 }
 0xa46   :  { %v12122_v8 = vpop.f32.mrf.mxu0 }
 0xa47   :  { %v4326_v18 = vmax.f32 %v4324_v47, %v12122_v8 }
 0xa48   :  { %v12124_v28 = vpop.f32.mrf.mxu0 }
 0xa4a   :  { %v12126_v55 = vpop.f32.mrf.mxu0 }
 0xa4b   :  { %v4327_v43 = vmax.f32 %v4325_v12, %v12126_v55 }
 0xa4c   :  { %v12128_v26 = vpop.f32.mrf.mxu0 }
 0xa4d   :  { %15310 = vst [vmem:[#allocation14_spill] sm:$0xff] %v12128_v26 }
 0xa4e   :  { %v12130_v37 = vpop.f32.mrf.mxu0 }
 0xa4f   :  { %v4328_v13 = vmax.f32 %v4326_v18, %v12130_v37 }
 0xa50   :  { %v12132_v62 = vpop.f32.mrf.mxu0 }
 0xa52   :  { %v12134_v35 = vpop.f32.mrf.mxu0 }
 0xa53   :  { %v4329_v40 = vmax.f32 %v4327_v43, %v12134_v35 }
 0xa54   :  { %v12136_v7 = vpop.f32.mrf.mxu0 }
 0xa55   :  { %15311 = vst [vmem:[#allocation72_spill] sm:$0xff] %v12136_v7 }
 0xa56   :  { %v12138_v22 = vpop.f32.mrf.mxu0 }
 0xa57   :  { %15312 = vst [vmem:[#allocation18_spill] sm:$0xff] %v12138_v22  ;;  %v4330_v1 = vmax.f32 %v4328_v13, %v12138_v22 }
 0xa58   :  { %v12140_v45 = vpop.f32.mrf.mxu0 }
 0xa59   :  { %15313 = vst [vmem:[#allocation149_spill] sm:$0xff] %v12140_v45 }
 0xa5a   :  { %v12142_v19 = vpop.f32.mrf.mxu0 }
 0xa5b   :  { %v4331_v50 = vmax.f32 %v4329_v40, %v12142_v19 }
 0xa5c   :  { %v12144_v21 = vpop.f32.mrf.mxu0 }
 0xa5d   :  { %15314 = vst [vmem:[#allocation150_spill] sm:$0xff] %v12144_v21 }
 0xa5e   :  { %v12146_v57 = vpop.f32.mrf.mxu0 }
 0xa5f   :  { %15315 = vst [vmem:[#allocation34_spill] sm:$0xff] %v12146_v57  ;;  %v4332_v3 = vmax.f32 %v4330_v1, %v12146_v57 }
 0xa60   :  { %v12148_v27 = vpop.f32.mrf.mxu0 }
 0xa62   :  { %v12150_v25 = vpop.f32.mrf.mxu0 }
 0xa63   :  { %v4333_v47 = vmax.f32 %v4331_v50, %v12150_v25 }
 0xa64   :  { %v12152_v31 = vpop.f32.mrf.mxu0 }
 0xa66   :  { %v12154_v51 = vpop.f32.mrf.mxu0 }
 0xa67   :  { %15316 = vst [vmem:[#allocation38_spill] sm:$0xff] %v12154_v51  ;;  %v4334_v12 = vmax.f32 %v4332_v3, %v12154_v51 }
 0xa68   :  { %v12156_v63 = vpop.f32.mrf.mxu0 }
 0xa6a   :  { %v12158_v15 = vpop.f32.mrf.mxu0 }
 0xa6b   :  { %v4335_v18 = vmax.f32 %v4333_v47, %v12158_v15  ;;  %v4362_v47 = vmax.f32 %v12112_v20, %v12120_v38 }
 0xa6c   :  { %v12160_v9 = vpop.f32.mrf.mxu0 }
 0xa6e   :  { %v12162_v48 = vpop.f32.mrf.mxu0 }
 0xa6f   :  { %v4336_v43 = vmax.f32 %v4334_v12, %v12162_v48 }
 0xa70   :  { %v12164_v61 = vpop.f32.mrf.mxu0 }
 0xa72   :  { %v12166_v41 = vpop.f32.mrf.mxu0 }
 0xa73   :  { %15317 = vst [vmem:[#allocation98_spill] sm:$0xff] %v12166_v41  ;;  %v4337_v13 = vmax.f32 %v4335_v18, %v12166_v41 }
 0xa74   :  { %v12168_v23 = vpop.f32.mrf.mxu0 }
 0xa76   :  { %v12170_v29 = vpop.f32.mrf.mxu0 }
 0xa77   :  { %v4338_v40 = vmax.f32 %v4336_v43, %v12170_v29  ;;  %v4361_v43 = vmax.f32 %v12108_v11, %v12116_v33 }
 0xa78   :  { %v12172_v32 = vpop.f32.mrf.mxu0 }
 0xa7a   :  { %v12174_v39 = vpop.f32.mrf.mxu0 }
 0xa7b   :  { %v4339_v1 = vmax.f32 %v4337_v13, %v12174_v39  ;;  %v4364_v13 = vmax.f32 %v4362_v47, %v12128_v26 }
 0xa7c   :  { %v12176_v54 = vpop.f32.mrf.mxu0 }
 0xa7d   :  { %v4366_v38 = vmax.f32 %v4364_v13, %v12136_v7 }
 0xa7e   :  { %v12178_v58 = vpop.f32.mrf.mxu0 }
 0xa7f   :  { %15318 = vst [vmem:[#allocation102_spill] sm:$0xff] %v12178_v58  ;;  %v4340_v50 = vmax.f32 %v4338_v40, %v12178_v58  ;;  %v4363_v58 = vmax.f32 %v4361_v43, %v12124_v28  ;;  %v4368_v47 = vmax.f32 %v4366_v38, %v12144_v21 }
 0xa80   :  { %v12180_v17 = vpop.f32.mrf.mxu0 }
 0xa81   :  { %v4370_v13 = vmax.f32 %v4368_v47, %v12152_v31 }
 0xa82   :  { %v12182_v10 = vpop.f32.mrf.mxu0 }
 0xa83   :  { %15319 = vst [vmem:[#allocation29_spill] sm:$0xff] %v12182_v10  ;;  %v4341_v3 = vmax.f32 %v4339_v1, %v12182_v10  ;;  %v4372_v38 = vmax.f32 %v4370_v13, %v12160_v9 }
 0xa84   :  { %v12184_v49 = vpop.f32.mrf.mxu0 }
 0xa86   :  { %v12186_v56 = vpop.f32.mrf.mxu0 }
 0xa87   :  { %15320 = vst [vmem:[#allocation31_spill] sm:$0xff] %v12186_v56  ;;  %v4342_v12 = vmax.f32 %v4340_v50, %v12186_v56  ;;  %v4365_v56 = vmax.f32 %v4363_v58, %v12132_v62 }
 0xa88   :  { %v12188_v30 = vpop.f32.mrf.mxu0 }
 0xa89   :  { %v4367_v43 = vmax.f32 %v4365_v56, %v12140_v45  ;;  %v4374_v56 = vmax.f32 %v4372_v38, %v12168_v23 }
 0xa8a   :  { %v12190_v14 = vpop.f32.mrf.mxu0 }
 0xa8b   :  { %15321 = vst [vmem:[#allocation92_spill] sm:$0xff] %v12190_v14  ;;  %v4343_v18 = vmax.f32 %v4341_v3, %v12190_v14  ;;  %v4369_v58 = vmax.f32 %v4367_v43, %v12148_v27 }
 0xa8c   :  { %v12192_v6 = vpop.f32.mrf.mxu0 }
 0xa8d   :  { %v4371_v21 = vmax.f32 %v4369_v58, %v12156_v63 }
 0xa8e   :  { %v12194_v44 = vpop.f32.mrf.mxu0 }
 0xa8f   :  { %v4344_v40 = vmax.f32 %v4342_v12, %v12194_v44  ;;  %v4373_v47 = vmax.f32 %v4371_v21, %v12164_v61 }
 0xa90   :  { %v12196_v42 = vpop.f32.mrf.mxu0 }
 0xa92   :  { %v12198_v2 = vpop.f32.mrf.mxu0 }
 0xa93   :  { %v4345_v1 = vmax.f32 %v4343_v18, %v12198_v2 }
 0xa94   :  { %v12200_v34 = vpop.f32.mrf.mxu0 }
 0xa96   :  { %v12202_v24 = vpop.f32.mrf.mxu0 }
 0xa97   :  { %v4346_v50 = vmax.f32 %v4344_v40, %v12202_v24 }
 0xa98   :  { %v12208_v46 = vpop.f32.mrf.mxu0 }
 0xa9a   :  { %v12212_v60 = vpop.f32.mrf.mxu0 }
 0xa9b   :  { %v4347_v3 = vmax.f32 %v4345_v1, %v12212_v60 }
 0xa9c   :  { %v12216_v5 = vpop.f32.mrf.mxu0 }
 0xa9e   :  { %v12220_v59 = vpop.f32.mrf.mxu0 }
 0xa9f   :  { %v4348_v12 = vmax.f32 %v4346_v50, %v12220_v59 }
 0xaa0   :  { %v12224_v53 = vpop.f32.mrf.mxu0 }
 0xaa2   :  { %v12228_v0 = vpop.f32.mrf.mxu0 }
 0xaa3   :  { %v4349_v18 = vmax.f32 %v4347_v3, %v12228_v0 }
 0xaa4   :  { %v12232_v22 = vpop.f32.mrf.mxu0 }
 0xaa6   :  { %v12236_v57 = vpop.f32.mrf.mxu0 }
 0xaa7   :  { %15322 = vst [vmem:[#allocation88_spill] sm:$0xff] %v12236_v57  ;;  %v4350_v40 = vmax.f32 %v4348_v12, %v12236_v57  ;;  %v4376_v12 = vmax.f32 %v4374_v56, %v12176_v54 }
 0xaa8   :  { %v12240_v51 = vpop.f32.mrf.mxu0 }
 0xaa9   :  { %v4378_v43 = vmax.f32 %v4376_v12, %v12184_v49 }
 0xaaa   :  { %v12246_v41 = vpop.f32.mrf.mxu0 }
 0xaab   :  { %15323 = vst [vmem:[#allocation36_spill] sm:$0xff] %v12246_v41  ;;  %v4351_v1 = vmax.f32 %v4349_v18, %v12246_v41  ;;  %v4375_v41 = vmax.f32 %v4373_v47, %v12172_v32 }
 0xaac   :  { %v12253_v10 = vpop.f32.mrf.mxu0 }
 0xaad   :  { %v4377_v13 = vmax.f32 %v4375_v41, %v12180_v17 }
 0xaae   :  { %v12259_v14 = vpop.f32.mrf.mxu0 }
 0xaaf   :  { %v4352_v50 = vmax.f32 %v4350_v40, %v12259_v14  ;;  %v4380_v40 = vmax.f32 %v4378_v43, %v12192_v6  ;;  %v4379_v58 = vmax.f32 %v4377_v13, %v12188_v30 }
 0xab0   :  { %v12265_v26 = vpop.f32.mrf.mxu0 }
 0xab1   :  { %v4382_v38 = vmax.f32 %v4380_v40, %v12200_v34  ;;  %v4381_v21 = vmax.f32 %v4379_v58, %v12196_v42 }
 0xab2   :  { %v12271_v7 = vpop.f32.mrf.mxu0 }
 0xab3   :  { %v4353_v3 = vmax.f32 %v4351_v1, %v12271_v7  ;;  %v4383_v47 = vmax.f32 %v4381_v21, %v12208_v46 }
 0xab5   :  { %v4354_v45 = vmax.f32 %v4352_v50, %v4353_v3  ;;  %v4384_v3 = vmax.f32 %v4382_v38, %v12216_v5  ;;  %v4385_v41 = vmax.f32 %v4383_v47, %v12224_v53 }
 0xab7   :  { %v4355_v18 = vrot.slane %v4354_v45, 4  ;;  %v4386_v12 = vmax.f32 %v4384_v3, %v12232_v22  ;;  %v4387_v13 = vmax.f32 %v4385_v41, %v12240_v51 }
 0xab9   :  { %v4356_v57 = vmax.f32 %v4354_v45, %v4355_v18  ;;  %v12291_v45 = vpop.f32.mrf.mxu0  ;;  %v4388_v18 = vmax.f32 %v4386_v12, %v12253_v10  ;;  %v4389_v40 = vmax.f32 %v4387_v13, %v12265_v26 }
 0xabb   :  { %v4357_v1 = vrot.slane %v4356_v57, 2 }
 0xabd   :  { %v4358_v50 = vmax.f32 %v4356_v57, %v4357_v1  ;;  %v4390_v57 = vmax.f32 %v4388_v18, %v12291_v45 }
 0xabf   :  { %v4359_v56 = vrot.slane %v4358_v50, 1  ;;  %v4391_v21 = vmax.f32 %v4389_v40, %v4390_v57 }
 0xac1   :  { %v12295_v43 = vmax.f32 %v4358_v50, %v4359_v56  ;;  %v4392_v41 = vrot.slane %v4391_v21, 4 }
 0xac3   :  { %v4398_v1 = vsub.f32 %v12104_v52, %v12295_v43  ;;  %v4400_v58 = vsub.f32 %v12110_v36, %v12295_v43  ;;  %v4402_v38 = vsub.f32 %v12114_v4, %v12295_v43  ;;  %v4404_v50 = vsub.f32 %v12118_v16, %v12295_v43 }
 0xac4   :  { %v4406_v47 = vsub.f32 %v12122_v8, %v12295_v43  ;;  %v4408_v52 = vsub.f32 %v12126_v55, %v12295_v43  ;;  %v4410_v4 = vsub.f32 %v12130_v37, %v12295_v43  ;;  %v4393_v13 = vmax.f32 %v4391_v21, %v4392_v41  ;;  %v15324_v8 = vld [vmem:[#allocation18_spill] sm:$0xff] }
 0xac5   :  { %v4462_v3 = vmul.f32 1.442695, %v4398_v1  ;;  %v4466_v56 = vmul.f32 1.442695, %v4400_v58  ;;  %v4470_v12 = vmul.f32 1.442695, %v4402_v38  ;;  %v4412_v16 = vsub.f32 %v12134_v35, %v12295_v43 }
 0xac6   :  { %v4474_v36 = vmul.f32 1.442695, %v4404_v50  ;;  %v4478_v18 = vmul.f32 1.442695, %v4406_v47  ;;  %v4482_v57 = vmul.f32 1.442695, %v4408_v52  ;;  %v4414_v40 = vsub.f32 %v15324_v8, %v12295_v43 }
 0xac7   :  { %8199 = vpow2.f32 %v4462_v3  ;;  %v4486_v1 = vmul.f32 1.442695, %v4410_v4  ;;  %v4416_v55 = vsub.f32 %v12142_v19, %v12295_v43  ;;  %v4394_v58 = vrot.slane %v4393_v13, 2  ;;  %v15325_v38 = vld [vmem:[#allocation34_spill] sm:$0xff] }
 0xac8   :  { %8201 = vpow2.f32 %v4466_v56  ;;  %v4418_v37 = vsub.f32 %v15325_v38, %v12295_v43  ;;  %v4490_v50 = vmul.f32 1.442695, %v4412_v16  ;;  %v4420_v21 = vsub.f32 %v12150_v25, %v12295_v43  ;;  %v15326_v35 = vld [vmem:[#allocation38_spill] sm:$0xff] }
 0xac9   :  { %8203 = vpow2.f32 %v4470_v12  ;;  %v4422_v3 = vsub.f32 %v15326_v35, %v12295_v43  ;;  %v4494_v56 = vmul.f32 1.442695, %v4414_v40  ;;  %v4424_v47 = vsub.f32 %v12158_v15, %v12295_v43 }
 0xaca   :  { %8205 = vpow2.f32 %v4474_v36  ;;  %v4498_v12 = vmul.f32 1.442695, %v4416_v55  ;;  %v4395_v41 = vmax.f32 %v4393_v13, %v4394_v58  ;;  %v4426_v52 = vsub.f32 %v12162_v48, %v12295_v43 }
 0xacb   :  { %8207 = vpow2.f32 %v4478_v18  ;;  %v4502_v36 = vmul.f32 1.442695, %v4418_v37  ;;  %v4442_v25 = vsub.f32 %v12194_v44, %v12295_v43  ;;  %v4506_v18 = vmul.f32 1.442695, %v4420_v21 }
 0xacc   :  { %8209 = vpow2.f32 %v4482_v57  ;;  %v4444_v16 = vsub.f32 %v12198_v2, %v12295_v43  ;;  %v4510_v15 = vmul.f32 1.442695, %v4422_v3  ;;  %v4446_v48 = vsub.f32 %v12202_v24, %v12295_v43 }
 0xacd   :  { %8211 = vpow2.f32 %v4486_v1  ;;  %v4514_v8 = vmul.f32 1.442695, %v4424_v47  ;;  %v4396_v40 = vrot.slane %v4395_v41, 1  ;;  %v4448_v44 = vsub.f32 %v12212_v60, %v12295_v43  ;;  %v15328_v60 = vld [vmem:[#allocation98_spill] sm:$0xff] }
 0xace   :  { %8213 = vpow2.f32 %v4490_v50  ;;  %v4518_v1 = vmul.f32 1.442695, %v4426_v52  ;;  %v4450_v58 = vsub.f32 %v12220_v59, %v12295_v43  ;;  %v4550_v38 = vmul.f32 1.442695, %v4442_v25  ;;  %v15329_v25 = vld [vmem:[#allocation102_spill] sm:$0xff] }
 0xacf   :  { %8215 = vpow2.f32 %v4494_v56  ;;  %v4452_v24 = vsub.f32 %v12228_v0, %v12295_v43  ;;  %v4554_v37 = vmul.f32 1.442695, %v4444_v16  ;;  %v4428_v35 = vsub.f32 %v15328_v60, %v12295_v43 }
 0xad0   :  { %8217 = vpow2.f32 %v4498_v12  ;;  %v4558_v3 = vmul.f32 1.442695, %v4446_v48  ;;  %v12358_v56 = vmax.f32 %v4395_v41, %v4396_v40  ;;  %v4430_v59 = vsub.f32 %v12170_v29, %v12295_v43 }
 0xad1   :  { %8219 = vpow2.f32 %v4502_v36  ;;  %v4562_v47 = vmul.f32 1.442695, %v4448_v44  ;;  %v4432_v52 = vsub.f32 %v12174_v39, %v12295_v43  ;;  %v4566_v36 = vmul.f32 1.442695, %v4450_v58  ;;  %v15330_v44 = vld [vmem:[#allocation29_spill] sm:$0xff] }
 0xad2   :  { %8221 = vpow2.f32 %v4506_v18  ;;  %v4434_v18 = vsub.f32 %v15329_v25, %v12295_v43  ;;  %v4570_v41 = vmul.f32 1.442695, %v4452_v24  ;;  %v4522_v29 = vmul.f32 1.442695, %v4428_v35 }
 0xad3   :  { %8223 = vpow2.f32 %v4510_v15  ;;  %v4526_v48 = vmul.f32 1.442695, %v4430_v59 }
 0xad4   :  { %v12328_v19 = vpop.eup %8199  ;;  %8225 = vpow2.f32 %v4514_v8  ;;  %v4401_v8 = vsub.f32 %v12112_v20, %v12358_v56  ;;  %v4534_v58 = vmul.f32 1.442695, %v4434_v18 }
 0xad5   :  { %v12332_v4 = vpop.eup %8201  ;;  %8227 = vpow2.f32 %v4518_v1  ;;  %v4436_v1 = vsub.f32 %v15330_v44, %v12295_v43 }
 0xad6   :  { %15327 = vst [vmem:[#allocation32_spill] sm:$0xff] %v12332_v4  ;;  %v4590_v13 = vadd.f32 %v12332_v4, %v12328_v19  ;;  %v12340_v57 = vpop.eup %8203  ;;  %8229 = vpow2.f32 %v4550_v38 }
 0xad7   :  { %v12347_v55 = vpop.eup %8205  ;;  %8231 = vpow2.f32 %v4554_v37  ;;  %v15331_v37 = vld [vmem:[#allocation31_spill] sm:$0xff] }
 0xad8   :  { %v4591_v2 = vadd.f32 %v12340_v57, %v4590_v13  ;;  %v12354_v21 = vpop.eup %8207  ;;  %8233 = vpow2.f32 %v4558_v3  ;;  %v4399_v13 = vsub.f32 %v12108_v11, %v12358_v56  ;;  %v4403_v11 = vsub.f32 %v12116_v33, %v12358_v56  ;;  %v15332_v3 = vld [vmem:[#allocation16_spill] sm:$0xff] }
 0xad9   :  { %v12363_v12 = vpop.eup %8209  ;;  %8235 = vpow2.f32 %v4562_v47  ;;  %v4405_v59 = vsub.f32 %v15332_v3, %v12358_v56  ;;  %v4468_v47 = vmul.f32 1.442695, %v4401_v8  ;;  %v15333_v33 = vld [vmem:[#allocation92_spill] sm:$0xff] }
 0xada   :  { %v4592_v50 = vadd.f32 %v12347_v55, %v4591_v2  ;;  %v12370_v15 = vpop.eup %8211  ;;  %v4530_v2 = vmul.f32 1.442695, %v4432_v52  ;;  %8237 = vpow2.f32 %v4566_v36  ;;  %v4464_v20 = vmul.f32 1.442695, %v4399_v13 }
 0xadb   :  { %v12377_v40 = vpop.eup %8213  ;;  %8239 = vpow2.f32 %v4570_v41  ;;  %v4440_v52 = vsub.f32 %v15333_v33, %v12295_v43  ;;  %v4538_v36 = vmul.f32 1.442695, %v4436_v1  ;;  %v4407_v41 = vsub.f32 %v12124_v28, %v12358_v56 }
 0xadc   :  { %v4593_v0 = vadd.f32 %v12354_v21, %v4592_v50  ;;  %v12384_v24 = vpop.eup %8215  ;;  %v4438_v50 = vsub.f32 %v15331_v37, %v12295_v43  ;;  %8241 = vpow2.f32 %v4522_v29  ;;  %v4411_v1 = vsub.f32 %v12132_v62, %v12358_v56 }
 0xadd   :  { %v12388_v60 = vpop.eup %8217  ;;  %8243 = vpow2.f32 %v4526_v48  ;;  %v15334_v48 = vld [vmem:[#allocation14_spill] sm:$0xff]  ;;  %v4546_v28 = vmul.f32 1.442695, %v4440_v52  ;;  %v4480_v3 = vmul.f32 1.442695, %v4407_v41  ;;  %v4423_v62 = vsub.f32 %v12156_v63, %v12358_v56 }
 0xade   :  { %v4594_v16 = vadd.f32 %v12363_v12, %v4593_v0  ;;  %v12393_v0 = vpop.eup %8219  ;;  %8245 = vpow2.f32 %v4530_v2  ;;  %v4542_v13 = vmul.f32 1.442695, %v4438_v50  ;;  %v4476_v2 = vmul.f32 1.442695, %v4405_v59 }
 0xadf   :  { %v12397_v25 = vpop.eup %8221  ;;  %8247 = vpow2.f32 %v4534_v58  ;;  %v4425_v59 = vsub.f32 %v12160_v9, %v12358_v56  ;;  %v4429_v63 = vsub.f32 %v12168_v23, %v12358_v56 }
 0xae0   :  { %v4595_v39 = vadd.f32 %v12370_v15, %v4594_v16  ;;  %v4472_v16 = vmul.f32 1.442695, %v4403_v11  ;;  %v12402_v29 = vpop.eup %8223  ;;  %8249 = vpow2.f32 %v4464_v20  ;;  %v15336_v20 = vld [vmem:[#allocation149_spill] sm:$0xff] }
 0xae1   :  { %v12406_v8 = vpop.eup %8225  ;;  %8251 = vpow2.f32 %v4468_v47 }
 0xae2   :  { %v4596_v38 = vadd.f32 %v12377_v40, %v4595_v39  ;;  %v4409_v39 = vsub.f32 %v15334_v48, %v12358_v56  ;;  %v12411_v58 = vpop.eup %8227  ;;  %8253 = vpow2.f32 %v4538_v36 }
 0xae3   :  { %v12415_v37 = vpop.eup %8229  ;;  %8255 = vpow2.f32 %v4472_v16 }
 0xae4   :  { %v4597_v35 = vadd.f32 %v12384_v24, %v4596_v38  ;;  %v15335_v38 = vld [vmem:[#allocation72_spill] sm:$0xff]  ;;  %v12420_v33 = vpop.eup %8231  ;;  %8257 = vpow2.f32 %v4542_v13  ;;  %v4484_v47 = vmul.f32 1.442695, %v4409_v39  ;;  %v4427_v13 = vsub.f32 %v12164_v61, %v12358_v56 }
 0xae5   :  { %v4413_v11 = vsub.f32 %v15335_v38, %v12358_v56  ;;  %v12426_v52 = vpop.eup %8233  ;;  %8259 = vpow2.f32 %v4476_v2  ;;  %v4512_v61 = vmul.f32 1.442695, %v4423_v62 }
 0xae6   :  { %v4598_v18 = vadd.f32 %v12388_v60, %v4597_v35  ;;  %v4415_v35 = vsub.f32 %v15336_v20, %v12358_v56  ;;  %v12431_v41 = vpop.eup %8235  ;;  %8261 = vpow2.f32 %v4546_v28  ;;  %v15337_v28 = vld [vmem:[#allocation150_spill] sm:$0xff] }
 0xae7   :  { %v4492_v9 = vmul.f32 1.442695, %v4413_v11  ;;  %v12437_v48 = vpop.eup %8237  ;;  %8263 = vpow2.f32 %v4480_v3  ;;  %v4417_v38 = vsub.f32 %v15337_v28, %v12358_v56  ;;  %v4516_v11 = vmul.f32 1.442695, %v4425_v59 }
 0xae8   :  { %v4599_v44 = vadd.f32 %v12393_v0, %v4598_v18  ;;  %v4488_v18 = vmul.f32 1.442695, %v4411_v1  ;;  %v12442_v2 = vpop.eup %8239  ;;  %8265 = vpow2.f32 %v4484_v47  ;;  %v4419_v3 = vsub.f32 %v12148_v27, %v12358_v56 }
 0xae9   :  { %v4421_v47 = vsub.f32 %v12152_v31, %v12358_v56  ;;  %v4500_v1 = vmul.f32 1.442695, %v4417_v38  ;;  %v15343_v38 = vld [vmem:[#allocation36_spill] sm:$0xff] }
 0xaea   :  { %v4600_v50 = vadd.f32 %v12397_v25, %v4599_v44  ;;  %v4496_v44 = vmul.f32 1.442695, %v4415_v35  ;;  %8267 = vpow2.f32 %v4488_v18  ;;  %v4524_v18 = vmul.f32 1.442695, %v4429_v63 }
 0xaeb   :  { %8269 = vpow2.f32 %v4492_v9  ;;  %v4508_v63 = vmul.f32 1.442695, %v4421_v47 }
 0xaec   :  { %v4601_v36 = vadd.f32 %v12402_v29, %v4600_v50  ;;  %v12446_v50 = vpop.eup %8241  ;;  %8271 = vpow2.f32 %v4496_v44 }
 0xaed   :  { %v12451_v35 = vpop.eup %8243  ;;  %8273 = vpow2.f32 %v4512_v61 }
 0xaee   :  { %v4602_v39 = vadd.f32 %v12406_v8, %v4601_v36  ;;  %15338 = vst [vmem:[#allocation30_spill] sm:$0xff] %v12451_v35  ;;  %v4520_v36 = vmul.f32 1.442695, %v4427_v13  ;;  %v12455_v16 = vpop.eup %8245  ;;  %8275 = vpow2.f32 %v4516_v11  ;;  %v15341_v13 = vld [vmem:[#allocation88_spill] sm:$0xff]  ;;  %v4456_v11 = vsub.f32 %v15343_v38, %v12295_v43 }
 0xaef   :  { %15339 = vst [vmem:[#allocation28_spill] sm:$0xff] %v12455_v16  ;;  %v12460_v59 = vpop.eup %8247  ;;  %v4454_v9 = vsub.f32 %v15341_v13, %v12295_v43  ;;  %v4451_v13 = vsub.f32 %v12224_v53, %v12358_v56 }
 0xaf0   :  { %v4603_v23 = vadd.f32 %v12411_v58, %v4602_v39  ;;  %15340 = vst [vmem:[#allocation100_spill] sm:$0xff] %v12460_v59  ;;  %v12462_v39 = vpop.eup %8249  ;;  %8277 = vpow2.f32 %v4520_v36 }
 0xaf1   :  { %v12465_v27 = vpop.eup %8251  ;;  %8279 = vpow2.f32 %v4524_v18  ;;  %v4574_v18 = vmul.f32 1.442695, %v4454_v9  ;;  %v4460_v9 = vsub.f32 %v12271_v7, %v12295_v43 }
 0xaf2   :  { %v4604_v62 = vadd.f32 %v12446_v50, %v4603_v23  ;;  %v4504_v23 = vmul.f32 1.442695, %v4419_v3  ;;  %v12469_v20 = vpop.eup %8253  ;;  %v4627_v44 = vadd.f32 %v12465_v27, %v12462_v39  ;;  %v4458_v3 = vsub.f32 %v12259_v14, %v12295_v43 }
 0xaf3   :  { %15342 = vst [vmem:[#allocation96_spill] sm:$0xff] %v12469_v20  ;;  %v12474_v61 = vpop.eup %8255  ;;  %8281 = vpow2.f32 %v4500_v1  ;;  %v4433_v43 = vsub.f32 %v12176_v54, %v12358_v56 }
 0xaf4   :  { %v4605_v28 = vadd.f32 %v12451_v35, %v4604_v62  ;;  %v12478_v62 = vpop.eup %8257  ;;  %8283 = vpow2.f32 %v4504_v23  ;;  %v4453_v35 = vsub.f32 %v12232_v22, %v12358_v56  ;;  %v4582_v53 = vmul.f32 1.442695, %v4458_v3 }
 0xaf5   :  { %v12484_v47 = vpop.eup %8259  ;;  %8285 = vpow2.f32 %v4508_v63  ;;  %v4431_v22 = vsub.f32 %v12172_v32, %v12358_v56  ;;  %v4568_v63 = vmul.f32 1.442695, %v4451_v13 }
 0xaf6   :  { %v4606_v31 = vadd.f32 %v12455_v16, %v4605_v28  ;;  %v4628_v28 = vadd.f32 %v12474_v61, %v4627_v44  ;;  %v12488_v16 = vpop.eup %8261  ;;  %8287 = vpow2.f32 %v4574_v18  ;;  %v4435_v18 = vsub.f32 %v12180_v17, %v12358_v56 }
 0xaf7   :  { %15344 = vst [vmem:[#allocation83_spill] sm:$0xff] %v12488_v16  ;;  %v12494_v1 = vpop.eup %8263 }
 0xaf8   :  { %v4607_v36 = vadd.f32 %v12460_v59, %v4606_v31  ;;  %v4629_v14 = vadd.f32 %v12484_v47, %v4628_v28  ;;  %v4578_v31 = vmul.f32 1.442695, %v4456_v11  ;;  %v12496_v44 = vpop.eup %8265 }
 0xafa   :  { %v4608_v38 = vadd.f32 %v12469_v20, %v4607_v36  ;;  %v4630_v59 = vadd.f32 %v12494_v1, %v4629_v14  ;;  %v12502_v36 = vpop.eup %8267  ;;  %v4572_v20 = vmul.f32 1.442695, %v4453_v35  ;;  %8289 = vpow2.f32 %v4578_v31 }
 0xafb   :  { %v12506_v28 = vpop.eup %8269  ;;  %8291 = vpow2.f32 %v4582_v53  ;;  %v4528_v31 = vmul.f32 1.442695, %v4431_v22  ;;  %v4532_v53 = vmul.f32 1.442695, %v4433_v43  ;;  %v4536_v22 = vmul.f32 1.442695, %v4435_v18 }
 0xafc   :  { %v4609_v23 = vadd.f32 %v12478_v62, %v4608_v38  ;;  %v4631_v4 = vadd.f32 %v12496_v44, %v4630_v59  ;;  %v12510_v7 = vpop.eup %8271  ;;  %v4586_v38 = vmul.f32 1.442695, %v4460_v9  ;;  %8293 = vpow2.f32 %v4568_v63 }
 0xafd   :  { %v8274_v3 = vpop.eup %8273  ;;  %8295 = vpow2.f32 %v4572_v20  ;;  %v4437_v9 = vsub.f32 %v12184_v49, %v12358_v56  ;;  %v4439_v20 = vsub.f32 %v12188_v30, %v12358_v56 }
 0xafe   :  { %v4610_v11 = vadd.f32 %v12488_v16, %v4609_v23  ;;  %v4632_v13 = vadd.f32 %v12502_v36, %v4631_v4  ;;  %v8276_v14 = vpop.eup %8275  ;;  %8297 = vpow2.f32 %v4586_v38  ;;  %v4443_v16 = vsub.f32 %v12196_v42, %v12358_v56 }
 0xaff   :  { %v12518_v35 = vpop.eup %8277  ;;  %8299 = vpow2.f32 %v4528_v31  ;;  %v4679_v38 = vpack.c.bf16 %v8276_v14, %v8274_v3  ;;  %v4540_v18 = vmul.f32 1.442695, %v4437_v9  ;;  %v4461_v31 = vsub.f32 %v12291_v45, %v12358_v56 }
 0xb00   :  { %v4611_v32 = vadd.f32 %v12415_v37, %v4610_v11  ;;  %v4633_v54 = vadd.f32 %v12506_v28, %v4632_v13  ;;  %v12522_v23 = vpop.eup %8279  ;;  %8301 = vpow2.f32 %v4532_v53  ;;  %v4445_v9 = vsub.f32 %v12200_v34, %v12358_v56 }
 0xb01   :  { %v4681_v63 = vpack.c.bf16 %v12522_v23, %v12518_v35  ;;  %v8282_v11 = vpop.eup %8281  ;;  %8303 = vpow2.f32 %v4536_v22  ;;  %v4455_v45 = vsub.f32 %v12240_v51, %v12358_v56  ;;  %v4457_v34 = vsub.f32 %v12253_v10, %v12358_v56 }
 0xb02   :  { %v4612_v59 = vadd.f32 %v12420_v33, %v4611_v32  ;;  %v4634_v17 = vadd.f32 %v12510_v7, %v4633_v54  ;;  %v4680_v32 = vpack.c.bf16 %v12446_v50, %v12411_v58  ;;  %v8284_v13 = vpop.eup %8283  ;;  %v4441_v54 = vsub.f32 %v12192_v6, %v12358_v56 }
 0xb03   :  { %4698 = vmatprep.subr.bf16.mxu1 %v4681_v63  ;;  %v4459_v50 = vsub.f32 %v12265_v26, %v12358_v56  ;;  %v4678_v6 = vpack.c.bf16 %v12406_v8, %v12402_v29  ;;  %v4447_v26 = vsub.f32 %v12208_v46, %v12358_v56  ;;  %8305 = vpow2.f32 %v4540_v18 }
 0xb04   :  { %v4613_v4 = vadd.f32 %v12426_v52, %v4612_v59  ;;  %v4635_v43 = vadd.f32 %v8282_v11, %v4634_v17  ;;  %v8286_v59 = vpop.eup %8285  ;;  %4699 = vmatpush1.bf16.msra.mxu1 %v4680_v32  ;;  %v4548_v53 = vmul.f32 1.442695, %v4441_v54  ;;  %v4552_v8 = vmul.f32 1.442695, %v4443_v16 }
 0xb05   :  { %4700 = vmatprep.subr.bf16.mxu1 %v4679_v38  ;;  %v4677_v63 = vpack.c.bf16 %v8286_v59, %v8284_v13  ;;  %v12547_v32 = vpop.eup %8287  ;;  %v4588_v46 = vmul.f32 1.442695, %v4461_v31  ;;  %v4676_v51 = vpack.c.bf16 %v12397_v25, %v12393_v0  ;;  %v4675_v16 = vpack.c.bf16 %v8282_v11, %v12510_v7 }
 0xb06   :  { %v4614_v49 = vadd.f32 %v12431_v41, %v4613_v4  ;;  %v4636_v58 = vadd.f32 %v8284_v13, %v4635_v43  ;;  %v4544_v4 = vmul.f32 1.442695, %v4439_v20  ;;  %v4449_v54 = vsub.f32 %v12216_v5, %v12358_v56 }
 0xb07   :  { %v12555_v20 = vpop.eup %8289  ;;  %v4556_v10 = vmul.f32 1.442695, %v4445_v9  ;;  %v4576_v7 = vmul.f32 1.442695, %v4455_v45  ;;  %v4580_v11 = vmul.f32 1.442695, %v4457_v34  ;;  %v4674_v5 = vpack.c.bf16 %v12388_v60, %v12384_v24 }
 0xb08   :  { %v4615_v30 = vadd.f32 %v12437_v48, %v4614_v49  ;;  %v4637_v42 = vadd.f32 %v8286_v59, %v4636_v58  ;;  %4701 = vmatpush1.bf16.msra.mxu1 %v4678_v6  ;;  %v12558_v13 = vpop.eup %8291  ;;  %v4584_v49 = vmul.f32 1.442695, %v4459_v50  ;;  %8307 = vpow2.f32 %v4544_v4 }
 0xb09   :  { %4702 = vmatprep.subr.bf16.mxu1 %v4677_v63  ;;  %v12564_v43 = vpop.eup %8293  ;;  %8309 = vpow2.f32 %v4548_v53  ;;  %v4673_v50 = vpack.c.bf16 %v12506_v28, %v12502_v36  ;;  %v4564_v31 = vmul.f32 1.442695, %v4449_v54  ;;  %v4672_v24 = vpack.c.bf16 %v12377_v40, %v12370_v15 }
 0xb0a   :  { %v4616_v17 = vadd.f32 %v12442_v2, %v4615_v30  ;;  %v4638_v22 = vadd.f32 %v8274_v3, %v4637_v42  ;;  %v12568_v3 = vpop.eup %8295  ;;  %v4560_v30 = vmul.f32 1.442695, %v4447_v26  ;;  %8311 = vpow2.f32 %v4552_v8 }
 0xb0b   :  { %v4693_v25 = vpack.c.bf16 %v12568_v3, %v12564_v43  ;;  %8313 = vpow2.f32 %v4584_v49  ;;  %v4671_v36 = vpack.c.bf16 %v12496_v44, %v12494_v1  ;;  %v4670_v42 = vpack.c.bf16 %v12363_v12, %v12354_v21 }
 0xb0c   :  { %v4617_v29 = vadd.f32 %v12547_v32, %v4616_v17  ;;  %v4639_v59 = vadd.f32 %v8276_v14, %v4638_v22  ;;  %4703 = vmatpush1.bf16.msra.mxu1 %v4676_v51  ;;  %v8298_v14 = vpop.eup %8297  ;;  %8315 = vpow2.f32 %v4588_v46  ;;  %v4669_v9 = vpack.c.bf16 %v12484_v47, %v12474_v61  ;;  %v15345_v47 = vld [vmem:[#allocation32_spill] sm:$0xff] }
 0xb0d   :  { %4704 = vmatprep.subr.bf16.mxu1 %v4675_v16  ;;  %8317 = vpow2.f32 %v4556_v10  ;;  %v4668_v1 = vpack.c.bf16 %v12347_v55, %v12340_v57  ;;  %v4666_v22 = vpack.c.bf16 %v15345_v47, %v12328_v19  ;;  %v4694_v16 = vpack.c.bf16 %v12555_v20, %v12547_v32 }
 0xb0e   :  { %v4618_v38 = vadd.f32 %v12555_v20, %v4617_v29  ;;  %v4640_v0 = vadd.f32 %v12518_v35, %v4639_v59  ;;  %v12583_v35 = vpop.eup %8299  ;;  %8319 = vpow2.f32 %v4560_v30  ;;  %v4667_v29 = vpack.c.bf16 %v12465_v27, %v12462_v39 }
 0xb0f   :  { %v12586_v6 = vpop.eup %8301  ;;  %8321 = vpow2.f32 %v4576_v7  ;;  %v15347_v32 = vpack.c.bf16 %v12431_v41, %v12426_v52  ;;  %v15351_v7 = vld [vmem:[#allocation96_spill] sm:$0xff]  ;;  %v15352_v41 = vld [vmem:[#allocation30_spill] sm:$0xff] }
 0xb10   :  { %v4619_v18 = vadd.f32 %v12558_v13, %v4618_v38  ;;  %v4641_v58 = vadd.f32 %v12522_v23, %v4640_v0  ;;  %4705 = vmatpush1.bf16.msra.mxu1 %v4674_v5  ;;  %8323 = vpow2.f32 %v4580_v11  ;;  %v8304_v28 = vpop.eup %8303  ;;  %v4696_v38 = vpack.c.bf16 %v8298_v14, %v12558_v13  ;;  %v15353_v5 = vld [vmem:[#allocation28_spill] sm:$0xff] }
 0xb11   :  { %4706 = vmatprep.subr.bf16.mxu1 %v4673_v50  ;;  %8325 = vpow2.f32 %v4564_v31  ;;  %v8306_v17 = vpop.eup %8305  ;;  %v15346_v13 = vpack.c.bf16 %v12442_v2, %v12437_v48  ;;  %v4683_v52 = vpack.c.bf16 %v12586_v6, %v12583_v35  ;;  %v15357_v31 = vld [vmem:[#allocation95_spill] sm:$0xff] }
 0xb12   :  { %v12578_v56 = vadd.f32 %v8298_v14, %v4619_v18  ;;  %v4642_v4 = vadd.f32 %v12583_v35, %v4641_v58  ;;  %v4685_v2 = vpack.c.bf16 %v8306_v17, %v8304_v28  ;;  %v4682_v58 = vpack.c.bf16 %v15353_v5, %v15352_v41  ;;  %v15363_v35 = vld [vmem:[#allocation54_spill] sm:$0xff] }
 0xb14   :  { %v4643_v60 = vadd.f32 %v12586_v6, %v4642_v4  ;;  %4707 = vmatpush1.bf16.msra.mxu1 %v4672_v24  ;;  %v15358_v24 = vld [vmem:[#allocation49_spill] sm:$0xff]  ;;  %v15364_v6 = vld [vmem:[#allocation52_spill] sm:$0xff] }
 0xb15   :  { %4708 = vmatprep.subr.bf16.mxu1 %v4671_v36  ;;  %v8308_v15 = vpop.eup %8307 }
 0xb16   :  { %v4644_v23 = vadd.f32 %v8304_v28, %v4643_v60  ;;  %v8310_v40 = vpop.eup %8309  ;;  %v15359_v60 = vld [vmem:[#allocation51_spill] sm:$0xff]  ;;  %v15360_v28 = vld [vmem:[#allocation85_spill] sm:$0xff] }
 0xb17   :  { %v8312_v45 = vpop.eup %8311  ;;  %v4687_v20 = vpack.c.bf16 %v8310_v40, %v8308_v15  ;;  %v1021_v36 = vpack.c.bf16 %v15359_v60, %v15358_v24 }
 0xb18   :  { %v4645_v63 = vadd.f32 %v8306_v17, %v4644_v23  ;;  %4709 = vmatpush1.bf16.msra.mxu1 %v4670_v42  ;;  %v8314_v44 = vpop.eup %8313  ;;  %v15361_v23 = vld [vmem:[#allocation81_spill] sm:$0xff]  ;;  %v15365_v42 = vpack.c.bf16 %v15363_v35, %v15364_v6 }
 0xb19   :  { %4710 = vmatprep.subr.bf16.mxu1 %v4669_v9  ;;  %v8316_v8 = vpop.eup %8315  ;;  %v15362_v17 = vpack.c.bf16 %v15360_v28, %v15361_v23  ;;  %v15367_v9 = vld [vmem:[#allocation48_spill] sm:$0xff] }
 0xb1a   :  { %v4646_v26 = vadd.f32 %v8308_v15, %v4645_v63  ;;  %v8318_v21 = vpop.eup %8317  ;;  %v4697_v46 = vpack.c.bf16 %v8316_v8, %v8314_v44  ;;  %v15366_v63 = vld [vmem:[#allocation50_spill] sm:$0xff] }
 0xb1b   :  { %v8320_v61 = vpop.eup %8319  ;;  %v4689_v14 = vpack.c.bf16 %v8318_v21, %v8312_v45  ;;  %v15368_v15 = vpack.c.bf16 %v15366_v63, %v15367_v9 }
 0xb1c   :  { %v4647_v53 = vadd.f32 %v8310_v40, %v4646_v26  ;;  %4711 = vmatpush1.bf16.msra.mxu1 %v4668_v1  ;;  %v8322_v34 = vpop.eup %8321  ;;  %v15369_v40 = vld [vmem:[#allocation93_spill] sm:$0xff]  ;;  %v15372_v1 = vmov 0  }
 0xb1d   :  { %4712 = vmatprep.subr.bf16.mxu1 %v4667_v29  ;;  %v8324_v51 = vpop.eup %8323  ;;  %v15370_v26 = vld [vmem:[#allocation89_spill] sm:$0xff] }
 0xb1e   :  { %v4648_v12 = vadd.f32 %v8312_v45, %v4647_v53  ;;  %v8326_v55 = vpop.eup %8325  ;;  %v4695_v27 = vpack.c.bf16 %v8324_v51, %v8322_v34  ;;  %v15371_v45 = vpack.c.bf16 %v15369_v40, %v15370_v26 }
 0xb1f   :  { %v4691_v30 = vpack.c.bf16 %v8326_v55, %v8320_v61 }
 0xb20   :  { %v4649_v49 = vadd.f32 %v8318_v21, %v4648_v12  ;;  %4713 = vmatpush1.bf16.msra.mxu1 %v4666_v22  ;;  %v4811_v22 = vpop.trf.xlu0 }
 0xb21   :  { %4714 = vmatprep.subr.bf16.mxu1 %v4697_v46 }
 0xb22   :  { %v4650_v57 = vadd.f32 %v8320_v61, %v4649_v49 }
 0xb24   :  { %v4651_v39 = vadd.f32 %v8326_v55, %v4650_v57  ;;  %4715 = vmatpush2.bf16.msra.mxu1 %v4696_v38 }
 0xb25   :  { %4716 = vmatprep.subr.bf16.mxu1 %v4695_v27  ;;  %v15374_v27 = vld [vmem:[#allocation116_spill] sm:$0xff] }
 0xb26   :  { %v4652_v59 = vadd.f32 %v12564_v43, %v4651_v39  ;;  %v15348_v43 = vpack.c.bf16 %v12420_v33, %v12415_v37  ;;  %v15354_v37 = vld [vmem:[#allocation53_spill] sm:$0xff]  ;;  %v15355_v33 = vld [vmem:[#allocation55_spill] sm:$0xff] }
 0xb27   :  { %v1025_v50 = vpack.c.bf16 %v15355_v33, %v15354_v37  ;;  %v15373_v39 = vld [vmem:[#allocation113_spill] sm:$0xff] }
 0xb28   :  { %v4653_v19 = vadd.f32 %v12568_v3, %v4652_v59  ;;  %4717 = vmatpush2.bf16.msra.mxu1 %v4694_v16  ;;  %v15349_v3 = vld [vmem:[#allocation83_spill] sm:$0xff]  ;;  %v1093_v59 = vpack.c.bf16 %v15374_v27, %v15373_v39  ;;  %v4621_v16 = vrot.slane %v12578_v56, 4 }
 0xb29   :  { %4718 = vmatprep.subr.bf16.mxu1 %v4693_v25  ;;  %v4686_v48 = vpack.c.bf16 %v15349_v3, %v12478_v62  ;;  %v15350_v25 = vld [vmem:[#allocation100_spill] sm:$0xff]  ;;  %v15356_v62 = vld [vmem:[#allocation91_spill] sm:$0xff] }
 0xb2a   :  { %v4654_v54 = vadd.f32 %v8322_v34, %v4653_v19  ;;  %v4684_v11 = vpack.c.bf16 %v15351_v7, %v15350_v25  ;;  %v1081_v4 = vpack.c.bf16 %v15357_v31, %v15356_v62  ;;  %v4812_v34 = vpop.trf.xlu0 }
 0xb2c   :  { %v4655_v10 = vadd.f32 %v8324_v51, %v4654_v54  ;;  %4719 = vmatpush2.bf16.msra.mxu1 %v15346_v13  ;;  %v4622_v54 = vadd.f32 %v4621_v16, %v12578_v56 }
 0xb2d   :  { %4720 = vmatprep.subr.bf16.mxu1 %v4691_v30 }
 0xb2e   :  { %v4656_v18 = vadd.f32 %v8314_v44, %v4655_v10  ;;  %v4795_v44 = vpop.trf.xlu1  ;;  %v4813_v49 = vpop.trf.xlu0  ;;  %v4623_v30 = vrot.slane %v4622_v54, 2 }
 0xb30   :  { %v12614_v0 = vadd.f32 %v8316_v8, %v4656_v18  ;;  %4721 = vmatpush2.bf16.msra.mxu1 %v15347_v32  ;;  %v4624_v18 = vadd.f32 %v4623_v30, %v4622_v54 }
 0xb31   :  { %4722 = vmatprep.subr.bf16.mxu1 %v4689_v14 }
 0xb32   :  { %v4796_v53 = vpop.trf.xlu1  ;;  %v4814_v46 = vpop.trf.xlu0  ;;  %v4658_v19 = vrot.slane %v12614_v0, 4  ;;  %v4625_v32 = vrot.slane %v4624_v18, 1 }
 0xb34   :  { %4723 = vmatpush2.bf16.msra.mxu1 %v15348_v43  ;;  %v4659_v10 = vadd.f32 %v4658_v19, %v12614_v0  ;;  %v4626_v43 = vadd.f32 %v4625_v32, %v4624_v18 }
 0xb35   :  { %4724 = vmatprep.subr.bf16.mxu1 %v4687_v20 }
 0xb36   :  { %v4797_v29 = vpop.trf.xlu1  ;;  %v4815_v51 = vpop.trf.xlu0  ;;  %v4660_v13 = vrot.slane %v4659_v10, 2  ;;  %8327 = vrcp.f32 %v4626_v43 }
 0xb38   :  { %4725 = vmatpush2.bf16.msra.mxu1 %v4686_v48  ;;  %v4661_v14 = vadd.f32 %v4660_v13, %v4659_v10 }
 0xb39   :  { %4726 = vmatprep.subr.bf16.mxu1 %v4685_v2 }
 0xb3a   :  { %v4798_v8 = vpop.trf.xlu1  ;;  %v4816_v57 = vpop.trf.xlu0  ;;  %v4662_v20 = vrot.slane %v4661_v14, 1 }
 0xb3c   :  { %4727 = vmatpush2.bf16.msra.mxu1 %v4684_v11  ;;  %v4663_v3 = vadd.f32 %v4662_v20, %v4661_v14 }
 0xb3d   :  { %4728 = vmatprep.subr.bf16.mxu1 %v4683_v52 }
 0xb3e   :  { %v4799_v21 = vpop.trf.xlu1  ;;  %v4817_v55 = vpop.trf.xlu0  ;;  %8329 = vrcp.f32 %v4663_v3 }
 0xb40   :  { %4729 = vmatpush2.bf16.msra.mxu1 %v4682_v58 }
 0xb41   :  { %4879 = vmatprep.subr.bf16.mxu1 %v1025_v50 }
 0xb42   :  { %v4800_v12 = vpop.trf.xlu1  ;;  %v4818_v38 = vpop.trf.xlu0 }
 0xb43   :  { %4731 = vmatmul.mubr.bf16.vlgmr.msra.gmra.mxu1 %v15362_v17  ;;  %v8328_v48 = vpop.eup %8327 }
 0xb44   :  { %4740 = vmatprep.mubr.bf16.mxu1 %v1081_v4  ;;  %4880 = vmatpush1.bf16.msra.mxu1 %v15365_v42 }
 0xb45   :  { %4881 = vmatprep.subr.bf16.mxu1 %v1021_v36 }
 0xb46   :  { %v4801_v61 = vpop.trf.xlu1 }
 0xb48   :  { %4882 = vmatpush1.bf16.msra.mxu1 %v15368_v15 }
 0xb4a   :  { %v4802_v47 = vpop.trf.xlu1 }
 0xb4b   :  { %4741 = vmatmul.mubr.bf16.gmra.mxu1 %v15371_v45  ;;  %v8330_v7 = vpop.eup %8329 }
 0xb4c   :  { %4899 = vmatprep.mubr.bf16.mxu1 %v15372_v1 }
 0xb53   :  { %7503 = vmatmul.mubr.msk.bf16.vlgmr.msra.gmra.mxu1 %vm1138_vm2, %v4795_v44 }
 0xb54   :  { %4909 = vmatprep.mubr.bf16.mxu1 %v15372_v1 }
 0xb5b   :  { %7504 = vmatmul.mubr.msk.bf16.gmra.mxu1 %vm1138_vm2, %v4796_v53 }
 0xb5c   :  { %4919 = vmatprep.mubr.bf16.mxu1 %v15372_v1 }
 0xb63   :  { %7505 = vmatmul.mubr.msk.bf16.gmra.mxu1 %vm1138_vm2, %v4797_v29 }
 0xb64   :  { %4929 = vmatprep.mubr.bf16.mxu1 %v15372_v1 }
 0xb6b   :  { %7506 = vmatmul.mubr.msk.bf16.gmra.mxu1 %vm1138_vm2, %v4798_v8 }
 0xb6c   :  { %4939 = vmatprep.mubr.bf16.mxu1 %v15372_v1 }
 0xb73   :  { %7507 = vmatmul.mubr.msk.bf16.gmra.mxu1 %vm1138_vm2, %v4799_v21 }
 0xb74   :  { %4949 = vmatprep.mubr.bf16.mxu1 %v15372_v1 }
 0xb7b   :  { %7508 = vmatmul.mubr.msk.bf16.gmra.mxu1 %vm1138_vm2, %v4800_v12 }
 0xb7c   :  { %4959 = vmatprep.mubr.bf16.mxu1 %v15372_v1 }
 0xb83   :  { %7509 = vmatmul.mubr.msk.bf16.gmra.mxu1 %vm1138_vm2, %v4801_v61 }
 0xb84   :  { %4969 = vmatprep.mubr.bf16.mxu1 %v15372_v1 }
 0xb8b   :  { %7510 = vmatmul.mubr.msk.bf16.gmra.mxu1 %vm1138_vm2, %v4802_v47 }
 0xb8c   :  { %4979 = vmatprep.mubr.bf16.mxu1 %v15372_v1 }
 0xb93   :  { %7511 = vmatmul.mubr.msk.bf16.gmra.mxu1 %vm1138_vm2, %v4811_v22 }
 0xb94   :  { %4989 = vmatprep.mubr.bf16.mxu1 %v15372_v1 }
 0xb9b   :  { %7512 = vmatmul.mubr.msk.bf16.gmra.mxu1 %vm1138_vm2, %v4812_v34 }
 0xb9c   :  { %4999 = vmatprep.mubr.bf16.mxu1 %v15372_v1 }
 0xba3   :  { %7513 = vmatmul.mubr.msk.bf16.gmra.mxu1 %vm1138_vm2, %v4813_v49 }
 0xba4   :  { %5009 = vmatprep.mubr.bf16.mxu1 %v15372_v1 }
 0xbab   :  { %7514 = vmatmul.mubr.msk.bf16.gmra.mxu1 %vm1138_vm2, %v4814_v46 }
 0xbac   :  { %5019 = vmatprep.mubr.bf16.mxu1 %v15372_v1 }
 0xbb3   :  { %7515 = vmatmul.mubr.msk.bf16.gmra.mxu1 %vm1138_vm2, %v4815_v51 }
 0xbb4   :  { %5029 = vmatprep.mubr.bf16.mxu1 %v15372_v1 }
 0xbbb   :  { %7516 = vmatmul.mubr.msk.bf16.gmra.mxu1 %vm1138_vm2, %v4816_v57 }
 0xbbc   :  { %5039 = vmatprep.mubr.bf16.mxu1 %v15372_v1 }
 0xbc3   :  { %7517 = vmatmul.mubr.msk.bf16.gmra.mxu1 %vm1138_vm2, %v4817_v55 }
 0xbc4   :  { %5049 = vmatprep.mubr.bf16.mxu1 %v15372_v1 }
 0xbcb   :  { %7518 = vmatmul.mubr.msk.bf16.gmra.mxu1 %vm1138_vm2, %v4818_v38 }
 0xbcc   :  { %6202 = vmatprep.mubr.bf16.mxu1 %v1093_v59 }
 0xc03   :  { %v4732_v2 = vpop.f32.mrf.mxu1 }
 0xc04   :  { %v12686_v25 = vmul.f32 %v8328_v48, %v4732_v2 }
 0xc05   :  { %v4734_v11 = vpop.f32.mrf.mxu1 }
 0xc06   :  { %15375 = vst [vmem:[#allocation87_spill] sm:$0xff] %v12686_v25  ;;  %v12688_v52 = vmul.f32 %v8330_v7, %v4734_v11 }
 0xc07   :  { %v4736_v56 = vpop.f32.mrf.mxu1 }
 0xc08   :  { %15376 = vst [vmem:[#allocation23_spill] sm:$0xff] %v12688_v52  ;;  %v12690_v0 = vmul.f32 %v8328_v48, %v4736_v56 }
 0xc09   :  { %v4738_v41 = vpop.f32.mrf.mxu1 }
 0xc0a   :  { %15377 = vst [vmem:[#allocation26_spill] sm:$0xff] %v12690_v0  ;;  %v12694_v58 = vmul.f32 %v8330_v7, %v4738_v41 }
 0xc0b   :  { %v4742_v37 = vpop.f32.mrf.mxu1 }
 0xc0c   :  { %15378 = vst [vmem:[#allocation24_spill] sm:$0xff] %v12694_v58  ;;  %v12698_v50 = vmul.f32 %v8328_v48, %v4742_v37 }
 0xc0d   :  { %v4744_v62 = vpop.f32.mrf.mxu1 }
 0xc0e   :  { %15379 = vst [vmem:[#allocation22_spill] sm:$0xff] %v12698_v50  ;;  %v12700_v31 = vmul.f32 %v8330_v7, %v4744_v62 }
 0xc0f   :  { %v4746_v4 = vpop.f32.mrf.mxu1 }
 0xc10   :  { %15380 = vst [vmem:[#allocation20_spill] sm:$0xff] %v12700_v31  ;;  %v12702_v24 = vmul.f32 %v8328_v48, %v4746_v4 }
 0xc11   :  { %v4748_v60 = vpop.f32.mrf.mxu1 }
 0xc12   :  { %15381 = vst [vmem:[#allocation84_spill] sm:$0xff] %v12702_v24  ;;  %v12706_v28 = vmul.f32 %v8330_v7, %v4748_v60 }
 0xc13   :  { %v12708_v23 = vpop.f32.mrf.mxu1 }
 0xc14   :  { %15382 = vst [vmem:[#allocation80_spill] sm:$0xff] %v12706_v28 }
 0xc15   :  { %v12712_v35 = vpop.f32.mrf.mxu1 }
 0xc17   :  { %v12714_v6 = vpop.f32.mrf.mxu1 }
 0xc19   :  { %v12716_v42 = vpop.f32.mrf.mxu1 }
 0xc1b   :  { %v12718_v63 = vpop.f32.mrf.mxu1 }
 0xc1c   :  { %v5060_v4 = vmax.f32 %v12708_v23, %v12718_v63 }
 0xc1d   :  { %v12720_v9 = vpop.f32.mrf.mxu1 }
 0xc1f   :  { %v12722_v15 = vpop.f32.mrf.mxu1 }
 0xc20   :  { %v5061_v60 = vmax.f32 %v12714_v6, %v12722_v15 }
 0xc21   :  { %v12724_v40 = vpop.f32.mrf.mxu1 }
 0xc22   :  { %15383 = vst [vmem:[#allocation82_spill] sm:$0xff] %v12724_v40 }
 0xc23   :  { %v12726_v26 = vpop.f32.mrf.mxu1 }
 0xc24   :  { %v5062_v33 = vmax.f32 %v5060_v4, %v12726_v26 }
 0xc25   :  { %v12728_v45 = vpop.f32.mrf.mxu1 }
 0xc27   :  { %v12730_v44 = vpop.f32.mrf.mxu1 }
 0xc28   :  { %v5063_v36 = vmax.f32 %v5061_v60, %v12730_v44 }
 0xc29   :  { %v12732_v53 = vpop.f32.mrf.mxu1 }
 0xc2a   :  { %15384 = vst [vmem:[#allocation106_spill] sm:$0xff] %v12732_v53 }
 0xc2b   :  { %v12734_v29 = vpop.f32.mrf.mxu1 }
 0xc2c   :  { %v5064_v25 = vmax.f32 %v5062_v33, %v12734_v29 }
 0xc2d   :  { %v12736_v8 = vpop.f32.mrf.mxu1 }
 0xc2f   :  { %v12738_v21 = vpop.f32.mrf.mxu1 }
 0xc30   :  { %v5065_v0 = vmax.f32 %v5063_v36, %v12738_v21 }
 0xc31   :  { %v12740_v12 = vpop.f32.mrf.mxu1 }
 0xc32   :  { %15385 = vst [vmem:[#allocation86_spill] sm:$0xff] %v12740_v12 }
 0xc33   :  { %v12742_v61 = vpop.f32.mrf.mxu1 }
 0xc34   :  { %15386 = vst [vmem:[#allocation21_spill] sm:$0xff] %v12742_v61  ;;  %v5066_v58 = vmax.f32 %v5064_v25, %v12742_v61 }
 0xc35   :  { %v12744_v47 = vpop.f32.mrf.mxu1 }
 0xc36   :  { %15387 = vst [vmem:[#allocation79_spill] sm:$0xff] %v12744_v47 }
 0xc37   :  { %v12746_v22 = vpop.f32.mrf.mxu1 }
 0xc38   :  { %v5067_v50 = vmax.f32 %v5065_v0, %v12746_v22 }
 0xc39   :  { %v12748_v34 = vpop.f32.mrf.mxu1 }
 0xc3a   :  { %15388 = vst [vmem:[#allocation78_spill] sm:$0xff] %v12748_v34 }
 0xc3b   :  { %v12750_v49 = vpop.f32.mrf.mxu1 }
 0xc3c   :  { %15389 = vst [vmem:[#allocation141_spill] sm:$0xff] %v12750_v49  ;;  %v5068_v31 = vmax.f32 %v5066_v58, %v12750_v49 }
 0xc3d   :  { %v12752_v46 = vpop.f32.mrf.mxu1 }
 0xc3f   :  { %v12754_v51 = vpop.f32.mrf.mxu1 }
 0xc40   :  { %v5069_v4 = vmax.f32 %v5067_v50, %v12754_v51 }
 0xc41   :  { %v12756_v57 = vpop.f32.mrf.mxu1 }
 0xc43   :  { %v12758_v55 = vpop.f32.mrf.mxu1 }
 0xc44   :  { %15390 = vst [vmem:[#allocation140_spill] sm:$0xff] %v12758_v55  ;;  %v5070_v60 = vmax.f32 %v5068_v31, %v12758_v55 }
 0xc45   :  { %v12760_v38 = vpop.f32.mrf.mxu1 }
 0xc47   :  { %v12762_v39 = vpop.f32.mrf.mxu1 }
 0xc48   :  { %v5071_v33 = vmax.f32 %v5069_v4, %v12762_v39  ;;  %v5098_v4 = vmax.f32 %v12716_v42, %v12724_v40 }
 0xc49   :  { %v12764_v27 = vpop.f32.mrf.mxu1 }
 0xc4b   :  { %v12766_v59 = vpop.f32.mrf.mxu1 }
 0xc4c   :  { %v5072_v36 = vmax.f32 %v5070_v60, %v12766_v59 }
 0xc4d   :  { %v12768_v16 = vpop.f32.mrf.mxu1 }
 0xc4f   :  { %v12770_v19 = vpop.f32.mrf.mxu1 }
 0xc50   :  { %15391 = vst [vmem:[#allocation152_spill] sm:$0xff] %v12770_v19  ;;  %v5073_v25 = vmax.f32 %v5071_v33, %v12770_v19 }
 0xc51   :  { %v12772_v54 = vpop.f32.mrf.mxu1 }
 0xc53   :  { %v12774_v10 = vpop.f32.mrf.mxu1 }
 0xc54   :  { %v5074_v0 = vmax.f32 %v5072_v36, %v12774_v10  ;;  %v5097_v36 = vmax.f32 %v12712_v35, %v12720_v9 }
 0xc55   :  { %v12776_v30 = vpop.f32.mrf.mxu1 }
 0xc57   :  { %v12778_v13 = vpop.f32.mrf.mxu1 }
 0xc58   :  { %v5075_v58 = vmax.f32 %v5073_v25, %v12778_v13  ;;  %v5100_v25 = vmax.f32 %v5098_v4, %v12732_v53 }
 0xc59   :  { %v12780_v18 = vpop.f32.mrf.mxu1 }
 0xc5a   :  { %v5102_v40 = vmax.f32 %v5100_v25, %v12740_v12 }
 0xc5b   :  { %v12782_v14 = vpop.f32.mrf.mxu1 }
 0xc5c   :  { %15392 = vst [vmem:[#allocation17_spill] sm:$0xff] %v12782_v14  ;;  %v5076_v50 = vmax.f32 %v5074_v0, %v12782_v14  ;;  %v5099_v14 = vmax.f32 %v5097_v36, %v12728_v45  ;;  %v5104_v4 = vmax.f32 %v5102_v40, %v12748_v34 }
 0xc5d   :  { %v12784_v32 = vpop.f32.mrf.mxu1 }
 0xc5e   :  { %v5106_v25 = vmax.f32 %v5104_v4, %v12756_v57 }
 0xc5f   :  { %v12786_v20 = vpop.f32.mrf.mxu1 }
 0xc60   :  { %15393 = vst [vmem:[#allocation137_spill] sm:$0xff] %v12786_v20  ;;  %v5077_v31 = vmax.f32 %v5075_v58, %v12786_v20  ;;  %v5108_v40 = vmax.f32 %v5106_v25, %v12764_v27 }
 0xc61   :  { %v12788_v43 = vpop.f32.mrf.mxu1 }
 0xc63   :  { %v12790_v3 = vpop.f32.mrf.mxu1 }
 0xc64   :  { %15394 = vst [vmem:[#allocation15_spill] sm:$0xff] %v12790_v3  ;;  %v5078_v60 = vmax.f32 %v5076_v50, %v12790_v3  ;;  %v5101_v3 = vmax.f32 %v5099_v14, %v12736_v8 }
 0xc65   :  { %v12792_v48 = vpop.f32.mrf.mxu1 }
 0xc66   :  { %v5103_v36 = vmax.f32 %v5101_v3, %v12744_v47  ;;  %v5110_v3 = vmax.f32 %v5108_v40, %v12772_v54 }
 0xc67   :  { %v12794_v2 = vpop.f32.mrf.mxu1 }
 0xc68   :  { %15395 = vst [vmem:[#allocation77_spill] sm:$0xff] %v12794_v2  ;;  %v5079_v33 = vmax.f32 %v5077_v31, %v12794_v2  ;;  %v5105_v14 = vmax.f32 %v5103_v36, %v12752_v46 }
 0xc69   :  { %v12796_v7 = vpop.f32.mrf.mxu1 }
 0xc6a   :  { %v5107_v34 = vmax.f32 %v5105_v14, %v12760_v38 }
 0xc6b   :  { %v12798_v11 = vpop.f32.mrf.mxu1 }
 0xc6c   :  { %v5080_v0 = vmax.f32 %v5078_v60, %v12798_v11  ;;  %v5109_v4 = vmax.f32 %v5107_v34, %v12768_v16 }
 0xc6d   :  { %v12800_v56 = vpop.f32.mrf.mxu1 }
 0xc6f   :  { %v12802_v41 = vpop.f32.mrf.mxu1 }
 0xc70   :  { %v5081_v58 = vmax.f32 %v5079_v33, %v12802_v41 }
 0xc71   :  { %v12804_v37 = vpop.f32.mrf.mxu1 }
 0xc73   :  { %v12806_v62 = vpop.f32.mrf.mxu1 }
 0xc74   :  { %v5082_v50 = vmax.f32 %v5080_v0, %v12806_v62 }
 0xc75   :  { %v12812_v5 = vpop.f32.mrf.mxu1 }
 0xc77   :  { %v12816_v17 = vpop.f32.mrf.mxu1 }
 0xc78   :  { %v5083_v31 = vmax.f32 %v5081_v58, %v12816_v17 }
 0xc79   :  { %v12820_v52 = vpop.f32.mrf.mxu1 }
 0xc7b   :  { %v12824_v24 = vpop.f32.mrf.mxu1 }
 0xc7c   :  { %v5084_v60 = vmax.f32 %v5082_v50, %v12824_v24 }
 0xc7d   :  { %v12828_v28 = vpop.f32.mrf.mxu1 }
 0xc7f   :  { %v12832_v1 = vpop.f32.mrf.mxu1 }
 0xc80   :  { %v5085_v33 = vmax.f32 %v5083_v31, %v12832_v1 }
 0xc81   :  { %v12836_v61 = vpop.f32.mrf.mxu1 }
 0xc83   :  { %v12840_v49 = vpop.f32.mrf.mxu1 }
 0xc84   :  { %15396 = vst [vmem:[#allocation13_spill] sm:$0xff] %v12840_v49  ;;  %v5086_v0 = vmax.f32 %v5084_v60, %v12840_v49  ;;  %v5112_v60 = vmax.f32 %v5110_v3, %v12780_v18 }
 0xc85   :  { %v12844_v55 = vpop.f32.mrf.mxu1 }
 0xc86   :  { %v5114_v36 = vmax.f32 %v5112_v60, %v12788_v43 }
 0xc87   :  { %v12850_v19 = vpop.f32.mrf.mxu1 }
 0xc88   :  { %15397 = vst [vmem:[#allocation19_spill] sm:$0xff] %v12850_v19  ;;  %v5087_v58 = vmax.f32 %v5085_v33, %v12850_v19  ;;  %v5111_v19 = vmax.f32 %v5109_v4, %v12776_v30 }
 0xc89   :  { %v12857_v20 = vpop.f32.mrf.mxu1 }
 0xc8a   :  { %v5113_v25 = vmax.f32 %v5111_v19, %v12784_v32 }
 0xc8b   :  { %v12863_v2 = vpop.f32.mrf.mxu1 }
 0xc8c   :  { %v5088_v50 = vmax.f32 %v5086_v0, %v12863_v2  ;;  %v5116_v0 = vmax.f32 %v5114_v36, %v12796_v7  ;;  %v5115_v14 = vmax.f32 %v5113_v25, %v12792_v48 }
 0xc8d   :  { %v12869_v53 = vpop.f32.mrf.mxu1 }
 0xc8e   :  { %v5118_v40 = vmax.f32 %v5116_v0, %v12804_v37  ;;  %v5117_v34 = vmax.f32 %v5115_v14, %v12800_v56 }
 0xc8f   :  { %v12875_v12 = vpop.f32.mrf.mxu1 }
 0xc90   :  { %v5089_v31 = vmax.f32 %v5087_v58, %v12875_v12  ;;  %v5119_v4 = vmax.f32 %v5117_v34, %v12812_v5 }
 0xc92   :  { %v5090_v47 = vmax.f32 %v5088_v50, %v5089_v31  ;;  %v5120_v31 = vmax.f32 %v5118_v40, %v12820_v52  ;;  %v5121_v19 = vmax.f32 %v5119_v4, %v12828_v28 }
 0xc94   :  { %v5091_v33 = vrot.slane %v5090_v47, 4  ;;  %v5122_v60 = vmax.f32 %v5120_v31, %v12836_v61  ;;  %v5123_v25 = vmax.f32 %v5121_v19, %v12844_v55 }
 0xc96   :  { %v5092_v49 = vmax.f32 %v5090_v47, %v5091_v33  ;;  %v12895_v47 = vpop.f32.mrf.mxu1  ;;  %v5124_v33 = vmax.f32 %v5122_v60, %v12857_v20  ;;  %v5125_v0 = vmax.f32 %v5123_v25, %v12869_v53 }
 0xc98   :  { %v5093_v58 = vrot.slane %v5092_v49, 2 }
 0xc9a   :  { %v5094_v50 = vmax.f32 %v5092_v49, %v5093_v58  ;;  %v5126_v49 = vmax.f32 %v5124_v33, %v12895_v47 }
 0xc9c   :  { %v5095_v3 = vrot.slane %v5094_v50, 1  ;;  %v5127_v34 = vmax.f32 %v5125_v0, %v5126_v49 }
 0xc9e   :  { %v12899_v36 = vmax.f32 %v5094_v50, %v5095_v3  ;;  %v5128_v19 = vrot.slane %v5127_v34, 4 }
 0xca0   :  { %v5134_v58 = vsub.f32 %v12708_v23, %v12899_v36  ;;  %v5136_v14 = vsub.f32 %v12714_v6, %v12899_v36  ;;  %v5138_v40 = vsub.f32 %v12718_v63, %v12899_v36  ;;  %v5140_v50 = vsub.f32 %v12722_v15, %v12899_v36 }
 0xca1   :  { %v5142_v4 = vsub.f32 %v12726_v26, %v12899_v36  ;;  %v5144_v23 = vsub.f32 %v12730_v44, %v12899_v36  ;;  %v5146_v63 = vsub.f32 %v12734_v29, %v12899_v36  ;;  %v5129_v25 = vmax.f32 %v5127_v34, %v5128_v19  ;;  %v15398_v26 = vld [vmem:[#allocation21_spill] sm:$0xff] }
 0xca2   :  { %v5198_v31 = vmul.f32 1.442695, %v5134_v58  ;;  %v5202_v3 = vmul.f32 1.442695, %v5136_v14  ;;  %v5206_v60 = vmul.f32 1.442695, %v5138_v40  ;;  %v5148_v15 = vsub.f32 %v12738_v21, %v12899_v36 }
 0xca3   :  { %v5210_v6 = vmul.f32 1.442695, %v5140_v50  ;;  %v5214_v33 = vmul.f32 1.442695, %v5142_v4  ;;  %v5218_v49 = vmul.f32 1.442695, %v5144_v23  ;;  %v5150_v0 = vsub.f32 %v15398_v26, %v12899_v36 }
 0xca4   :  { %8331 = vpow2.f32 %v5198_v31  ;;  %v5222_v58 = vmul.f32 1.442695, %v5146_v63  ;;  %v5152_v44 = vsub.f32 %v12746_v22, %v12899_v36  ;;  %v5130_v14 = vrot.slane %v5129_v25, 2  ;;  %v15399_v40 = vld [vmem:[#allocation141_spill] sm:$0xff]  ;;  %v15400_v21 = vld [vmem:[#allocation140_spill] sm:$0xff] }
 0xca5   :  { %8333 = vpow2.f32 %v5202_v3  ;;  %v5154_v29 = vsub.f32 %v15399_v40, %v12899_v36  ;;  %v5226_v50 = vmul.f32 1.442695, %v5148_v15  ;;  %v5156_v34 = vsub.f32 %v12754_v51, %v12899_v36 }
 0xca6   :  { %8335 = vpow2.f32 %v5206_v60  ;;  %v5158_v31 = vsub.f32 %v15400_v21, %v12899_v36  ;;  %v5230_v3 = vmul.f32 1.442695, %v5150_v0  ;;  %v5160_v4 = vsub.f32 %v12762_v39, %v12899_v36 }
 0xca7   :  { %8337 = vpow2.f32 %v5210_v6  ;;  %v5234_v60 = vmul.f32 1.442695, %v5152_v44  ;;  %v5131_v19 = vmax.f32 %v5129_v25, %v5130_v14  ;;  %v5162_v23 = vsub.f32 %v12766_v59, %v12899_v36 }
 0xca8   :  { %8339 = vpow2.f32 %v5214_v33  ;;  %v5238_v6 = vmul.f32 1.442695, %v5154_v29  ;;  %v5178_v51 = vsub.f32 %v12798_v11, %v12899_v36  ;;  %v5242_v33 = vmul.f32 1.442695, %v5156_v34 }
 0xca9   :  { %8341 = vpow2.f32 %v5218_v49  ;;  %v5180_v15 = vsub.f32 %v12802_v41, %v12899_v36  ;;  %v5246_v39 = vmul.f32 1.442695, %v5158_v31  ;;  %v5182_v59 = vsub.f32 %v12806_v62, %v12899_v36 }
 0xcaa   :  { %8343 = vpow2.f32 %v5222_v58  ;;  %v5250_v26 = vmul.f32 1.442695, %v5160_v4  ;;  %v5132_v0 = vrot.slane %v5131_v19, 1  ;;  %v5184_v11 = vsub.f32 %v12816_v17, %v12899_v36  ;;  %v15402_v17 = vld [vmem:[#allocation152_spill] sm:$0xff] }
 0xcab   :  { %8345 = vpow2.f32 %v5226_v50  ;;  %v5254_v58 = vmul.f32 1.442695, %v5162_v23  ;;  %v5186_v14 = vsub.f32 %v12824_v24, %v12899_v36  ;;  %v5286_v40 = vmul.f32 1.442695, %v5178_v51  ;;  %v15403_v51 = vld [vmem:[#allocation17_spill] sm:$0xff] }
 0xcac   :  { %8347 = vpow2.f32 %v5230_v3  ;;  %v5188_v62 = vsub.f32 %v12832_v1, %v12899_v36  ;;  %v5290_v29 = vmul.f32 1.442695, %v5180_v15  ;;  %v5164_v21 = vsub.f32 %v15402_v17, %v12899_v36 }
 0xcad   :  { %8349 = vpow2.f32 %v5234_v60  ;;  %v5294_v31 = vmul.f32 1.442695, %v5182_v59  ;;  %v12962_v3 = vmax.f32 %v5131_v19, %v5132_v0  ;;  %v5166_v24 = vsub.f32 %v12774_v10, %v12899_v36 }
 0xcae   :  { %8351 = vpow2.f32 %v5238_v6  ;;  %v5298_v4 = vmul.f32 1.442695, %v5184_v11  ;;  %v5168_v23 = vsub.f32 %v12778_v13, %v12899_v36  ;;  %v5302_v6 = vmul.f32 1.442695, %v5186_v14  ;;  %v15404_v11 = vld [vmem:[#allocation137_spill] sm:$0xff] }
 0xcaf   :  { %8353 = vpow2.f32 %v5242_v33  ;;  %v5170_v33 = vsub.f32 %v15403_v51, %v12899_v36  ;;  %v5306_v19 = vmul.f32 1.442695, %v5188_v62  ;;  %v5258_v10 = vmul.f32 1.442695, %v5164_v21 }
 0xcb0   :  { %8355 = vpow2.f32 %v5246_v39  ;;  %v5262_v59 = vmul.f32 1.442695, %v5166_v24 }
 0xcb1   :  { %v12932_v22 = vpop.eup %8331  ;;  %8357 = vpow2.f32 %v5250_v26  ;;  %v5137_v26 = vsub.f32 %v12716_v42, %v12962_v3  ;;  %v5270_v14 = vmul.f32 1.442695, %v5170_v33 }
 0xcb2   :  { %v12936_v63 = vpop.eup %8333  ;;  %8359 = vpow2.f32 %v5254_v58  ;;  %v5172_v58 = vsub.f32 %v15404_v11, %v12899_v36 }
 0xcb3   :  { %15401 = vst [vmem:[#allocation75_spill] sm:$0xff] %v12936_v63  ;;  %v5326_v25 = vadd.f32 %v12936_v63, %v12932_v22  ;;  %v12944_v49 = vpop.eup %8335  ;;  %8361 = vpow2.f32 %v5286_v40 }
 0xcb4   :  { %v12951_v44 = vpop.eup %8337  ;;  %8363 = vpow2.f32 %v5290_v29  ;;  %v15405_v29 = vld [vmem:[#allocation15_spill] sm:$0xff] }
 0xcb5   :  { %v5327_v41 = vadd.f32 %v12944_v49, %v5326_v25  ;;  %v12958_v34 = vpop.eup %8339  ;;  %8365 = vpow2.f32 %v5294_v31  ;;  %v5135_v25 = vsub.f32 %v12712_v35, %v12962_v3  ;;  %v5139_v35 = vsub.f32 %v12720_v9, %v12962_v3  ;;  %v15406_v31 = vld [vmem:[#allocation82_spill] sm:$0xff]  ;;  %v15407_v9 = vld [vmem:[#allocation77_spill] sm:$0xff] }
 0xcb6   :  { %v12967_v60 = vpop.eup %8341  ;;  %8367 = vpow2.f32 %v5298_v4  ;;  %v5141_v24 = vsub.f32 %v15406_v31, %v12962_v3  ;;  %v5204_v4 = vmul.f32 1.442695, %v5137_v26 }
 0xcb7   :  { %v5328_v50 = vadd.f32 %v12951_v44, %v5327_v41  ;;  %v12974_v39 = vpop.eup %8343  ;;  %v5266_v41 = vmul.f32 1.442695, %v5168_v23  ;;  %8369 = vpow2.f32 %v5302_v6  ;;  %v5200_v42 = vmul.f32 1.442695, %v5135_v25 }
 0xcb8   :  { %v12981_v0 = vpop.eup %8345  ;;  %8371 = vpow2.f32 %v5306_v19  ;;  %v5176_v23 = vsub.f32 %v15407_v9, %v12899_v36  ;;  %v5274_v6 = vmul.f32 1.442695, %v5172_v58  ;;  %v5143_v19 = vsub.f32 %v12728_v45, %v12962_v3 }
 0xcb9   :  { %v5329_v1 = vadd.f32 %v12958_v34, %v5328_v50  ;;  %v12988_v62 = vpop.eup %8347  ;;  %v5174_v50 = vsub.f32 %v15405_v29, %v12899_v36  ;;  %8373 = vpow2.f32 %v5258_v10  ;;  %v5147_v58 = vsub.f32 %v12736_v8, %v12962_v3 }
 0xcba   :  { %v12992_v17 = vpop.eup %8349  ;;  %8375 = vpow2.f32 %v5262_v59  ;;  %v15408_v59 = vld [vmem:[#allocation106_spill] sm:$0xff]  ;;  %v5282_v45 = vmul.f32 1.442695, %v5176_v23  ;;  %v5216_v31 = vmul.f32 1.442695, %v5143_v19  ;;  %v5159_v8 = vsub.f32 %v12760_v38, %v12962_v3 }
 0xcbb   :  { %v5330_v15 = vadd.f32 %v12967_v60, %v5329_v1  ;;  %v12997_v1 = vpop.eup %8351  ;;  %8377 = vpow2.f32 %v5266_v41  ;;  %v5278_v25 = vmul.f32 1.442695, %v5174_v50  ;;  %v5212_v41 = vmul.f32 1.442695, %v5141_v24 }
 0xcbc   :  { %v13001_v51 = vpop.eup %8353  ;;  %8379 = vpow2.f32 %v5270_v14  ;;  %v5161_v24 = vsub.f32 %v12764_v27, %v12962_v3  ;;  %v5165_v38 = vsub.f32 %v12772_v54, %v12962_v3 }
 0xcbd   :  { %v5331_v13 = vadd.f32 %v12974_v39, %v5330_v15  ;;  %v5208_v15 = vmul.f32 1.442695, %v5139_v35  ;;  %v13006_v10 = vpop.eup %8355  ;;  %8381 = vpow2.f32 %v5200_v42  ;;  %v15410_v42 = vld [vmem:[#allocation79_spill] sm:$0xff] }
 0xcbe   :  { %v13010_v26 = vpop.eup %8357  ;;  %8383 = vpow2.f32 %v5204_v4 }
 0xcbf   :  { %v5332_v40 = vadd.f32 %v12981_v0, %v5331_v13  ;;  %v5145_v13 = vsub.f32 %v15408_v59, %v12962_v3  ;;  %v13015_v14 = vpop.eup %8359  ;;  %8385 = vpow2.f32 %v5274_v6 }
 0xcc0   :  { %v13019_v29 = vpop.eup %8361  ;;  %8387 = vpow2.f32 %v5208_v15 }
 0xcc1   :  { %v5333_v21 = vadd.f32 %v12988_v62, %v5332_v40  ;;  %v15409_v40 = vld [vmem:[#allocation86_spill] sm:$0xff]  ;;  %v13024_v9 = vpop.eup %8363  ;;  %8389 = vpow2.f32 %v5278_v25  ;;  %v5220_v4 = vmul.f32 1.442695, %v5145_v13  ;;  %v5163_v25 = vsub.f32 %v12768_v16, %v12962_v3 }
 0xcc2   :  { %v5149_v35 = vsub.f32 %v15409_v40, %v12962_v3  ;;  %v13030_v23 = vpop.eup %8365  ;;  %8391 = vpow2.f32 %v5212_v41  ;;  %v5248_v16 = vmul.f32 1.442695, %v5159_v8 }
 0xcc3   :  { %v5334_v33 = vadd.f32 %v12992_v17, %v5333_v21  ;;  %v5151_v21 = vsub.f32 %v15410_v42, %v12962_v3  ;;  %v13035_v19 = vpop.eup %8367  ;;  %8393 = vpow2.f32 %v5282_v45  ;;  %v15411_v45 = vld [vmem:[#allocation78_spill] sm:$0xff] }
 0xcc4   :  { %v5228_v27 = vmul.f32 1.442695, %v5149_v35  ;;  %v13041_v59 = vpop.eup %8369  ;;  %8395 = vpow2.f32 %v5216_v31  ;;  %v5153_v40 = vsub.f32 %v15411_v45, %v12962_v3  ;;  %v5252_v35 = vmul.f32 1.442695, %v5161_v24 }
 0xcc5   :  { %v5335_v11 = vadd.f32 %v12997_v1, %v5334_v33  ;;  %v5224_v33 = vmul.f32 1.442695, %v5147_v58  ;;  %v13046_v41 = vpop.eup %8371  ;;  %8397 = vpow2.f32 %v5220_v4  ;;  %v5155_v31 = vsub.f32 %v12752_v46, %v12962_v3 }
 0xcc6   :  { %v5157_v4 = vsub.f32 %v12756_v57, %v12962_v3  ;;  %v5236_v58 = vmul.f32 1.442695, %v5153_v40  ;;  %v15417_v40 = vld [vmem:[#allocation19_spill] sm:$0xff] }
 0xcc7   :  { %v5336_v50 = vadd.f32 %v13001_v51, %v5335_v11  ;;  %v5232_v11 = vmul.f32 1.442695, %v5151_v21  ;;  %8399 = vpow2.f32 %v5224_v33  ;;  %v5260_v33 = vmul.f32 1.442695, %v5165_v38 }
 0xcc8   :  { %8401 = vpow2.f32 %v5228_v27  ;;  %v5244_v38 = vmul.f32 1.442695, %v5157_v4 }
 0xcc9   :  { %v5337_v6 = vadd.f32 %v13006_v10, %v5336_v50  ;;  %v13050_v50 = vpop.eup %8373  ;;  %8403 = vpow2.f32 %v5232_v11 }
 0xcca   :  { %v13055_v21 = vpop.eup %8375  ;;  %8405 = vpow2.f32 %v5248_v16 }
 0xccb   :  { %v5338_v13 = vadd.f32 %v13010_v26, %v5337_v6  ;;  %15412 = vst [vmem:[#allocation45_spill] sm:$0xff] %v13055_v21  ;;  %v5256_v6 = vmul.f32 1.442695, %v5163_v25  ;;  %v13059_v15 = vpop.eup %8377  ;;  %8407 = vpow2.f32 %v5252_v35  ;;  %v15415_v25 = vld [vmem:[#allocation13_spill] sm:$0xff]  ;;  %v5192_v35 = vsub.f32 %v15417_v40, %v12899_v36 }
 0xccc   :  { %15413 = vst [vmem:[#allocation47_spill] sm:$0xff] %v13059_v15  ;;  %v13064_v24 = vpop.eup %8379  ;;  %v5190_v27 = vsub.f32 %v15415_v25, %v12899_v36  ;;  %v5187_v25 = vsub.f32 %v12828_v28, %v12962_v3 }
 0xccd   :  { %v5339_v54 = vadd.f32 %v13015_v14, %v5338_v13  ;;  %15414 = vst [vmem:[#allocation35_spill] sm:$0xff] %v13064_v24  ;;  %v13066_v13 = vpop.eup %8381  ;;  %8409 = vpow2.f32 %v5256_v6 }
 0xcce   :  { %v13069_v46 = vpop.eup %8383  ;;  %8411 = vpow2.f32 %v5260_v33  ;;  %v5310_v33 = vmul.f32 1.442695, %v5190_v27  ;;  %v5196_v27 = vsub.f32 %v12875_v12, %v12899_v36 }
 0xccf   :  { %v5340_v8 = vadd.f32 %v13050_v50, %v5339_v54  ;;  %v5240_v54 = vmul.f32 1.442695, %v5155_v31  ;;  %v13073_v42 = vpop.eup %8385  ;;  %v5363_v11 = vadd.f32 %v13069_v46, %v13066_v13  ;;  %v5194_v31 = vsub.f32 %v12863_v2, %v12899_v36 }
 0xcd0   :  { %15416 = vst [vmem:[#allocation39_spill] sm:$0xff] %v13073_v42  ;;  %v13078_v16 = vpop.eup %8387  ;;  %8413 = vpow2.f32 %v5236_v58  ;;  %v5169_v36 = vsub.f32 %v12780_v18, %v12962_v3 }
 0xcd1   :  { %v5341_v45 = vadd.f32 %v13055_v21, %v5340_v8  ;;  %v13082_v8 = vpop.eup %8389  ;;  %8415 = vpow2.f32 %v5240_v54  ;;  %v5189_v21 = vsub.f32 %v12836_v61, %v12962_v3  ;;  %v5318_v28 = vmul.f32 1.442695, %v5194_v31 }
 0xcd2   :  { %v13088_v4 = vpop.eup %8391  ;;  %8417 = vpow2.f32 %v5244_v38  ;;  %v5167_v61 = vsub.f32 %v12776_v30, %v12962_v3  ;;  %v5304_v38 = vmul.f32 1.442695, %v5187_v25 }
 0xcd3   :  { %v5342_v57 = vadd.f32 %v13059_v15, %v5341_v45  ;;  %v5364_v45 = vadd.f32 %v13078_v16, %v5363_v11  ;;  %v13092_v15 = vpop.eup %8393  ;;  %8419 = vpow2.f32 %v5310_v33  ;;  %v5171_v33 = vsub.f32 %v12784_v32, %v12962_v3 }
 0xcd4   :  { %15418 = vst [vmem:[#allocation41_spill] sm:$0xff] %v13092_v15  ;;  %v13098_v58 = vpop.eup %8395 }
 0xcd5   :  { %v5343_v6 = vadd.f32 %v13064_v24, %v5342_v57  ;;  %v5365_v2 = vadd.f32 %v13088_v4, %v5364_v45  ;;  %v5314_v57 = vmul.f32 1.442695, %v5192_v35  ;;  %v13100_v11 = vpop.eup %8397 }
 0xcd7   :  { %v5344_v40 = vadd.f32 %v13073_v42, %v5343_v6  ;;  %v5366_v24 = vadd.f32 %v13098_v58, %v5365_v2  ;;  %v13106_v6 = vpop.eup %8399  ;;  %v5308_v42 = vmul.f32 1.442695, %v5189_v21  ;;  %8421 = vpow2.f32 %v5314_v57 }
 0xcd8   :  { %v13110_v45 = vpop.eup %8401  ;;  %8423 = vpow2.f32 %v5318_v28  ;;  %v5264_v57 = vmul.f32 1.442695, %v5167_v61  ;;  %v5268_v28 = vmul.f32 1.442695, %v5169_v36  ;;  %v5272_v61 = vmul.f32 1.442695, %v5171_v33 }
 0xcd9   :  { %v5345_v54 = vadd.f32 %v13082_v8, %v5344_v40  ;;  %v5367_v63 = vadd.f32 %v13100_v11, %v5366_v24  ;;  %v13114_v12 = vpop.eup %8403  ;;  %v5322_v40 = vmul.f32 1.442695, %v5196_v27  ;;  %8425 = vpow2.f32 %v5304_v38 }
 0xcda   :  { %v8406_v31 = vpop.eup %8405  ;;  %8427 = vpow2.f32 %v5308_v42  ;;  %v5173_v27 = vsub.f32 %v12788_v43, %v12962_v3  ;;  %v5175_v42 = vsub.f32 %v12792_v48, %v12962_v3 }
 0xcdb   :  { %v5346_v35 = vadd.f32 %v13092_v15, %v5345_v54  ;;  %v5368_v25 = vadd.f32 %v13106_v6, %v5367_v63  ;;  %v8408_v2 = vpop.eup %8407  ;;  %8429 = vpow2.f32 %v5322_v40  ;;  %v5179_v15 = vsub.f32 %v12800_v56, %v12962_v3 }
 0xcdc   :  { %v13122_v21 = vpop.eup %8409  ;;  %8431 = vpow2.f32 %v5264_v57  ;;  %v5415_v40 = vpack.c.bf16 %v8408_v2, %v8406_v31  ;;  %v5276_v33 = vmul.f32 1.442695, %v5173_v27  ;;  %v5197_v57 = vsub.f32 %v12895_v47, %v12962_v3 }
 0xcdd   :  { %v5347_v30 = vadd.f32 %v13019_v29, %v5346_v35  ;;  %v5369_v18 = vadd.f32 %v13110_v45, %v5368_v25  ;;  %v13126_v54 = vpop.eup %8411  ;;  %8433 = vpow2.f32 %v5268_v28  ;;  %v5181_v27 = vsub.f32 %v12804_v37, %v12962_v3 }
 0xcde   :  { %v5417_v38 = vpack.c.bf16 %v13126_v54, %v13122_v21  ;;  %v8414_v35 = vpop.eup %8413  ;;  %8435 = vpow2.f32 %v5272_v61  ;;  %v5191_v47 = vsub.f32 %v12844_v55, %v12962_v3  ;;  %v5193_v37 = vsub.f32 %v12857_v20, %v12962_v3 }
 0xcdf   :  { %v5348_v24 = vadd.f32 %v13024_v9, %v5347_v30  ;;  %v5370_v32 = vadd.f32 %v13114_v12, %v5369_v18  ;;  %v5416_v30 = vpack.c.bf16 %v13050_v50, %v13015_v14  ;;  %v8416_v25 = vpop.eup %8415  ;;  %v5177_v18 = vsub.f32 %v12796_v7, %v12962_v3 }
 0xce0   :  { %5434 = vmatprep.subr.bf16.mxu0 %v5417_v38  ;;  %v5195_v50 = vsub.f32 %v12869_v53, %v12962_v3  ;;  %v5414_v7 = vpack.c.bf16 %v13010_v26, %v13006_v10  ;;  %v5183_v53 = vsub.f32 %v12812_v5, %v12962_v3  ;;  %8437 = vpow2.f32 %v5276_v33 }
 0xce1   :  { %v5349_v63 = vadd.f32 %v13030_v23, %v5348_v24  ;;  %v5371_v36 = vadd.f32 %v8414_v35, %v5370_v32  ;;  %v8418_v24 = vpop.eup %8417  ;;  %5435 = vmatpush1.bf16.msra.mxu0 %v5416_v30  ;;  %v5284_v28 = vmul.f32 1.442695, %v5177_v18  ;;  %v5288_v26 = vmul.f32 1.442695, %v5179_v15 }
 0xce2   :  { %5436 = vmatprep.subr.bf16.mxu0 %v5415_v40  ;;  %v5413_v38 = vpack.c.bf16 %v8418_v24, %v8416_v25  ;;  %v13151_v30 = vpop.eup %8419  ;;  %v5324_v5 = vmul.f32 1.442695, %v5197_v57  ;;  %v5412_v55 = vpack.c.bf16 %v13001_v51, %v12997_v1  ;;  %v5411_v15 = vpack.c.bf16 %v8414_v35, %v13114_v12 }
 0xce3   :  { %v5350_v43 = vadd.f32 %v13035_v19, %v5349_v63  ;;  %v5372_v14 = vadd.f32 %v8416_v25, %v5371_v36  ;;  %v5280_v63 = vmul.f32 1.442695, %v5175_v42  ;;  %v5185_v18 = vsub.f32 %v12820_v52, %v12962_v3 }
 0xce4   :  { %v13159_v42 = vpop.eup %8421  ;;  %v5292_v20 = vmul.f32 1.442695, %v5181_v27  ;;  %v5312_v12 = vmul.f32 1.442695, %v5191_v47  ;;  %v5316_v35 = vmul.f32 1.442695, %v5193_v37  ;;  %v5410_v52 = vpack.c.bf16 %v12992_v17, %v12988_v62 }
 0xce5   :  { %v5351_v48 = vadd.f32 %v13041_v59, %v5350_v43  ;;  %v5373_v56 = vadd.f32 %v8418_v24, %v5372_v14  ;;  %5437 = vmatpush1.bf16.msra.mxu0 %v5414_v7  ;;  %v13162_v25 = vpop.eup %8423  ;;  %v5320_v43 = vmul.f32 1.442695, %v5195_v50  ;;  %8439 = vpow2.f32 %v5280_v63 }
 0xce6   :  { %5438 = vmatprep.subr.bf16.mxu0 %v5413_v38  ;;  %v13168_v36 = vpop.eup %8425  ;;  %8441 = vpow2.f32 %v5284_v28  ;;  %v5409_v50 = vpack.c.bf16 %v13110_v45, %v13106_v6  ;;  %v5300_v57 = vmul.f32 1.442695, %v5185_v18  ;;  %v5408_v62 = vpack.c.bf16 %v12981_v0, %v12974_v39 }
 0xce7   :  { %v5352_v32 = vadd.f32 %v13046_v41, %v5351_v48  ;;  %v5374_v61 = vadd.f32 %v8406_v31, %v5373_v56  ;;  %v13172_v31 = vpop.eup %8427  ;;  %v5296_v48 = vmul.f32 1.442695, %v5183_v53  ;;  %8443 = vpow2.f32 %v5288_v26 }
 0xce8   :  { %v5429_v51 = vpack.c.bf16 %v13172_v31, %v13168_v36  ;;  %8445 = vpow2.f32 %v5320_v43  ;;  %v5407_v6 = vpack.c.bf16 %v13100_v11, %v13098_v58  ;;  %v5406_v56 = vpack.c.bf16 %v12967_v60, %v12958_v34 }
 0xce9   :  { %v5353_v10 = vadd.f32 %v13151_v30, %v5352_v32  ;;  %v5375_v24 = vadd.f32 %v8408_v2, %v5374_v61  ;;  %5439 = vmatpush1.bf16.msra.mxu0 %v5412_v55  ;;  %v8430_v2 = vpop.eup %8429  ;;  %8447 = vpow2.f32 %v5324_v5  ;;  %v5405_v27 = vpack.c.bf16 %v13088_v4, %v13078_v16  ;;  %v15419_v4 = vld [vmem:[#allocation75_spill] sm:$0xff] }
 0xcea   :  { %5440 = vmatprep.subr.bf16.mxu0 %v5411_v15  ;;  %8449 = vpow2.f32 %v5292_v20  ;;  %v5404_v58 = vpack.c.bf16 %v12951_v44, %v12944_v49  ;;  %v5402_v61 = vpack.c.bf16 %v15419_v4, %v12932_v22  ;;  %v5430_v15 = vpack.c.bf16 %v13159_v42, %v13151_v30 }
 0xceb   :  { %v5354_v40 = vadd.f32 %v13159_v42, %v5353_v10  ;;  %v5376_v1 = vadd.f32 %v13122_v21, %v5375_v24  ;;  %v13187_v21 = vpop.eup %8431  ;;  %8451 = vpow2.f32 %v5296_v48  ;;  %v5403_v10 = vpack.c.bf16 %v13069_v46, %v13066_v13 }
 0xcec   :  { %v13190_v7 = vpop.eup %8433  ;;  %8453 = vpow2.f32 %v5312_v12  ;;  %v15421_v30 = vpack.c.bf16 %v13035_v19, %v13030_v23  ;;  %v15425_v12 = vld [vmem:[#allocation39_spill] sm:$0xff]  ;;  %v15426_v19 = vld [vmem:[#allocation45_spill] sm:$0xff] }
 0xced   :  { %v5355_v33 = vadd.f32 %v13162_v25, %v5354_v40  ;;  %v5377_v14 = vadd.f32 %v13126_v54, %v5376_v1  ;;  %5441 = vmatpush1.bf16.msra.mxu0 %v5410_v52  ;;  %8455 = vpow2.f32 %v5316_v35  ;;  %v8436_v45 = vpop.eup %8435  ;;  %v5432_v40 = vpack.c.bf16 %v8430_v2, %v13162_v25  ;;  %v15427_v52 = vld [vmem:[#allocation47_spill] sm:$0xff] }
 0xcee   :  { %5442 = vmatprep.subr.bf16.mxu0 %v5409_v50  ;;  %8457 = vpow2.f32 %v5300_v57  ;;  %v8438_v32 = vpop.eup %8437  ;;  %v15420_v25 = vpack.c.bf16 %v13046_v41, %v13041_v59  ;;  %v5419_v23 = vpack.c.bf16 %v13190_v7, %v13187_v21  ;;  %v15431_v57 = vld [vmem:[#allocation111_spill] sm:$0xff] }
 0xcef   :  { %v13182_v3 = vadd.f32 %v8430_v2, %v5355_v33  ;;  %v5378_v63 = vadd.f32 %v13187_v21, %v5377_v14  ;;  %v5421_v41 = vpack.c.bf16 %v8438_v32, %v8436_v45  ;;  %v5418_v14 = vpack.c.bf16 %v15427_v52, %v15426_v19  ;;  %v15437_v21 = vld [vmem:[#allocation62_spill] sm:$0xff] }
 0xcf1   :  { %v5379_v17 = vadd.f32 %v13190_v7, %v5378_v63  ;;  %5443 = vmatpush1.bf16.msra.mxu0 %v5408_v62  ;;  %v15432_v62 = vld [vmem:[#allocation57_spill] sm:$0xff]  ;;  %v15438_v7 = vld [vmem:[#allocation60_spill] sm:$0xff] }
 0xcf2   :  { %5444 = vmatprep.subr.bf16.mxu0 %v5407_v6  ;;  %v8440_v39 = vpop.eup %8439 }
 0xcf3   :  { %v5380_v54 = vadd.f32 %v8436_v45, %v5379_v17  ;;  %v8442_v0 = vpop.eup %8441  ;;  %v15433_v17 = vld [vmem:[#allocation59_spill] sm:$0xff]  ;;  %v15434_v45 = vld [vmem:[#allocation101_spill] sm:$0xff] }
 0xcf4   :  { %v8444_v47 = vpop.eup %8443  ;;  %v5423_v42 = vpack.c.bf16 %v8442_v0, %v8440_v39  ;;  %v1029_v6 = vpack.c.bf16 %v15433_v17, %v15432_v62 }
 0xcf5   :  { %v5381_v38 = vadd.f32 %v8438_v32, %v5380_v54  ;;  %5445 = vmatpush1.bf16.msra.mxu0 %v5406_v56  ;;  %v8446_v11 = vpop.eup %8445  ;;  %v15435_v54 = vld [vmem:[#allocation97_spill] sm:$0xff]  ;;  %v15439_v56 = vpack.c.bf16 %v15437_v21, %v15438_v7 }
 0xcf6   :  { %5446 = vmatprep.subr.bf16.mxu0 %v5405_v27  ;;  %v8448_v26 = vpop.eup %8447  ;;  %v15436_v32 = vpack.c.bf16 %v15434_v45, %v15435_v54  ;;  %v15441_v27 = vld [vmem:[#allocation56_spill] sm:$0xff] }
 0xcf7   :  { %v5382_v53 = vadd.f32 %v8440_v39, %v5381_v38  ;;  %v8450_v34 = vpop.eup %8449  ;;  %v5433_v5 = vpack.c.bf16 %v8448_v26, %v8446_v11  ;;  %v15440_v38 = vld [vmem:[#allocation58_spill] sm:$0xff] }
 0xcf8   :  { %v8452_v16 = vpop.eup %8451  ;;  %v5425_v2 = vpack.c.bf16 %v8450_v34, %v8444_v47  ;;  %v15442_v39 = vpack.c.bf16 %v15440_v38, %v15441_v27 }
 0xcf9   :  { %v5383_v28 = vadd.f32 %v8442_v0, %v5382_v53  ;;  %5447 = vmatpush1.bf16.msra.mxu0 %v5404_v58  ;;  %v8454_v37 = vpop.eup %8453  ;;  %v15443_v0 = vld [vmem:[#allocation109_spill] sm:$0xff]  ;;  %v15446_v58 = vmov 0  }
 0xcfa   :  { %5448 = vmatprep.subr.bf16.mxu0 %v5403_v10  ;;  %v8456_v55 = vpop.eup %8455  ;;  %v15444_v53 = vld [vmem:[#allocation105_spill] sm:$0xff] }
 0xcfb   :  { %v5384_v60 = vadd.f32 %v8444_v47, %v5383_v28  ;;  %v8458_v44 = vpop.eup %8457  ;;  %v5431_v46 = vpack.c.bf16 %v8456_v55, %v8454_v37  ;;  %v15445_v47 = vpack.c.bf16 %v15443_v0, %v15444_v53 }
 0xcfc   :  { %v5427_v48 = vpack.c.bf16 %v8458_v44, %v8452_v16 }
 0xcfd   :  { %v5385_v43 = vadd.f32 %v8450_v34, %v5384_v60  ;;  %5449 = vmatpush1.bf16.msra.mxu0 %v5402_v61  ;;  %v5547_v61 = vpop.trf.xlu0 }
 0xcfe   :  { %5450 = vmatprep.subr.bf16.mxu0 %v5433_v5 }
 0xcff   :  { %v5386_v49 = vadd.f32 %v8452_v16, %v5385_v43 }
 0xd01   :  { %v5387_v13 = vadd.f32 %v8458_v44, %v5386_v49  ;;  %5451 = vmatpush2.bf16.msra.mxu0 %v5432_v40 }
 0xd02   :  { %5452 = vmatprep.subr.bf16.mxu0 %v5431_v46  ;;  %v15448_v46 = vld [vmem:[#allocation127_spill] sm:$0xff] }
 0xd03   :  { %v5388_v24 = vadd.f32 %v13168_v36, %v5387_v13  ;;  %v15422_v36 = vpack.c.bf16 %v13024_v9, %v13019_v29  ;;  %v15428_v29 = vld [vmem:[#allocation61_spill] sm:$0xff]  ;;  %v15429_v9 = vld [vmem:[#allocation63_spill] sm:$0xff]  ;;  %v15447_v13 = vld [vmem:[#allocation124_spill] sm:$0xff] }
 0xd04   :  { %v1033_v50 = vpack.c.bf16 %v15429_v9, %v15428_v29 }
 0xd05   :  { %v5389_v22 = vadd.f32 %v13172_v31, %v5388_v24  ;;  %5453 = vmatpush2.bf16.msra.mxu0 %v5430_v15  ;;  %v15423_v31 = vld [vmem:[#allocation41_spill] sm:$0xff]  ;;  %v1101_v24 = vpack.c.bf16 %v15448_v46, %v15447_v13  ;;  %v5357_v15 = vrot.slane %v13182_v3, 4 }
 0xd06   :  { %5454 = vmatprep.subr.bf16.mxu0 %v5429_v51  ;;  %v5422_v59 = vpack.c.bf16 %v15423_v31, %v13082_v8  ;;  %v15424_v51 = vld [vmem:[#allocation35_spill] sm:$0xff] }
 0xd07   :  { %v5390_v18 = vadd.f32 %v8454_v37, %v5389_v22  ;;  %v5420_v35 = vpack.c.bf16 %v15425_v12, %v15424_v51  ;;  %v15430_v8 = vld [vmem:[#allocation107_spill] sm:$0xff]  ;;  %v5548_v37 = vpop.trf.xlu0 }
 0xd08   :  { %v1089_v63 = vpack.c.bf16 %v15431_v57, %v15430_v8 }
 0xd09   :  { %v5391_v20 = vadd.f32 %v8456_v55, %v5390_v18  ;;  %5455 = vmatpush2.bf16.msra.mxu0 %v15420_v25  ;;  %v5358_v18 = vadd.f32 %v5357_v15, %v13182_v3 }
 0xd0a   :  { %5456 = vmatprep.subr.bf16.mxu0 %v5427_v48 }
 0xd0b   :  { %v5392_v33 = vadd.f32 %v8446_v11, %v5391_v20  ;;  %v5531_v11 = vpop.trf.xlu1  ;;  %v5549_v43 = vpop.trf.xlu0  ;;  %v5359_v48 = vrot.slane %v5358_v18, 2 }
 0xd0d   :  { %v13218_v1 = vadd.f32 %v8448_v26, %v5392_v33  ;;  %5457 = vmatpush2.bf16.msra.mxu0 %v15421_v30  ;;  %v5360_v33 = vadd.f32 %v5359_v48, %v5358_v18 }
 0xd0e   :  { %5458 = vmatprep.subr.bf16.mxu0 %v5425_v2 }
 0xd0f   :  { %v5532_v28 = vpop.trf.xlu1  ;;  %v5550_v5 = vpop.trf.xlu0  ;;  %v5394_v22 = vrot.slane %v13218_v1, 4  ;;  %v5361_v30 = vrot.slane %v5360_v33, 1 }
 0xd11   :  { %5459 = vmatpush2.bf16.msra.mxu0 %v15422_v36  ;;  %v5395_v20 = vadd.f32 %v5394_v22, %v13218_v1  ;;  %v5362_v36 = vadd.f32 %v5361_v30, %v5360_v33 }
 0xd12   :  { %5460 = vmatprep.subr.bf16.mxu0 %v5423_v42 }
 0xd13   :  { %v5533_v10 = vpop.trf.xlu1  ;;  %v5551_v55 = vpop.trf.xlu0  ;;  %v5396_v25 = vrot.slane %v5395_v20, 2  ;;  %8459 = vrcp.f32 %v5362_v36 }
 0xd15   :  { %5461 = vmatpush2.bf16.msra.mxu0 %v5422_v59  ;;  %v5397_v2 = vadd.f32 %v5396_v25, %v5395_v20 }
 0xd16   :  { %5462 = vmatprep.subr.bf16.mxu0 %v5421_v41 }
 0xd17   :  { %v5534_v26 = vpop.trf.xlu1  ;;  %v5552_v49 = vpop.trf.xlu0  ;;  %v5398_v42 = vrot.slane %v5397_v2, 1 }
 0xd19   :  { %5463 = vmatpush2.bf16.msra.mxu0 %v5420_v35  ;;  %v5399_v31 = vadd.f32 %v5398_v42, %v5397_v2 }
 0xd1a   :  { %5464 = vmatprep.subr.bf16.mxu0 %v5419_v23 }
 0xd1b   :  { %v5535_v34 = vpop.trf.xlu1  ;;  %v5553_v44 = vpop.trf.xlu0  ;;  %8461 = vrcp.f32 %v5399_v31 }
 0xd1d   :  { %5465 = vmatpush2.bf16.msra.mxu0 %v5418_v14 }
 0xd1e   :  { %5615 = vmatprep.subr.bf16.mxu0 %v1033_v50 }
 0xd1f   :  { %v5536_v60 = vpop.trf.xlu1  ;;  %v5554_v40 = vpop.trf.xlu0 }
 0xd20   :  { %5467 = vmatmul.mubr.bf16.vlgmr.msra.gmra.mxu0 %v15436_v32  ;;  %v8460_v59 = vpop.eup %8459 }
 0xd21   :  { %5476 = vmatprep.mubr.bf16.mxu0 %v1089_v63  ;;  %5616 = vmatpush1.bf16.msra.mxu0 %v15439_v56 }
 0xd22   :  { %5617 = vmatprep.subr.bf16.mxu0 %v1029_v6 }
 0xd23   :  { %v5537_v16 = vpop.trf.xlu1 }
 0xd25   :  { %5618 = vmatpush1.bf16.msra.mxu0 %v15442_v39 }
 0xd27   :  { %v5538_v4 = vpop.trf.xlu1 }
 0xd28   :  { %5477 = vmatmul.mubr.bf16.gmra.mxu0 %v15445_v47  ;;  %v8462_v12 = vpop.eup %8461 }
 0xd29   :  { %5635 = vmatprep.mubr.bf16.mxu0 %v15446_v58 }
 0xd30   :  { %7523 = vmatmul.mubr.msk.bf16.vlgmr.msra.gmra.mxu0 %vm1138_vm2, %v5531_v11 }
 0xd31   :  { %5645 = vmatprep.mubr.bf16.mxu0 %v15446_v58 }
 0xd38   :  { %7524 = vmatmul.mubr.msk.bf16.gmra.mxu0 %vm1138_vm2, %v5532_v28 }
 0xd39   :  { %5655 = vmatprep.mubr.bf16.mxu0 %v15446_v58 }
 0xd40   :  { %7525 = vmatmul.mubr.msk.bf16.gmra.mxu0 %vm1138_vm2, %v5533_v10 }
 0xd41   :  { %5665 = vmatprep.mubr.bf16.mxu0 %v15446_v58 }
 0xd48   :  { %7526 = vmatmul.mubr.msk.bf16.gmra.mxu0 %vm1138_vm2, %v5534_v26 }
 0xd49   :  { %5675 = vmatprep.mubr.bf16.mxu0 %v15446_v58 }
 0xd50   :  { %7527 = vmatmul.mubr.msk.bf16.gmra.mxu0 %vm1138_vm2, %v5535_v34 }
 0xd51   :  { %5685 = vmatprep.mubr.bf16.mxu0 %v15446_v58 }
 0xd58   :  { %7528 = vmatmul.mubr.msk.bf16.gmra.mxu0 %vm1138_vm2, %v5536_v60 }
 0xd59   :  { %5695 = vmatprep.mubr.bf16.mxu0 %v15446_v58 }
 0xd60   :  { %7529 = vmatmul.mubr.msk.bf16.gmra.mxu0 %vm1138_vm2, %v5537_v16 }
 0xd61   :  { %5705 = vmatprep.mubr.bf16.mxu0 %v15446_v58 }
 0xd68   :  { %7530 = vmatmul.mubr.msk.bf16.gmra.mxu0 %vm1138_vm2, %v5538_v4 }
 0xd69   :  { %5715 = vmatprep.mubr.bf16.mxu0 %v15446_v58 }
 0xd70   :  { %7531 = vmatmul.mubr.msk.bf16.gmra.mxu0 %vm1138_vm2, %v5547_v61 }
 0xd71   :  { %5725 = vmatprep.mubr.bf16.mxu0 %v15446_v58 }
 0xd78   :  { %7532 = vmatmul.mubr.msk.bf16.gmra.mxu0 %vm1138_vm2, %v5548_v37 }
 0xd79   :  { %5735 = vmatprep.mubr.bf16.mxu0 %v15446_v58 }
 0xd80   :  { %7533 = vmatmul.mubr.msk.bf16.gmra.mxu0 %vm1138_vm2, %v5549_v43 }
 0xd81   :  { %5745 = vmatprep.mubr.bf16.mxu0 %v15446_v58 }
 0xd88   :  { %7534 = vmatmul.mubr.msk.bf16.gmra.mxu0 %vm1138_vm2, %v5550_v5 }
 0xd89   :  { %5755 = vmatprep.mubr.bf16.mxu0 %v15446_v58 }
 0xd90   :  { %7535 = vmatmul.mubr.msk.bf16.gmra.mxu0 %vm1138_vm2, %v5551_v55 }
 0xd91   :  { %5765 = vmatprep.mubr.bf16.mxu0 %v15446_v58 }
 0xd98   :  { %7536 = vmatmul.mubr.msk.bf16.gmra.mxu0 %vm1138_vm2, %v5552_v49 }
 0xd99   :  { %5775 = vmatprep.mubr.bf16.mxu0 %v15446_v58 }
 0xda0   :  { %7537 = vmatmul.mubr.msk.bf16.gmra.mxu0 %vm1138_vm2, %v5553_v44 }
 0xda1   :  { %5785 = vmatprep.mubr.bf16.mxu0 %v15446_v58 }
 0xda8   :  { %7538 = vmatmul.mubr.msk.bf16.gmra.mxu0 %vm1138_vm2, %v5554_v40 }
 0xda9   :  { %6938 = vmatprep.mubr.bf16.mxu0 %v1101_v24 }
 0xde0   :  { %v5468_v41 = vpop.f32.mrf.mxu0 }
 0xde1   :  { %v13290_v51 = vmul.f32 %v8460_v59, %v5468_v41 }
 0xde2   :  { %v5470_v35 = vpop.f32.mrf.mxu0 }
 0xde3   :  { %15449 = vst [vmem:[#allocation43_spill] sm:$0xff] %v13290_v51  ;;  %v13292_v23 = vmul.f32 %v8462_v12, %v5470_v35 }
 0xde4   :  { %v5472_v3 = vpop.f32.mrf.mxu0 }
 0xde5   :  { %15450 = vst [vmem:[#allocation108_spill] sm:$0xff] %v13292_v23  ;;  %v13294_v1 = vmul.f32 %v8460_v59, %v5472_v3 }
 0xde6   :  { %v5474_v19 = vpop.f32.mrf.mxu0 }
 0xde7   :  { %15451 = vst [vmem:[#allocation104_spill] sm:$0xff] %v13294_v1  ;;  %v13298_v14 = vmul.f32 %v8462_v12, %v5474_v19 }
 0xde8   :  { %v5478_v29 = vpop.f32.mrf.mxu0 }
 0xde9   :  { %15452 = vst [vmem:[#allocation46_spill] sm:$0xff] %v13298_v14  ;;  %v13302_v50 = vmul.f32 %v8460_v59, %v5478_v29 }
 0xdea   :  { %v5480_v8 = vpop.f32.mrf.mxu0 }
 0xdeb   :  { %15453 = vst [vmem:[#allocation44_spill] sm:$0xff] %v13302_v50  ;;  %v13304_v57 = vmul.f32 %v8462_v12, %v5480_v8 }
 0xdec   :  { %v5482_v63 = vpop.f32.mrf.mxu0 }
 0xded   :  { %15454 = vst [vmem:[#allocation42_spill] sm:$0xff] %v13304_v57  ;;  %v13306_v62 = vmul.f32 %v8460_v59, %v5482_v63 }
 0xdee   :  { %v5484_v17 = vpop.f32.mrf.mxu0 }
 0xdef   :  { %15455 = vst [vmem:[#allocation40_spill] sm:$0xff] %v13306_v62  ;;  %v13310_v45 = vmul.f32 %v8462_v12, %v5484_v17 }
 0xdf0   :  { %v13312_v54 = vpop.f32.mrf.mxu0 }
 0xdf1   :  { %15456 = vst [vmem:[#allocation37_spill] sm:$0xff] %v13310_v45 }
 0xdf2   :  { %v13316_v21 = vpop.f32.mrf.mxu0 }
 0xdf4   :  { %v13318_v7 = vpop.f32.mrf.mxu0 }
 0xdf6   :  { %v13320_v56 = vpop.f32.mrf.mxu0 }
 0xdf8   :  { %v13322_v38 = vpop.f32.mrf.mxu0 }
 0xdf9   :  { %v5796_v63 = vmax.f32 %v13312_v54, %v13322_v38 }
 0xdfa   :  { %v13324_v27 = vpop.f32.mrf.mxu0 }
 0xdfc   :  { %v13326_v39 = vpop.f32.mrf.mxu0 }
 0xdfd   :  { %v5797_v17 = vmax.f32 %v13318_v7, %v13326_v39 }
 0xdfe   :  { %v13328_v0 = vpop.f32.mrf.mxu0 }
 0xdff   :  { %15457 = vst [vmem:[#allocation33_spill] sm:$0xff] %v13328_v0 }
 0xe00   :  { %v13330_v53 = vpop.f32.mrf.mxu0 }
 0xe01   :  { %v5798_v9 = vmax.f32 %v5796_v63, %v13330_v53 }
 0xe02   :  { %v13332_v47 = vpop.f32.mrf.mxu0 }
 0xe04   :  { %v13334_v11 = vpop.f32.mrf.mxu0 }
 0xe05   :  { %v5799_v6 = vmax.f32 %v5797_v17, %v13334_v11 }
 0xe06   :  { %v13336_v28 = vpop.f32.mrf.mxu0 }
 0xe07   :  { %15458 = vst [vmem:[#allocation99_spill] sm:$0xff] %v13336_v28 }
 0xe08   :  { %v13338_v10 = vpop.f32.mrf.mxu0 }
 0xe09   :  { %v5800_v51 = vmax.f32 %v5798_v9, %v13338_v10 }
 0xe0a   :  { %v13340_v26 = vpop.f32.mrf.mxu0 }
 0xe0c   :  { %v13342_v34 = vpop.f32.mrf.mxu0 }
 0xe0d   :  { %v5801_v1 = vmax.f32 %v5799_v6, %v13342_v34 }
 0xe0e   :  { %v13344_v60 = vpop.f32.mrf.mxu0 }
 0xe0f   :  { %15459 = vst [vmem:[#allocation103_spill] sm:$0xff] %v13344_v60 }
 0xe10   :  { %v13346_v16 = vpop.f32.mrf.mxu0 }
 0xe11   :  { %15460 = vst [vmem:[#allocation18_spill] sm:$0xff] %v13346_v16  ;;  %v5802_v14 = vmax.f32 %v5800_v51, %v13346_v16 }
 0xe12   :  { %v13348_v4 = vpop.f32.mrf.mxu0 }
 0xe13   :  { %15461 = vst [vmem:[#allocation34_spill] sm:$0xff] %v13348_v4 }
 0xe14   :  { %v13350_v61 = vpop.f32.mrf.mxu0 }
 0xe15   :  { %v5803_v50 = vmax.f32 %v5801_v1, %v13350_v61 }
 0xe16   :  { %v13352_v37 = vpop.f32.mrf.mxu0 }
 0xe17   :  { %15462 = vst [vmem:[#allocation38_spill] sm:$0xff] %v13352_v37 }
 0xe18   :  { %v13354_v43 = vpop.f32.mrf.mxu0 }
 0xe19   :  { %15463 = vst [vmem:[#allocation98_spill] sm:$0xff] %v13354_v43  ;;  %v5804_v57 = vmax.f32 %v5802_v14, %v13354_v43 }
 0xe1a   :  { %v13356_v5 = vpop.f32.mrf.mxu0 }
 0xe1c   :  { %v13358_v55 = vpop.f32.mrf.mxu0 }
 0xe1d   :  { %v5805_v63 = vmax.f32 %v5803_v50, %v13358_v55 }
 0xe1e   :  { %v13360_v49 = vpop.f32.mrf.mxu0 }
 0xe20   :  { %v13362_v44 = vpop.f32.mrf.mxu0 }
 0xe21   :  { %15464 = vst [vmem:[#allocation102_spill] sm:$0xff] %v13362_v44  ;;  %v5806_v17 = vmax.f32 %v5804_v57, %v13362_v44 }
 0xe22   :  { %v13364_v40 = vpop.f32.mrf.mxu0 }
 0xe24   :  { %v13366_v13 = vpop.f32.mrf.mxu0 }
 0xe25   :  { %v5807_v9 = vmax.f32 %v5805_v63, %v13366_v13  ;;  %v5834_v63 = vmax.f32 %v13320_v56, %v13328_v0 }
 0xe26   :  { %v13368_v46 = vpop.f32.mrf.mxu0 }
 0xe28   :  { %v13370_v24 = vpop.f32.mrf.mxu0 }
 0xe29   :  { %v5808_v6 = vmax.f32 %v5806_v17, %v13370_v24 }
 0xe2a   :  { %v13372_v15 = vpop.f32.mrf.mxu0 }
 0xe2c   :  { %v13374_v22 = vpop.f32.mrf.mxu0 }
 0xe2d   :  { %15465 = vst [vmem:[#allocation29_spill] sm:$0xff] %v13374_v22  ;;  %v5809_v51 = vmax.f32 %v5807_v9, %v13374_v22 }
 0xe2e   :  { %v13376_v18 = vpop.f32.mrf.mxu0 }
 0xe30   :  { %v13378_v20 = vpop.f32.mrf.mxu0 }
 0xe31   :  { %v5810_v1 = vmax.f32 %v5808_v6, %v13378_v20  ;;  %v5833_v6 = vmax.f32 %v13316_v21, %v13324_v27 }
 0xe32   :  { %v13380_v48 = vpop.f32.mrf.mxu0 }
 0xe34   :  { %v13382_v25 = vpop.f32.mrf.mxu0 }
 0xe35   :  { %v5811_v14 = vmax.f32 %v5809_v51, %v13382_v25  ;;  %v5836_v51 = vmax.f32 %v5834_v63, %v13336_v28 }
 0xe36   :  { %v13384_v33 = vpop.f32.mrf.mxu0 }
 0xe37   :  { %v5838_v0 = vmax.f32 %v5836_v51, %v13344_v60 }
 0xe38   :  { %v13386_v2 = vpop.f32.mrf.mxu0 }
 0xe39   :  { %15466 = vst [vmem:[#allocation31_spill] sm:$0xff] %v13386_v2  ;;  %v5812_v50 = vmax.f32 %v5810_v1, %v13386_v2  ;;  %v5835_v2 = vmax.f32 %v5833_v6, %v13332_v47  ;;  %v5840_v63 = vmax.f32 %v5838_v0, %v13352_v37 }
 0xe3a   :  { %v13388_v30 = vpop.f32.mrf.mxu0 }
 0xe3b   :  { %v5842_v51 = vmax.f32 %v5840_v63, %v13360_v49 }
 0xe3c   :  { %v13390_v42 = vpop.f32.mrf.mxu0 }
 0xe3d   :  { %15467 = vst [vmem:[#allocation16_spill] sm:$0xff] %v13390_v42  ;;  %v5813_v57 = vmax.f32 %v5811_v14, %v13390_v42  ;;  %v5844_v0 = vmax.f32 %v5842_v51, %v13368_v46 }
 0xe3e   :  { %v13392_v36 = vpop.f32.mrf.mxu0 }
 0xe40   :  { %v13394_v31 = vpop.f32.mrf.mxu0 }
 0xe41   :  { %15468 = vst [vmem:[#allocation92_spill] sm:$0xff] %v13394_v31  ;;  %v5814_v17 = vmax.f32 %v5812_v50, %v13394_v31  ;;  %v5837_v31 = vmax.f32 %v5835_v2, %v13340_v26 }
 0xe42   :  { %v13396_v59 = vpop.f32.mrf.mxu0 }
 0xe43   :  { %v5839_v6 = vmax.f32 %v5837_v31, %v13348_v4  ;;  %v5846_v31 = vmax.f32 %v5844_v0, %v13376_v18 }
 0xe44   :  { %v13398_v41 = vpop.f32.mrf.mxu0 }
 0xe45   :  { %15469 = vst [vmem:[#allocation14_spill] sm:$0xff] %v13398_v41  ;;  %v5815_v9 = vmax.f32 %v5813_v57, %v13398_v41  ;;  %v5841_v2 = vmax.f32 %v5839_v6, %v13356_v5 }
 0xe46   :  { %v13400_v12 = vpop.f32.mrf.mxu0 }
 0xe47   :  { %v5843_v37 = vmax.f32 %v5841_v2, %v13364_v40 }
 0xe48   :  { %v13402_v35 = vpop.f32.mrf.mxu0 }
 0xe49   :  { %v5816_v1 = vmax.f32 %v5814_v17, %v13402_v35  ;;  %v5845_v63 = vmax.f32 %v5843_v37, %v13372_v15 }
 0xe4a   :  { %v13404_v3 = vpop.f32.mrf.mxu0 }
 0xe4c   :  { %v13406_v19 = vpop.f32.mrf.mxu0 }
 0xe4d   :  { %v5817_v14 = vmax.f32 %v5815_v9, %v13406_v19 }
 0xe4e   :  { %v13408_v29 = vpop.f32.mrf.mxu0 }
 0xe50   :  { %v13410_v8 = vpop.f32.mrf.mxu0 }
 0xe51   :  { %v5818_v50 = vmax.f32 %v5816_v1, %v13410_v8 }
 0xe52   :  { %v13416_v52 = vpop.f32.mrf.mxu0 }
 0xe54   :  { %v13420_v32 = vpop.f32.mrf.mxu0 }
 0xe55   :  { %v5819_v57 = vmax.f32 %v5817_v14, %v13420_v32 }
 0xe56   :  { %v13424_v23 = vpop.f32.mrf.mxu0 }
 0xe58   :  { %v13428_v62 = vpop.f32.mrf.mxu0 }
 0xe59   :  { %v5820_v17 = vmax.f32 %v5818_v50, %v13428_v62 }
 0xe5a   :  { %v13432_v45 = vpop.f32.mrf.mxu0 }
 0xe5c   :  { %v13436_v58 = vpop.f32.mrf.mxu0 }
 0xe5d   :  { %v5821_v9 = vmax.f32 %v5819_v57, %v13436_v58 }
 0xe5e   :  { %v13440_v16 = vpop.f32.mrf.mxu0 }
 0xe60   :  { %v13444_v43 = vpop.f32.mrf.mxu0 }
 0xe61   :  { %15470 = vst [vmem:[#allocation72_spill] sm:$0xff] %v13444_v43  ;;  %v5822_v1 = vmax.f32 %v5820_v17, %v13444_v43  ;;  %v5848_v17 = vmax.f32 %v5846_v31, %v13384_v33 }
 0xe62   :  { %v13448_v44 = vpop.f32.mrf.mxu0 }
 0xe63   :  { %v5850_v6 = vmax.f32 %v5848_v17, %v13392_v36 }
 0xe64   :  { %v13454_v22 = vpop.f32.mrf.mxu0 }
 0xe65   :  { %15471 = vst [vmem:[#allocation149_spill] sm:$0xff] %v13454_v22  ;;  %v5823_v14 = vmax.f32 %v5821_v9, %v13454_v22  ;;  %v5847_v22 = vmax.f32 %v5845_v63, %v13380_v48 }
 0xe66   :  { %v13461_v42 = vpop.f32.mrf.mxu0 }
 0xe67   :  { %v5849_v51 = vmax.f32 %v5847_v22, %v13388_v30 }
 0xe68   :  { %v13467_v41 = vpop.f32.mrf.mxu0 }
 0xe69   :  { %v5824_v50 = vmax.f32 %v5822_v1, %v13467_v41  ;;  %v5852_v1 = vmax.f32 %v5850_v6, %v13400_v12  ;;  %v5851_v2 = vmax.f32 %v5849_v51, %v13396_v59 }
 0xe6a   :  { %v13473_v28 = vpop.f32.mrf.mxu0 }
 0xe6b   :  { %v5854_v0 = vmax.f32 %v5852_v1, %v13408_v29  ;;  %v5853_v37 = vmax.f32 %v5851_v2, %v13404_v3 }
 0xe6c   :  { %v13479_v60 = vpop.f32.mrf.mxu0 }
 0xe6d   :  { %v5825_v57 = vmax.f32 %v5823_v14, %v13479_v60  ;;  %v5855_v63 = vmax.f32 %v5853_v37, %v13416_v52 }
 0xe6f   :  { %v5826_v4 = vmax.f32 %v5824_v50, %v5825_v57  ;;  %v5856_v57 = vmax.f32 %v5854_v0, %v13424_v23  ;;  %v5857_v22 = vmax.f32 %v5855_v63, %v13432_v45 }
 0xe71   :  { %v5827_v9 = vrot.slane %v5826_v4, 4  ;;  %v5858_v17 = vmax.f32 %v5856_v57, %v13440_v16  ;;  %v5859_v51 = vmax.f32 %v5857_v22, %v13448_v44 }
 0xe73   :  { %v5828_v43 = vmax.f32 %v5826_v4, %v5827_v9  ;;  %v13499_v4 = vpop.f32.mrf.mxu0  ;;  %v5860_v9 = vmax.f32 %v5858_v17, %v13461_v42  ;;  %v5861_v1 = vmax.f32 %v5859_v51, %v13473_v28 }
 0xe75   :  { %v5829_v14 = vrot.slane %v5828_v43, 2 }
 0xe77   :  { %v5830_v50 = vmax.f32 %v5828_v43, %v5829_v14  ;;  %v5862_v43 = vmax.f32 %v5860_v9, %v13499_v4 }
 0xe79   :  { %v5831_v31 = vrot.slane %v5830_v50, 1  ;;  %v5863_v37 = vmax.f32 %v5861_v1, %v5862_v43 }
 0xe7b   :  { %v13503_v6 = vmax.f32 %v5830_v50, %v5831_v31  ;;  %v5864_v22 = vrot.slane %v5863_v37, 4 }
 0xe7d   :  { %v5870_v14 = vsub.f32 %v13312_v54, %v13503_v6  ;;  %v5872_v2 = vsub.f32 %v13318_v7, %v13503_v6  ;;  %v5874_v0 = vsub.f32 %v13322_v38, %v13503_v6  ;;  %v5876_v50 = vsub.f32 %v13326_v39, %v13503_v6 }
 0xe7e   :  { %v5878_v63 = vsub.f32 %v13330_v53, %v13503_v6  ;;  %v5880_v54 = vsub.f32 %v13334_v11, %v13503_v6  ;;  %v5882_v38 = vsub.f32 %v13338_v10, %v13503_v6  ;;  %v5865_v51 = vmax.f32 %v5863_v37, %v5864_v22  ;;  %v15472_v53 = vld [vmem:[#allocation18_spill] sm:$0xff] }
 0xe7f   :  { %v5934_v57 = vmul.f32 1.442695, %v5870_v14  ;;  %v5938_v31 = vmul.f32 1.442695, %v5872_v2  ;;  %v5942_v17 = vmul.f32 1.442695, %v5874_v0  ;;  %v5884_v39 = vsub.f32 %v13342_v34, %v13503_v6 }
 0xe80   :  { %v5946_v7 = vmul.f32 1.442695, %v5876_v50  ;;  %v5950_v9 = vmul.f32 1.442695, %v5878_v63  ;;  %v5954_v43 = vmul.f32 1.442695, %v5880_v54  ;;  %v5886_v1 = vsub.f32 %v15472_v53, %v13503_v6 }
 0xe81   :  { %8463 = vpow2.f32 %v5934_v57  ;;  %v5958_v14 = vmul.f32 1.442695, %v5882_v38  ;;  %v5888_v11 = vsub.f32 %v13350_v61, %v13503_v6  ;;  %v5866_v2 = vrot.slane %v5865_v51, 2  ;;  %v15473_v0 = vld [vmem:[#allocation98_spill] sm:$0xff] }
 0xe82   :  { %8465 = vpow2.f32 %v5938_v31  ;;  %v5890_v10 = vsub.f32 %v15473_v0, %v13503_v6  ;;  %v5962_v50 = vmul.f32 1.442695, %v5884_v39  ;;  %v5892_v37 = vsub.f32 %v13358_v55, %v13503_v6  ;;  %v15474_v34 = vld [vmem:[#allocation102_spill] sm:$0xff] }
 0xe83   :  { %8467 = vpow2.f32 %v5942_v17  ;;  %v5894_v57 = vsub.f32 %v15474_v34, %v13503_v6  ;;  %v5966_v31 = vmul.f32 1.442695, %v5886_v1  ;;  %v5896_v63 = vsub.f32 %v13366_v13, %v13503_v6 }
 0xe84   :  { %8469 = vpow2.f32 %v5946_v7  ;;  %v5970_v17 = vmul.f32 1.442695, %v5888_v11  ;;  %v5867_v22 = vmax.f32 %v5865_v51, %v5866_v2  ;;  %v5898_v54 = vsub.f32 %v13370_v24, %v13503_v6 }
 0xe85   :  { %8471 = vpow2.f32 %v5950_v9  ;;  %v5974_v7 = vmul.f32 1.442695, %v5890_v10  ;;  %v5914_v55 = vsub.f32 %v13402_v35, %v13503_v6  ;;  %v5978_v9 = vmul.f32 1.442695, %v5892_v37 }
 0xe86   :  { %8473 = vpow2.f32 %v5954_v43  ;;  %v5916_v39 = vsub.f32 %v13406_v19, %v13503_v6  ;;  %v5982_v13 = vmul.f32 1.442695, %v5894_v57  ;;  %v5918_v24 = vsub.f32 %v13410_v8, %v13503_v6 }
 0xe87   :  { %8475 = vpow2.f32 %v5958_v14  ;;  %v5986_v53 = vmul.f32 1.442695, %v5896_v63  ;;  %v5868_v1 = vrot.slane %v5867_v22, 1  ;;  %v5920_v35 = vsub.f32 %v13420_v32, %v13503_v6  ;;  %v15476_v32 = vld [vmem:[#allocation29_spill] sm:$0xff] }
 0xe88   :  { %8477 = vpow2.f32 %v5962_v50  ;;  %v5990_v14 = vmul.f32 1.442695, %v5898_v54  ;;  %v5922_v2 = vsub.f32 %v13428_v62, %v13503_v6  ;;  %v6022_v0 = vmul.f32 1.442695, %v5914_v55  ;;  %v15477_v55 = vld [vmem:[#allocation31_spill] sm:$0xff] }
 0xe89   :  { %8479 = vpow2.f32 %v5966_v31  ;;  %v5924_v8 = vsub.f32 %v13436_v58, %v13503_v6  ;;  %v6026_v10 = vmul.f32 1.442695, %v5916_v39  ;;  %v5900_v34 = vsub.f32 %v15476_v32, %v13503_v6 }
 0xe8a   :  { %8481 = vpow2.f32 %v5970_v17  ;;  %v6030_v57 = vmul.f32 1.442695, %v5918_v24  ;;  %v13566_v31 = vmax.f32 %v5867_v22, %v5868_v1  ;;  %v5902_v62 = vsub.f32 %v13378_v20, %v13503_v6 }
 0xe8b   :  { %8483 = vpow2.f32 %v5974_v7  ;;  %v6034_v63 = vmul.f32 1.442695, %v5920_v35  ;;  %v5904_v54 = vsub.f32 %v13382_v25, %v13503_v6  ;;  %v6038_v7 = vmul.f32 1.442695, %v5922_v2  ;;  %v15478_v35 = vld [vmem:[#allocation16_spill] sm:$0xff] }
 0xe8c   :  { %8485 = vpow2.f32 %v5978_v9  ;;  %v5906_v9 = vsub.f32 %v15477_v55, %v13503_v6  ;;  %v6042_v22 = vmul.f32 1.442695, %v5924_v8  ;;  %v5994_v20 = vmul.f32 1.442695, %v5900_v34 }
 0xe8d   :  { %8487 = vpow2.f32 %v5982_v13  ;;  %v5998_v24 = vmul.f32 1.442695, %v5902_v62 }
 0xe8e   :  { %v13536_v61 = vpop.eup %8463  ;;  %8489 = vpow2.f32 %v5986_v53  ;;  %v5873_v53 = vsub.f32 %v13320_v56, %v13566_v31  ;;  %v6006_v2 = vmul.f32 1.442695, %v5906_v9 }
 0xe8f   :  { %v13540_v38 = vpop.eup %8465  ;;  %8491 = vpow2.f32 %v5990_v14  ;;  %v5908_v14 = vsub.f32 %v15478_v35, %v13503_v6 }
 0xe90   :  { %15475 = vst [vmem:[#allocation150_spill] sm:$0xff] %v13540_v38  ;;  %v6062_v51 = vadd.f32 %v13540_v38, %v13536_v61  ;;  %v13548_v43 = vpop.eup %8467  ;;  %8493 = vpow2.f32 %v6022_v0 }
 0xe91   :  { %v13555_v11 = vpop.eup %8469  ;;  %8495 = vpow2.f32 %v6026_v10  ;;  %v15479_v10 = vld [vmem:[#allocation92_spill] sm:$0xff] }
 0xe92   :  { %v6063_v19 = vadd.f32 %v13548_v43, %v6062_v51  ;;  %v13562_v37 = vpop.eup %8471  ;;  %8497 = vpow2.f32 %v6030_v57  ;;  %v5871_v51 = vsub.f32 %v13316_v21, %v13566_v31  ;;  %v5875_v21 = vsub.f32 %v13324_v27, %v13566_v31  ;;  %v15480_v57 = vld [vmem:[#allocation33_spill] sm:$0xff]  ;;  %v15481_v27 = vld [vmem:[#allocation14_spill] sm:$0xff] }
 0xe93   :  { %v13571_v17 = vpop.eup %8473  ;;  %8499 = vpow2.f32 %v6034_v63  ;;  %v5877_v62 = vsub.f32 %v15480_v57, %v13566_v31  ;;  %v5940_v63 = vmul.f32 1.442695, %v5873_v53 }
 0xe94   :  { %v6064_v50 = vadd.f32 %v13555_v11, %v6063_v19  ;;  %v13578_v13 = vpop.eup %8475  ;;  %v6002_v19 = vmul.f32 1.442695, %v5904_v54  ;;  %8501 = vpow2.f32 %v6038_v7  ;;  %v5936_v56 = vmul.f32 1.442695, %v5871_v51 }
 0xe95   :  { %v13585_v1 = vpop.eup %8477  ;;  %8503 = vpow2.f32 %v6042_v22  ;;  %v5912_v54 = vsub.f32 %v15481_v27, %v13503_v6  ;;  %v6010_v7 = vmul.f32 1.442695, %v5908_v14  ;;  %v5879_v22 = vsub.f32 %v13332_v47, %v13566_v31 }
 0xe96   :  { %v6065_v58 = vadd.f32 %v13562_v37, %v6064_v50  ;;  %v13592_v8 = vpop.eup %8479  ;;  %v5910_v50 = vsub.f32 %v15479_v10, %v13503_v6  ;;  %8505 = vpow2.f32 %v5994_v20  ;;  %v5883_v14 = vsub.f32 %v13340_v26, %v13566_v31 }
 0xe97   :  { %v13596_v32 = vpop.eup %8481  ;;  %8507 = vpow2.f32 %v5998_v24  ;;  %v15482_v24 = vld [vmem:[#allocation99_spill] sm:$0xff]  ;;  %v6018_v47 = vmul.f32 1.442695, %v5912_v54  ;;  %v5952_v57 = vmul.f32 1.442695, %v5879_v22  ;;  %v5895_v26 = vsub.f32 %v13364_v40, %v13566_v31 }
 0xe98   :  { %v6066_v39 = vadd.f32 %v13571_v17, %v6065_v58  ;;  %v13601_v58 = vpop.eup %8483  ;;  %8509 = vpow2.f32 %v6002_v19  ;;  %v6014_v51 = vmul.f32 1.442695, %v5910_v50  ;;  %v5948_v19 = vmul.f32 1.442695, %v5877_v62 }
 0xe99   :  { %v13605_v55 = vpop.eup %8485  ;;  %8511 = vpow2.f32 %v6006_v2  ;;  %v5897_v62 = vsub.f32 %v13368_v46, %v13566_v31  ;;  %v5901_v40 = vsub.f32 %v13376_v18, %v13566_v31 }
 0xe9a   :  { %v6067_v25 = vadd.f32 %v13578_v13, %v6066_v39  ;;  %v5944_v39 = vmul.f32 1.442695, %v5875_v21  ;;  %v13610_v20 = vpop.eup %8487  ;;  %8513 = vpow2.f32 %v5936_v56  ;;  %v15484_v56 = vld [vmem:[#allocation34_spill] sm:$0xff] }
 0xe9b   :  { %v13614_v53 = vpop.eup %8489  ;;  %8515 = vpow2.f32 %v5940_v63 }
 0xe9c   :  { %v6068_v0 = vadd.f32 %v13585_v1, %v6067_v25  ;;  %v5881_v25 = vsub.f32 %v15482_v24, %v13566_v31  ;;  %v13619_v2 = vpop.eup %8491  ;;  %8517 = vpow2.f32 %v6010_v7 }
 0xe9d   :  { %v13623_v10 = vpop.eup %8493  ;;  %8519 = vpow2.f32 %v5944_v39 }
 0xe9e   :  { %v6069_v34 = vadd.f32 %v13592_v8, %v6068_v0  ;;  %v15483_v0 = vld [vmem:[#allocation103_spill] sm:$0xff]  ;;  %v13628_v27 = vpop.eup %8495  ;;  %8521 = vpow2.f32 %v6014_v51  ;;  %v5956_v63 = vmul.f32 1.442695, %v5881_v25  ;;  %v5899_v51 = vsub.f32 %v13372_v15, %v13566_v31 }
 0xe9f   :  { %v5885_v21 = vsub.f32 %v15483_v0, %v13566_v31  ;;  %v13634_v54 = vpop.eup %8497  ;;  %8523 = vpow2.f32 %v5948_v19  ;;  %v5984_v15 = vmul.f32 1.442695, %v5895_v26 }
 0xea0   :  { %v6070_v9 = vadd.f32 %v13596_v32, %v6069_v34  ;;  %v5887_v34 = vsub.f32 %v15484_v56, %v13566_v31  ;;  %v13639_v22 = vpop.eup %8499  ;;  %8525 = vpow2.f32 %v6018_v47  ;;  %v15485_v47 = vld [vmem:[#allocation38_spill] sm:$0xff] }
 0xea1   :  { %v5964_v46 = vmul.f32 1.442695, %v5885_v21  ;;  %v13645_v24 = vpop.eup %8501  ;;  %8527 = vpow2.f32 %v5952_v57  ;;  %v5889_v0 = vsub.f32 %v15485_v47, %v13566_v31  ;;  %v5988_v21 = vmul.f32 1.442695, %v5897_v62 }
 0xea2   :  { %v6071_v35 = vadd.f32 %v13601_v58, %v6070_v9  ;;  %v5960_v9 = vmul.f32 1.442695, %v5883_v14  ;;  %v13650_v19 = vpop.eup %8503  ;;  %8529 = vpow2.f32 %v5956_v63  ;;  %v5891_v57 = vsub.f32 %v13356_v5, %v13566_v31 }
 0xea3   :  { %v5893_v63 = vsub.f32 %v13360_v49, %v13566_v31  ;;  %v5972_v14 = vmul.f32 1.442695, %v5889_v0  ;;  %v15491_v0 = vld [vmem:[#allocation149_spill] sm:$0xff] }
 0xea4   :  { %v6072_v50 = vadd.f32 %v13605_v55, %v6071_v35  ;;  %v5968_v35 = vmul.f32 1.442695, %v5887_v34  ;;  %8531 = vpow2.f32 %v5960_v9  ;;  %v5996_v9 = vmul.f32 1.442695, %v5901_v40 }
 0xea5   :  { %8533 = vpow2.f32 %v5964_v46  ;;  %v5980_v40 = vmul.f32 1.442695, %v5893_v63 }
 0xea6   :  { %v6073_v7 = vadd.f32 %v13610_v20, %v6072_v50  ;;  %v13654_v50 = vpop.eup %8505  ;;  %8535 = vpow2.f32 %v5968_v35 }
 0xea7   :  { %v13659_v34 = vpop.eup %8507  ;;  %8537 = vpow2.f32 %v5984_v15 }
 0xea8   :  { %v6074_v25 = vadd.f32 %v13614_v53, %v6073_v7  ;;  %15486 = vst [vmem:[#allocation88_spill] sm:$0xff] %v13659_v34  ;;  %v5992_v7 = vmul.f32 1.442695, %v5899_v51  ;;  %v13663_v39 = vpop.eup %8509  ;;  %8539 = vpow2.f32 %v5988_v21  ;;  %v15489_v51 = vld [vmem:[#allocation72_spill] sm:$0xff]  ;;  %v5928_v21 = vsub.f32 %v15491_v0, %v13503_v6 }
 0xea9   :  { %15487 = vst [vmem:[#allocation36_spill] sm:$0xff] %v13663_v39  ;;  %v13668_v62 = vpop.eup %8511  ;;  %v5926_v46 = vsub.f32 %v15489_v51, %v13503_v6  ;;  %v5923_v51 = vsub.f32 %v13432_v45, %v13566_v31 }
 0xeaa   :  { %v6075_v18 = vadd.f32 %v13619_v2, %v6074_v25  ;;  %15488 = vst [vmem:[#allocation32_spill] sm:$0xff] %v13668_v62  ;;  %v13670_v25 = vpop.eup %8513  ;;  %8541 = vpow2.f32 %v5992_v7 }
 0xeab   :  { %v13673_v5 = vpop.eup %8515  ;;  %8543 = vpow2.f32 %v5996_v9  ;;  %v6046_v9 = vmul.f32 1.442695, %v5926_v46  ;;  %v5932_v46 = vsub.f32 %v13479_v60, %v13503_v6 }
 0xeac   :  { %v6076_v26 = vadd.f32 %v13654_v50, %v6075_v18  ;;  %v5976_v18 = vmul.f32 1.442695, %v5891_v57  ;;  %v13677_v56 = vpop.eup %8517  ;;  %v6099_v35 = vadd.f32 %v13673_v5, %v13670_v25  ;;  %v5930_v57 = vsub.f32 %v13467_v41, %v13503_v6 }
 0xead   :  { %15490 = vst [vmem:[#allocation83_spill] sm:$0xff] %v13677_v56  ;;  %v13682_v15 = vpop.eup %8519  ;;  %8545 = vpow2.f32 %v5972_v14  ;;  %v5905_v6 = vsub.f32 %v13384_v33, %v13566_v31 }
 0xeae   :  { %v6077_v47 = vadd.f32 %v13659_v34, %v6076_v26  ;;  %v13686_v26 = vpop.eup %8521  ;;  %8547 = vpow2.f32 %v5976_v18  ;;  %v5925_v34 = vsub.f32 %v13440_v16, %v13566_v31  ;;  %v6054_v45 = vmul.f32 1.442695, %v5930_v57 }
 0xeaf   :  { %v13692_v63 = vpop.eup %8523  ;;  %8549 = vpow2.f32 %v5980_v40  ;;  %v5903_v16 = vsub.f32 %v13380_v48, %v13566_v31  ;;  %v6040_v40 = vmul.f32 1.442695, %v5923_v51 }
 0xeb0   :  { %v6078_v49 = vadd.f32 %v13663_v39, %v6077_v47  ;;  %v6100_v47 = vadd.f32 %v13682_v15, %v6099_v35  ;;  %v13696_v39 = vpop.eup %8525  ;;  %8551 = vpow2.f32 %v6046_v9  ;;  %v5907_v9 = vsub.f32 %v13388_v30, %v13566_v31 }
 0xeb1   :  { %15492 = vst [vmem:[#allocation100_spill] sm:$0xff] %v13696_v39  ;;  %v13702_v14 = vpop.eup %8527 }
 0xeb2   :  { %v6079_v7 = vadd.f32 %v13668_v62, %v6078_v49  ;;  %v6101_v41 = vadd.f32 %v13692_v63, %v6100_v47  ;;  %v6050_v49 = vmul.f32 1.442695, %v5928_v21  ;;  %v13704_v35 = vpop.eup %8529 }
 0xeb4   :  { %v6080_v0 = vadd.f32 %v13677_v56, %v6079_v7  ;;  %v6102_v62 = vadd.f32 %v13702_v14, %v6101_v41  ;;  %v13710_v7 = vpop.eup %8531  ;;  %v6044_v56 = vmul.f32 1.442695, %v5925_v34  ;;  %8553 = vpow2.f32 %v6050_v49 }
 0xeb5   :  { %v13714_v47 = vpop.eup %8533  ;;  %8555 = vpow2.f32 %v6054_v45  ;;  %v6000_v49 = vmul.f32 1.442695, %v5903_v16  ;;  %v6004_v45 = vmul.f32 1.442695, %v5905_v6  ;;  %v6008_v16 = vmul.f32 1.442695, %v5907_v9 }
 0xeb6   :  { %v6081_v18 = vadd.f32 %v13686_v26, %v6080_v0  ;;  %v6103_v38 = vadd.f32 %v13704_v35, %v6102_v62  ;;  %v13718_v60 = vpop.eup %8535  ;;  %v6058_v0 = vmul.f32 1.442695, %v5932_v46  ;;  %8557 = vpow2.f32 %v6040_v40 }
 0xeb7   :  { %v8538_v57 = vpop.eup %8537  ;;  %8559 = vpow2.f32 %v6044_v56  ;;  %v5909_v46 = vsub.f32 %v13392_v36, %v13566_v31  ;;  %v5911_v56 = vsub.f32 %v13396_v59, %v13566_v31 }
 0xeb8   :  { %v6082_v21 = vadd.f32 %v13696_v39, %v6081_v18  ;;  %v6104_v51 = vadd.f32 %v13710_v7, %v6103_v38  ;;  %v8540_v41 = vpop.eup %8539  ;;  %8561 = vpow2.f32 %v6058_v0  ;;  %v5915_v39 = vsub.f32 %v13404_v3, %v13566_v31 }
 0xeb9   :  { %v13726_v34 = vpop.eup %8541  ;;  %8563 = vpow2.f32 %v6000_v49  ;;  %v6151_v0 = vpack.c.bf16 %v8540_v41, %v8538_v57  ;;  %v6012_v9 = vmul.f32 1.442695, %v5909_v46  ;;  %v5933_v49 = vsub.f32 %v13499_v4, %v13566_v31 }
 0xeba   :  { %v6083_v48 = vadd.f32 %v13623_v10, %v6082_v21  ;;  %v6105_v33 = vadd.f32 %v13714_v47, %v6104_v51  ;;  %v13730_v18 = vpop.eup %8543  ;;  %8565 = vpow2.f32 %v6004_v45  ;;  %v5917_v46 = vsub.f32 %v13408_v29, %v13566_v31 }
 0xebb   :  { %v6153_v40 = vpack.c.bf16 %v13730_v18, %v13726_v34  ;;  %v8546_v21 = vpop.eup %8545  ;;  %8567 = vpow2.f32 %v6008_v16  ;;  %v5927_v4 = vsub.f32 %v13448_v44, %v13566_v31  ;;  %v5929_v29 = vsub.f32 %v13461_v42, %v13566_v31 }
 0xebc   :  { %v6084_v62 = vadd.f32 %v13628_v27, %v6083_v48  ;;  %v6106_v30 = vadd.f32 %v13718_v60, %v6105_v33  ;;  %v6152_v48 = vpack.c.bf16 %v13654_v50, %v13619_v2  ;;  %v8548_v51 = vpop.eup %8547  ;;  %v5913_v33 = vsub.f32 %v13400_v12, %v13566_v31 }
 0xebd   :  { %6170 = vmatprep.subr.bf16.mxu1 %v6153_v40  ;;  %v5931_v50 = vsub.f32 %v13473_v28, %v13566_v31  ;;  %v6150_v12 = vpack.c.bf16 %v13614_v53, %v13610_v20  ;;  %v5919_v28 = vsub.f32 %v13416_v52, %v13566_v31  ;;  %8569 = vpow2.f32 %v6012_v9 }
 0xebe   :  { %v6085_v38 = vadd.f32 %v13634_v54, %v6084_v62  ;;  %v6107_v6 = vadd.f32 %v8546_v21, %v6106_v30  ;;  %v8550_v62 = vpop.eup %8549  ;;  %6171 = vmatpush1.bf16.msra.mxu1 %v6152_v48  ;;  %v6020_v45 = vmul.f32 1.442695, %v5913_v33  ;;  %v6024_v53 = vmul.f32 1.442695, %v5915_v39 }
 0xebf   :  { %6172 = vmatprep.subr.bf16.mxu1 %v6151_v0  ;;  %v6149_v40 = vpack.c.bf16 %v8550_v62, %v8548_v51  ;;  %v13755_v48 = vpop.eup %8551  ;;  %v6060_v52 = vmul.f32 1.442695, %v5933_v49  ;;  %v6148_v44 = vpack.c.bf16 %v13605_v55, %v13601_v58  ;;  %v6147_v39 = vpack.c.bf16 %v8546_v21, %v13718_v60 }
 0xec0   :  { %v6086_v36 = vadd.f32 %v13639_v22, %v6085_v38  ;;  %v6108_v2 = vadd.f32 %v8548_v51, %v6107_v6  ;;  %v6016_v38 = vmul.f32 1.442695, %v5911_v56  ;;  %v5921_v33 = vsub.f32 %v13424_v23, %v13566_v31 }
 0xec1   :  { %v13763_v56 = vpop.eup %8553  ;;  %v6028_v42 = vmul.f32 1.442695, %v5917_v46  ;;  %v6048_v60 = vmul.f32 1.442695, %v5927_v4  ;;  %v6052_v21 = vmul.f32 1.442695, %v5929_v29  ;;  %v6146_v23 = vpack.c.bf16 %v13596_v32, %v13592_v8 }
 0xec2   :  { %v6087_v59 = vadd.f32 %v13645_v24, %v6086_v36  ;;  %v6109_v3 = vadd.f32 %v8550_v62, %v6108_v2  ;;  %6173 = vmatpush1.bf16.msra.mxu1 %v6150_v12  ;;  %v13766_v51 = vpop.eup %8555  ;;  %v6056_v36 = vmul.f32 1.442695, %v5931_v50  ;;  %8571 = vpow2.f32 %v6016_v38 }
 0xec3   :  { %6174 = vmatprep.subr.bf16.mxu1 %v6149_v40  ;;  %v13772_v6 = vpop.eup %8557  ;;  %8573 = vpow2.f32 %v6020_v45  ;;  %v6145_v50 = vpack.c.bf16 %v13714_v47, %v13710_v7  ;;  %v6036_v49 = vmul.f32 1.442695, %v5921_v33  ;;  %v6144_v8 = vpack.c.bf16 %v13585_v1, %v13578_v13 }
 0xec4   :  { %v6088_v30 = vadd.f32 %v13650_v19, %v6087_v59  ;;  %v6110_v16 = vadd.f32 %v8538_v57, %v6109_v3  ;;  %v13776_v57 = vpop.eup %8559  ;;  %v6032_v59 = vmul.f32 1.442695, %v5919_v28  ;;  %8575 = vpow2.f32 %v6024_v53 }
 0xec5   :  { %v6165_v55 = vpack.c.bf16 %v13776_v57, %v13772_v6  ;;  %8577 = vpow2.f32 %v6056_v36  ;;  %v6143_v7 = vpack.c.bf16 %v13704_v35, %v13702_v14  ;;  %v6142_v3 = vpack.c.bf16 %v13571_v17, %v13562_v37 }
 0xec6   :  { %v6089_v20 = vadd.f32 %v13755_v48, %v6088_v30  ;;  %v6111_v62 = vadd.f32 %v8540_v41, %v6110_v16  ;;  %6175 = vmatpush1.bf16.msra.mxu1 %v6148_v44  ;;  %v8562_v41 = vpop.eup %8561  ;;  %8579 = vpow2.f32 %v6060_v52  ;;  %v6141_v46 = vpack.c.bf16 %v13692_v63, %v13682_v15  ;;  %v15493_v63 = vld [vmem:[#allocation150_spill] sm:$0xff] }
 0xec7   :  { %6176 = vmatprep.subr.bf16.mxu1 %v6147_v39  ;;  %8581 = vpow2.f32 %v6028_v42  ;;  %v6140_v14 = vpack.c.bf16 %v13555_v11, %v13548_v43  ;;  %v6138_v16 = vpack.c.bf16 %v15493_v63, %v13536_v61  ;;  %v6166_v39 = vpack.c.bf16 %v13763_v56, %v13755_v48  ;;  %v15527_v63 = vld [vmem:[#allocation94_spill] sm:$0xff] }
 0xec8   :  { %v6090_v0 = vadd.f32 %v13763_v56, %v6089_v20  ;;  %v6112_v58 = vadd.f32 %v13726_v34, %v6111_v62  ;;  %v13791_v34 = vpop.eup %8563  ;;  %8583 = vpow2.f32 %v6032_v59  ;;  %v6139_v20 = vpack.c.bf16 %v13673_v5, %v13670_v25 }
 0xec9   :  { %v13794_v12 = vpop.eup %8565  ;;  %8585 = vpow2.f32 %v6048_v60  ;;  %v15495_v48 = vpack.c.bf16 %v13639_v22, %v13634_v54  ;;  %v15499_v60 = vld [vmem:[#allocation83_spill] sm:$0xff]  ;;  %v15500_v22 = vld [vmem:[#allocation88_spill] sm:$0xff] }
 0xeca   :  { %v6091_v9 = vadd.f32 %v13766_v51, %v6090_v0  ;;  %v6113_v2 = vadd.f32 %v13730_v18, %v6112_v58  ;;  %6177 = vmatpush1.bf16.msra.mxu1 %v6146_v23  ;;  %8587 = vpow2.f32 %v6052_v21  ;;  %v8568_v47 = vpop.eup %8567  ;;  %v6168_v0 = vpack.c.bf16 %v8562_v41, %v13766_v51  ;;  %v15501_v23 = vld [vmem:[#allocation36_spill] sm:$0xff] }
 0xecb   :  { %6178 = vmatprep.subr.bf16.mxu1 %v6145_v50  ;;  %8589 = vpow2.f32 %v6036_v49  ;;  %v8570_v30 = vpop.eup %8569  ;;  %v15494_v51 = vpack.c.bf16 %v13650_v19, %v13645_v24  ;;  %v6155_v54 = vpack.c.bf16 %v13794_v12, %v13791_v34  ;;  %v15505_v49 = vld [vmem:[#allocation121_spill] sm:$0xff] }
 0xecc   :  { %v13786_v31 = vadd.f32 %v8562_v41, %v6091_v9  ;;  %v6114_v38 = vadd.f32 %v13791_v34, %v6113_v2  ;;  %v6157_v19 = vpack.c.bf16 %v8570_v30, %v8568_v47  ;;  %v6154_v2 = vpack.c.bf16 %v15501_v23, %v15500_v22  ;;  %v15511_v34 = vld [vmem:[#allocation70_spill] sm:$0xff] }
 0xecd   :  { %v15555_v22 = vld [vmem:[#allocation122_spill] sm:$0xff] }
 0xece   :  { %v6115_v32 = vadd.f32 %v13794_v12, %v6114_v38  ;;  %6179 = vmatpush1.bf16.msra.mxu1 %v6144_v8  ;;  %v15506_v8 = vld [vmem:[#allocation65_spill] sm:$0xff]  ;;  %v15512_v12 = vld [vmem:[#allocation68_spill] sm:$0xff] }
 0xecf   :  { %6180 = vmatprep.subr.bf16.mxu1 %v6143_v7  ;;  %v8572_v13 = vpop.eup %8571 }
 0xed0   :  { %v6116_v18 = vadd.f32 %v8568_v47, %v6115_v32  ;;  %v8574_v1 = vpop.eup %8573  ;;  %v15507_v32 = vld [vmem:[#allocation67_spill] sm:$0xff] }
 0xed1   :  { %v8576_v4 = vpop.eup %8575  ;;  %v6159_v56 = vpack.c.bf16 %v8574_v1, %v8572_v13  ;;  %v1037_v7 = vpack.c.bf16 %v15507_v32, %v15506_v8  ;;  %v15508_v47 = vld [vmem:[#allocation115_spill] sm:$0xff]  ;;  %v15564_v32 = vld [vmem:[#allocation144_spill] sm:$0xff] }
 0xed2   :  { %v6117_v40 = vadd.f32 %v8570_v30, %v6116_v18  ;;  %6181 = vmatpush1.bf16.msra.mxu1 %v6142_v3  ;;  %v8578_v35 = vpop.eup %8577  ;;  %v15509_v18 = vld [vmem:[#allocation112_spill] sm:$0xff]  ;;  %v15513_v3 = vpack.c.bf16 %v15511_v34, %v15512_v12  ;;  %v15563_v8 = vld [vmem:[#allocation147_spill] sm:$0xff] }
 0xed3   :  { %6182 = vmatprep.subr.bf16.mxu1 %v6141_v46  ;;  %v8580_v53 = vpop.eup %8579  ;;  %v15510_v30 = vpack.c.bf16 %v15508_v47, %v15509_v18  ;;  %v15515_v46 = vld [vmem:[#allocation64_spill] sm:$0xff]  ;;  %v15566_v47 = vld [vmem:[#allocation146_spill] sm:$0xff]  ;;  %v15567_v18 = vld [vmem:[#allocation143_spill] sm:$0xff] }
 0xed4   :  { %v6118_v28 = vadd.f32 %v8572_v13, %v6117_v40  ;;  %v8582_v37 = vpop.eup %8581  ;;  %v6169_v52 = vpack.c.bf16 %v8580_v53, %v8578_v35  ;;  %v15514_v40 = vld [vmem:[#allocation66_spill] sm:$0xff] }
 0xed5   :  { %v8584_v15 = vpop.eup %8583  ;;  %v6161_v41 = vpack.c.bf16 %v8582_v37, %v8576_v4  ;;  %v15516_v13 = vpack.c.bf16 %v15514_v40, %v15515_v46  ;;  %v6283_v46 = vpop.trf.xlu0 }
 0xed6   :  { %v6119_v45 = vadd.f32 %v8574_v1, %v6118_v28  ;;  %6183 = vmatpush1.bf16.msra.mxu1 %v6140_v14  ;;  %v8586_v29 = vpop.eup %8585  ;;  %v15517_v1 = vld [vmem:[#allocation151_spill] sm:$0xff]  ;;  %v15518_v28 = vld [vmem:[#allocation73_spill] sm:$0xff]  ;;  %v15520_v14 = vld [vmem:[#allocation120_spill] sm:$0xff] }
 0xed7   :  { %6184 = vmatprep.subr.bf16.mxu1 %v6139_v20  ;;  %v8588_v44 = vpop.eup %8587  ;;  %v15523_v20 = vmov 0  }
 0xed8   :  { %v6120_v17 = vadd.f32 %v8576_v4, %v6119_v45  ;;  %v8590_v11 = vpop.eup %8589  ;;  %v6167_v5 = vpack.c.bf16 %v8588_v44, %v8586_v29  ;;  %v15519_v4 = vpack.c.bf16 %v15517_v1, %v15518_v28 }
 0xed9   :  { %v6163_v59 = vpack.c.bf16 %v8590_v11, %v8584_v15 }
 0xeda   :  { %v6121_v36 = vadd.f32 %v8582_v37, %v6120_v17  ;;  %6185 = vmatpush1.bf16.msra.mxu1 %v6138_v16  ;;  %v15524_v37 = vld [vmem:[#allocation142_spill] sm:$0xff]  ;;  %v15525_v17 = vld [vmem:[#allocation153_spill] sm:$0xff]  ;;  %v15528_v16 = vld [vmem:[#allocation139_spill] sm:$0xff] }
 0xedb   :  { %6186 = vmatprep.subr.bf16.mxu1 %v6169_v52  ;;  %v15531_v52 = vld [vmem:[#allocation138_spill] sm:$0xff] }
 0xedc   :  { %v6122_v43 = vadd.f32 %v8584_v15, %v6121_v36  ;;  %v15526_v15 = vpack.c.bf16 %v15524_v37, %v15525_v17  ;;  %v15530_v36 = vld [vmem:[#allocation90_spill] sm:$0xff] }
 0xede   :  { %v6123_v25 = vadd.f32 %v8590_v11, %v6122_v43  ;;  %6187 = vmatpush2.bf16.msra.mxu1 %v6168_v0  ;;  %v15533_v11 = vld [vmem:[#allocation27_spill] sm:$0xff]  ;;  %v15534_v0 = vld [vmem:[#allocation76_spill] sm:$0xff] }
 0xedf   :  { %6188 = vmatprep.subr.bf16.mxu1 %v6167_v5  ;;  %v15536_v5 = vld [vmem:[#allocation25_spill] sm:$0xff] }
 0xee0   :  { %v6124_v62 = vadd.f32 %v13772_v6, %v6123_v25  ;;  %v15496_v6 = vpack.c.bf16 %v13628_v27, %v13623_v10  ;;  %v15502_v10 = vld [vmem:[#allocation69_spill] sm:$0xff]  ;;  %v15503_v27 = vld [vmem:[#allocation71_spill] sm:$0xff]  ;;  %v15535_v25 = vpack.c.bf16 %v15533_v11, %v15534_v0 }
 0xee1   :  { %v1041_v50 = vpack.c.bf16 %v15503_v27, %v15502_v10  ;;  %v15557_v10 = vld [vmem:[#allocation148_spill] sm:$0xff] }
 0xee2   :  { %v6125_v61 = vadd.f32 %v13776_v57, %v6124_v62  ;;  %6189 = vmatpush2.bf16.msra.mxu1 %v6166_v39  ;;  %v15497_v57 = vld [vmem:[#allocation100_spill] sm:$0xff] }
 0xee3   :  { %6190 = vmatprep.subr.bf16.mxu1 %v6165_v55  ;;  %v6158_v24 = vpack.c.bf16 %v15497_v57, %v13686_v26  ;;  %v15498_v55 = vld [vmem:[#allocation32_spill] sm:$0xff]  ;;  %v15504_v26 = vld [vmem:[#allocation119_spill] sm:$0xff] }
 0xee4   :  { %v6126_v33 = vadd.f32 %v8586_v29, %v6125_v61  ;;  %v6156_v21 = vpack.c.bf16 %v15499_v60, %v15498_v55  ;;  %v1097_v38 = vpack.c.bf16 %v15505_v49, %v15504_v26  ;;  %v15529_v29 = vpack.c.bf16 %v15527_v63, %v15528_v16  ;;  %v15537_v62 = vld [vmem:[#allocation12_spill] sm:$0xff]  ;;  %v15539_v61 = vld [vmem:[#allocation110_spill] sm:$0xff]  ;;  %v15548_v57 = vld [vmem:[#allocation135_spill] sm:$0xff] }
 0xee5   :  { %v15538_v39 = vpack.c.bf16 %v15536_v5, %v15537_v62  ;;  %v15551_v55 = vld [vmem:[#allocation132_spill] sm:$0xff]  ;;  %v15552_v60 = vld [vmem:[#allocation126_spill] sm:$0xff]  ;;  %v15560_v26 = vld [vmem:[#allocation145_spill] sm:$0xff] }
 0xee6   :  { %v6127_v42 = vadd.f32 %v8588_v44, %v6126_v33  ;;  %6191 = vmatpush2.bf16.msra.mxu1 %v15494_v51  ;;  %v15532_v44 = vpack.c.bf16 %v15530_v36, %v15531_v52  ;;  %v15540_v33 = vld [vmem:[#allocation118_spill] sm:$0xff]  ;;  %v15558_v27 = vld [vmem:[#allocation156_spill] sm:$0xff]  ;;  %v15561_v49 = vld [vmem:[#allocation155_spill] sm:$0xff] }
 0xee7   :  { %6192 = vmatprep.subr.bf16.mxu1 %v6163_v59  ;;  %v15542_v59 = vld [vmem:[#allocation74_spill] sm:$0xff] }
 0xee8   :  { %v6128_v9 = vadd.f32 %v8578_v35, %v6127_v42  ;;  %v15521_v35 = vld [vmem:[#allocation117_spill] sm:$0xff]  ;;  %v15541_v42 = vpack.c.bf16 %v15539_v61, %v15540_v33  ;;  %v15543_v51 = vld [vmem:[#allocation114_spill] sm:$0xff] }
 0xee9   :  { %v15522_v45 = vpack.c.bf16 %v15520_v14, %v15521_v35 }
 0xeea   :  { %v13822_v58 = vadd.f32 %v8580_v53, %v6128_v9  ;;  %6193 = vmatpush2.bf16.msra.mxu1 %v15495_v48  ;;  %v6267_v53 = vpop.trf.xlu1  ;;  %v15544_v9 = vpack.c.bf16 %v15542_v59, %v15543_v51  ;;  %v15545_v48 = vld [vmem:[#allocation136_spill] sm:$0xff] }
 0xeeb   :  { %6194 = vmatprep.subr.bf16.mxu1 %v6161_v41 }
 0xeec   :  { %v6130_v37 = vrot.slane %v13822_v58, 4 }
 0xeee   :  { %6195 = vmatpush2.bf16.msra.mxu1 %v15496_v6  ;;  %v6268_v43 = vpop.trf.xlu1 }
 0xeef   :  { %6196 = vmatprep.subr.bf16.mxu1 %v6159_v56  ;;  %v15546_v56 = vld [vmem:[#allocation134_spill] sm:$0xff] }
 0xef0   :  { %v15547_v6 = vpack.c.bf16 %v15545_v48, %v15546_v56 }
 0xef2   :  { %6197 = vmatpush2.bf16.msra.mxu1 %v6158_v24  ;;  %v6269_v41 = vpop.trf.xlu1  ;;  %v15549_v24 = vld [vmem:[#allocation133_spill] sm:$0xff] }
 0xef3   :  { %6198 = vmatprep.subr.bf16.mxu1 %v6157_v19  ;;  %v15550_v19 = vpack.c.bf16 %v15548_v57, %v15549_v24 }
 0xef6   :  { %6199 = vmatpush2.bf16.msra.mxu1 %v6156_v21  ;;  %v15553_v21 = vpack.c.bf16 %v15551_v55, %v15552_v60 }
 0xef7   :  { %6200 = vmatprep.subr.bf16.mxu1 %v6155_v54  ;;  %v15554_v54 = vld [vmem:[#allocation130_spill] sm:$0xff] }
 0xef8   :  { %v15556_v23 = vpack.c.bf16 %v15554_v54, %v15555_v22 }
 0xefa   :  { %6201 = vmatpush2.bf16.msra.mxu1 %v6154_v2  ;;  %v6270_v2 = vpop.trf.xlu1 }
 0xefb   :  { %6351 = vmatprep.subr.bf16.mxu1 %v1041_v50  ;;  %v15559_v50 = vpack.c.bf16 %v15557_v10, %v15558_v27 }
 0xefd   :  { %6203 = vmatmul.mubr.bf16.vlgmr.msra.gmra.mxu1 %v15510_v30  ;;  %v15568_v30 = vpack.c.bf16 %v15566_v47, %v15567_v18 }
 0xefe   :  { %6212 = vmatprep.mubr.bf16.mxu1 %v1097_v38  ;;  %6352 = vmatpush1.bf16.msra.mxu1 %v15513_v3  ;;  %v15562_v38 = vpack.c.bf16 %v15560_v26, %v15561_v49  ;;  %v6271_v34 = vpop.trf.xlu1 }
 0xeff   :  { %6353 = vmatprep.subr.bf16.mxu1 %v1037_v7  ;;  %v15565_v7 = vpack.c.bf16 %v15563_v8, %v15564_v32 }
 0xf02   :  { %6354 = vmatpush1.bf16.msra.mxu1 %v15516_v13  ;;  %v6272_v12 = vpop.trf.xlu1  ;;  %v6284_v13 = vpop.trf.xlu0 }
 0xf03   :  { %7195 = vmatprep.subr.bf16.mxu1 %v15519_v4 }
 0xf05   :  { %6213 = vmatmul.mubr.bf16.gmra.mxu1 %v15522_v45 }
 0xf06   :  { %6371 = vmatprep.mubr.bf16.mxu1 %v15523_v20  ;;  %v6273_v3 = vpop.trf.xlu1  ;;  %v6285_v1 = vpop.trf.xlu0 }
 0xf0a   :  { %v6274_v40 = vpop.trf.xlu1  ;;  %v6286_v28 = vpop.trf.xlu0 }
 0xf0d   :  { %7543 = vmatmul.mubr.msk.bf16.vlgmr.msra.gmra.mxu1 %vm1138_vm2, %v6267_v53  ;;  %v6093_v53 = vrot.slane %v13786_v31, 4 }
 0xf0e   :  { %7196 = vmatpush1.bf16.msra.mxu1 %v15526_v15  ;;  %6381 = vmatprep.mubr.bf16.mxu1 %v15523_v20  ;;  %v6287_v4 = vpop.trf.xlu0  ;;  %v6131_v15 = vadd.f32 %v6130_v37, %v13822_v58 }
 0xf0f   :  { %7197 = vmatprep.subr.bf16.mxu1 %v15529_v29  ;;  %v6094_v17 = vadd.f32 %v6093_v53, %v13786_v31 }
 0xf10   :  { %v6132_v16 = vrot.slane %v6131_v15, 2 }
 0xf11   :  { %v6095_v63 = vrot.slane %v6094_v17, 2 }
 0xf12   :  { %7198 = vmatpush1.bf16.msra.mxu1 %v15532_v44  ;;  %v6288_v14 = vpop.trf.xlu0  ;;  %v6133_v36 = vadd.f32 %v6132_v16, %v6131_v15 }
 0xf13   :  { %7199 = vmatprep.subr.bf16.mxu1 %v15535_v25  ;;  %v6096_v29 = vadd.f32 %v6095_v63, %v6094_v17 }
 0xf14   :  { %v6134_v44 = vrot.slane %v6133_v36, 1 }
 0xf15   :  { %7544 = vmatmul.mubr.msk.bf16.gmra.mxu1 %vm1138_vm2, %v6268_v43  ;;  %v6097_v52 = vrot.slane %v6096_v29, 1 }
 0xf16   :  { %7200 = vmatpush1.bf16.msra.mxu1 %v15538_v39  ;;  %6391 = vmatprep.mubr.bf16.mxu1 %v15523_v20  ;;  %v6289_v35 = vpop.trf.xlu0  ;;  %v6135_v11 = vadd.f32 %v6134_v44, %v6133_v36 }
 0xf17   :  { %7201 = vmatprep.subr.bf16.mxu1 %v15541_v42  ;;  %v6098_v43 = vadd.f32 %v6097_v52, %v6096_v29 }
 0xf19   :  { %8591 = vrcp.f32 %v6098_v43 }
 0xf1a   :  { %7202 = vmatpush1.bf16.msra.mxu1 %v15544_v9  ;;  %v6290_v45 = vpop.trf.xlu0  ;;  %8593 = vrcp.f32 %v6135_v11 }
 0xf1b   :  { %7203 = vmatprep.subr.bf16.mxu1 %v15547_v6 }
 0xf1d   :  { %7545 = vmatmul.mubr.msk.bf16.gmra.mxu1 %vm1138_vm2, %v6269_v41 }
 0xf1e   :  { %7204 = vmatpush1.bf16.msra.mxu1 %v15550_v19  ;;  %6401 = vmatprep.mubr.bf16.mxu1 %v15523_v20 }
 0xf1f   :  { %7205 = vmatprep.subr.bf16.mxu1 %v15553_v21 }
 0xf22   :  { %7206 = vmatpush1.bf16.msra.mxu1 %v15556_v23 }
 0xf23   :  { %7207 = vmatprep.subr.bf16.mxu1 %v15559_v50 }
 0xf25   :  { %7546 = vmatmul.mubr.msk.bf16.gmra.mxu1 %vm1138_vm2, %v6270_v2 }
 0xf26   :  { %7208 = vmatpush1.bf16.msra.mxu1 %v15562_v38  ;;  %6411 = vmatprep.mubr.bf16.mxu1 %v15523_v20  ;;  %v8592_v0 = vpop.eup %8591 }
 0xf27   :  { %7209 = vmatprep.subr.bf16.mxu1 %v15565_v7  ;;  %v8594_v62 = vpop.eup %8593 }
 0xf2a   :  { %7210 = vmatpush1.bf16.msra.mxu1 %v15568_v30 }
 0xf2d   :  { %7547 = vmatmul.mubr.msk.bf16.gmra.mxu1 %vm1138_vm2, %v6271_v34 }
 0xf2e   :  { %6421 = vmatprep.mubr.bf16.mxu1 %v15523_v20 }
 0xf35   :  { %7548 = vmatmul.mubr.msk.bf16.gmra.mxu1 %vm1138_vm2, %v6272_v12 }
 0xf36   :  { %6431 = vmatprep.mubr.bf16.mxu1 %v15523_v20 }
 0xf3d   :  { %7549 = vmatmul.mubr.msk.bf16.gmra.mxu1 %vm1138_vm2, %v6273_v3 }
 0xf3e   :  { %6441 = vmatprep.mubr.bf16.mxu1 %v15523_v20 }
 0xf45   :  { %7550 = vmatmul.mubr.msk.bf16.gmra.mxu1 %vm1138_vm2, %v6274_v40 }
 0xf46   :  { %6451 = vmatprep.mubr.bf16.mxu1 %v15523_v20 }
 0xf4d   :  { %7551 = vmatmul.mubr.msk.bf16.gmra.mxu1 %vm1138_vm2, %v6283_v46 }
 0xf4e   :  { %6461 = vmatprep.mubr.bf16.mxu1 %v15523_v20 }
 0xf55   :  { %7552 = vmatmul.mubr.msk.bf16.gmra.mxu1 %vm1138_vm2, %v6284_v13 }
 0xf56   :  { %6471 = vmatprep.mubr.bf16.mxu1 %v15523_v20 }
 0xf5d   :  { %7553 = vmatmul.mubr.msk.bf16.gmra.mxu1 %vm1138_vm2, %v6285_v1 }
 0xf5e   :  { %6481 = vmatprep.mubr.bf16.mxu1 %v15523_v20 }
 0xf65   :  { %7554 = vmatmul.mubr.msk.bf16.gmra.mxu1 %vm1138_vm2, %v6286_v28 }
 0xf66   :  { %6491 = vmatprep.mubr.bf16.mxu1 %v15523_v20 }
 0xf6d   :  { %7555 = vmatmul.mubr.msk.bf16.gmra.mxu1 %vm1138_vm2, %v6287_v4 }
 0xf6e   :  { %6501 = vmatprep.mubr.bf16.mxu1 %v15523_v20 }
 0xf75   :  { %7556 = vmatmul.mubr.msk.bf16.gmra.mxu1 %vm1138_vm2, %v6288_v14 }
 0xf76   :  { %6511 = vmatprep.mubr.bf16.mxu1 %v15523_v20 }
 0xf7d   :  { %7557 = vmatmul.mubr.msk.bf16.gmra.mxu1 %vm1138_vm2, %v6289_v35 }
 0xf7e   :  { %6521 = vmatprep.mubr.bf16.mxu1 %v15523_v20 }
 0xf85   :  { %7558 = vmatmul.mubr.msk.bf16.gmra.mxu1 %vm1138_vm2, %v6290_v45 }
 0xf86   :  { %7227 = vmatprep.mubr.bf16.mxu1 %v15523_v20 }
 0xfbd   :  { %v6204_v25 = vpop.f32.mrf.mxu1 }
 0xfbe   :  { %v13941_v5 = vmul.f32 %v8592_v0, %v6204_v25 }
 0xfbf   :  { %v6206_v39 = vpop.f32.mrf.mxu1 }
 0xfc0   :  { %15569 = vst [vmem:[#allocation96_spill] sm:$0xff] %v13941_v5  ;;  %v13943_v61 = vmul.f32 %v8594_v62, %v6206_v39 }
 0xfc1   :  { %v6208_v31 = vpop.f32.mrf.mxu1 }
 0xfc2   :  { %15570 = vst [vmem:[#allocation30_spill] sm:$0xff] %v13943_v61  ;;  %v13945_v58 = vmul.f32 %v8592_v0, %v6208_v31 }
 0xfc3   :  { %v6210_v33 = vpop.f32.mrf.mxu1 }
 0xfc4   :  { %15571 = vst [vmem:[#allocation28_spill] sm:$0xff] %v13945_v58  ;;  %v13949_v59 = vmul.f32 %v8594_v62, %v6210_v33 }
 0xfc5   :  { %v6214_v51 = vpop.f32.mrf.mxu1 }
 0xfc6   :  { %15572 = vst [vmem:[#allocation53_spill] sm:$0xff] %v13949_v59  ;;  %v13953_v41 = vmul.f32 %v8592_v0, %v6214_v51 }
 0xfc7   :  { %v6216_v48 = vpop.f32.mrf.mxu1 }
 0xfc8   :  { %15573 = vst [vmem:[#allocation55_spill] sm:$0xff] %v13953_v41  ;;  %v13955_v56 = vmul.f32 %v8594_v62, %v6216_v48 }
 0xfc9   :  { %v6218_v6 = vpop.f32.mrf.mxu1 }
 0xfca   :  { %15574 = vst [vmem:[#allocation91_spill] sm:$0xff] %v13955_v56  ;;  %v13957_v57 = vmul.f32 %v8592_v0, %v6218_v6 }
 0xfcb   :  { %v6220_v24 = vpop.f32.mrf.mxu1 }
 0xfcc   :  { %15575 = vst [vmem:[#allocation95_spill] sm:$0xff] %v13957_v57  ;;  %v13961_v55 = vmul.f32 %v8594_v62, %v6220_v24 }
 0xfcd   :  { %v13963_v60 = vpop.f32.mrf.mxu1 }
 0xfce   :  { %15576 = vst [vmem:[#allocation49_spill] sm:$0xff] %v13961_v55 }
 0xfcf   :  { %v13967_v54 = vpop.f32.mrf.mxu1 }
 0xfd1   :  { %v13969_v22 = vpop.f32.mrf.mxu1 }
 0xfd3   :  { %v13971_v23 = vpop.f32.mrf.mxu1 }
 0xfd5   :  { %v13973_v2 = vpop.f32.mrf.mxu1 }
 0xfd6   :  { %v6532_v6 = vmax.f32 %v13963_v60, %v13973_v2 }
 0xfd7   :  { %v13975_v10 = vpop.f32.mrf.mxu1 }
 0xfd9   :  { %v13977_v27 = vpop.f32.mrf.mxu1 }
 0xfda   :  { %v6533_v24 = vmax.f32 %v13969_v22, %v13977_v27 }
 0xfdb   :  { %v13979_v50 = vpop.f32.mrf.mxu1 }
 0xfdc   :  { %15577 = vst [vmem:[#allocation51_spill] sm:$0xff] %v13979_v50 }
 0xfdd   :  { %v13981_v26 = vpop.f32.mrf.mxu1 }
 0xfde   :  { %v6534_v9 = vmax.f32 %v6532_v6, %v13981_v26 }
 0xfdf   :  { %v13983_v49 = vpop.f32.mrf.mxu1 }
 0xfe1   :  { %v13985_v38 = vpop.f32.mrf.mxu1 }
 0xfe2   :  { %v6535_v19 = vmax.f32 %v6533_v24, %v13985_v38 }
 0xfe3   :  { %v13987_v8 = vpop.f32.mrf.mxu1 }
 0xfe4   :  { %15578 = vst [vmem:[#allocation85_spill] sm:$0xff] %v13987_v8 }
 0xfe5   :  { %v13989_v32 = vpop.f32.mrf.mxu1 }
 0xfe6   :  { %v6536_v5 = vmax.f32 %v6534_v9, %v13989_v32 }
 0xfe7   :  { %v13991_v7 = vpop.f32.mrf.mxu1 }
 0xfe9   :  { %v13993_v47 = vpop.f32.mrf.mxu1 }
 0xfea   :  { %v6537_v58 = vmax.f32 %v6535_v19, %v13993_v47 }
 0xfeb   :  { %v13995_v18 = vpop.f32.mrf.mxu1 }
 0xfec   :  { %15579 = vst [vmem:[#allocation81_spill] sm:$0xff] %v13995_v18 }
 0xfed   :  { %v13997_v30 = vpop.f32.mrf.mxu1 }
 0xfee   :  { %15580 = vst [vmem:[#allocation54_spill] sm:$0xff] %v13997_v30  ;;  %v6538_v59 = vmax.f32 %v6536_v5, %v13997_v30 }
 0xfef   :  { %v13999_v34 = vpop.f32.mrf.mxu1 }
 0xff0   :  { %15581 = vst [vmem:[#allocation52_spill] sm:$0xff] %v13999_v34 }
 0xff1   :  { %v14001_v12 = vpop.f32.mrf.mxu1 }
 0xff2   :  { %v6539_v41 = vmax.f32 %v6537_v58, %v14001_v12 }
 0xff3   :  { %v14003_v3 = vpop.f32.mrf.mxu1 }
 0xff4   :  { %15582 = vst [vmem:[#allocation50_spill] sm:$0xff] %v14003_v3 }
 0xff5   :  { %v14005_v40 = vpop.f32.mrf.mxu1 }
 0xff6   :  { %15583 = vst [vmem:[#allocation48_spill] sm:$0xff] %v14005_v40  ;;  %v6540_v56 = vmax.f32 %v6538_v59, %v14005_v40 }
 0xff7   :  { %v14007_v46 = vpop.f32.mrf.mxu1 }
 0xff9   :  { %v14009_v13 = vpop.f32.mrf.mxu1 }
 0xffa   :  { %v6541_v6 = vmax.f32 %v6539_v41, %v14009_v13 }
 0xffb   :  { %v14011_v1 = vpop.f32.mrf.mxu1 }
 0xffd   :  { %v14013_v28 = vpop.f32.mrf.mxu1 }
 0xffe   :  { %15584 = vst [vmem:[#allocation93_spill] sm:$0xff] %v14013_v28  ;;  %v6542_v24 = vmax.f32 %v6540_v56, %v14013_v28 }
 0xfff   :  { %v14015_v4 = vpop.f32.mrf.mxu1 }
0x1001   :  { %v14017_v14 = vpop.f32.mrf.mxu1 }
0x1002   :  { %v6543_v9 = vmax.f32 %v6541_v6, %v14017_v14  ;;  %v6570_v6 = vmax.f32 %v13971_v23, %v13979_v50 }
0x1003   :  { %v14019_v35 = vpop.f32.mrf.mxu1 }
0x1005   :  { %v14021_v45 = vpop.f32.mrf.mxu1 }
0x1006   :  { %v6544_v19 = vmax.f32 %v6542_v24, %v14021_v45 }
0x1007   :  { %v14023_v53 = vpop.f32.mrf.mxu1 }
0x1009   :  { %v14025_v37 = vpop.f32.mrf.mxu1 }
0x100a   :  { %15585 = vst [vmem:[#allocation89_spill] sm:$0xff] %v14025_v37  ;;  %v6545_v5 = vmax.f32 %v6543_v9, %v14025_v37 }
0x100b   :  { %v14027_v17 = vpop.f32.mrf.mxu1 }
0x100d   :  { %v14029_v15 = vpop.f32.mrf.mxu1 }
0x100e   :  { %v6546_v58 = vmax.f32 %v6544_v19, %v14029_v15  ;;  %v6569_v19 = vmax.f32 %v13967_v54, %v13975_v10 }
0x100f   :  { %v14031_v63 = vpop.f32.mrf.mxu1 }
0x1011   :  { %v14033_v16 = vpop.f32.mrf.mxu1 }
0x1012   :  { %v6547_v59 = vmax.f32 %v6545_v5, %v14033_v16  ;;  %v6572_v5 = vmax.f32 %v6570_v6, %v13987_v8 }
0x1013   :  { %v14035_v29 = vpop.f32.mrf.mxu1 }
0x1014   :  { %v6574_v50 = vmax.f32 %v6572_v5, %v13995_v18 }
0x1015   :  { %v14037_v36 = vpop.f32.mrf.mxu1 }
0x1016   :  { %15586 = vst [vmem:[#allocation113_spill] sm:$0xff] %v14037_v36  ;;  %v6548_v41 = vmax.f32 %v6546_v58, %v14037_v36  ;;  %v6571_v36 = vmax.f32 %v6569_v19, %v13983_v49  ;;  %v6576_v6 = vmax.f32 %v6574_v50, %v14003_v3 }
0x1017   :  { %v14039_v52 = vpop.f32.mrf.mxu1 }
0x1018   :  { %v6578_v5 = vmax.f32 %v6576_v6, %v14011_v1 }
0x1019   :  { %v14041_v44 = vpop.f32.mrf.mxu1 }
0x101a   :  { %15587 = vst [vmem:[#allocation116_spill] sm:$0xff] %v14041_v44  ;;  %v6549_v56 = vmax.f32 %v6547_v59, %v14041_v44  ;;  %v6580_v50 = vmax.f32 %v6578_v5, %v14019_v35 }
0x101b   :  { %v14043_v43 = vpop.f32.mrf.mxu1 }
0x101d   :  { %v14045_v11 = vpop.f32.mrf.mxu1 }
0x101e   :  { %15588 = vst [vmem:[#allocation21_spill] sm:$0xff] %v14045_v11  ;;  %v6550_v24 = vmax.f32 %v6548_v41, %v14045_v11  ;;  %v6573_v11 = vmax.f32 %v6571_v36, %v13991_v7 }
0x101f   :  { %v14047_v0 = vpop.f32.mrf.mxu1 }
0x1020   :  { %v6575_v19 = vmax.f32 %v6573_v11, %v13999_v34  ;;  %v6582_v11 = vmax.f32 %v6580_v50, %v14027_v17 }
0x1021   :  { %v14049_v25 = vpop.f32.mrf.mxu1 }
0x1022   :  { %15589 = vst [vmem:[#allocation141_spill] sm:$0xff] %v14049_v25  ;;  %v6551_v9 = vmax.f32 %v6549_v56, %v14049_v25  ;;  %v6577_v36 = vmax.f32 %v6575_v19, %v14007_v46 }
0x1023   :  { %v14051_v62 = vpop.f32.mrf.mxu1 }
0x1024   :  { %v6579_v3 = vmax.f32 %v6577_v36, %v14015_v4 }
0x1025   :  { %v14053_v39 = vpop.f32.mrf.mxu1 }
0x1026   :  { %v6552_v58 = vmax.f32 %v6550_v24, %v14053_v39  ;;  %v6581_v6 = vmax.f32 %v6579_v3, %v14023_v53 }
0x1027   :  { %v14055_v31 = vpop.f32.mrf.mxu1 }
0x1029   :  { %v14057_v33 = vpop.f32.mrf.mxu1 }
0x102a   :  { %v6553_v59 = vmax.f32 %v6551_v9, %v14057_v33 }
0x102b   :  { %v14059_v51 = vpop.f32.mrf.mxu1 }
0x102d   :  { %v14061_v48 = vpop.f32.mrf.mxu1 }
0x102e   :  { %v6554_v41 = vmax.f32 %v6552_v58, %v14061_v48 }
0x102f   :  { %v14067_v42 = vpop.f32.mrf.mxu1 }
0x1031   :  { %v14071_v21 = vpop.f32.mrf.mxu1 }
0x1032   :  { %v6555_v56 = vmax.f32 %v6553_v59, %v14071_v21 }
0x1033   :  { %v14075_v61 = vpop.f32.mrf.mxu1 }
0x1035   :  { %v14079_v57 = vpop.f32.mrf.mxu1 }
0x1036   :  { %v6556_v24 = vmax.f32 %v6554_v41, %v14079_v57 }
0x1037   :  { %v14083_v55 = vpop.f32.mrf.mxu1 }
0x1039   :  { %v14087_v20 = vpop.f32.mrf.mxu1 }
0x103a   :  { %v6557_v9 = vmax.f32 %v6555_v56, %v14087_v20 }
0x103b   :  { %v14091_v30 = vpop.f32.mrf.mxu1 }
0x103d   :  { %v14095_v40 = vpop.f32.mrf.mxu1 }
0x103e   :  { %15590 = vst [vmem:[#allocation140_spill] sm:$0xff] %v14095_v40  ;;  %v6558_v58 = vmax.f32 %v6556_v24, %v14095_v40  ;;  %v6584_v24 = vmax.f32 %v6582_v11, %v14035_v29 }
0x103f   :  { %v14099_v28 = vpop.f32.mrf.mxu1 }
0x1040   :  { %v6586_v19 = vmax.f32 %v6584_v24, %v14043_v43 }
0x1041   :  { %v14105_v37 = vpop.f32.mrf.mxu1 }
0x1042   :  { %15591 = vst [vmem:[#allocation152_spill] sm:$0xff] %v14105_v37  ;;  %v6559_v59 = vmax.f32 %v6557_v9, %v14105_v37  ;;  %v6583_v37 = vmax.f32 %v6581_v6, %v14031_v63 }
0x1043   :  { %v14112_v44 = vpop.f32.mrf.mxu1 }
0x1044   :  { %v6585_v5 = vmax.f32 %v6583_v37, %v14039_v52 }
0x1045   :  { %v14118_v25 = vpop.f32.mrf.mxu1 }
0x1046   :  { %v6560_v41 = vmax.f32 %v6558_v58, %v14118_v25  ;;  %v6588_v58 = vmax.f32 %v6586_v19, %v14051_v62  ;;  %v6587_v36 = vmax.f32 %v6585_v5, %v14047_v0 }
0x1047   :  { %v14124_v8 = vpop.f32.mrf.mxu1 }
0x1048   :  { %v6590_v50 = vmax.f32 %v6588_v58, %v14059_v51  ;;  %v6589_v3 = vmax.f32 %v6587_v36, %v14055_v31 }
0x1049   :  { %v14130_v18 = vpop.f32.mrf.mxu1 }
0x104a   :  { %v6561_v56 = vmax.f32 %v6559_v59, %v14130_v18  ;;  %v6591_v6 = vmax.f32 %v6589_v3, %v14067_v42 }
0x104c   :  { %v6562_v34 = vmax.f32 %v6560_v41, %v6561_v56  ;;  %v6592_v56 = vmax.f32 %v6590_v50, %v14075_v61  ;;  %v6593_v37 = vmax.f32 %v6591_v6, %v14083_v55 }
0x104e   :  { %v6563_v9 = vrot.slane %v6562_v34, 4  ;;  %v6594_v24 = vmax.f32 %v6592_v56, %v14091_v30  ;;  %v6595_v5 = vmax.f32 %v6593_v37, %v14099_v28 }
0x1050   :  { %v6564_v40 = vmax.f32 %v6562_v34, %v6563_v9  ;;  %v14150_v34 = vpop.f32.mrf.mxu1  ;;  %v6596_v9 = vmax.f32 %v6594_v24, %v14112_v44  ;;  %v6597_v58 = vmax.f32 %v6595_v5, %v14124_v8 }
0x1052   :  { %v6565_v59 = vrot.slane %v6564_v40, 2 }
0x1054   :  { %v6566_v41 = vmax.f32 %v6564_v40, %v6565_v59  ;;  %v6598_v40 = vmax.f32 %v6596_v9, %v14150_v34 }
0x1056   :  { %v6567_v11 = vrot.slane %v6566_v41, 1  ;;  %v6599_v3 = vmax.f32 %v6597_v58, %v6598_v40 }
0x1058   :  { %v14154_v19 = vmax.f32 %v6566_v41, %v6567_v11  ;;  %v6600_v37 = vrot.slane %v6599_v3, 4 }
0x105a   :  { %v6606_v59 = vsub.f32 %v13963_v60, %v14154_v19  ;;  %v6608_v36 = vsub.f32 %v13969_v22, %v14154_v19  ;;  %v6610_v50 = vsub.f32 %v13973_v2, %v14154_v19  ;;  %v6612_v41 = vsub.f32 %v13977_v27, %v14154_v19 }
0x105b   :  { %v6614_v6 = vsub.f32 %v13981_v26, %v14154_v19  ;;  %v6616_v60 = vsub.f32 %v13985_v38, %v14154_v19  ;;  %v6618_v2 = vsub.f32 %v13989_v32, %v14154_v19  ;;  %v6601_v5 = vmax.f32 %v6599_v3, %v6600_v37  ;;  %v15592_v26 = vld [vmem:[#allocation54_spill] sm:$0xff] }
0x105c   :  { %v6670_v56 = vmul.f32 1.442695, %v6606_v59  ;;  %v6674_v11 = vmul.f32 1.442695, %v6608_v36  ;;  %v6678_v24 = vmul.f32 1.442695, %v6610_v50  ;;  %v6620_v27 = vsub.f32 %v13993_v47, %v14154_v19 }
0x105d   :  { %v6682_v22 = vmul.f32 1.442695, %v6612_v41  ;;  %v6686_v9 = vmul.f32 1.442695, %v6614_v6  ;;  %v6690_v40 = vmul.f32 1.442695, %v6616_v60  ;;  %v6622_v58 = vsub.f32 %v15592_v26, %v14154_v19 }
0x105e   :  { %8595 = vpow2.f32 %v6670_v56  ;;  %v6694_v59 = vmul.f32 1.442695, %v6618_v2  ;;  %v6624_v38 = vsub.f32 %v14001_v12, %v14154_v19  ;;  %v6602_v36 = vrot.slane %v6601_v5, 2  ;;  %v15593_v50 = vld [vmem:[#allocation48_spill] sm:$0xff]  ;;  %v15594_v47 = vld [vmem:[#allocation93_spill] sm:$0xff] }
0x105f   :  { %8597 = vpow2.f32 %v6674_v11  ;;  %v6626_v32 = vsub.f32 %v15593_v50, %v14154_v19  ;;  %v6698_v41 = vmul.f32 1.442695, %v6620_v27  ;;  %v6628_v3 = vsub.f32 %v14009_v13, %v14154_v19 }
0x1060   :  { %8599 = vpow2.f32 %v6678_v24  ;;  %v6630_v56 = vsub.f32 %v15594_v47, %v14154_v19  ;;  %v6702_v11 = vmul.f32 1.442695, %v6622_v58  ;;  %v6632_v6 = vsub.f32 %v14017_v14, %v14154_v19 }
0x1061   :  { %8601 = vpow2.f32 %v6682_v22  ;;  %v6706_v24 = vmul.f32 1.442695, %v6624_v38  ;;  %v6603_v37 = vmax.f32 %v6601_v5, %v6602_v36  ;;  %v6634_v60 = vsub.f32 %v14021_v45, %v14154_v19 }
0x1062   :  { %8603 = vpow2.f32 %v6686_v9  ;;  %v6710_v22 = vmul.f32 1.442695, %v6626_v32  ;;  %v6650_v13 = vsub.f32 %v14053_v39, %v14154_v19  ;;  %v6714_v9 = vmul.f32 1.442695, %v6628_v3 }
0x1063   :  { %8605 = vpow2.f32 %v6690_v40  ;;  %v6652_v27 = vsub.f32 %v14057_v33, %v14154_v19  ;;  %v6718_v14 = vmul.f32 1.442695, %v6630_v56  ;;  %v6654_v45 = vsub.f32 %v14061_v48, %v14154_v19 }
0x1064   :  { %8607 = vpow2.f32 %v6694_v59  ;;  %v6722_v26 = vmul.f32 1.442695, %v6632_v6  ;;  %v6604_v58 = vrot.slane %v6603_v37, 1  ;;  %v6656_v39 = vsub.f32 %v14071_v21, %v14154_v19  ;;  %v15596_v21 = vld [vmem:[#allocation89_spill] sm:$0xff] }
0x1065   :  { %8609 = vpow2.f32 %v6698_v41  ;;  %v6726_v59 = vmul.f32 1.442695, %v6634_v60  ;;  %v6658_v36 = vsub.f32 %v14079_v57, %v14154_v19  ;;  %v6758_v50 = vmul.f32 1.442695, %v6650_v13  ;;  %v15597_v13 = vld [vmem:[#allocation113_spill] sm:$0xff] }
0x1066   :  { %8611 = vpow2.f32 %v6702_v11  ;;  %v6660_v48 = vsub.f32 %v14087_v20, %v14154_v19  ;;  %v6762_v32 = vmul.f32 1.442695, %v6652_v27  ;;  %v6636_v47 = vsub.f32 %v15596_v21, %v14154_v19 }
0x1067   :  { %8613 = vpow2.f32 %v6706_v24  ;;  %v6766_v56 = vmul.f32 1.442695, %v6654_v45  ;;  %v14217_v11 = vmax.f32 %v6603_v37, %v6604_v58  ;;  %v6638_v57 = vsub.f32 %v14029_v15, %v14154_v19 }
0x1068   :  { %8615 = vpow2.f32 %v6710_v22  ;;  %v6770_v6 = vmul.f32 1.442695, %v6656_v39  ;;  %v6640_v60 = vsub.f32 %v14033_v16, %v14154_v19  ;;  %v6774_v22 = vmul.f32 1.442695, %v6658_v36  ;;  %v15598_v39 = vld [vmem:[#allocation116_spill] sm:$0xff] }
0x1069   :  { %8617 = vpow2.f32 %v6714_v9  ;;  %v6642_v9 = vsub.f32 %v15597_v13, %v14154_v19  ;;  %v6778_v37 = vmul.f32 1.442695, %v6660_v48  ;;  %v6730_v15 = vmul.f32 1.442695, %v6636_v47 }
0x106a   :  { %8619 = vpow2.f32 %v6718_v14  ;;  %v6734_v45 = vmul.f32 1.442695, %v6638_v57 }
0x106b   :  { %v14187_v12 = vpop.eup %8595  ;;  %8621 = vpow2.f32 %v6722_v26  ;;  %v6609_v26 = vsub.f32 %v13971_v23, %v14217_v11  ;;  %v6742_v36 = vmul.f32 1.442695, %v6642_v9 }
0x106c   :  { %v14191_v2 = vpop.eup %8597  ;;  %8623 = vpow2.f32 %v6726_v59  ;;  %v6644_v59 = vsub.f32 %v15598_v39, %v14154_v19 }
0x106d   :  { %15595 = vst [vmem:[#allocation17_spill] sm:$0xff] %v14191_v2  ;;  %v6798_v5 = vadd.f32 %v14191_v2, %v14187_v12  ;;  %v14199_v40 = vpop.eup %8599  ;;  %8625 = vpow2.f32 %v6758_v50 }
0x106e   :  { %v14206_v38 = vpop.eup %8601  ;;  %8627 = vpow2.f32 %v6762_v32  ;;  %v15599_v32 = vld [vmem:[#allocation21_spill] sm:$0xff] }
0x106f   :  { %v6799_v33 = vadd.f32 %v14199_v40, %v6798_v5  ;;  %v14213_v3 = vpop.eup %8603  ;;  %8629 = vpow2.f32 %v6766_v56  ;;  %v6607_v5 = vsub.f32 %v13967_v54, %v14217_v11  ;;  %v6611_v54 = vsub.f32 %v13975_v10, %v14217_v11  ;;  %v15600_v56 = vld [vmem:[#allocation51_spill] sm:$0xff]  ;;  %v15601_v10 = vld [vmem:[#allocation141_spill] sm:$0xff] }
0x1070   :  { %v14222_v24 = vpop.eup %8605  ;;  %8631 = vpow2.f32 %v6770_v6  ;;  %v6613_v57 = vsub.f32 %v15600_v56, %v14217_v11  ;;  %v6676_v6 = vmul.f32 1.442695, %v6609_v26 }
0x1071   :  { %v6800_v41 = vadd.f32 %v14206_v38, %v6799_v33  ;;  %v14229_v14 = vpop.eup %8607  ;;  %v6738_v33 = vmul.f32 1.442695, %v6640_v60  ;;  %8633 = vpow2.f32 %v6774_v22  ;;  %v6672_v23 = vmul.f32 1.442695, %v6607_v5 }
0x1072   :  { %v14236_v58 = vpop.eup %8609  ;;  %8635 = vpow2.f32 %v6778_v37  ;;  %v6648_v60 = vsub.f32 %v15601_v10, %v14154_v19  ;;  %v6746_v22 = vmul.f32 1.442695, %v6644_v59  ;;  %v6615_v37 = vsub.f32 %v13983_v49, %v14217_v11 }
0x1073   :  { %v6801_v20 = vadd.f32 %v14213_v3, %v6800_v41  ;;  %v14243_v48 = vpop.eup %8611  ;;  %v6646_v41 = vsub.f32 %v15599_v32, %v14154_v19  ;;  %8637 = vpow2.f32 %v6730_v15  ;;  %v6619_v59 = vsub.f32 %v13991_v7, %v14217_v11 }
0x1074   :  { %v14247_v21 = vpop.eup %8613  ;;  %8639 = vpow2.f32 %v6734_v45  ;;  %v15602_v45 = vld [vmem:[#allocation85_spill] sm:$0xff]  ;;  %v6754_v49 = vmul.f32 1.442695, %v6648_v60  ;;  %v6688_v56 = vmul.f32 1.442695, %v6615_v37  ;;  %v6631_v7 = vsub.f32 %v14015_v4, %v14217_v11 }
0x1075   :  { %v6802_v27 = vadd.f32 %v14222_v24, %v6801_v20  ;;  %v14252_v20 = vpop.eup %8615  ;;  %8641 = vpow2.f32 %v6738_v33  ;;  %v6750_v5 = vmul.f32 1.442695, %v6646_v41  ;;  %v6684_v33 = vmul.f32 1.442695, %v6613_v57 }
0x1076   :  { %v14256_v13 = vpop.eup %8617  ;;  %8643 = vpow2.f32 %v6742_v36  ;;  %v6633_v57 = vsub.f32 %v14019_v35, %v14217_v11  ;;  %v6637_v4 = vsub.f32 %v14027_v17, %v14217_v11 }
0x1077   :  { %v6803_v16 = vadd.f32 %v14229_v14, %v6802_v27  ;;  %v6680_v27 = vmul.f32 1.442695, %v6611_v54  ;;  %v14261_v15 = vpop.eup %8619  ;;  %8645 = vpow2.f32 %v6672_v23  ;;  %v15604_v23 = vld [vmem:[#allocation52_spill] sm:$0xff] }
0x1078   :  { %v14265_v26 = vpop.eup %8621  ;;  %8647 = vpow2.f32 %v6676_v6 }
0x1079   :  { %v6804_v50 = vadd.f32 %v14236_v58, %v6803_v16  ;;  %v6617_v16 = vsub.f32 %v15602_v45, %v14217_v11  ;;  %v14270_v36 = vpop.eup %8623  ;;  %8649 = vpow2.f32 %v6746_v22 }
0x107a   :  { %v14274_v32 = vpop.eup %8625  ;;  %8651 = vpow2.f32 %v6680_v27 }
0x107b   :  { %v6805_v47 = vadd.f32 %v14243_v48, %v6804_v50  ;;  %v15603_v50 = vld [vmem:[#allocation81_spill] sm:$0xff]  ;;  %v14279_v10 = vpop.eup %8627  ;;  %8653 = vpow2.f32 %v6750_v5  ;;  %v6692_v6 = vmul.f32 1.442695, %v6617_v16  ;;  %v6635_v5 = vsub.f32 %v14023_v53, %v14217_v11 }
0x107c   :  { %v6621_v54 = vsub.f32 %v15603_v50, %v14217_v11  ;;  %v14285_v60 = vpop.eup %8629  ;;  %8655 = vpow2.f32 %v6684_v33  ;;  %v6720_v53 = vmul.f32 1.442695, %v6631_v7 }
0x107d   :  { %v6806_v9 = vadd.f32 %v14247_v21, %v6805_v47  ;;  %v6623_v47 = vsub.f32 %v15604_v23, %v14217_v11  ;;  %v14290_v37 = vpop.eup %8631  ;;  %8657 = vpow2.f32 %v6754_v49  ;;  %v15605_v49 = vld [vmem:[#allocation50_spill] sm:$0xff] }
0x107e   :  { %v6700_v35 = vmul.f32 1.442695, %v6621_v54  ;;  %v14296_v45 = vpop.eup %8633  ;;  %8659 = vpow2.f32 %v6688_v56  ;;  %v6625_v50 = vsub.f32 %v15605_v49, %v14217_v11  ;;  %v6724_v54 = vmul.f32 1.442695, %v6633_v57 }
0x107f   :  { %v6807_v39 = vadd.f32 %v14252_v20, %v6806_v9  ;;  %v6696_v9 = vmul.f32 1.442695, %v6619_v59  ;;  %v14301_v33 = vpop.eup %8635  ;;  %8661 = vpow2.f32 %v6692_v6  ;;  %v6627_v56 = vsub.f32 %v14007_v46, %v14217_v11 }
0x1080   :  { %v6629_v6 = vsub.f32 %v14011_v1, %v14217_v11  ;;  %v6708_v59 = vmul.f32 1.442695, %v6625_v50  ;;  %v15611_v50 = vld [vmem:[#allocation152_spill] sm:$0xff] }
0x1081   :  { %v6808_v41 = vadd.f32 %v14256_v13, %v6807_v39  ;;  %v6704_v39 = vmul.f32 1.442695, %v6623_v47  ;;  %8663 = vpow2.f32 %v6696_v9  ;;  %v6732_v9 = vmul.f32 1.442695, %v6637_v4 }
0x1082   :  { %8665 = vpow2.f32 %v6700_v35  ;;  %v6716_v4 = vmul.f32 1.442695, %v6629_v6 }
0x1083   :  { %v6809_v22 = vadd.f32 %v14261_v15, %v6808_v41  ;;  %v14305_v41 = vpop.eup %8637  ;;  %8667 = vpow2.f32 %v6704_v39 }
0x1084   :  { %v14310_v47 = vpop.eup %8639  ;;  %8669 = vpow2.f32 %v6720_v53 }
0x1085   :  { %v6810_v16 = vadd.f32 %v14265_v26, %v6809_v22  ;;  %15606 = vst [vmem:[#allocation137_spill] sm:$0xff] %v14310_v47  ;;  %v6728_v22 = vmul.f32 1.442695, %v6635_v5  ;;  %v14314_v27 = vpop.eup %8641  ;;  %8671 = vpow2.f32 %v6724_v54  ;;  %v15609_v5 = vld [vmem:[#allocation140_spill] sm:$0xff]  ;;  %v6664_v54 = vsub.f32 %v15611_v50, %v14154_v19 }
0x1086   :  { %15607 = vst [vmem:[#allocation15_spill] sm:$0xff] %v14314_v27  ;;  %v14319_v57 = vpop.eup %8643  ;;  %v6662_v35 = vsub.f32 %v15609_v5, %v14154_v19  ;;  %v6659_v5 = vsub.f32 %v14083_v55, %v14217_v11 }
0x1087   :  { %v6811_v17 = vadd.f32 %v14270_v36, %v6810_v16  ;;  %15608 = vst [vmem:[#allocation82_spill] sm:$0xff] %v14319_v57  ;;  %v14321_v16 = vpop.eup %8645  ;;  %8673 = vpow2.f32 %v6728_v22 }
0x1088   :  { %v14324_v46 = vpop.eup %8647  ;;  %8675 = vpow2.f32 %v6732_v9  ;;  %v6782_v9 = vmul.f32 1.442695, %v6662_v35  ;;  %v6668_v35 = vsub.f32 %v14130_v18, %v14154_v19 }
0x1089   :  { %v6812_v7 = vadd.f32 %v14305_v41, %v6811_v17  ;;  %v6712_v17 = vmul.f32 1.442695, %v6627_v56  ;;  %v14328_v23 = vpop.eup %8649  ;;  %v6835_v39 = vadd.f32 %v14324_v46, %v14321_v16  ;;  %v6666_v56 = vsub.f32 %v14118_v25, %v14154_v19 }
0x108a   :  { %15610 = vst [vmem:[#allocation77_spill] sm:$0xff] %v14328_v23  ;;  %v14333_v53 = vpop.eup %8651  ;;  %8677 = vpow2.f32 %v6708_v59  ;;  %v6641_v19 = vsub.f32 %v14035_v29, %v14217_v11 }
0x108b   :  { %v6813_v49 = vadd.f32 %v14310_v47, %v6812_v7  ;;  %v14337_v7 = vpop.eup %8653  ;;  %8679 = vpow2.f32 %v6712_v17  ;;  %v6661_v47 = vsub.f32 %v14091_v30, %v14217_v11  ;;  %v6790_v55 = vmul.f32 1.442695, %v6666_v56 }
0x108c   :  { %v14343_v6 = vpop.eup %8655  ;;  %8681 = vpow2.f32 %v6716_v4  ;;  %v6639_v30 = vsub.f32 %v14031_v63, %v14217_v11  ;;  %v6776_v4 = vmul.f32 1.442695, %v6659_v5 }
0x108d   :  { %v6814_v1 = vadd.f32 %v14314_v27, %v6813_v49  ;;  %v6836_v49 = vadd.f32 %v14333_v53, %v6835_v39  ;;  %v14347_v27 = vpop.eup %8657  ;;  %8683 = vpow2.f32 %v6782_v9  ;;  %v6643_v9 = vsub.f32 %v14039_v52, %v14217_v11 }
0x108e   :  { %15612 = vst [vmem:[#allocation106_spill] sm:$0xff] %v14347_v27  ;;  %v14353_v59 = vpop.eup %8659 }
0x108f   :  { %v6815_v22 = vadd.f32 %v14319_v57, %v6814_v1  ;;  %v6837_v25 = vadd.f32 %v14343_v6, %v6836_v49  ;;  %v6786_v1 = vmul.f32 1.442695, %v6664_v54  ;;  %v14355_v39 = vpop.eup %8661 }
0x1091   :  { %v6816_v50 = vadd.f32 %v14328_v23, %v6815_v22  ;;  %v6838_v57 = vadd.f32 %v14353_v59, %v6837_v25  ;;  %v14361_v22 = vpop.eup %8663  ;;  %v6780_v23 = vmul.f32 1.442695, %v6661_v47  ;;  %8685 = vpow2.f32 %v6786_v1 }
0x1092   :  { %v14365_v49 = vpop.eup %8665  ;;  %8687 = vpow2.f32 %v6790_v55  ;;  %v6736_v1 = vmul.f32 1.442695, %v6639_v30  ;;  %v6740_v55 = vmul.f32 1.442695, %v6641_v19  ;;  %v6744_v30 = vmul.f32 1.442695, %v6643_v9 }
0x1093   :  { %v6817_v17 = vadd.f32 %v14337_v7, %v6816_v50  ;;  %v6839_v2 = vadd.f32 %v14355_v39, %v6838_v57  ;;  %v14369_v18 = vpop.eup %8667  ;;  %v6794_v50 = vmul.f32 1.442695, %v6668_v35  ;;  %8689 = vpow2.f32 %v6776_v4 }
0x1094   :  { %v8670_v56 = vpop.eup %8669  ;;  %8691 = vpow2.f32 %v6780_v23  ;;  %v6645_v35 = vsub.f32 %v14043_v43, %v14217_v11  ;;  %v6647_v23 = vsub.f32 %v14047_v0, %v14217_v11 }
0x1095   :  { %v6818_v54 = vadd.f32 %v14347_v27, %v6817_v17  ;;  %v6840_v5 = vadd.f32 %v14361_v22, %v6839_v2  ;;  %v8672_v25 = vpop.eup %8671  ;;  %8693 = vpow2.f32 %v6794_v50  ;;  %v6651_v27 = vsub.f32 %v14055_v31, %v14217_v11 }
0x1096   :  { %v14377_v47 = vpop.eup %8673  ;;  %8695 = vpow2.f32 %v6736_v1  ;;  %v6887_v50 = vpack.c.bf16 %v8672_v25, %v8670_v56  ;;  %v6748_v9 = vmul.f32 1.442695, %v6645_v35  ;;  %v6669_v1 = vsub.f32 %v14150_v34, %v14217_v11 }
0x1097   :  { %v6819_v63 = vadd.f32 %v14274_v32, %v6818_v54  ;;  %v6841_v29 = vadd.f32 %v14365_v49, %v6840_v5  ;;  %v14381_v17 = vpop.eup %8675  ;;  %8697 = vpow2.f32 %v6740_v55  ;;  %v6653_v35 = vsub.f32 %v14059_v51, %v14217_v11 }
0x1098   :  { %v6889_v4 = vpack.c.bf16 %v14381_v17, %v14377_v47  ;;  %v8678_v54 = vpop.eup %8677  ;;  %8699 = vpow2.f32 %v6744_v30  ;;  %v6663_v34 = vsub.f32 %v14099_v28, %v14217_v11  ;;  %v6665_v51 = vsub.f32 %v14112_v44, %v14217_v11 }
0x1099   :  { %v6820_v57 = vadd.f32 %v14279_v10, %v6819_v63  ;;  %v6842_v52 = vadd.f32 %v14369_v18, %v6841_v29  ;;  %v6888_v63 = vpack.c.bf16 %v14305_v41, %v14270_v36  ;;  %v8680_v5 = vpop.eup %8679  ;;  %v6649_v29 = vsub.f32 %v14051_v62, %v14217_v11 }
0x109a   :  { %6906 = vmatprep.subr.bf16.mxu0 %v6889_v4  ;;  %v6667_v41 = vsub.f32 %v14124_v8, %v14217_v11  ;;  %v6886_v62 = vpack.c.bf16 %v14265_v26, %v14261_v15  ;;  %v6655_v8 = vsub.f32 %v14067_v42, %v14217_v11  ;;  %8701 = vpow2.f32 %v6748_v9 }
0x109b   :  { %v6821_v2 = vadd.f32 %v14285_v60, %v6820_v57  ;;  %v6843_v19 = vadd.f32 %v8678_v54, %v6842_v52  ;;  %v8682_v57 = vpop.eup %8681  ;;  %6907 = vmatpush1.bf16.msra.mxu0 %v6888_v63  ;;  %v6756_v55 = vmul.f32 1.442695, %v6649_v29  ;;  %v6760_v26 = vmul.f32 1.442695, %v6651_v27 }
0x109c   :  { %6908 = vmatprep.subr.bf16.mxu0 %v6887_v50  ;;  %v6885_v4 = vpack.c.bf16 %v8682_v57, %v8680_v5  ;;  %v14406_v63 = vpop.eup %8683  ;;  %v6796_v42 = vmul.f32 1.442695, %v6669_v1  ;;  %v6884_v28 = vpack.c.bf16 %v14256_v13, %v14252_v20  ;;  %v6883_v27 = vpack.c.bf16 %v8678_v54, %v14369_v18 }
0x109d   :  { %v6822_v43 = vadd.f32 %v14290_v37, %v6821_v2  ;;  %v6844_v36 = vadd.f32 %v8680_v5, %v6843_v19  ;;  %v6752_v2 = vmul.f32 1.442695, %v6647_v23  ;;  %v6657_v29 = vsub.f32 %v14075_v61, %v14217_v11 }
0x109e   :  { %v14414_v23 = vpop.eup %8685  ;;  %v6764_v44 = vmul.f32 1.442695, %v6653_v35  ;;  %v6784_v18 = vmul.f32 1.442695, %v6663_v34  ;;  %v6788_v54 = vmul.f32 1.442695, %v6665_v51  ;;  %v6882_v61 = vpack.c.bf16 %v14247_v21, %v14243_v48 }
0x109f   :  { %v6823_v0 = vadd.f32 %v14296_v45, %v6822_v43  ;;  %v6845_v31 = vadd.f32 %v8682_v57, %v6844_v36  ;;  %6909 = vmatpush1.bf16.msra.mxu0 %v6886_v62  ;;  %v14417_v5 = vpop.eup %8687  ;;  %v6792_v43 = vmul.f32 1.442695, %v6667_v41  ;;  %8703 = vpow2.f32 %v6752_v2 }
0x10a0   :  { %6910 = vmatprep.subr.bf16.mxu0 %v6885_v4  ;;  %v14423_v19 = vpop.eup %8689  ;;  %8705 = vpow2.f32 %v6756_v55  ;;  %v6881_v41 = vpack.c.bf16 %v14365_v49, %v14361_v22  ;;  %v6772_v1 = vmul.f32 1.442695, %v6657_v29  ;;  %v6880_v48 = vpack.c.bf16 %v14236_v58, %v14229_v14 }
0x10a1   :  { %v6824_v52 = vadd.f32 %v14301_v33, %v6823_v0  ;;  %v6846_v30 = vadd.f32 %v8670_v56, %v6845_v31  ;;  %v14427_v56 = vpop.eup %8691  ;;  %v6768_v0 = vmul.f32 1.442695, %v6655_v8  ;;  %8707 = vpow2.f32 %v6760_v26 }
0x10a2   :  { %v6901_v13 = vpack.c.bf16 %v14427_v56, %v14423_v19  ;;  %8709 = vpow2.f32 %v6792_v43  ;;  %v6879_v22 = vpack.c.bf16 %v14355_v39, %v14353_v59  ;;  %v6878_v31 = vpack.c.bf16 %v14222_v24, %v14213_v3 }
0x10a3   :  { %v6825_v15 = vadd.f32 %v14406_v63, %v6824_v52  ;;  %v6847_v57 = vadd.f32 %v8672_v25, %v6846_v30  ;;  %6911 = vmatpush1.bf16.msra.mxu0 %v6884_v28  ;;  %v8694_v25 = vpop.eup %8693  ;;  %8711 = vpow2.f32 %v6796_v42  ;;  %v6877_v35 = vpack.c.bf16 %v14343_v6, %v14333_v53  ;;  %v15613_v6 = vld [vmem:[#allocation17_spill] sm:$0xff] }
0x10a4   :  { %6912 = vmatprep.subr.bf16.mxu0 %v6883_v27  ;;  %8713 = vpow2.f32 %v6764_v44  ;;  %v6876_v59 = vpack.c.bf16 %v14206_v38, %v14199_v40  ;;  %v6874_v30 = vpack.c.bf16 %v15613_v6, %v14187_v12  ;;  %v6902_v27 = vpack.c.bf16 %v14414_v23, %v14406_v63 }
0x10a5   :  { %v6826_v50 = vadd.f32 %v14414_v23, %v6825_v15  ;;  %v6848_v20 = vadd.f32 %v14377_v47, %v6847_v57  ;;  %v14442_v47 = vpop.eup %8695  ;;  %8715 = vpow2.f32 %v6768_v0  ;;  %v6875_v15 = vpack.c.bf16 %v14324_v46, %v14321_v16 }
0x10a6   :  { %v14445_v62 = vpop.eup %8697  ;;  %8717 = vpow2.f32 %v6784_v18  ;;  %v15615_v63 = vpack.c.bf16 %v14290_v37, %v14285_v60  ;;  %v15619_v18 = vld [vmem:[#allocation77_spill] sm:$0xff] }
0x10a7   :  { %v6827_v9 = vadd.f32 %v14417_v5, %v6826_v50  ;;  %v6849_v36 = vadd.f32 %v14381_v17, %v6848_v20  ;;  %6913 = vmatpush1.bf16.msra.mxu0 %v6882_v61  ;;  %8719 = vpow2.f32 %v6788_v54  ;;  %v8700_v49 = vpop.eup %8699  ;;  %v6904_v50 = vpack.c.bf16 %v8694_v25, %v14417_v5  ;;  %v15620_v37 = vld [vmem:[#allocation137_spill] sm:$0xff]  ;;  %v15621_v61 = vld [vmem:[#allocation15_spill] sm:$0xff] }
0x10a8   :  { %6914 = vmatprep.subr.bf16.mxu0 %v6881_v41  ;;  %8721 = vpow2.f32 %v6772_v1  ;;  %v8702_v52 = vpop.eup %8701  ;;  %v15614_v5 = vpack.c.bf16 %v14301_v33, %v14296_v45  ;;  %v15618_v33 = vld [vmem:[#allocation82_spill] sm:$0xff]  ;;  %v6891_v60 = vpack.c.bf16 %v14445_v62, %v14442_v47  ;;  %v15624_v1 = vld [vmem:[#allocation125_spill] sm:$0xff] }
0x10a9   :  { %v14437_v11 = vadd.f32 %v8694_v25, %v6827_v9  ;;  %v6850_v2 = vadd.f32 %v14442_v47, %v6849_v36  ;;  %v6893_v45 = vpack.c.bf16 %v8702_v52, %v8700_v49  ;;  %v6892_v54 = vpack.c.bf16 %v15619_v18, %v15618_v33  ;;  %v6995_v47 = vld [vmem:[%s14545_s2] sm:$0xf]  ;;  %v15641_v33 = vld [vmem:[#allocation96_spill] sm:$0xff]  ;;  %s8797_s2 = smov [#allocation8]  }
0x10aa   :  { %v6890_v36 = vpack.c.bf16 %v15621_v61, %v15620_v37  ;;  %v15646_v61 = vld [vmem:[#allocation40_spill] sm:$0xff] }
0x10ab   :  { %v6851_v21 = vadd.f32 %v14445_v62, %v6850_v2  ;;  %6915 = vmatpush1.bf16.msra.mxu0 %v6880_v48  ;;  %v15627_v48 = vld [vmem:[#allocation131_spill] sm:$0xff]  ;;  %v6996_v62 = vpack.c.bf16 %v6995_v47, %v6995_v47  ;;  %v15658_v47 = vld [vmem:[#allocation84_spill] sm:$0xff] }
0x10ac   :  { %6916 = vmatprep.subr.bf16.mxu0 %v6879_v22  ;;  %v8704_v14 = vpop.eup %8703 }
0x10ad   :  { %v6852_v17 = vadd.f32 %v8700_v49, %v6851_v21  ;;  %v8706_v58 = vpop.eup %8705  ;;  %v15628_v21 = vld [vmem:[#allocation128_spill] sm:$0xff]  ;;  %v15630_v49 = vmov 0   ;;  %7228 = vmatmul.mubr.bf16.vlgmr.msra.gmra.mxu1 %v6996_v62 }
0x10ae   :  { %v8708_v34 = vpop.eup %8707  ;;  %v6895_v23 = vpack.c.bf16 %v8706_v58, %v8704_v14  ;;  %v15629_v22 = vpack.c.bf16 %v15627_v48, %v15628_v21  ;;  %v15655_v21 = vld [vmem:[#allocation80_spill] sm:$0xff] }
0x10af   :  { %v6853_v4 = vadd.f32 %v8702_v52, %v6852_v17  ;;  %6917 = vmatpush1.bf16.msra.mxu0 %v6878_v31  ;;  %v8710_v39 = vpop.eup %8709  ;;  %v7029_v17 = vld [vmem:[%s14546_s3] sm:$0xf]  ;;  %v6829_v52 = vrot.slane %v14437_v11, 4  ;;  %s7293_s3 = sshll.u32 %s8797_s2, 4  ;;  %s7294_s3 = int_to_ptr.vmem [resolvable:$true] %s7293_s3 }
0x10b0   :  { %6918 = vmatprep.subr.bf16.mxu0 %v6877_v35  ;;  %v8712_v26 = vpop.eup %8711  ;;  %7032 = vperm.xlu1 %7666, %v7029_v17   ;;  %v15659_v17 = vld [vmem:[#allocation22_spill] sm:$0xff]  ;;  %s8767_s27 = scalar_lea.vmem %s7294_s3, 256  ;;  %p8772_p11 = scmp.lt.s32.totalorder %s7294_s3, %s7294_s3 }
0x10b1   :  { %v6854_v8 = vadd.f32 %v8704_v14, %v6853_v4  ;;  %v8714_v3 = vpop.eup %8713  ;;  %v6905_v42 = vpack.c.bf16 %v8712_v26, %v8710_v39  ;;  %v6830_v4 = vadd.f32 %v6829_v52, %v14437_v11  ;;  %v15660_v52 = vpack.c.bf16 %v15658_v47, %v15659_v17  ;;  %p8768_p10 = scmp.ne.s32.totalorder %s7294_s3, %s8767_s27  ;;  %p8773_p12 = scmp.lt.s32.totalorder %s8767_s27, %s8767_s27 }
0x10b2   :  { %v8716_v53 = vpop.eup %8715  ;;  %v6897_v25 = vpack.c.bf16 %v8714_v3, %v8708_v34 }
0x10b3   :  { %v6855_v55 = vadd.f32 %v8706_v58, %v6854_v8  ;;  %6919 = vmatpush1.bf16.msra.mxu0 %v6876_v59  ;;  %v8718_v51 = vpop.eup %8717  ;;  %v6831_v14 = vrot.slane %v6830_v4, 2  ;;  %p8774_p13 = por %p8773_p12, %p8772_p11 }
0x10b4   :  { %6920 = vmatprep.subr.bf16.mxu0 %v6875_v15  ;;  %v8720_v28 = vpop.eup %8719 }
0x10b5   :  { %v6856_v24 = vadd.f32 %v8708_v34, %v6855_v55  ;;  %v8722_v38 = vpop.eup %8721  ;;  %v6903_v46 = vpack.c.bf16 %v8720_v28, %v8718_v51  ;;  %v6832_v8 = vadd.f32 %v6831_v14, %v6830_v4  ;;  %v15662_v4 = vld [vmem:[#allocation23_spill] sm:$0xff]  ;;  %v15664_v14 = vld [vmem:[#allocation26_spill] sm:$0xff]  ;;  %p8775_p0 = pnand %p8774_p13, %p8768_p10 }
0x10b6   :  { %v6899_v0 = vpack.c.bf16 %v8722_v38, %v8716_v53 }
0x10b7   :  { %v6857_v43 = vadd.f32 %v8714_v3, %v6856_v24  ;;  %6921 = vmatpush1.bf16.msra.mxu0 %v6874_v30  ;;  %v6833_v59 = vrot.slane %v6832_v8, 1 }
0x10b8   :  { %6922 = vmatprep.subr.bf16.mxu0 %v6905_v42 }
0x10b9   :  { %v6858_v40 = vadd.f32 %v8716_v53, %v6857_v43  ;;  %v6834_v55 = vadd.f32 %v6833_v59, %v6832_v8 }
0x10bb   :  { %v6859_v16 = vadd.f32 %v8722_v38, %v6858_v40  ;;  %6923 = vmatpush2.bf16.msra.mxu0 %v6904_v50  ;;  %8723 = vrcp.f32 %v6834_v55 }
0x10bc   :  { %6924 = vmatprep.subr.bf16.mxu0 %v6903_v46 }
0x10bd   :  { %v6860_v57 = vadd.f32 %v14423_v19, %v6859_v16  ;;  %v15616_v19 = vpack.c.bf16 %v14279_v10, %v14274_v32  ;;  %v15622_v32 = vld [vmem:[#allocation129_spill] sm:$0xff]  ;;  %v15623_v10 = vld [vmem:[#allocation154_spill] sm:$0xff] }
0x10be   :  { %v1105_v41 = vpack.c.bf16 %v15623_v10, %v15622_v32  ;;  %v15649_v10 = vld [vmem:[#allocation46_spill] sm:$0xff] }
0x10bf   :  { %v6861_v12 = vadd.f32 %v14427_v56, %v6860_v57  ;;  %6925 = vmatpush2.bf16.msra.mxu0 %v6902_v27  ;;  %v15617_v56 = vld [vmem:[#allocation106_spill] sm:$0xff] }
0x10c0   :  { %6926 = vmatprep.subr.bf16.mxu0 %v6901_v13  ;;  %v6894_v13 = vpack.c.bf16 %v15617_v56, %v14337_v7  ;;  %v15625_v7 = vld [vmem:[#allocation123_spill] sm:$0xff]  ;;  %v15638_v56 = vld [vmem:[#allocation30_spill] sm:$0xff] }
0x10c1   :  { %v6862_v29 = vadd.f32 %v8718_v51, %v6861_v12  ;;  %v15626_v2 = vpack.c.bf16 %v15624_v1, %v15625_v7  ;;  %v15652_v7 = vld [vmem:[#allocation104_spill] sm:$0xff] }
0x10c3   :  { %v6863_v44 = vadd.f32 %v8720_v28, %v6862_v29  ;;  %6927 = vmatpush2.bf16.msra.mxu0 %v15614_v5  ;;  %v15631_v5 = vld [vmem:[#allocation49_spill] sm:$0xff] }
0x10c4   :  { %6928 = vmatprep.subr.bf16.mxu0 %v6899_v0 }
0x10c5   :  { %v6864_v9 = vadd.f32 %v8710_v39, %v6863_v44 }
0x10c7   :  { %v6865_v20 = vadd.f32 %v8712_v26, %v6864_v9  ;;  %6929 = vmatpush2.bf16.msra.mxu0 %v15615_v63  ;;  %v15632_v9 = vld [vmem:[#allocation91_spill] sm:$0xff] }
0x10c8   :  { %6930 = vmatprep.subr.bf16.mxu0 %v6897_v25  ;;  %v8724_v43 = vpop.eup %8723  ;;  %v15634_v25 = vld [vmem:[#allocation95_spill] sm:$0xff] }
0x10c9   :  { %v6866_v31 = vrot.slane %v6865_v20, 4  ;;  %v15635_v63 = vld [vmem:[#allocation55_spill] sm:$0xff] }
0x10cb   :  { %6931 = vmatpush2.bf16.msra.mxu0 %v15616_v19  ;;  %v6867_v35 = vadd.f32 %v6866_v31, %v6865_v20  ;;  %v15633_v20 = vpack.c.bf16 %v15631_v5, %v15632_v9  ;;  %v15637_v19 = vld [vmem:[#allocation53_spill] sm:$0xff]  ;;  %v15661_v31 = vld [vmem:[#allocation24_spill] sm:$0xff] }
0x10cc   :  { %6932 = vmatprep.subr.bf16.mxu0 %v6895_v23  ;;  %v15636_v23 = vpack.c.bf16 %v15634_v25, %v15635_v63 }
0x10cd   :  { %v6868_v58 = vrot.slane %v6867_v35, 2 }
0x10cf   :  { %6933 = vmatpush2.bf16.msra.mxu0 %v6894_v13  ;;  %v6869_v34 = vadd.f32 %v6868_v58, %v6867_v35  ;;  %v15639_v13 = vpack.c.bf16 %v15637_v19, %v15638_v56  ;;  %v15663_v35 = vpack.c.bf16 %v15661_v31, %v15662_v4  ;;  %v15665_v58 = vld [vmem:[#allocation87_spill] sm:$0xff] }
0x10d0   :  { %6934 = vmatprep.subr.bf16.mxu0 %v6893_v45  ;;  %v15640_v45 = vld [vmem:[#allocation28_spill] sm:$0xff]  ;;  %v15666_v8 = vpack.c.bf16 %v15664_v14, %v15665_v58 }
0x10d1   :  { %v6870_v39 = vrot.slane %v6869_v34, 1  ;;  %v15642_v18 = vpack.c.bf16 %v15640_v45, %v15641_v33 }
0x10d3   :  { %6935 = vmatpush2.bf16.msra.mxu0 %v6892_v54  ;;  %v6871_v15 = vadd.f32 %v6870_v39, %v6869_v34  ;;  %v15643_v54 = vld [vmem:[#allocation37_spill] sm:$0xff] }
0x10d4   :  { %6936 = vmatprep.subr.bf16.mxu0 %v6891_v60  ;;  %v15644_v60 = vld [vmem:[#allocation42_spill] sm:$0xff] }
0x10d5   :  { %8725 = vrcp.f32 %v6871_v15  ;;  %v15645_v37 = vpack.c.bf16 %v15643_v54, %v15644_v60 }
0x10d7   :  { %6937 = vmatpush2.bf16.msra.mxu0 %v6890_v36  ;;  %v15647_v36 = vld [vmem:[#allocation44_spill] sm:$0xff] }
0x10d8   :  { %v15648_v32 = vpack.c.bf16 %v15646_v61, %v15647_v36 }
0x10da   :  { %6939 = vmatmul.mubr.bf16.vlgmr.msra.gmra.mxu0 %v15626_v2  ;;  %v15653_v2 = vld [vmem:[#allocation43_spill] sm:$0xff] }
0x10db   :  { %6948 = vmatprep.mubr.bf16.mxu0 %v1105_v41  ;;  %v15650_v41 = vld [vmem:[#allocation108_spill] sm:$0xff]  ;;  %v15654_v48 = vpack.c.bf16 %v15652_v7, %v15653_v2 }
0x10dc   :  { %v15651_v1 = vpack.c.bf16 %v15649_v10, %v15650_v41 }
0x10e2   :  { %6949 = vmatmul.mubr.bf16.gmra.mxu0 %v15629_v22  ;;  %v8726_v11 = vpop.eup %8725  ;;  %v15656_v22 = vld [vmem:[#allocation20_spill] sm:$0xff] }
0x10e3   :  { %7268 = vmatprep.mubr.bf16.mxu0 %v15630_v49  ;;  %v15657_v49 = vpack.c.bf16 %v15655_v21, %v15656_v22 }
0x112b   :  { %v7033_v55 = vpop.permute.xlu1 %7032 }
0x116d   :  { %v7229_v34 = vpop.f32.mrf.mxu1 }
0x116e   :  { %v7230_v15 = vadd.f32 %v7229_v34, %v7033_v55 }
0x116f   :  { %v7231_v59 = vpop.f32.mrf.mxu1 }
0x1171   :  { %v7233_v39 = vpop.f32.mrf.mxu1 }
0x119a   :  { %v6940_v26 = vpop.f32.mrf.mxu0 }
0x119b   :  { %v6959_v44 = vmul.f32 %v8724_v43, %v6940_v26  ;;  %v7232_v26 = vadd.f32 %v7231_v59, %v7033_v55 }
0x119c   :  { %v6942_v3 = vpop.f32.mrf.mxu0 }
0x119d   :  { %v6960_v46 = vmul.f32 %v8726_v11, %v6942_v3  ;;  %v7234_v3 = vpop.f32.mrf.mxu1 }
0x119e   :  { %v6944_v24 = vpop.f32.mrf.mxu0 }
0x119f   :  { %v6961_v27 = vmul.f32 %v8724_v43, %v6944_v24  ;;  %v7281_v24 = vcombine.low %v7230_v15, %v7232_v26 }
0x11a0   :  { %v6946_v53 = vpop.f32.mrf.mxu0 }
0x11a1   :  { %v6962_v40 = vmul.f32 %v8726_v11, %v6946_v53  ;;  %v7653_v0 = vpack.c.bf16 %v6961_v27, %v6959_v44  ;;  %7285 = vst [vmem:[#allocation8] sm:$0xff] %v7281_v24 }
0x11a2   :  { %v6950_v6 = vpop.f32.mrf.mxu0 }
0x11a3   :  { %v6963_v16 = vmul.f32 %v8724_v43, %v6950_v6  ;;  %v7654_v29 = vpack.c.bf16 %v6962_v40, %v6960_v46 }
0x11a4   :  { %v6952_v30 = vpop.f32.mrf.mxu0 }
0x11a5   :  { %v6964_v38 = vmul.f32 %v8726_v11, %v6952_v30 }
0x11a6   :  { %v6954_v51 = vpop.f32.mrf.mxu0 }
0x11a7   :  { %v6965_v42 = vmul.f32 %v8724_v43, %v6954_v51 }
0x11a8   :  { %v6956_v28 = vpop.f32.mrf.mxu0 }
0x11a9   :  { %v6966_v50 = vmul.f32 %v8726_v11, %v6956_v28  ;;  %v7657_v12 = vpack.c.bf16 %v6965_v42, %v6963_v16 }
0x11ab   :  { %v7658_v57 = vpack.c.bf16 %v6966_v50, %v6964_v38 }
0x11ad   :  { %7236 = vmatprep.subr.bf16.mxu0 %v7658_v57 }
0x11ae   :  { %7237 = vmatpush1.bf16.msra.mxu0 %v7657_v12 }
0x11af   :  { %7238 = vmatprep.subr.bf16.mxu0 %v7654_v29 }
0x11b2   :  { %7239 = vmatpush1.bf16.msra.mxu0 %v7653_v0 }
0x11b3   :  { %7240 = vmatprep.subr.bf16.mxu0 %v15633_v20 }
0x11b6   :  { %7241 = vmatpush1.bf16.msra.mxu0 %v15636_v23 }
0x11b7   :  { %7242 = vmatprep.subr.bf16.mxu0 %v15639_v13 }
0x11ba   :  { %7243 = vmatpush1.bf16.msra.mxu0 %v15642_v18 }
0x11bb   :  { %7244 = vmatprep.subr.bf16.mxu0 %v15645_v37 }
0x11be   :  { %7245 = vmatpush1.bf16.msra.mxu0 %v15648_v32 }
0x11bf   :  { %7246 = vmatprep.subr.bf16.mxu0 %v15651_v1 }
0x11c2   :  { %7247 = vmatpush1.bf16.msra.mxu0 %v15654_v48 }
0x11c3   :  { %7248 = vmatprep.subr.bf16.mxu0 %v15657_v49 }
0x11c6   :  { %7249 = vmatpush1.bf16.msra.mxu0 %v15660_v52 }
0x11c7   :  { %7250 = vmatprep.subr.bf16.mxu0 %v15663_v35 }
0x11ca   :  { %7251 = vmatpush1.bf16.msra.mxu0 %v15666_v8 }
0x11cd   :  { %7269 = vmatmul.mubr.bf16.vlgmr.msra.gmra.mxu0 %v6996_v62 }
0x128d   :  { %v7270_v53 = vpop.f32.mrf.mxu0 }
0x128e   :  { %v7271_v30 = vadd.f32 %v7270_v53, %v7033_v55 }
0x128f   :  { %v7272_v6 = vpop.f32.mrf.mxu0 }
0x1290   :  { %v7273_v51 = vadd.f32 %v7272_v6, %v7033_v55 }
0x1291   :  { %v7274_v43 = vpop.f32.mrf.mxu0 }
0x1292   :  { %v7282_v11 = vcombine.low %v7271_v30, %v7273_v51 }
0x1293   :  { %v7275_v42 = vpop.f32.mrf.mxu0 }
0x1294   :  { %7286 = vst [vmem:[#allocation8 + $0x8] sm:$0xff] %v7282_v11 }
0x1295   :  { %8778 = shalt.err (!%p8775_p0)
}
0x1296   :  { %7296 = dma.vmem_to_hbm [thread:$0]  %s7294_s3, 256, %s14547_s4, [#allocation5]  }
0x1297   :  { %8791 = dma.done.wait [#allocation5], 256  }
0x1298   :  { %8792 = vsyncadd [#allocation5], 4294967040 }
0x1299   :  { %7300 = vsyncpa [#allocation4], 1 }
0x129a   :  { %7301 = vsyncpa [#allocation7], 1 }
0x129b   :  { %7302 = vsyncpa [#allocation5], 1 }

</bundles_post_ra>
